<compile_context>
chip_gen: v7x
topology: tpu7x:2x2x1
jax: 0.10.0
libtpu: 0.0.40
codegen_flags: <defaults>
</compile_context>

<pallas_src>
import functools

import jax
import jax.numpy as jnp
from jax.experimental import pallas as pl
from jax.experimental.pallas import tpu as pltpu


# ------------------------------ fused kernel ---------------------------------
def nete_fused_kernel(u_ref, i_ref, s_ref, f_ref, seq_ref,
                      c2w1_ref, c2b1_ref, c2w2_ref, c2b2_ref,
                      c3w1_ref, c3b1_ref, c3w2_ref, c3b2_ref,
                      tw_ref, tb_ref,
                      wih_w_ref, wih_f_ref, whh_ref,
                      brz_w_ref, bni_w_ref, bnh_w_ref,
                      brz_f_ref, bni_f_ref, bnh_f_ref,
                      gww_ref, gbw_ref, gwf_ref, gbf_ref,
                      gwfw_ref, gwff_ref, gbwf_ref,
                      wp_ref, bp_ref,
                      logp_ref):
    dot = lambda a, b: jnp.dot(a, b, preferred_element_type=jnp.float32)

    u = u_ref[...]
    it = i_ref[...]
    s = s_ref[...]
    f = f_ref[...]
    B = u.shape[0]
    R = tb_ref.shape[-1]
    T = seq_ref.shape[0]

    # ---------------- encoder (runs once) ----------------
    # confounder2_layer: Linear(2E,H) -> Dropout(id) -> ReLU -> Linear(H,E)
    ui = jnp.concatenate([u, it], axis=1)                       # (B, 2E)
    h2 = jnp.maximum(dot(ui, c2w1_ref[...]) + c2b1_ref[...], 0.0)
    z2 = dot(h2, c2w2_ref[...]) + c2b2_ref[...]
    # confounder3_layer: Linear(3E,H) -> Dropout(id) -> ReLU -> Linear(H,E)
    uif = jnp.concatenate([u, it, f], axis=1)                   # (B, 3E)
    h3 = jnp.maximum(dot(uif, c3w1_ref[...]) + c3b1_ref[...], 0.0)
    z3 = dot(h3, c3w2_ref[...]) + c3b2_ref[...]
    # trans_linear on cat([u, i, s, z2, z3], 1), then tanh
    unit = jnp.concatenate([u, it, s, z2, z3], axis=1)          # (B, 5E)
    h0 = jnp.tanh(dot(unit, tw_ref[...]) + tb_ref[...])         # (B, R)

    # ------------- loop-invariant precomputation -------------
    wih_w = wih_w_ref[...]                                      # (E, 3R) [r|z|n]
    whh = whh_ref[...]                                          # (R, 6R) [wr|wz|wn|fr|fz|fn]
    wp = wp_ref[...]                                            # (R, V)
    gww = gww_ref[...]
    gwf = gwf_ref[...]

    bcast = lambda v: jnp.broadcast_to(v, (B, v.shape[-1]))     # hoist broadcasts
    brz_w = bcast(brz_w_ref[...])
    bni_w = bcast(bni_w_ref[...])
    bnh_w = bcast(bnh_w_ref[...])
    bnh_f = bcast(bnh_f_ref[...])
    gbw = bcast(gbw_ref[...])
    gbf = bcast(gbf_ref[...])
    gwfw = bcast(gwfw_ref[...])
    gwff = bcast(gwff_ref[...])
    gbwf = bcast(gbwf_ref[...])
    bp = bcast(bp_ref[...])

    # Feature-GRU input projection is constant over t: compute once, fold biases.
    xf_proj = dot(f, wih_f_ref[...])                            # (B, 3R)
    xf_rz = xf_proj[:, :2 * R] + bcast(brz_f_ref[...])          # (B, 2R)
    xf_n = xf_proj[:, 2 * R:] + bcast(bni_f_ref[...])           # (B, R)

    def step(t, h):
        x_w = seq_ref[t]                                        # (B, E) word emb at t
        xw_proj = dot(x_w, wih_w)                               # (B, 3R)
        hh = dot(h, whh)                                        # (B, 6R) shared recurrence

        # ---- word GRU (PyTorch gate order r, z, n) ----
        rz_w = jax.nn.sigmoid(xw_proj[:, :2 * R] + hh[:, :2 * R] + brz_w)
        r_w, z_w = rz_w[:, :R], rz_w[:, R:]
        n_w = jnp.tanh(xw_proj[:, 2 * R:] + bni_w + r_w * (hh[:, 2 * R:3 * R] + bnh_w))
        h_w = (1.0 - z_w) * n_w + z_w * h

        # ---- feature GRU (input side hoisted out of the loop) ----
        rz_f = jax.nn.sigmoid(xf_rz + hh[:, 3 * R:5 * R])
        r_f, z_f = rz_f[:, :R], rz_f[:, R:]
        n_f = jnp.tanh(xf_n + r_f * (hh[:, 5 * R:] + bnh_f))
        h_f = (1.0 - z_f) * n_f + z_f * h

        # ---- GFRU fusion gate ----
        sw = jnp.tanh(dot(h_w, gww) + gbw)
        sf = jnp.tanh(dot(h_f, gwf) + gbf)
        glogit = (jnp.sum(sw * gwfw, axis=1, keepdims=True)
                  + jnp.sum(sf * gwff, axis=1, keepdims=True)
                  + gbwf)
        gamma = jax.nn.sigmoid(glogit)                          # (B, 1)
        h_new = (1.0 - gamma) * h_w + gamma * h_f

        # ---- predict_linear + log_softmax over vocab ----
        decoded = dot(h_new, wp) + bp                           # (B, V)
        m = jnp.max(decoded, axis=1, keepdims=True)
        lse = m + jnp.log(jnp.sum(jnp.exp(decoded - m), axis=1, keepdims=True))
        logp_ref[t] = decoded - lse
        return h_new

    jax.lax.fori_loop(0, T, step, h0, unroll=True)


def nete_fused_pallas(u_emb, i_emb, s_emb, f_emb, seq_emb_tm, p):
    T, B, E = seq_emb_tm.shape
    V = p["bp"].shape[-1]

    args = (u_emb, i_emb, s_emb, f_emb, seq_emb_tm,
            p["c2w1"], p["c2b1"], p["c2w2"], p["c2b2"],
            p["c3w1"], p["c3b1"], p["c3w2"], p["c3b2"],
            p["tw"], p["tb"],
            p["wih_w"], p["wih_f"], p["whh"],
            p["brz_w"], p["bni_w"], p["bnh_w"],
            p["brz_f"], p["bni_f"], p["bnh_f"],
            p["gww"], p["gbw"], p["gwf"], p["gbf"],
            p["gwfw"], p["gwff"], p["gbwf"],
            p["wp"], p["bp"])

    def full(shape):
        nd = len(shape)
        return pl.BlockSpec(shape, lambda i, _nd=nd: (0,) * _nd)

    return pl.pallas_call(
        nete_fused_kernel,
        out_shape=jax.ShapeDtypeStruct((T, B, V), jnp.float32),
        grid_spec=pltpu.PrefetchScalarGridSpec(
            num_scalar_prefetch=0,
            grid=(1,),
            in_specs=[full(a.shape) for a in args],
            out_specs=full((T, B, V)),
        ),
        compiler_params=pltpu.CompilerParams(
            dimension_semantics=("arbitrary",)),
    )(*args)


# ------------------------------- wrapper --------------------------------------
def nete_user_forward(params, user, item, sentiment_index, seq, fea):
    """Mirrors NETE_USER.forward (eval mode: dropout = identity)."""
    # embedding lookups (data-dependent gathers; done in XLA glue)
    u_emb = params["user_emb"][user]                     # (B, E)
    i_emb = params["item_emb"][item]                     # (B, E)
    s_emb = params["sent_emb"][sentiment_index]          # (B, E)
    f_emb = params["word_emb"][fea[:, 0]]                # (B, E)  squeeze of (B,1,E)
    seq_emb_tm = jnp.transpose(params["word_emb"][seq], (1, 0, 2))   # (T, B, E)

    logp_tm = nete_fused_pallas(u_emb, i_emb, s_emb, f_emb, seq_emb_tm, params)
    # PyTorch convention (B, T, V); cheap at demo sizes.
    return jnp.transpose(logp_tm, (1, 0, 2))


# --------------------------- parameter construction --------------------------
def make_params(key, *, nuser, nitem, ntoken, nfeature, nsentiment,
                emsize, rnn_dim, hidden_size):
    E, R, H, V = emsize, rnn_dim, hidden_size, ntoken
    initrange = 0.1
    keys = iter(jax.random.split(key, 64))

    def uni(shape):
        return jax.random.uniform(next(keys), shape, jnp.float32,
                                  -initrange, initrange)

    zeros = lambda shape: jnp.zeros(shape, jnp.float32)

    # per-gate GRU weights (PyTorch gate order r, z, n), fused below
    wih_w_g = [uni((E, R)) for _ in range(3)]
    whh_w_g = [uni((R, R)) for _ in range(3)]
    wih_f_g = [uni((E, R)) for _ in range(3)]
    whh_f_g = [uni((R, R)) for _ in range(3)]
    bih_w = [zeros((1, R)) for _ in range(3)]
    bhh_w = [zeros((1, R)) for _ in range(3)]
    bih_f = [zeros((1, R)) for _ in range(3)]
    bhh_f = [zeros((1, R)) for _ in range(3)]

    params = {
        # embedding tables
        "user_emb": uni((nuser, E)),
        "item_emb": uni((nitem, E)),
        "word_emb": uni((ntoken, E)),
        "sent_emb": uni((nsentiment, E)),
        # confounder2_layer: Linear(2E,H), Linear(H,E)
        "c2w1": uni((2 * E, H)), "c2b1": zeros((1, H)),
        "c2w2": uni((H, E)),     "c2b2": zeros((1, E)),
        # confounder3_layer: Linear(3E,H), Linear(H,E)
        "c3w1": uni((3 * E, H)), "c3b1": zeros((1, H)),
        "c3w2": uni((H, E)),     "c3b2": zeros((1, E)),
        # trans_linear: Linear(5E, R)
        "tw": uni((5 * E, R)), "tb": zeros((1, R)),
        # fused GRU input weights: (E, 3R) with column blocks [r | z | n]
        "wih_w": jnp.concatenate(wih_w_g, axis=1),
        "wih_f": jnp.concatenate(wih_f_g, axis=1),
        # shared recurrence: (R, 6R) with blocks [w_r|w_z|w_n|f_r|f_z|f_n]
        "whh": jnp.concatenate(whh_w_g + whh_f_g, axis=1),
        # folded biases: (b_ir+b_hr | b_iz+b_hz); n-gate input/hidden kept split
        "brz_w": jnp.concatenate([bih_w[0] + bhh_w[0], bih_w[1] + bhh_w[1]], axis=1),
        "bni_w": bih_w[2], "bnh_w": bhh_w[2],
        "brz_f": jnp.concatenate([bih_f[0] + bhh_f[0], bih_f[1] + bhh_f[1]], axis=1),
        "bni_f": bih_f[2], "bnh_f": bhh_f[2],
        # GFRU: layer_w, layer_f (R->R), layer_w_f (2R->1, split into halves)
        "gww": uni((R, R)), "gbw": zeros((1, R)),
        "gwf": uni((R, R)), "gbf": zeros((1, R)),
        "gwfw": uni((1, R)), "gwff": uni((1, R)), "gbwf": zeros((1, 1)),
        # predict_linear: Linear(R, ntoken)
        "wp": uni((R, V)), "bp": zeros((1, V)),
    }
    return params


# ---------------------------------- main --------------------------------------
if __name__ == "__main__":
    # Small, module-consistent shapes chosen vreg/MXU aligned:
    # B multiple of 8 (sublane), rnn_dim/hidden/vocab multiples of 128 (lane).
    nuser, nitem, ntoken, nfeature, nsentiment = 16, 16, 256, 8, 2
    emsize, rnn_dim, hidden_size = 32, 128, 128
    B, T = 8, 8

    root = jax.random.PRNGKey(0)
    kp, ku, ki, ks, kq, kf = jax.random.split(root, 6)

    params = make_params(kp, nuser=nuser, nitem=nitem, ntoken=ntoken,
                         nfeature=nfeature, nsentiment=nsentiment,
                         emsize=emsize, rnn_dim=rnn_dim,
                         hidden_size=hidden_size)

    user = jax.random.randint(ku, (B,), 0, nuser, dtype=jnp.int32)
    item = jax.random.randint(ki, (B,), 0, nitem, dtype=jnp.int32)
    sentiment_index = jax.random.randint(ks, (B,), 0, nsentiment, dtype=jnp.int32)
    seq = jax.random.randint(kq, (B, T), 0, ntoken, dtype=jnp.int32)
    fea = jax.random.randint(kf, (B, 1), 0, ntoken, dtype=jnp.int32)

    fwd = jax.jit(functools.partial(nete_user_forward, params))
    total_word_prob = fwd(user, item, sentiment_index, seq, fea)
    jax.block_until_ready(total_word_prob)

    assert total_word_prob.shape == (B, T, ntoken)
    assert bool(jnp.all(jnp.isfinite(total_word_prob)))
    print("KERNEL_OK")
</pallas_src>

<mosaic_0001>
module attributes {stable_mosaic.version = 11 : i64} {
  func.func @nete_fused_kernel(%arg0: i32, %arg1: memref<8x32xf32, #tpu.memory_space<vmem>>, %arg2: memref<8x32xf32, #tpu.memory_space<vmem>>, %arg3: memref<8x32xf32, #tpu.memory_space<vmem>>, %arg4: memref<8x32xf32, #tpu.memory_space<vmem>>, %arg5: memref<8x8x32xf32, #tpu.memory_space<vmem>>, %arg6: memref<64x128xf32, #tpu.memory_space<vmem>>, %arg7: memref<1x128xf32, #tpu.memory_space<vmem>>, %arg8: memref<128x32xf32, #tpu.memory_space<vmem>>, %arg9: memref<1x32xf32, #tpu.memory_space<vmem>>, %arg10: memref<96x128xf32, #tpu.memory_space<vmem>>, %arg11: memref<1x128xf32, #tpu.memory_space<vmem>>, %arg12: memref<128x32xf32, #tpu.memory_space<vmem>>, %arg13: memref<1x32xf32, #tpu.memory_space<vmem>>, %arg14: memref<160x128xf32, #tpu.memory_space<vmem>>, %arg15: memref<1x128xf32, #tpu.memory_space<vmem>>, %arg16: memref<32x384xf32, #tpu.memory_space<vmem>>, %arg17: memref<32x384xf32, #tpu.memory_space<vmem>>, %arg18: memref<128x768xf32, #tpu.memory_space<vmem>>, %arg19: memref<1x256xf32, #tpu.memory_space<vmem>>, %arg20: memref<1x128xf32, #tpu.memory_space<vmem>>, %arg21: memref<1x128xf32, #tpu.memory_space<vmem>>, %arg22: memref<1x256xf32, #tpu.memory_space<vmem>>, %arg23: memref<1x128xf32, #tpu.memory_space<vmem>>, %arg24: memref<1x128xf32, #tpu.memory_space<vmem>>, %arg25: memref<128x128xf32, #tpu.memory_space<vmem>>, %arg26: memref<1x128xf32, #tpu.memory_space<vmem>>, %arg27: memref<128x128xf32, #tpu.memory_space<vmem>>, %arg28: memref<1x128xf32, #tpu.memory_space<vmem>>, %arg29: memref<1x128xf32, #tpu.memory_space<vmem>>, %arg30: memref<1x128xf32, #tpu.memory_space<vmem>>, %arg31: memref<1x1xf32, #tpu.memory_space<vmem>>, %arg32: memref<128x256xf32, #tpu.memory_space<vmem>>, %arg33: memref<1x256xf32, #tpu.memory_space<vmem>>, %arg34: memref<8x8x256xf32, #tpu.memory_space<vmem>>) attributes {dimension_semantics = [#tpu.dimension_semantics<arbitrary>], iteration_bounds = array<i64: 1>, scalar_prefetch = 0 : i64, scratch_operands = 0 : i64, tpu.core_type = #tpu.core_type<tc>, window_params = [{pipeline_mode = #tpu.pipeline_mode<synchronous>, transform_indices = @transform_0, window_bounds = array<i64: 8, 32>}, {pipeline_mode = #tpu.pipeline_mode<synchronous>, transform_indices = @transform_1, window_bounds = array<i64: 8, 32>}, {pipeline_mode = #tpu.pipeline_mode<synchronous>, transform_indices = @transform_2, window_bounds = array<i64: 8, 32>}, {pipeline_mode = #tpu.pipeline_mode<synchronous>, transform_indices = @transform_3, window_bounds = array<i64: 8, 32>}, {pipeline_mode = #tpu.pipeline_mode<synchronous>, transform_indices = @transform_4, window_bounds = array<i64: 8, 8, 32>}, {pipeline_mode = #tpu.pipeline_mode<synchronous>, transform_indices = @transform_5, window_bounds = array<i64: 64, 128>}, {pipeline_mode = #tpu.pipeline_mode<synchronous>, transform_indices = @transform_6, window_bounds = array<i64: 1, 128>}, {pipeline_mode = #tpu.pipeline_mode<synchronous>, transform_indices = @transform_7, window_bounds = array<i64: 128, 32>}, {pipeline_mode = #tpu.pipeline_mode<synchronous>, transform_indices = @transform_8, window_bounds = array<i64: 1, 32>}, {pipeline_mode = #tpu.pipeline_mode<synchronous>, transform_indices = @transform_9, window_bounds = array<i64: 96, 128>}, {pipeline_mode = #tpu.pipeline_mode<synchronous>, transform_indices = @transform_10, window_bounds = array<i64: 1, 128>}, {pipeline_mode = #tpu.pipeline_mode<synchronous>, transform_indices = @transform_11, window_bounds = array<i64: 128, 32>}, {pipeline_mode = #tpu.pipeline_mode<synchronous>, transform_indices = @transform_12, window_bounds = array<i64: 1, 32>}, {pipeline_mode = #tpu.pipeline_mode<synchronous>, transform_indices = @transform_13, window_bounds = array<i64: 160, 128>}, {pipeline_mode = #tpu.pipeline_mode<synchronous>, transform_indices = @transform_14, window_bounds = array<i64: 1, 128>}, {pipeline_mode = #tpu.pipeline_mode<synchronous>, transform_indices = @transform_15, window_bounds = array<i64: 32, 384>}, {pipeline_mode = #tpu.pipeline_mode<synchronous>, transform_indices = @transform_16, window_bounds = array<i64: 32, 384>}, {pipeline_mode = #tpu.pipeline_mode<synchronous>, transform_indices = @transform_17, window_bounds = array<i64: 128, 768>}, {pipeline_mode = #tpu.pipeline_mode<synchronous>, transform_indices = @transform_18, window_bounds = array<i64: 1, 256>}, {pipeline_mode = #tpu.pipeline_mode<synchronous>, transform_indices = @transform_19, window_bounds = array<i64: 1, 128>}, {pipeline_mode = #tpu.pipeline_mode<synchronous>, transform_indices = @transform_20, window_bounds = array<i64: 1, 128>}, {pipeline_mode = #tpu.pipeline_mode<synchronous>, transform_indices = @transform_21, window_bounds = array<i64: 1, 256>}, {pipeline_mode = #tpu.pipeline_mode<synchronous>, transform_indices = @transform_22, window_bounds = array<i64: 1, 128>}, {pipeline_mode = #tpu.pipeline_mode<synchronous>, transform_indices = @transform_23, window_bounds = array<i64: 1, 128>}, {pipeline_mode = #tpu.pipeline_mode<synchronous>, transform_indices = @transform_24, window_bounds = array<i64: 128, 128>}, {pipeline_mode = #tpu.pipeline_mode<synchronous>, transform_indices = @transform_25, window_bounds = array<i64: 1, 128>}, {pipeline_mode = #tpu.pipeline_mode<synchronous>, transform_indices = @transform_26, window_bounds = array<i64: 128, 128>}, {pipeline_mode = #tpu.pipeline_mode<synchronous>, transform_indices = @transform_27, window_bounds = array<i64: 1, 128>}, {pipeline_mode = #tpu.pipeline_mode<synchronous>, transform_indices = @transform_28, window_bounds = array<i64: 1, 128>}, {pipeline_mode = #tpu.pipeline_mode<synchronous>, transform_indices = @transform_29, window_bounds = array<i64: 1, 128>}, {pipeline_mode = #tpu.pipeline_mode<synchronous>, transform_indices = @transform_30, window_bounds = array<i64: 1, 1>}, {pipeline_mode = #tpu.pipeline_mode<synchronous>, transform_indices = @transform_31, window_bounds = array<i64: 128, 256>}, {pipeline_mode = #tpu.pipeline_mode<synchronous>, transform_indices = @transform_32, window_bounds = array<i64: 1, 256>}, {pipeline_mode = #tpu.pipeline_mode<synchronous>, transform_indices = @transform_33, window_bounds = array<i64: 8, 8, 256>}]} {
    %c0 = arith.constant 0 : index
    %c0_0 = arith.constant 0 : index
    %0 = vector.load %arg1[%c0, %c0_0] : memref<8x32xf32, #tpu.memory_space<vmem>>, vector<8x32xf32>
    %c0_1 = arith.constant 0 : index
    %c0_2 = arith.constant 0 : index
    %1 = vector.load %arg2[%c0_1, %c0_2] : memref<8x32xf32, #tpu.memory_space<vmem>>, vector<8x32xf32>
    %c0_3 = arith.constant 0 : index
    %c0_4 = arith.constant 0 : index
    %2 = vector.load %arg3[%c0_3, %c0_4] : memref<8x32xf32, #tpu.memory_space<vmem>>, vector<8x32xf32>
    %c0_5 = arith.constant 0 : index
    %c0_6 = arith.constant 0 : index
    %3 = vector.load %arg4[%c0_5, %c0_6] : memref<8x32xf32, #tpu.memory_space<vmem>>, vector<8x32xf32>
    %4 = tpu.concatenate %0, %1 in 1 : vector<8x32xf32>, vector<8x32xf32> -> vector<8x64xf32>
    %c0_7 = arith.constant 0 : index
    %c0_8 = arith.constant 0 : index
    %5 = vector.load %arg6[%c0_7, %c0_8] : memref<64x128xf32, #tpu.memory_space<vmem>>, vector<64x128xf32>
    %cst = arith.constant dense<0.000000e+00> : vector<8x128xf32>
    %6 = tpu.matmul %4, %5, %cst {dimension_numbers = #tpu.dot_dimension_numbers<[1], [0], [0], [1], [0, 0, 1, 1], [], []>} : vector<8x64xf32>, vector<64x128xf32>, vector<8x128xf32> -> vector<8x128xf32>
    %c0_9 = arith.constant 0 : index
    %c0_10 = arith.constant 0 : index
    %7 = vector.load %arg7[%c0_9, %c0_10] : memref<1x128xf32, #tpu.memory_space<vmem>>, vector<1x128xf32>
    %8 = vector.broadcast %7 : vector<1x128xf32> to vector<8x128xf32>
    %9 = arith.addf %6, %8 : vector<8x128xf32>
    %cst_11 = arith.constant 0.000000e+00 : f32
    %10 = vector.broadcast %cst_11 : f32 to vector<8x128xf32>
    %11 = arith.maximumf %9, %10 : vector<8x128xf32>
    %c0_12 = arith.constant 0 : index
    %c0_13 = arith.constant 0 : index
    %12 = vector.load %arg8[%c0_12, %c0_13] : memref<128x32xf32, #tpu.memory_space<vmem>>, vector<128x32xf32>
    %cst_14 = arith.constant dense<0.000000e+00> : vector<8x32xf32>
    %13 = tpu.matmul %11, %12, %cst_14 {dimension_numbers = #tpu.dot_dimension_numbers<[1], [0], [0], [1], [0, 0, 1, 1], [], []>} : vector<8x128xf32>, vector<128x32xf32>, vector<8x32xf32> -> vector<8x32xf32>
    %c0_15 = arith.constant 0 : index
    %c0_16 = arith.constant 0 : index
    %14 = vector.load %arg9[%c0_15, %c0_16] : memref<1x32xf32, #tpu.memory_space<vmem>>, vector<1x32xf32>
    %15 = vector.broadcast %14 : vector<1x32xf32> to vector<8x32xf32>
    %16 = arith.addf %13, %15 : vector<8x32xf32>
    %17 = tpu.concatenate %0, %1, %3 in 1 : vector<8x32xf32>, vector<8x32xf32>, vector<8x32xf32> -> vector<8x96xf32>
    %c0_17 = arith.constant 0 : index
    %c0_18 = arith.constant 0 : index
    %18 = vector.load %arg10[%c0_17, %c0_18] : memref<96x128xf32, #tpu.memory_space<vmem>>, vector<96x128xf32>
    %cst_19 = arith.constant dense<0.000000e+00> : vector<8x128xf32>
    %19 = tpu.matmul %17, %18, %cst_19 {dimension_numbers = #tpu.dot_dimension_numbers<[1], [0], [0], [1], [0, 0, 1, 1], [], []>} : vector<8x96xf32>, vector<96x128xf32>, vector<8x128xf32> -> vector<8x128xf32>
    %c0_20 = arith.constant 0 : index
    %c0_21 = arith.constant 0 : index
    %20 = vector.load %arg11[%c0_20, %c0_21] : memref<1x128xf32, #tpu.memory_space<vmem>>, vector<1x128xf32>
    %21 = vector.broadcast %20 : vector<1x128xf32> to vector<8x128xf32>
    %22 = arith.addf %19, %21 : vector<8x128xf32>
    %cst_22 = arith.constant 0.000000e+00 : f32
    %23 = vector.broadcast %cst_22 : f32 to vector<8x128xf32>
    %24 = arith.maximumf %22, %23 : vector<8x128xf32>
    %c0_23 = arith.constant 0 : index
    %c0_24 = arith.constant 0 : index
    %25 = vector.load %arg12[%c0_23, %c0_24] : memref<128x32xf32, #tpu.memory_space<vmem>>, vector<128x32xf32>
    %cst_25 = arith.constant dense<0.000000e+00> : vector<8x32xf32>
    %26 = tpu.matmul %24, %25, %cst_25 {dimension_numbers = #tpu.dot_dimension_numbers<[1], [0], [0], [1], [0, 0, 1, 1], [], []>} : vector<8x128xf32>, vector<128x32xf32>, vector<8x32xf32> -> vector<8x32xf32>
    %c0_26 = arith.constant 0 : index
    %c0_27 = arith.constant 0 : index
    %27 = vector.load %arg13[%c0_26, %c0_27] : memref<1x32xf32, #tpu.memory_space<vmem>>, vector<1x32xf32>
    %28 = vector.broadcast %27 : vector<1x32xf32> to vector<8x32xf32>
    %29 = arith.addf %26, %28 : vector<8x32xf32>
    %30 = tpu.concatenate %0, %1, %2, %16, %29 in 1 : vector<8x32xf32>, vector<8x32xf32>, vector<8x32xf32>, vector<8x32xf32>, vector<8x32xf32> -> vector<8x160xf32>
    %c0_28 = arith.constant 0 : index
    %c0_29 = arith.constant 0 : index
    %31 = vector.load %arg14[%c0_28, %c0_29] : memref<160x128xf32, #tpu.memory_space<vmem>>, vector<160x128xf32>
    %cst_30 = arith.constant dense<0.000000e+00> : vector<8x128xf32>
    %32 = tpu.matmul %30, %31, %cst_30 {dimension_numbers = #tpu.dot_dimension_numbers<[1], [0], [0], [1], [0, 0, 1, 1], [], []>} : vector<8x160xf32>, vector<160x128xf32>, vector<8x128xf32> -> vector<8x128xf32>
    %c0_31 = arith.constant 0 : index
    %c0_32 = arith.constant 0 : index
    %33 = vector.load %arg15[%c0_31, %c0_32] : memref<1x128xf32, #tpu.memory_space<vmem>>, vector<1x128xf32>
    %34 = vector.broadcast %33 : vector<1x128xf32> to vector<8x128xf32>
    %35 = arith.addf %32, %34 : vector<8x128xf32>
    %36 = math.tanh %35 : vector<8x128xf32>
    %c0_33 = arith.constant 0 : index
    %c0_34 = arith.constant 0 : index
    %37 = vector.load %arg16[%c0_33, %c0_34] : memref<32x384xf32, #tpu.memory_space<vmem>>, vector<32x384xf32>
    %c0_35 = arith.constant 0 : index
    %c0_36 = arith.constant 0 : index
    %38 = vector.load %arg18[%c0_35, %c0_36] : memref<128x768xf32, #tpu.memory_space<vmem>>, vector<128x768xf32>
    %c0_37 = arith.constant 0 : index
    %c0_38 = arith.constant 0 : index
    %39 = vector.load %arg32[%c0_37, %c0_38] : memref<128x256xf32, #tpu.memory_space<vmem>>, vector<128x256xf32>
    %c0_39 = arith.constant 0 : index
    %c0_40 = arith.constant 0 : index
    %40 = vector.load %arg25[%c0_39, %c0_40] : memref<128x128xf32, #tpu.memory_space<vmem>>, vector<128x128xf32>
    %c0_41 = arith.constant 0 : index
    %c0_42 = arith.constant 0 : index
    %41 = vector.load %arg27[%c0_41, %c0_42] : memref<128x128xf32, #tpu.memory_space<vmem>>, vector<128x128xf32>
    %c0_43 = arith.constant 0 : index
    %c0_44 = arith.constant 0 : index
    %42 = vector.load %arg19[%c0_43, %c0_44] : memref<1x256xf32, #tpu.memory_space<vmem>>, vector<1x256xf32>
    %43 = vector.shape_cast %42 : vector<1x256xf32> to vector<1x256xf32>
    %44 = vector.broadcast %43 : vector<1x256xf32> to vector<8x256xf32>
    %c0_45 = arith.constant 0 : index
    %c0_46 = arith.constant 0 : index
    %45 = vector.load %arg20[%c0_45, %c0_46] : memref<1x128xf32, #tpu.memory_space<vmem>>, vector<1x128xf32>
    %46 = vector.shape_cast %45 : vector<1x128xf32> to vector<1x128xf32>
    %47 = vector.broadcast %46 : vector<1x128xf32> to vector<8x128xf32>
    %c0_47 = arith.constant 0 : index
    %c0_48 = arith.constant 0 : index
    %48 = vector.load %arg21[%c0_47, %c0_48] : memref<1x128xf32, #tpu.memory_space<vmem>>, vector<1x128xf32>
    %49 = vector.shape_cast %48 : vector<1x128xf32> to vector<1x128xf32>
    %50 = vector.broadcast %49 : vector<1x128xf32> to vector<8x128xf32>
    %c0_49 = arith.constant 0 : index
    %c0_50 = arith.constant 0 : index
    %51 = vector.load %arg24[%c0_49, %c0_50] : memref<1x128xf32, #tpu.memory_space<vmem>>, vector<1x128xf32>
    %52 = vector.shape_cast %51 : vector<1x128xf32> to vector<1x128xf32>
    %53 = vector.broadcast %52 : vector<1x128xf32> to vector<8x128xf32>
    %c0_51 = arith.constant 0 : index
    %c0_52 = arith.constant 0 : index
    %54 = vector.load %arg26[%c0_51, %c0_52] : memref<1x128xf32, #tpu.memory_space<vmem>>, vector<1x128xf32>
    %55 = vector.shape_cast %54 : vector<1x128xf32> to vector<1x128xf32>
    %56 = vector.broadcast %55 : vector<1x128xf32> to vector<8x128xf32>
    %c0_53 = arith.constant 0 : index
    %c0_54 = arith.constant 0 : index
    %57 = vector.load %arg28[%c0_53, %c0_54] : memref<1x128xf32, #tpu.memory_space<vmem>>, vector<1x128xf32>
    %58 = vector.shape_cast %57 : vector<1x128xf32> to vector<1x128xf32>
    %59 = vector.broadcast %58 : vector<1x128xf32> to vector<8x128xf32>
    %c0_55 = arith.constant 0 : index
    %c0_56 = arith.constant 0 : index
    %60 = vector.load %arg29[%c0_55, %c0_56] : memref<1x128xf32, #tpu.memory_space<vmem>>, vector<1x128xf32>
    %61 = vector.shape_cast %60 : vector<1x128xf32> to vector<1x128xf32>
    %62 = vector.broadcast %61 : vector<1x128xf32> to vector<8x128xf32>
    %c0_57 = arith.constant 0 : index
    %c0_58 = arith.constant 0 : index
    %63 = vector.load %arg30[%c0_57, %c0_58] : memref<1x128xf32, #tpu.memory_space<vmem>>, vector<1x128xf32>
    %64 = vector.shape_cast %63 : vector<1x128xf32> to vector<1x128xf32>
    %65 = vector.broadcast %64 : vector<1x128xf32> to vector<8x128xf32>
    %c0_59 = arith.constant 0 : index
    %c0_60 = arith.constant 0 : index
    %66 = vector.load %arg31[%c0_59, %c0_60] : memref<1x1xf32, #tpu.memory_space<vmem>>, vector<1x1xf32>
    %67 = vector.shape_cast %66 : vector<1x1xf32> to vector<1x1xf32>
    %68 = vector.broadcast %67 : vector<1x1xf32> to vector<8x1xf32>
    %c0_61 = arith.constant 0 : index
    %c0_62 = arith.constant 0 : index
    %69 = vector.load %arg33[%c0_61, %c0_62] : memref<1x256xf32, #tpu.memory_space<vmem>>, vector<1x256xf32>
    %70 = vector.shape_cast %69 : vector<1x256xf32> to vector<1x256xf32>
    %71 = vector.broadcast %70 : vector<1x256xf32> to vector<8x256xf32>
    %c0_63 = arith.constant 0 : index
    %c0_64 = arith.constant 0 : index
    %72 = vector.load %arg17[%c0_63, %c0_64] : memref<32x384xf32, #tpu.memory_space<vmem>>, vector<32x384xf32>
    %cst_65 = arith.constant dense<0.000000e+00> : vector<8x384xf32>
    %73 = tpu.matmul %3, %72, %cst_65 {dimension_numbers = #tpu.dot_dimension_numbers<[1], [0], [0], [1], [0, 0, 1, 1], [], []>} : vector<8x32xf32>, vector<32x384xf32>, vector<8x384xf32> -> vector<8x384xf32>
    %74 = vector.extract_strided_slice %73 {offsets = [0, 0], sizes = [8, 256], strides = [1, 1]} : vector<8x384xf32> to vector<8x256xf32>
    %c0_66 = arith.constant 0 : index
    %c0_67 = arith.constant 0 : index
    %75 = vector.load %arg22[%c0_66, %c0_67] : memref<1x256xf32, #tpu.memory_space<vmem>>, vector<1x256xf32>
    %76 = vector.shape_cast %75 : vector<1x256xf32> to vector<1x256xf32>
    %77 = vector.broadcast %76 : vector<1x256xf32> to vector<8x256xf32>
    %78 = arith.addf %74, %77 : vector<8x256xf32>
    %79 = vector.extract_strided_slice %73 {offsets = [0, 256], sizes = [8, 128], strides = [1, 1]} : vector<8x384xf32> to vector<8x128xf32>
    %c0_68 = arith.constant 0 : index
    %c0_69 = arith.constant 0 : index
    %80 = vector.load %arg23[%c0_68, %c0_69] : memref<1x128xf32, #tpu.memory_space<vmem>>, vector<1x128xf32>
    %81 = vector.shape_cast %80 : vector<1x128xf32> to vector<1x128xf32>
    %82 = vector.broadcast %81 : vector<1x128xf32> to vector<8x128xf32>
    %83 = arith.addf %79, %82 : vector<8x128xf32>
    %c0_i32 = arith.constant 0 : i32
    %84 = arith.index_cast %c0_i32 : i32 to index
    %c0_70 = arith.constant 0 : index
    %c0_71 = arith.constant 0 : index
    %85 = vector.load %arg5[%84, %c0_70, %c0_71] : memref<8x8x32xf32, #tpu.memory_space<vmem>>, vector<1x8x32xf32>
    %86 = vector.shape_cast %85 : vector<1x8x32xf32> to vector<8x32xf32>
    %cst_72 = arith.constant dense<0.000000e+00> : vector<8x384xf32>
    %87 = tpu.matmul %86, %37, %cst_72 {dimension_numbers = #tpu.dot_dimension_numbers<[1], [0], [0], [1], [0, 0, 1, 1], [], []>} : vector<8x32xf32>, vector<32x384xf32>, vector<8x384xf32> -> vector<8x384xf32>
    %cst_73 = arith.constant dense<0.000000e+00> : vector<8x768xf32>
    %88 = tpu.matmul %36, %38, %cst_73 {dimension_numbers = #tpu.dot_dimension_numbers<[1], [0], [0], [1], [0, 0, 1, 1], [], []>} : vector<8x128xf32>, vector<128x768xf32>, vector<8x768xf32> -> vector<8x768xf32>
    %89 = vector.extract_strided_slice %87 {offsets = [0, 0], sizes = [8, 256], strides = [1, 1]} : vector<8x384xf32> to vector<8x256xf32>
    %90 = vector.extract_strided_slice %88 {offsets = [0, 0], sizes = [8, 256], strides = [1, 1]} : vector<8x768xf32> to vector<8x256xf32>
    %91 = arith.addf %89, %90 : vector<8x256xf32>
    %92 = arith.addf %91, %44 : vector<8x256xf32>
    %93 = arith.negf %92 : vector<8x256xf32>
    %94 = math.exp %93 : vector<8x256xf32>
    %cst_74 = arith.constant 1.000000e+00 : f32
    %95 = vector.broadcast %cst_74 : f32 to vector<8x256xf32>
    %96 = arith.addf %95, %94 : vector<8x256xf32>
    %97 = arith.divf %95, %96 : vector<8x256xf32>
    %98 = vector.extract_strided_slice %97 {offsets = [0, 0], sizes = [8, 128], strides = [1, 1]} : vector<8x256xf32> to vector<8x128xf32>
    %99 = vector.extract_strided_slice %97 {offsets = [0, 128], sizes = [8, 128], strides = [1, 1]} : vector<8x256xf32> to vector<8x128xf32>
    %100 = vector.extract_strided_slice %87 {offsets = [0, 256], sizes = [8, 128], strides = [1, 1]} : vector<8x384xf32> to vector<8x128xf32>
    %101 = arith.addf %100, %47 : vector<8x128xf32>
    %102 = vector.extract_strided_slice %88 {offsets = [0, 256], sizes = [8, 128], strides = [1, 1]} : vector<8x768xf32> to vector<8x128xf32>
    %103 = arith.addf %102, %50 : vector<8x128xf32>
    %104 = arith.mulf %98, %103 : vector<8x128xf32>
    %105 = arith.addf %101, %104 : vector<8x128xf32>
    %106 = math.tanh %105 : vector<8x128xf32>
    %cst_75 = arith.constant 1.000000e+00 : f32
    %107 = vector.broadcast %cst_75 : f32 to vector<8x128xf32>
    %108 = arith.subf %107, %99 : vector<8x128xf32>
    %109 = arith.mulf %108, %106 : vector<8x128xf32>
    %110 = arith.mulf %99, %36 : vector<8x128xf32>
    %111 = arith.addf %109, %110 : vector<8x128xf32>
    %112 = vector.extract_strided_slice %88 {offsets = [0, 384], sizes = [8, 256], strides = [1, 1]} : vector<8x768xf32> to vector<8x256xf32>
    %113 = arith.addf %78, %112 : vector<8x256xf32>
    %114 = arith.negf %113 : vector<8x256xf32>
    %115 = math.exp %114 : vector<8x256xf32>
    %cst_76 = arith.constant 1.000000e+00 : f32
    %116 = vector.broadcast %cst_76 : f32 to vector<8x256xf32>
    %117 = arith.addf %116, %115 : vector<8x256xf32>
    %118 = arith.divf %116, %117 : vector<8x256xf32>
    %119 = vector.extract_strided_slice %118 {offsets = [0, 0], sizes = [8, 128], strides = [1, 1]} : vector<8x256xf32> to vector<8x128xf32>
    %120 = vector.extract_strided_slice %118 {offsets = [0, 128], sizes = [8, 128], strides = [1, 1]} : vector<8x256xf32> to vector<8x128xf32>
    %121 = vector.extract_strided_slice %88 {offsets = [0, 640], sizes = [8, 128], strides = [1, 1]} : vector<8x768xf32> to vector<8x128xf32>
    %122 = arith.addf %121, %53 : vector<8x128xf32>
    %123 = arith.mulf %119, %122 : vector<8x128xf32>
    %124 = arith.addf %83, %123 : vector<8x128xf32>
    %125 = math.tanh %124 : vector<8x128xf32>
    %cst_77 = arith.constant 1.000000e+00 : f32
    %126 = vector.broadcast %cst_77 : f32 to vector<8x128xf32>
    %127 = arith.subf %126, %120 : vector<8x128xf32>
    %128 = arith.mulf %127, %125 : vector<8x128xf32>
    %129 = arith.mulf %120, %36 : vector<8x128xf32>
    %130 = arith.addf %128, %129 : vector<8x128xf32>
    %cst_78 = arith.constant dense<0.000000e+00> : vector<8x128xf32>
    %131 = tpu.matmul %111, %40, %cst_78 {dimension_numbers = #tpu.dot_dimension_numbers<[1], [0], [0], [1], [0, 0, 1, 1], [], []>} : vector<8x128xf32>, vector<128x128xf32>, vector<8x128xf32> -> vector<8x128xf32>
    %132 = arith.addf %131, %56 : vector<8x128xf32>
    %133 = math.tanh %132 : vector<8x128xf32>
    %cst_79 = arith.constant dense<0.000000e+00> : vector<8x128xf32>
    %134 = tpu.matmul %130, %41, %cst_79 {dimension_numbers = #tpu.dot_dimension_numbers<[1], [0], [0], [1], [0, 0, 1, 1], [], []>} : vector<8x128xf32>, vector<128x128xf32>, vector<8x128xf32> -> vector<8x128xf32>
    %135 = arith.addf %134, %59 : vector<8x128xf32>
    %136 = math.tanh %135 : vector<8x128xf32>
    %137 = arith.mulf %133, %62 : vector<8x128xf32>
    %cst_80 = arith.constant dense<0.000000e+00> : vector<8xf32>
    %138 = vector.multi_reduction <add>, %137, %cst_80 [1] : vector<8x128xf32> to vector<8xf32>
    %139 = vector.shape_cast %138 : vector<8xf32> to vector<8x1xf32>
    %140 = arith.mulf %136, %65 : vector<8x128xf32>
    %cst_81 = arith.constant dense<0.000000e+00> : vector<8xf32>
    %141 = vector.multi_reduction <add>, %140, %cst_81 [1] : vector<8x128xf32> to vector<8xf32>
    %142 = vector.shape_cast %141 : vector<8xf32> to vector<8x1xf32>
    %143 = arith.addf %139, %142 : vector<8x1xf32>
    %144 = arith.addf %143, %68 : vector<8x1xf32>
    %145 = arith.negf %144 : vector<8x1xf32>
    %146 = math.exp %145 : vector<8x1xf32>
    %cst_82 = arith.constant 1.000000e+00 : f32
    %147 = vector.broadcast %cst_82 : f32 to vector<8x1xf32>
    %148 = arith.addf %147, %146 : vector<8x1xf32>
    %149 = arith.divf %147, %148 : vector<8x1xf32>
    %cst_83 = arith.constant 1.000000e+00 : f32
    %150 = vector.broadcast %cst_83 : f32 to vector<8x1xf32>
    %151 = arith.subf %150, %149 : vector<8x1xf32>
    %152 = vector.broadcast %151 : vector<8x1xf32> to vector<8x128xf32>
    %153 = arith.mulf %152, %111 : vector<8x128xf32>
    %154 = vector.broadcast %149 : vector<8x1xf32> to vector<8x128xf32>
    %155 = arith.mulf %154, %130 : vector<8x128xf32>
    %156 = arith.addf %153, %155 : vector<8x128xf32>
    %cst_84 = arith.constant dense<0.000000e+00> : vector<8x256xf32>
    %157 = tpu.matmul %156, %39, %cst_84 {dimension_numbers = #tpu.dot_dimension_numbers<[1], [0], [0], [1], [0, 0, 1, 1], [], []>} : vector<8x128xf32>, vector<128x256xf32>, vector<8x256xf32> -> vector<8x256xf32>
    %158 = arith.addf %157, %71 : vector<8x256xf32>
    %cst_85 = arith.constant dense<0xFF800000> : vector<8xf32>
    %159 = vector.multi_reduction <maximumf>, %158, %cst_85 [1] : vector<8x256xf32> to vector<8xf32>
    %160 = vector.shape_cast %159 : vector<8xf32> to vector<8x1xf32>
    %161 = vector.broadcast %160 : vector<8x1xf32> to vector<8x256xf32>
    %162 = arith.subf %158, %161 : vector<8x256xf32>
    %163 = math.exp %162 : vector<8x256xf32>
    %cst_86 = arith.constant dense<0.000000e+00> : vector<8xf32>
    %164 = vector.multi_reduction <add>, %163, %cst_86 [1] : vector<8x256xf32> to vector<8xf32>
    %165 = vector.shape_cast %164 : vector<8xf32> to vector<8x1xf32>
    %166 = math.log %165 : vector<8x1xf32>
    %167 = arith.addf %160, %166 : vector<8x1xf32>
    %168 = vector.broadcast %167 : vector<8x1xf32> to vector<8x256xf32>
    %169 = arith.subf %158, %168 : vector<8x256xf32>
    %170 = arith.index_cast %c0_i32 : i32 to index
    %c0_87 = arith.constant 0 : index
    %c0_88 = arith.constant 0 : index
    %171 = vector.load %arg34[%170, %c0_87, %c0_88] : memref<8x8x256xf32, #tpu.memory_space<vmem>>, vector<1x8x256xf32>
    %172 = vector.shape_cast %171 : vector<1x8x256xf32> to vector<8x256xf32>
    %173 = vector.shape_cast %169 : vector<8x256xf32> to vector<1x8x256xf32>
    tpu.vector_store %arg34[%170, %c0_87, %c0_88], %173 {strides = array<i32>} : memref<8x8x256xf32, #tpu.memory_space<vmem>>, vector<1x8x256xf32>,
    %c1_i32 = arith.constant 1 : i32
    %174 = arith.index_cast %c1_i32 : i32 to index
    %c0_89 = arith.constant 0 : index
    %c0_90 = arith.constant 0 : index
    %175 = vector.load %arg5[%174, %c0_89, %c0_90] : memref<8x8x32xf32, #tpu.memory_space<vmem>>, vector<1x8x32xf32>
    %176 = vector.shape_cast %175 : vector<1x8x32xf32> to vector<8x32xf32>
    %cst_91 = arith.constant dense<0.000000e+00> : vector<8x384xf32>
    %177 = tpu.matmul %176, %37, %cst_91 {dimension_numbers = #tpu.dot_dimension_numbers<[1], [0], [0], [1], [0, 0, 1, 1], [], []>} : vector<8x32xf32>, vector<32x384xf32>, vector<8x384xf32> -> vector<8x384xf32>
    %cst_92 = arith.constant dense<0.000000e+00> : vector<8x768xf32>
    %178 = tpu.matmul %156, %38, %cst_92 {dimension_numbers = #tpu.dot_dimension_numbers<[1], [0], [0], [1], [0, 0, 1, 1], [], []>} : vector<8x128xf32>, vector<128x768xf32>, vector<8x768xf32> -> vector<8x768xf32>
    %179 = vector.extract_strided_slice %177 {offsets = [0, 0], sizes = [8, 256], strides = [1, 1]} : vector<8x384xf32> to vector<8x256xf32>
    %180 = vector.extract_strided_slice %178 {offsets = [0, 0], sizes = [8, 256], strides = [1, 1]} : vector<8x768xf32> to vector<8x256xf32>
    %181 = arith.addf %179, %180 : vector<8x256xf32>
    %182 = arith.addf %181, %44 : vector<8x256xf32>
    %183 = arith.negf %182 : vector<8x256xf32>
    %184 = math.exp %183 : vector<8x256xf32>
    %cst_93 = arith.constant 1.000000e+00 : f32
    %185 = vector.broadcast %cst_93 : f32 to vector<8x256xf32>
    %186 = arith.addf %185, %184 : vector<8x256xf32>
    %187 = arith.divf %185, %186 : vector<8x256xf32>
    %188 = vector.extract_strided_slice %187 {offsets = [0, 0], sizes = [8, 128], strides = [1, 1]} : vector<8x256xf32> to vector<8x128xf32>
    %189 = vector.extract_strided_slice %187 {offsets = [0, 128], sizes = [8, 128], strides = [1, 1]} : vector<8x256xf32> to vector<8x128xf32>
    %190 = vector.extract_strided_slice %177 {offsets = [0, 256], sizes = [8, 128], strides = [1, 1]} : vector<8x384xf32> to vector<8x128xf32>
    %191 = arith.addf %190, %47 : vector<8x128xf32>
    %192 = vector.extract_strided_slice %178 {offsets = [0, 256], sizes = [8, 128], strides = [1, 1]} : vector<8x768xf32> to vector<8x128xf32>
    %193 = arith.addf %192, %50 : vector<8x128xf32>
    %194 = arith.mulf %188, %193 : vector<8x128xf32>
    %195 = arith.addf %191, %194 : vector<8x128xf32>
    %196 = math.tanh %195 : vector<8x128xf32>
    %cst_94 = arith.constant 1.000000e+00 : f32
    %197 = vector.broadcast %cst_94 : f32 to vector<8x128xf32>
    %198 = arith.subf %197, %189 : vector<8x128xf32>
    %199 = arith.mulf %198, %196 : vector<8x128xf32>
    %200 = arith.mulf %189, %156 : vector<8x128xf32>
    %201 = arith.addf %199, %200 : vector<8x128xf32>
    %202 = vector.extract_strided_slice %178 {offsets = [0, 384], sizes = [8, 256], strides = [1, 1]} : vector<8x768xf32> to vector<8x256xf32>
    %203 = arith.addf %78, %202 : vector<8x256xf32>
    %204 = arith.negf %203 : vector<8x256xf32>
    %205 = math.exp %204 : vector<8x256xf32>
    %cst_95 = arith.constant 1.000000e+00 : f32
    %206 = vector.broadcast %cst_95 : f32 to vector<8x256xf32>
    %207 = arith.addf %206, %205 : vector<8x256xf32>
    %208 = arith.divf %206, %207 : vector<8x256xf32>
    %209 = vector.extract_strided_slice %208 {offsets = [0, 0], sizes = [8, 128], strides = [1, 1]} : vector<8x256xf32> to vector<8x128xf32>
    %210 = vector.extract_strided_slice %208 {offsets = [0, 128], sizes = [8, 128], strides = [1, 1]} : vector<8x256xf32> to vector<8x128xf32>
    %211 = vector.extract_strided_slice %178 {offsets = [0, 640], sizes = [8, 128], strides = [1, 1]} : vector<8x768xf32> to vector<8x128xf32>
    %212 = arith.addf %211, %53 : vector<8x128xf32>
    %213 = arith.mulf %209, %212 : vector<8x128xf32>
    %214 = arith.addf %83, %213 : vector<8x128xf32>
    %215 = math.tanh %214 : vector<8x128xf32>
    %cst_96 = arith.constant 1.000000e+00 : f32
    %216 = vector.broadcast %cst_96 : f32 to vector<8x128xf32>
    %217 = arith.subf %216, %210 : vector<8x128xf32>
    %218 = arith.mulf %217, %215 : vector<8x128xf32>
    %219 = arith.mulf %210, %156 : vector<8x128xf32>
    %220 = arith.addf %218, %219 : vector<8x128xf32>
    %cst_97 = arith.constant dense<0.000000e+00> : vector<8x128xf32>
    %221 = tpu.matmul %201, %40, %cst_97 {dimension_numbers = #tpu.dot_dimension_numbers<[1], [0], [0], [1], [0, 0, 1, 1], [], []>} : vector<8x128xf32>, vector<128x128xf32>, vector<8x128xf32> -> vector<8x128xf32>
    %222 = arith.addf %221, %56 : vector<8x128xf32>
    %223 = math.tanh %222 : vector<8x128xf32>
    %cst_98 = arith.constant dense<0.000000e+00> : vector<8x128xf32>
    %224 = tpu.matmul %220, %41, %cst_98 {dimension_numbers = #tpu.dot_dimension_numbers<[1], [0], [0], [1], [0, 0, 1, 1], [], []>} : vector<8x128xf32>, vector<128x128xf32>, vector<8x128xf32> -> vector<8x128xf32>
    %225 = arith.addf %224, %59 : vector<8x128xf32>
    %226 = math.tanh %225 : vector<8x128xf32>
    %227 = arith.mulf %223, %62 : vector<8x128xf32>
    %cst_99 = arith.constant dense<0.000000e+00> : vector<8xf32>
    %228 = vector.multi_reduction <add>, %227, %cst_99 [1] : vector<8x128xf32> to vector<8xf32>
    %229 = vector.shape_cast %228 : vector<8xf32> to vector<8x1xf32>
    %230 = arith.mulf %226, %65 : vector<8x128xf32>
    %cst_100 = arith.constant dense<0.000000e+00> : vector<8xf32>
    %231 = vector.multi_reduction <add>, %230, %cst_100 [1] : vector<8x128xf32> to vector<8xf32>
    %232 = vector.shape_cast %231 : vector<8xf32> to vector<8x1xf32>
    %233 = arith.addf %229, %232 : vector<8x1xf32>
    %234 = arith.addf %233, %68 : vector<8x1xf32>
    %235 = arith.negf %234 : vector<8x1xf32>
    %236 = math.exp %235 : vector<8x1xf32>
    %cst_101 = arith.constant 1.000000e+00 : f32
    %237 = vector.broadcast %cst_101 : f32 to vector<8x1xf32>
    %238 = arith.addf %237, %236 : vector<8x1xf32>
    %239 = arith.divf %237, %238 : vector<8x1xf32>
    %cst_102 = arith.constant 1.000000e+00 : f32
    %240 = vector.broadcast %cst_102 : f32 to vector<8x1xf32>
    %241 = arith.subf %240, %239 : vector<8x1xf32>
    %242 = vector.broadcast %241 : vector<8x1xf32> to vector<8x128xf32>
    %243 = arith.mulf %242, %201 : vector<8x128xf32>
    %244 = vector.broadcast %239 : vector<8x1xf32> to vector<8x128xf32>
    %245 = arith.mulf %244, %220 : vector<8x128xf32>
    %246 = arith.addf %243, %245 : vector<8x128xf32>
    %cst_103 = arith.constant dense<0.000000e+00> : vector<8x256xf32>
    %247 = tpu.matmul %246, %39, %cst_103 {dimension_numbers = #tpu.dot_dimension_numbers<[1], [0], [0], [1], [0, 0, 1, 1], [], []>} : vector<8x128xf32>, vector<128x256xf32>, vector<8x256xf32> -> vector<8x256xf32>
    %248 = arith.addf %247, %71 : vector<8x256xf32>
    %cst_104 = arith.constant dense<0xFF800000> : vector<8xf32>
    %249 = vector.multi_reduction <maximumf>, %248, %cst_104 [1] : vector<8x256xf32> to vector<8xf32>
    %250 = vector.shape_cast %249 : vector<8xf32> to vector<8x1xf32>
    %251 = vector.broadcast %250 : vector<8x1xf32> to vector<8x256xf32>
    %252 = arith.subf %248, %251 : vector<8x256xf32>
    %253 = math.exp %252 : vector<8x256xf32>
    %cst_105 = arith.constant dense<0.000000e+00> : vector<8xf32>
    %254 = vector.multi_reduction <add>, %253, %cst_105 [1] : vector<8x256xf32> to vector<8xf32>
    %255 = vector.shape_cast %254 : vector<8xf32> to vector<8x1xf32>
    %256 = math.log %255 : vector<8x1xf32>
    %257 = arith.addf %250, %256 : vector<8x1xf32>
    %258 = vector.broadcast %257 : vector<8x1xf32> to vector<8x256xf32>
    %259 = arith.subf %248, %258 : vector<8x256xf32>
    %260 = arith.index_cast %c1_i32 : i32 to index
    %c0_106 = arith.constant 0 : index
    %c0_107 = arith.constant 0 : index
    %261 = vector.load %arg34[%260, %c0_106, %c0_107] : memref<8x8x256xf32, #tpu.memory_space<vmem>>, vector<1x8x256xf32>
    %262 = vector.shape_cast %261 : vector<1x8x256xf32> to vector<8x256xf32>
    %263 = vector.shape_cast %259 : vector<8x256xf32> to vector<1x8x256xf32>
    tpu.vector_store %arg34[%260, %c0_106, %c0_107], %263 {strides = array<i32>} : memref<8x8x256xf32, #tpu.memory_space<vmem>>, vector<1x8x256xf32>,
    %c2_i32 = arith.constant 2 : i32
    %264 = arith.index_cast %c2_i32 : i32 to index
    %c0_108 = arith.constant 0 : index
    %c0_109 = arith.constant 0 : index
    %265 = vector.load %arg5[%264, %c0_108, %c0_109] : memref<8x8x32xf32, #tpu.memory_space<vmem>>, vector<1x8x32xf32>
    %266 = vector.shape_cast %265 : vector<1x8x32xf32> to vector<8x32xf32>
    %cst_110 = arith.constant dense<0.000000e+00> : vector<8x384xf32>
    %267 = tpu.matmul %266, %37, %cst_110 {dimension_numbers = #tpu.dot_dimension_numbers<[1], [0], [0], [1], [0, 0, 1, 1], [], []>} : vector<8x32xf32>, vector<32x384xf32>, vector<8x384xf32> -> vector<8x384xf32>
    %cst_111 = arith.constant dense<0.000000e+00> : vector<8x768xf32>
    %268 = tpu.matmul %246, %38, %cst_111 {dimension_numbers = #tpu.dot_dimension_numbers<[1], [0], [0], [1], [0, 0, 1, 1], [], []>} : vector<8x128xf32>, vector<128x768xf32>, vector<8x768xf32> -> vector<8x768xf32>
    %269 = vector.extract_strided_slice %267 {offsets = [0, 0], sizes = [8, 256], strides = [1, 1]} : vector<8x384xf32> to vector<8x256xf32>
    %270 = vector.extract_strided_slice %268 {offsets = [0, 0], sizes = [8, 256], strides = [1, 1]} : vector<8x768xf32> to vector<8x256xf32>
    %271 = arith.addf %269, %270 : vector<8x256xf32>
    %272 = arith.addf %271, %44 : vector<8x256xf32>
    %273 = arith.negf %272 : vector<8x256xf32>
    %274 = math.exp %273 : vector<8x256xf32>
    %cst_112 = arith.constant 1.000000e+00 : f32
    %275 = vector.broadcast %cst_112 : f32 to vector<8x256xf32>
    %276 = arith.addf %275, %274 : vector<8x256xf32>
    %277 = arith.divf %275, %276 : vector<8x256xf32>
    %278 = vector.extract_strided_slice %277 {offsets = [0, 0], sizes = [8, 128], strides = [1, 1]} : vector<8x256xf32> to vector<8x128xf32>
    %279 = vector.extract_strided_slice %277 {offsets = [0, 128], sizes = [8, 128], strides = [1, 1]} : vector<8x256xf32> to vector<8x128xf32>
    %280 = vector.extract_strided_slice %267 {offsets = [0, 256], sizes = [8, 128], strides = [1, 1]} : vector<8x384xf32> to vector<8x128xf32>
    %281 = arith.addf %280, %47 : vector<8x128xf32>
    %282 = vector.extract_strided_slice %268 {offsets = [0, 256], sizes = [8, 128], strides = [1, 1]} : vector<8x768xf32> to vector<8x128xf32>
    %283 = arith.addf %282, %50 : vector<8x128xf32>
    %284 = arith.mulf %278, %283 : vector<8x128xf32>
    %285 = arith.addf %281, %284 : vector<8x128xf32>
    %286 = math.tanh %285 : vector<8x128xf32>
    %cst_113 = arith.constant 1.000000e+00 : f32
    %287 = vector.broadcast %cst_113 : f32 to vector<8x128xf32>
    %288 = arith.subf %287, %279 : vector<8x128xf32>
    %289 = arith.mulf %288, %286 : vector<8x128xf32>
    %290 = arith.mulf %279, %246 : vector<8x128xf32>
    %291 = arith.addf %289, %290 : vector<8x128xf32>
    %292 = vector.extract_strided_slice %268 {offsets = [0, 384], sizes = [8, 256], strides = [1, 1]} : vector<8x768xf32> to vector<8x256xf32>
    %293 = arith.addf %78, %292 : vector<8x256xf32>
    %294 = arith.negf %293 : vector<8x256xf32>
    %295 = math.exp %294 : vector<8x256xf32>
    %cst_114 = arith.constant 1.000000e+00 : f32
    %296 = vector.broadcast %cst_114 : f32 to vector<8x256xf32>
    %297 = arith.addf %296, %295 : vector<8x256xf32>
    %298 = arith.divf %296, %297 : vector<8x256xf32>
    %299 = vector.extract_strided_slice %298 {offsets = [0, 0], sizes = [8, 128], strides = [1, 1]} : vector<8x256xf32> to vector<8x128xf32>
    %300 = vector.extract_strided_slice %298 {offsets = [0, 128], sizes = [8, 128], strides = [1, 1]} : vector<8x256xf32> to vector<8x128xf32>
    %301 = vector.extract_strided_slice %268 {offsets = [0, 640], sizes = [8, 128], strides = [1, 1]} : vector<8x768xf32> to vector<8x128xf32>
    %302 = arith.addf %301, %53 : vector<8x128xf32>
    %303 = arith.mulf %299, %302 : vector<8x128xf32>
    %304 = arith.addf %83, %303 : vector<8x128xf32>
    %305 = math.tanh %304 : vector<8x128xf32>
    %cst_115 = arith.constant 1.000000e+00 : f32
    %306 = vector.broadcast %cst_115 : f32 to vector<8x128xf32>
    %307 = arith.subf %306, %300 : vector<8x128xf32>
    %308 = arith.mulf %307, %305 : vector<8x128xf32>
    %309 = arith.mulf %300, %246 : vector<8x128xf32>
    %310 = arith.addf %308, %309 : vector<8x128xf32>
    %cst_116 = arith.constant dense<0.000000e+00> : vector<8x128xf32>
    %311 = tpu.matmul %291, %40, %cst_116 {dimension_numbers = #tpu.dot_dimension_numbers<[1], [0], [0], [1], [0, 0, 1, 1], [], []>} : vector<8x128xf32>, vector<128x128xf32>, vector<8x128xf32> -> vector<8x128xf32>
    %312 = arith.addf %311, %56 : vector<8x128xf32>
    %313 = math.tanh %312 : vector<8x128xf32>
    %cst_117 = arith.constant dense<0.000000e+00> : vector<8x128xf32>
    %314 = tpu.matmul %310, %41, %cst_117 {dimension_numbers = #tpu.dot_dimension_numbers<[1], [0], [0], [1], [0, 0, 1, 1], [], []>} : vector<8x128xf32>, vector<128x128xf32>, vector<8x128xf32> -> vector<8x128xf32>
    %315 = arith.addf %314, %59 : vector<8x128xf32>
    %316 = math.tanh %315 : vector<8x128xf32>
    %317 = arith.mulf %313, %62 : vector<8x128xf32>
    %cst_118 = arith.constant dense<0.000000e+00> : vector<8xf32>
    %318 = vector.multi_reduction <add>, %317, %cst_118 [1] : vector<8x128xf32> to vector<8xf32>
    %319 = vector.shape_cast %318 : vector<8xf32> to vector<8x1xf32>
    %320 = arith.mulf %316, %65 : vector<8x128xf32>
    %cst_119 = arith.constant dense<0.000000e+00> : vector<8xf32>
    %321 = vector.multi_reduction <add>, %320, %cst_119 [1] : vector<8x128xf32> to vector<8xf32>
    %322 = vector.shape_cast %321 : vector<8xf32> to vector<8x1xf32>
    %323 = arith.addf %319, %322 : vector<8x1xf32>
    %324 = arith.addf %323, %68 : vector<8x1xf32>
    %325 = arith.negf %324 : vector<8x1xf32>
    %326 = math.exp %325 : vector<8x1xf32>
    %cst_120 = arith.constant 1.000000e+00 : f32
    %327 = vector.broadcast %cst_120 : f32 to vector<8x1xf32>
    %328 = arith.addf %327, %326 : vector<8x1xf32>
    %329 = arith.divf %327, %328 : vector<8x1xf32>
    %cst_121 = arith.constant 1.000000e+00 : f32
    %330 = vector.broadcast %cst_121 : f32 to vector<8x1xf32>
    %331 = arith.subf %330, %329 : vector<8x1xf32>
    %332 = vector.broadcast %331 : vector<8x1xf32> to vector<8x128xf32>
    %333 = arith.mulf %332, %291 : vector<8x128xf32>
    %334 = vector.broadcast %329 : vector<8x1xf32> to vector<8x128xf32>
    %335 = arith.mulf %334, %310 : vector<8x128xf32>
    %336 = arith.addf %333, %335 : vector<8x128xf32>
    %cst_122 = arith.constant dense<0.000000e+00> : vector<8x256xf32>
    %337 = tpu.matmul %336, %39, %cst_122 {dimension_numbers = #tpu.dot_dimension_numbers<[1], [0], [0], [1], [0, 0, 1, 1], [], []>} : vector<8x128xf32>, vector<128x256xf32>, vector<8x256xf32> -> vector<8x256xf32>
    %338 = arith.addf %337, %71 : vector<8x256xf32>
    %cst_123 = arith.constant dense<0xFF800000> : vector<8xf32>
    %339 = vector.multi_reduction <maximumf>, %338, %cst_123 [1] : vector<8x256xf32> to vector<8xf32>
    %340 = vector.shape_cast %339 : vector<8xf32> to vector<8x1xf32>
    %341 = vector.broadcast %340 : vector<8x1xf32> to vector<8x256xf32>
    %342 = arith.subf %338, %341 : vector<8x256xf32>
    %343 = math.exp %342 : vector<8x256xf32>
    %cst_124 = arith.constant dense<0.000000e+00> : vector<8xf32>
    %344 = vector.multi_reduction <add>, %343, %cst_124 [1] : vector<8x256xf32> to vector<8xf32>
    %345 = vector.shape_cast %344 : vector<8xf32> to vector<8x1xf32>
    %346 = math.log %345 : vector<8x1xf32>
    %347 = arith.addf %340, %346 : vector<8x1xf32>
    %348 = vector.broadcast %347 : vector<8x1xf32> to vector<8x256xf32>
    %349 = arith.subf %338, %348 : vector<8x256xf32>
    %350 = arith.index_cast %c2_i32 : i32 to index
    %c0_125 = arith.constant 0 : index
    %c0_126 = arith.constant 0 : index
    %351 = vector.load %arg34[%350, %c0_125, %c0_126] : memref<8x8x256xf32, #tpu.memory_space<vmem>>, vector<1x8x256xf32>
    %352 = vector.shape_cast %351 : vector<1x8x256xf32> to vector<8x256xf32>
    %353 = vector.shape_cast %349 : vector<8x256xf32> to vector<1x8x256xf32>
    tpu.vector_store %arg34[%350, %c0_125, %c0_126], %353 {strides = array<i32>} : memref<8x8x256xf32, #tpu.memory_space<vmem>>, vector<1x8x256xf32>,
    %c3_i32 = arith.constant 3 : i32
    %354 = arith.index_cast %c3_i32 : i32 to index
    %c0_127 = arith.constant 0 : index
    %c0_128 = arith.constant 0 : index
    %355 = vector.load %arg5[%354, %c0_127, %c0_128] : memref<8x8x32xf32, #tpu.memory_space<vmem>>, vector<1x8x32xf32>
    %356 = vector.shape_cast %355 : vector<1x8x32xf32> to vector<8x32xf32>
    %cst_129 = arith.constant dense<0.000000e+00> : vector<8x384xf32>
    %357 = tpu.matmul %356, %37, %cst_129 {dimension_numbers = #tpu.dot_dimension_numbers<[1], [0], [0], [1], [0, 0, 1, 1], [], []>} : vector<8x32xf32>, vector<32x384xf32>, vector<8x384xf32> -> vector<8x384xf32>
    %cst_130 = arith.constant dense<0.000000e+00> : vector<8x768xf32>
    %358 = tpu.matmul %336, %38, %cst_130 {dimension_numbers = #tpu.dot_dimension_numbers<[1], [0], [0], [1], [0, 0, 1, 1], [], []>} : vector<8x128xf32>, vector<128x768xf32>, vector<8x768xf32> -> vector<8x768xf32>
    %359 = vector.extract_strided_slice %357 {offsets = [0, 0], sizes = [8, 256], strides = [1, 1]} : vector<8x384xf32> to vector<8x256xf32>
    %360 = vector.extract_strided_slice %358 {offsets = [0, 0], sizes = [8, 256], strides = [1, 1]} : vector<8x768xf32> to vector<8x256xf32>
    %361 = arith.addf %359, %360 : vector<8x256xf32>
    %362 = arith.addf %361, %44 : vector<8x256xf32>
    %363 = arith.negf %362 : vector<8x256xf32>
    %364 = math.exp %363 : vector<8x256xf32>
    %cst_131 = arith.constant 1.000000e+00 : f32
    %365 = vector.broadcast %cst_131 : f32 to vector<8x256xf32>
    %366 = arith.addf %365, %364 : vector<8x256xf32>
    %367 = arith.divf %365, %366 : vector<8x256xf32>
    %368 = vector.extract_strided_slice %367 {offsets = [0, 0], sizes = [8, 128], strides = [1, 1]} : vector<8x256xf32> to vector<8x128xf32>
    %369 = vector.extract_strided_slice %367 {offsets = [0, 128], sizes = [8, 128], strides = [1, 1]} : vector<8x256xf32> to vector<8x128xf32>
    %370 = vector.extract_strided_slice %357 {offsets = [0, 256], sizes = [8, 128], strides = [1, 1]} : vector<8x384xf32> to vector<8x128xf32>
    %371 = arith.addf %370, %47 : vector<8x128xf32>
    %372 = vector.extract_strided_slice %358 {offsets = [0, 256], sizes = [8, 128], strides = [1, 1]} : vector<8x768xf32> to vector<8x128xf32>
    %373 = arith.addf %372, %50 : vector<8x128xf32>
    %374 = arith.mulf %368, %373 : vector<8x128xf32>
    %375 = arith.addf %371, %374 : vector<8x128xf32>
    %376 = math.tanh %375 : vector<8x128xf32>
    %cst_132 = arith.constant 1.000000e+00 : f32
    %377 = vector.broadcast %cst_132 : f32 to vector<8x128xf32>
    %378 = arith.subf %377, %369 : vector<8x128xf32>
    %379 = arith.mulf %378, %376 : vector<8x128xf32>
    %380 = arith.mulf %369, %336 : vector<8x128xf32>
    %381 = arith.addf %379, %380 : vector<8x128xf32>
    %382 = vector.extract_strided_slice %358 {offsets = [0, 384], sizes = [8, 256], strides = [1, 1]} : vector<8x768xf32> to vector<8x256xf32>
    %383 = arith.addf %78, %382 : vector<8x256xf32>
    %384 = arith.negf %383 : vector<8x256xf32>
    %385 = math.exp %384 : vector<8x256xf32>
    %cst_133 = arith.constant 1.000000e+00 : f32
    %386 = vector.broadcast %cst_133 : f32 to vector<8x256xf32>
    %387 = arith.addf %386, %385 : vector<8x256xf32>
    %388 = arith.divf %386, %387 : vector<8x256xf32>
    %389 = vector.extract_strided_slice %388 {offsets = [0, 0], sizes = [8, 128], strides = [1, 1]} : vector<8x256xf32> to vector<8x128xf32>
    %390 = vector.extract_strided_slice %388 {offsets = [0, 128], sizes = [8, 128], strides = [1, 1]} : vector<8x256xf32> to vector<8x128xf32>
    %391 = vector.extract_strided_slice %358 {offsets = [0, 640], sizes = [8, 128], strides = [1, 1]} : vector<8x768xf32> to vector<8x128xf32>
    %392 = arith.addf %391, %53 : vector<8x128xf32>
    %393 = arith.mulf %389, %392 : vector<8x128xf32>
    %394 = arith.addf %83, %393 : vector<8x128xf32>
    %395 = math.tanh %394 : vector<8x128xf32>
    %cst_134 = arith.constant 1.000000e+00 : f32
    %396 = vector.broadcast %cst_134 : f32 to vector<8x128xf32>
    %397 = arith.subf %396, %390 : vector<8x128xf32>
    %398 = arith.mulf %397, %395 : vector<8x128xf32>
    %399 = arith.mulf %390, %336 : vector<8x128xf32>
    %400 = arith.addf %398, %399 : vector<8x128xf32>
    %cst_135 = arith.constant dense<0.000000e+00> : vector<8x128xf32>
    %401 = tpu.matmul %381, %40, %cst_135 {dimension_numbers = #tpu.dot_dimension_numbers<[1], [0], [0], [1], [0, 0, 1, 1], [], []>} : vector<8x128xf32>, vector<128x128xf32>, vector<8x128xf32> -> vector<8x128xf32>
    %402 = arith.addf %401, %56 : vector<8x128xf32>
    %403 = math.tanh %402 : vector<8x128xf32>
    %cst_136 = arith.constant dense<0.000000e+00> : vector<8x128xf32>
    %404 = tpu.matmul %400, %41, %cst_136 {dimension_numbers = #tpu.dot_dimension_numbers<[1], [0], [0], [1], [0, 0, 1, 1], [], []>} : vector<8x128xf32>, vector<128x128xf32>, vector<8x128xf32> -> vector<8x128xf32>
    %405 = arith.addf %404, %59 : vector<8x128xf32>
    %406 = math.tanh %405 : vector<8x128xf32>
    %407 = arith.mulf %403, %62 : vector<8x128xf32>
    %cst_137 = arith.constant dense<0.000000e+00> : vector<8xf32>
    %408 = vector.multi_reduction <add>, %407, %cst_137 [1] : vector<8x128xf32> to vector<8xf32>
    %409 = vector.shape_cast %408 : vector<8xf32> to vector<8x1xf32>
    %410 = arith.mulf %406, %65 : vector<8x128xf32>
    %cst_138 = arith.constant dense<0.000000e+00> : vector<8xf32>
    %411 = vector.multi_reduction <add>, %410, %cst_138 [1] : vector<8x128xf32> to vector<8xf32>
    %412 = vector.shape_cast %411 : vector<8xf32> to vector<8x1xf32>
    %413 = arith.addf %409, %412 : vector<8x1xf32>
    %414 = arith.addf %413, %68 : vector<8x1xf32>
    %415 = arith.negf %414 : vector<8x1xf32>
    %416 = math.exp %415 : vector<8x1xf32>
    %cst_139 = arith.constant 1.000000e+00 : f32
    %417 = vector.broadcast %cst_139 : f32 to vector<8x1xf32>
    %418 = arith.addf %417, %416 : vector<8x1xf32>
    %419 = arith.divf %417, %418 : vector<8x1xf32>
    %cst_140 = arith.constant 1.000000e+00 : f32
    %420 = vector.broadcast %cst_140 : f32 to vector<8x1xf32>
    %421 = arith.subf %420, %419 : vector<8x1xf32>
    %422 = vector.broadcast %421 : vector<8x1xf32> to vector<8x128xf32>
    %423 = arith.mulf %422, %381 : vector<8x128xf32>
    %424 = vector.broadcast %419 : vector<8x1xf32> to vector<8x128xf32>
    %425 = arith.mulf %424, %400 : vector<8x128xf32>
    %426 = arith.addf %423, %425 : vector<8x128xf32>
    %cst_141 = arith.constant dense<0.000000e+00> : vector<8x256xf32>
    %427 = tpu.matmul %426, %39, %cst_141 {dimension_numbers = #tpu.dot_dimension_numbers<[1], [0], [0], [1], [0, 0, 1, 1], [], []>} : vector<8x128xf32>, vector<128x256xf32>, vector<8x256xf32> -> vector<8x256xf32>
    %428 = arith.addf %427, %71 : vector<8x256xf32>
    %cst_142 = arith.constant dense<0xFF800000> : vector<8xf32>
    %429 = vector.multi_reduction <maximumf>, %428, %cst_142 [1] : vector<8x256xf32> to vector<8xf32>
    %430 = vector.shape_cast %429 : vector<8xf32> to vector<8x1xf32>
    %431 = vector.broadcast %430 : vector<8x1xf32> to vector<8x256xf32>
    %432 = arith.subf %428, %431 : vector<8x256xf32>
    %433 = math.exp %432 : vector<8x256xf32>
    %cst_143 = arith.constant dense<0.000000e+00> : vector<8xf32>
    %434 = vector.multi_reduction <add>, %433, %cst_143 [1] : vector<8x256xf32> to vector<8xf32>
    %435 = vector.shape_cast %434 : vector<8xf32> to vector<8x1xf32>
    %436 = math.log %435 : vector<8x1xf32>
    %437 = arith.addf %430, %436 : vector<8x1xf32>
    %438 = vector.broadcast %437 : vector<8x1xf32> to vector<8x256xf32>
    %439 = arith.subf %428, %438 : vector<8x256xf32>
    %440 = arith.index_cast %c3_i32 : i32 to index
    %c0_144 = arith.constant 0 : index
    %c0_145 = arith.constant 0 : index
    %441 = vector.load %arg34[%440, %c0_144, %c0_145] : memref<8x8x256xf32, #tpu.memory_space<vmem>>, vector<1x8x256xf32>
    %442 = vector.shape_cast %441 : vector<1x8x256xf32> to vector<8x256xf32>
    %443 = vector.shape_cast %439 : vector<8x256xf32> to vector<1x8x256xf32>
    tpu.vector_store %arg34[%440, %c0_144, %c0_145], %443 {strides = array<i32>} : memref<8x8x256xf32, #tpu.memory_space<vmem>>, vector<1x8x256xf32>,
    %c4_i32 = arith.constant 4 : i32
    %444 = arith.index_cast %c4_i32 : i32 to index
    %c0_146 = arith.constant 0 : index
    %c0_147 = arith.constant 0 : index
    %445 = vector.load %arg5[%444, %c0_146, %c0_147] : memref<8x8x32xf32, #tpu.memory_space<vmem>>, vector<1x8x32xf32>
    %446 = vector.shape_cast %445 : vector<1x8x32xf32> to vector<8x32xf32>
    %cst_148 = arith.constant dense<0.000000e+00> : vector<8x384xf32>
    %447 = tpu.matmul %446, %37, %cst_148 {dimension_numbers = #tpu.dot_dimension_numbers<[1], [0], [0], [1], [0, 0, 1, 1], [], []>} : vector<8x32xf32>, vector<32x384xf32>, vector<8x384xf32> -> vector<8x384xf32>
    %cst_149 = arith.constant dense<0.000000e+00> : vector<8x768xf32>
    %448 = tpu.matmul %426, %38, %cst_149 {dimension_numbers = #tpu.dot_dimension_numbers<[1], [0], [0], [1], [0, 0, 1, 1], [], []>} : vector<8x128xf32>, vector<128x768xf32>, vector<8x768xf32> -> vector<8x768xf32>
    %449 = vector.extract_strided_slice %447 {offsets = [0, 0], sizes = [8, 256], strides = [1, 1]} : vector<8x384xf32> to vector<8x256xf32>
    %450 = vector.extract_strided_slice %448 {offsets = [0, 0], sizes = [8, 256], strides = [1, 1]} : vector<8x768xf32> to vector<8x256xf32>
    %451 = arith.addf %449, %450 : vector<8x256xf32>
    %452 = arith.addf %451, %44 : vector<8x256xf32>
    %453 = arith.negf %452 : vector<8x256xf32>
    %454 = math.exp %453 : vector<8x256xf32>
    %cst_150 = arith.constant 1.000000e+00 : f32
    %455 = vector.broadcast %cst_150 : f32 to vector<8x256xf32>
    %456 = arith.addf %455, %454 : vector<8x256xf32>
    %457 = arith.divf %455, %456 : vector<8x256xf32>
    %458 = vector.extract_strided_slice %457 {offsets = [0, 0], sizes = [8, 128], strides = [1, 1]} : vector<8x256xf32> to vector<8x128xf32>
    %459 = vector.extract_strided_slice %457 {offsets = [0, 128], sizes = [8, 128], strides = [1, 1]} : vector<8x256xf32> to vector<8x128xf32>
    %460 = vector.extract_strided_slice %447 {offsets = [0, 256], sizes = [8, 128], strides = [1, 1]} : vector<8x384xf32> to vector<8x128xf32>
    %461 = arith.addf %460, %47 : vector<8x128xf32>
    %462 = vector.extract_strided_slice %448 {offsets = [0, 256], sizes = [8, 128], strides = [1, 1]} : vector<8x768xf32> to vector<8x128xf32>
    %463 = arith.addf %462, %50 : vector<8x128xf32>
    %464 = arith.mulf %458, %463 : vector<8x128xf32>
    %465 = arith.addf %461, %464 : vector<8x128xf32>
    %466 = math.tanh %465 : vector<8x128xf32>
    %cst_151 = arith.constant 1.000000e+00 : f32
    %467 = vector.broadcast %cst_151 : f32 to vector<8x128xf32>
    %468 = arith.subf %467, %459 : vector<8x128xf32>
    %469 = arith.mulf %468, %466 : vector<8x128xf32>
    %470 = arith.mulf %459, %426 : vector<8x128xf32>
    %471 = arith.addf %469, %470 : vector<8x128xf32>
    %472 = vector.extract_strided_slice %448 {offsets = [0, 384], sizes = [8, 256], strides = [1, 1]} : vector<8x768xf32> to vector<8x256xf32>
    %473 = arith.addf %78, %472 : vector<8x256xf32>
    %474 = arith.negf %473 : vector<8x256xf32>
    %475 = math.exp %474 : vector<8x256xf32>
    %cst_152 = arith.constant 1.000000e+00 : f32
    %476 = vector.broadcast %cst_152 : f32 to vector<8x256xf32>
    %477 = arith.addf %476, %475 : vector<8x256xf32>
    %478 = arith.divf %476, %477 : vector<8x256xf32>
    %479 = vector.extract_strided_slice %478 {offsets = [0, 0], sizes = [8, 128], strides = [1, 1]} : vector<8x256xf32> to vector<8x128xf32>
    %480 = vector.extract_strided_slice %478 {offsets = [0, 128], sizes = [8, 128], strides = [1, 1]} : vector<8x256xf32> to vector<8x128xf32>
    %481 = vector.extract_strided_slice %448 {offsets = [0, 640], sizes = [8, 128], strides = [1, 1]} : vector<8x768xf32> to vector<8x128xf32>
    %482 = arith.addf %481, %53 : vector<8x128xf32>
    %483 = arith.mulf %479, %482 : vector<8x128xf32>
    %484 = arith.addf %83, %483 : vector<8x128xf32>
    %485 = math.tanh %484 : vector<8x128xf32>
    %cst_153 = arith.constant 1.000000e+00 : f32
    %486 = vector.broadcast %cst_153 : f32 to vector<8x128xf32>
    %487 = arith.subf %486, %480 : vector<8x128xf32>
    %488 = arith.mulf %487, %485 : vector<8x128xf32>
    %489 = arith.mulf %480, %426 : vector<8x128xf32>
    %490 = arith.addf %488, %489 : vector<8x128xf32>
    %cst_154 = arith.constant dense<0.000000e+00> : vector<8x128xf32>
    %491 = tpu.matmul %471, %40, %cst_154 {dimension_numbers = #tpu.dot_dimension_numbers<[1], [0], [0], [1], [0, 0, 1, 1], [], []>} : vector<8x128xf32>, vector<128x128xf32>, vector<8x128xf32> -> vector<8x128xf32>
    %492 = arith.addf %491, %56 : vector<8x128xf32>
    %493 = math.tanh %492 : vector<8x128xf32>
    %cst_155 = arith.constant dense<0.000000e+00> : vector<8x128xf32>
    %494 = tpu.matmul %490, %41, %cst_155 {dimension_numbers = #tpu.dot_dimension_numbers<[1], [0], [0], [1], [0, 0, 1, 1], [], []>} : vector<8x128xf32>, vector<128x128xf32>, vector<8x128xf32> -> vector<8x128xf32>
    %495 = arith.addf %494, %59 : vector<8x128xf32>
    %496 = math.tanh %495 : vector<8x128xf32>
    %497 = arith.mulf %493, %62 : vector<8x128xf32>
    %cst_156 = arith.constant dense<0.000000e+00> : vector<8xf32>
    %498 = vector.multi_reduction <add>, %497, %cst_156 [1] : vector<8x128xf32> to vector<8xf32>
    %499 = vector.shape_cast %498 : vector<8xf32> to vector<8x1xf32>
    %500 = arith.mulf %496, %65 : vector<8x128xf32>
    %cst_157 = arith.constant dense<0.000000e+00> : vector<8xf32>
    %501 = vector.multi_reduction <add>, %500, %cst_157 [1] : vector<8x128xf32> to vector<8xf32>
    %502 = vector.shape_cast %501 : vector<8xf32> to vector<8x1xf32>
    %503 = arith.addf %499, %502 : vector<8x1xf32>
    %504 = arith.addf %503, %68 : vector<8x1xf32>
    %505 = arith.negf %504 : vector<8x1xf32>
    %506 = math.exp %505 : vector<8x1xf32>
    %cst_158 = arith.constant 1.000000e+00 : f32
    %507 = vector.broadcast %cst_158 : f32 to vector<8x1xf32>
    %508 = arith.addf %507, %506 : vector<8x1xf32>
    %509 = arith.divf %507, %508 : vector<8x1xf32>
    %cst_159 = arith.constant 1.000000e+00 : f32
    %510 = vector.broadcast %cst_159 : f32 to vector<8x1xf32>
    %511 = arith.subf %510, %509 : vector<8x1xf32>
    %512 = vector.broadcast %511 : vector<8x1xf32> to vector<8x128xf32>
    %513 = arith.mulf %512, %471 : vector<8x128xf32>
    %514 = vector.broadcast %509 : vector<8x1xf32> to vector<8x128xf32>
    %515 = arith.mulf %514, %490 : vector<8x128xf32>
    %516 = arith.addf %513, %515 : vector<8x128xf32>
    %cst_160 = arith.constant dense<0.000000e+00> : vector<8x256xf32>
    %517 = tpu.matmul %516, %39, %cst_160 {dimension_numbers = #tpu.dot_dimension_numbers<[1], [0], [0], [1], [0, 0, 1, 1], [], []>} : vector<8x128xf32>, vector<128x256xf32>, vector<8x256xf32> -> vector<8x256xf32>
    %518 = arith.addf %517, %71 : vector<8x256xf32>
    %cst_161 = arith.constant dense<0xFF800000> : vector<8xf32>
    %519 = vector.multi_reduction <maximumf>, %518, %cst_161 [1] : vector<8x256xf32> to vector<8xf32>
    %520 = vector.shape_cast %519 : vector<8xf32> to vector<8x1xf32>
    %521 = vector.broadcast %520 : vector<8x1xf32> to vector<8x256xf32>
    %522 = arith.subf %518, %521 : vector<8x256xf32>
    %523 = math.exp %522 : vector<8x256xf32>
    %cst_162 = arith.constant dense<0.000000e+00> : vector<8xf32>
    %524 = vector.multi_reduction <add>, %523, %cst_162 [1] : vector<8x256xf32> to vector<8xf32>
    %525 = vector.shape_cast %524 : vector<8xf32> to vector<8x1xf32>
    %526 = math.log %525 : vector<8x1xf32>
    %527 = arith.addf %520, %526 : vector<8x1xf32>
    %528 = vector.broadcast %527 : vector<8x1xf32> to vector<8x256xf32>
    %529 = arith.subf %518, %528 : vector<8x256xf32>
    %530 = arith.index_cast %c4_i32 : i32 to index
    %c0_163 = arith.constant 0 : index
    %c0_164 = arith.constant 0 : index
    %531 = vector.load %arg34[%530, %c0_163, %c0_164] : memref<8x8x256xf32, #tpu.memory_space<vmem>>, vector<1x8x256xf32>
    %532 = vector.shape_cast %531 : vector<1x8x256xf32> to vector<8x256xf32>
    %533 = vector.shape_cast %529 : vector<8x256xf32> to vector<1x8x256xf32>
    tpu.vector_store %arg34[%530, %c0_163, %c0_164], %533 {strides = array<i32>} : memref<8x8x256xf32, #tpu.memory_space<vmem>>, vector<1x8x256xf32>,
    %c5_i32 = arith.constant 5 : i32
    %534 = arith.index_cast %c5_i32 : i32 to index
    %c0_165 = arith.constant 0 : index
    %c0_166 = arith.constant 0 : index
    %535 = vector.load %arg5[%534, %c0_165, %c0_166] : memref<8x8x32xf32, #tpu.memory_space<vmem>>, vector<1x8x32xf32>
    %536 = vector.shape_cast %535 : vector<1x8x32xf32> to vector<8x32xf32>
    %cst_167 = arith.constant dense<0.000000e+00> : vector<8x384xf32>
    %537 = tpu.matmul %536, %37, %cst_167 {dimension_numbers = #tpu.dot_dimension_numbers<[1], [0], [0], [1], [0, 0, 1, 1], [], []>} : vector<8x32xf32>, vector<32x384xf32>, vector<8x384xf32> -> vector<8x384xf32>
    %cst_168 = arith.constant dense<0.000000e+00> : vector<8x768xf32>
    %538 = tpu.matmul %516, %38, %cst_168 {dimension_numbers = #tpu.dot_dimension_numbers<[1], [0], [0], [1], [0, 0, 1, 1], [], []>} : vector<8x128xf32>, vector<128x768xf32>, vector<8x768xf32> -> vector<8x768xf32>
    %539 = vector.extract_strided_slice %537 {offsets = [0, 0], sizes = [8, 256], strides = [1, 1]} : vector<8x384xf32> to vector<8x256xf32>
    %540 = vector.extract_strided_slice %538 {offsets = [0, 0], sizes = [8, 256], strides = [1, 1]} : vector<8x768xf32> to vector<8x256xf32>
    %541 = arith.addf %539, %540 : vector<8x256xf32>
    %542 = arith.addf %541, %44 : vector<8x256xf32>
    %543 = arith.negf %542 : vector<8x256xf32>
    %544 = math.exp %543 : vector<8x256xf32>
    %cst_169 = arith.constant 1.000000e+00 : f32
    %545 = vector.broadcast %cst_169 : f32 to vector<8x256xf32>
    %546 = arith.addf %545, %544 : vector<8x256xf32>
    %547 = arith.divf %545, %546 : vector<8x256xf32>
    %548 = vector.extract_strided_slice %547 {offsets = [0, 0], sizes = [8, 128], strides = [1, 1]} : vector<8x256xf32> to vector<8x128xf32>
    %549 = vector.extract_strided_slice %547 {offsets = [0, 128], sizes = [8, 128], strides = [1, 1]} : vector<8x256xf32> to vector<8x128xf32>
    %550 = vector.extract_strided_slice %537 {offsets = [0, 256], sizes = [8, 128], strides = [1, 1]} : vector<8x384xf32> to vector<8x128xf32>
    %551 = arith.addf %550, %47 : vector<8x128xf32>
    %552 = vector.extract_strided_slice %538 {offsets = [0, 256], sizes = [8, 128], strides = [1, 1]} : vector<8x768xf32> to vector<8x128xf32>
    %553 = arith.addf %552, %50 : vector<8x128xf32>
    %554 = arith.mulf %548, %553 : vector<8x128xf32>
    %555 = arith.addf %551, %554 : vector<8x128xf32>
    %556 = math.tanh %555 : vector<8x128xf32>
    %cst_170 = arith.constant 1.000000e+00 : f32
    %557 = vector.broadcast %cst_170 : f32 to vector<8x128xf32>
    %558 = arith.subf %557, %549 : vector<8x128xf32>
    %559 = arith.mulf %558, %556 : vector<8x128xf32>
    %560 = arith.mulf %549, %516 : vector<8x128xf32>
    %561 = arith.addf %559, %560 : vector<8x128xf32>
    %562 = vector.extract_strided_slice %538 {offsets = [0, 384], sizes = [8, 256], strides = [1, 1]} : vector<8x768xf32> to vector<8x256xf32>
    %563 = arith.addf %78, %562 : vector<8x256xf32>
    %564 = arith.negf %563 : vector<8x256xf32>
    %565 = math.exp %564 : vector<8x256xf32>
    %cst_171 = arith.constant 1.000000e+00 : f32
    %566 = vector.broadcast %cst_171 : f32 to vector<8x256xf32>
    %567 = arith.addf %566, %565 : vector<8x256xf32>
    %568 = arith.divf %566, %567 : vector<8x256xf32>
    %569 = vector.extract_strided_slice %568 {offsets = [0, 0], sizes = [8, 128], strides = [1, 1]} : vector<8x256xf32> to vector<8x128xf32>
    %570 = vector.extract_strided_slice %568 {offsets = [0, 128], sizes = [8, 128], strides = [1, 1]} : vector<8x256xf32> to vector<8x128xf32>
    %571 = vector.extract_strided_slice %538 {offsets = [0, 640], sizes = [8, 128], strides = [1, 1]} : vector<8x768xf32> to vector<8x128xf32>
    %572 = arith.addf %571, %53 : vector<8x128xf32>
    %573 = arith.mulf %569, %572 : vector<8x128xf32>
    %574 = arith.addf %83, %573 : vector<8x128xf32>
    %575 = math.tanh %574 : vector<8x128xf32>
    %cst_172 = arith.constant 1.000000e+00 : f32
    %576 = vector.broadcast %cst_172 : f32 to vector<8x128xf32>
    %577 = arith.subf %576, %570 : vector<8x128xf32>
    %578 = arith.mulf %577, %575 : vector<8x128xf32>
    %579 = arith.mulf %570, %516 : vector<8x128xf32>
    %580 = arith.addf %578, %579 : vector<8x128xf32>
    %cst_173 = arith.constant dense<0.000000e+00> : vector<8x128xf32>
    %581 = tpu.matmul %561, %40, %cst_173 {dimension_numbers = #tpu.dot_dimension_numbers<[1], [0], [0], [1], [0, 0, 1, 1], [], []>} : vector<8x128xf32>, vector<128x128xf32>, vector<8x128xf32> -> vector<8x128xf32>
    %582 = arith.addf %581, %56 : vector<8x128xf32>
    %583 = math.tanh %582 : vector<8x128xf32>
    %cst_174 = arith.constant dense<0.000000e+00> : vector<8x128xf32>
    %584 = tpu.matmul %580, %41, %cst_174 {dimension_numbers = #tpu.dot_dimension_numbers<[1], [0], [0], [1], [0, 0, 1, 1], [], []>} : vector<8x128xf32>, vector<128x128xf32>, vector<8x128xf32> -> vector<8x128xf32>
    %585 = arith.addf %584, %59 : vector<8x128xf32>
    %586 = math.tanh %585 : vector<8x128xf32>
    %587 = arith.mulf %583, %62 : vector<8x128xf32>
    %cst_175 = arith.constant dense<0.000000e+00> : vector<8xf32>
    %588 = vector.multi_reduction <add>, %587, %cst_175 [1] : vector<8x128xf32> to vector<8xf32>
    %589 = vector.shape_cast %588 : vector<8xf32> to vector<8x1xf32>
    %590 = arith.mulf %586, %65 : vector<8x128xf32>
    %cst_176 = arith.constant dense<0.000000e+00> : vector<8xf32>
    %591 = vector.multi_reduction <add>, %590, %cst_176 [1] : vector<8x128xf32> to vector<8xf32>
    %592 = vector.shape_cast %591 : vector<8xf32> to vector<8x1xf32>
    %593 = arith.addf %589, %592 : vector<8x1xf32>
    %594 = arith.addf %593, %68 : vector<8x1xf32>
    %595 = arith.negf %594 : vector<8x1xf32>
    %596 = math.exp %595 : vector<8x1xf32>
    %cst_177 = arith.constant 1.000000e+00 : f32
    %597 = vector.broadcast %cst_177 : f32 to vector<8x1xf32>
    %598 = arith.addf %597, %596 : vector<8x1xf32>
    %599 = arith.divf %597, %598 : vector<8x1xf32>
    %cst_178 = arith.constant 1.000000e+00 : f32
    %600 = vector.broadcast %cst_178 : f32 to vector<8x1xf32>
    %601 = arith.subf %600, %599 : vector<8x1xf32>
    %602 = vector.broadcast %601 : vector<8x1xf32> to vector<8x128xf32>
    %603 = arith.mulf %602, %561 : vector<8x128xf32>
    %604 = vector.broadcast %599 : vector<8x1xf32> to vector<8x128xf32>
    %605 = arith.mulf %604, %580 : vector<8x128xf32>
    %606 = arith.addf %603, %605 : vector<8x128xf32>
    %cst_179 = arith.constant dense<0.000000e+00> : vector<8x256xf32>
    %607 = tpu.matmul %606, %39, %cst_179 {dimension_numbers = #tpu.dot_dimension_numbers<[1], [0], [0], [1], [0, 0, 1, 1], [], []>} : vector<8x128xf32>, vector<128x256xf32>, vector<8x256xf32> -> vector<8x256xf32>
    %608 = arith.addf %607, %71 : vector<8x256xf32>
    %cst_180 = arith.constant dense<0xFF800000> : vector<8xf32>
    %609 = vector.multi_reduction <maximumf>, %608, %cst_180 [1] : vector<8x256xf32> to vector<8xf32>
    %610 = vector.shape_cast %609 : vector<8xf32> to vector<8x1xf32>
    %611 = vector.broadcast %610 : vector<8x1xf32> to vector<8x256xf32>
    %612 = arith.subf %608, %611 : vector<8x256xf32>
    %613 = math.exp %612 : vector<8x256xf32>
    %cst_181 = arith.constant dense<0.000000e+00> : vector<8xf32>
    %614 = vector.multi_reduction <add>, %613, %cst_181 [1] : vector<8x256xf32> to vector<8xf32>
    %615 = vector.shape_cast %614 : vector<8xf32> to vector<8x1xf32>
    %616 = math.log %615 : vector<8x1xf32>
    %617 = arith.addf %610, %616 : vector<8x1xf32>
    %618 = vector.broadcast %617 : vector<8x1xf32> to vector<8x256xf32>
    %619 = arith.subf %608, %618 : vector<8x256xf32>
    %620 = arith.index_cast %c5_i32 : i32 to index
    %c0_182 = arith.constant 0 : index
    %c0_183 = arith.constant 0 : index
    %621 = vector.load %arg34[%620, %c0_182, %c0_183] : memref<8x8x256xf32, #tpu.memory_space<vmem>>, vector<1x8x256xf32>
    %622 = vector.shape_cast %621 : vector<1x8x256xf32> to vector<8x256xf32>
    %623 = vector.shape_cast %619 : vector<8x256xf32> to vector<1x8x256xf32>
    tpu.vector_store %arg34[%620, %c0_182, %c0_183], %623 {strides = array<i32>} : memref<8x8x256xf32, #tpu.memory_space<vmem>>, vector<1x8x256xf32>,
    %c6_i32 = arith.constant 6 : i32
    %624 = arith.index_cast %c6_i32 : i32 to index
    %c0_184 = arith.constant 0 : index
    %c0_185 = arith.constant 0 : index
    %625 = vector.load %arg5[%624, %c0_184, %c0_185] : memref<8x8x32xf32, #tpu.memory_space<vmem>>, vector<1x8x32xf32>
    %626 = vector.shape_cast %625 : vector<1x8x32xf32> to vector<8x32xf32>
    %cst_186 = arith.constant dense<0.000000e+00> : vector<8x384xf32>
    %627 = tpu.matmul %626, %37, %cst_186 {dimension_numbers = #tpu.dot_dimension_numbers<[1], [0], [0], [1], [0, 0, 1, 1], [], []>} : vector<8x32xf32>, vector<32x384xf32>, vector<8x384xf32> -> vector<8x384xf32>
    %cst_187 = arith.constant dense<0.000000e+00> : vector<8x768xf32>
    %628 = tpu.matmul %606, %38, %cst_187 {dimension_numbers = #tpu.dot_dimension_numbers<[1], [0], [0], [1], [0, 0, 1, 1], [], []>} : vector<8x128xf32>, vector<128x768xf32>, vector<8x768xf32> -> vector<8x768xf32>
    %629 = vector.extract_strided_slice %627 {offsets = [0, 0], sizes = [8, 256], strides = [1, 1]} : vector<8x384xf32> to vector<8x256xf32>
    %630 = vector.extract_strided_slice %628 {offsets = [0, 0], sizes = [8, 256], strides = [1, 1]} : vector<8x768xf32> to vector<8x256xf32>
    %631 = arith.addf %629, %630 : vector<8x256xf32>
    %632 = arith.addf %631, %44 : vector<8x256xf32>
    %633 = arith.negf %632 : vector<8x256xf32>
    %634 = math.exp %633 : vector<8x256xf32>
    %cst_188 = arith.constant 1.000000e+00 : f32
    %635 = vector.broadcast %cst_188 : f32 to vector<8x256xf32>
    %636 = arith.addf %635, %634 : vector<8x256xf32>
    %637 = arith.divf %635, %636 : vector<8x256xf32>
    %638 = vector.extract_strided_slice %637 {offsets = [0, 0], sizes = [8, 128], strides = [1, 1]} : vector<8x256xf32> to vector<8x128xf32>
    %639 = vector.extract_strided_slice %637 {offsets = [0, 128], sizes = [8, 128], strides = [1, 1]} : vector<8x256xf32> to vector<8x128xf32>
    %640 = vector.extract_strided_slice %627 {offsets = [0, 256], sizes = [8, 128], strides = [1, 1]} : vector<8x384xf32> to vector<8x128xf32>
    %641 = arith.addf %640, %47 : vector<8x128xf32>
    %642 = vector.extract_strided_slice %628 {offsets = [0, 256], sizes = [8, 128], strides = [1, 1]} : vector<8x768xf32> to vector<8x128xf32>
    %643 = arith.addf %642, %50 : vector<8x128xf32>
    %644 = arith.mulf %638, %643 : vector<8x128xf32>
    %645 = arith.addf %641, %644 : vector<8x128xf32>
    %646 = math.tanh %645 : vector<8x128xf32>
    %cst_189 = arith.constant 1.000000e+00 : f32
    %647 = vector.broadcast %cst_189 : f32 to vector<8x128xf32>
    %648 = arith.subf %647, %639 : vector<8x128xf32>
    %649 = arith.mulf %648, %646 : vector<8x128xf32>
    %650 = arith.mulf %639, %606 : vector<8x128xf32>
    %651 = arith.addf %649, %650 : vector<8x128xf32>
    %652 = vector.extract_strided_slice %628 {offsets = [0, 384], sizes = [8, 256], strides = [1, 1]} : vector<8x768xf32> to vector<8x256xf32>
    %653 = arith.addf %78, %652 : vector<8x256xf32>
    %654 = arith.negf %653 : vector<8x256xf32>
    %655 = math.exp %654 : vector<8x256xf32>
    %cst_190 = arith.constant 1.000000e+00 : f32
    %656 = vector.broadcast %cst_190 : f32 to vector<8x256xf32>
    %657 = arith.addf %656, %655 : vector<8x256xf32>
    %658 = arith.divf %656, %657 : vector<8x256xf32>
    %659 = vector.extract_strided_slice %658 {offsets = [0, 0], sizes = [8, 128], strides = [1, 1]} : vector<8x256xf32> to vector<8x128xf32>
    %660 = vector.extract_strided_slice %658 {offsets = [0, 128], sizes = [8, 128], strides = [1, 1]} : vector<8x256xf32> to vector<8x128xf32>
    %661 = vector.extract_strided_slice %628 {offsets = [0, 640], sizes = [8, 128], strides = [1, 1]} : vector<8x768xf32> to vector<8x128xf32>
    %662 = arith.addf %661, %53 : vector<8x128xf32>
    %663 = arith.mulf %659, %662 : vector<8x128xf32>
    %664 = arith.addf %83, %663 : vector<8x128xf32>
    %665 = math.tanh %664 : vector<8x128xf32>
    %cst_191 = arith.constant 1.000000e+00 : f32
    %666 = vector.broadcast %cst_191 : f32 to vector<8x128xf32>
    %667 = arith.subf %666, %660 : vector<8x128xf32>
    %668 = arith.mulf %667, %665 : vector<8x128xf32>
    %669 = arith.mulf %660, %606 : vector<8x128xf32>
    %670 = arith.addf %668, %669 : vector<8x128xf32>
    %cst_192 = arith.constant dense<0.000000e+00> : vector<8x128xf32>
    %671 = tpu.matmul %651, %40, %cst_192 {dimension_numbers = #tpu.dot_dimension_numbers<[1], [0], [0], [1], [0, 0, 1, 1], [], []>} : vector<8x128xf32>, vector<128x128xf32>, vector<8x128xf32> -> vector<8x128xf32>
    %672 = arith.addf %671, %56 : vector<8x128xf32>
    %673 = math.tanh %672 : vector<8x128xf32>
    %cst_193 = arith.constant dense<0.000000e+00> : vector<8x128xf32>
    %674 = tpu.matmul %670, %41, %cst_193 {dimension_numbers = #tpu.dot_dimension_numbers<[1], [0], [0], [1], [0, 0, 1, 1], [], []>} : vector<8x128xf32>, vector<128x128xf32>, vector<8x128xf32> -> vector<8x128xf32>
    %675 = arith.addf %674, %59 : vector<8x128xf32>
    %676 = math.tanh %675 : vector<8x128xf32>
    %677 = arith.mulf %673, %62 : vector<8x128xf32>
    %cst_194 = arith.constant dense<0.000000e+00> : vector<8xf32>
    %678 = vector.multi_reduction <add>, %677, %cst_194 [1] : vector<8x128xf32> to vector<8xf32>
    %679 = vector.shape_cast %678 : vector<8xf32> to vector<8x1xf32>
    %680 = arith.mulf %676, %65 : vector<8x128xf32>
    %cst_195 = arith.constant dense<0.000000e+00> : vector<8xf32>
    %681 = vector.multi_reduction <add>, %680, %cst_195 [1] : vector<8x128xf32> to vector<8xf32>
    %682 = vector.shape_cast %681 : vector<8xf32> to vector<8x1xf32>
    %683 = arith.addf %679, %682 : vector<8x1xf32>
    %684 = arith.addf %683, %68 : vector<8x1xf32>
    %685 = arith.negf %684 : vector<8x1xf32>
    %686 = math.exp %685 : vector<8x1xf32>
    %cst_196 = arith.constant 1.000000e+00 : f32
    %687 = vector.broadcast %cst_196 : f32 to vector<8x1xf32>
    %688 = arith.addf %687, %686 : vector<8x1xf32>
    %689 = arith.divf %687, %688 : vector<8x1xf32>
    %cst_197 = arith.constant 1.000000e+00 : f32
    %690 = vector.broadcast %cst_197 : f32 to vector<8x1xf32>
    %691 = arith.subf %690, %689 : vector<8x1xf32>
    %692 = vector.broadcast %691 : vector<8x1xf32> to vector<8x128xf32>
    %693 = arith.mulf %692, %651 : vector<8x128xf32>
    %694 = vector.broadcast %689 : vector<8x1xf32> to vector<8x128xf32>
    %695 = arith.mulf %694, %670 : vector<8x128xf32>
    %696 = arith.addf %693, %695 : vector<8x128xf32>
    %cst_198 = arith.constant dense<0.000000e+00> : vector<8x256xf32>
    %697 = tpu.matmul %696, %39, %cst_198 {dimension_numbers = #tpu.dot_dimension_numbers<[1], [0], [0], [1], [0, 0, 1, 1], [], []>} : vector<8x128xf32>, vector<128x256xf32>, vector<8x256xf32> -> vector<8x256xf32>
    %698 = arith.addf %697, %71 : vector<8x256xf32>
    %cst_199 = arith.constant dense<0xFF800000> : vector<8xf32>
    %699 = vector.multi_reduction <maximumf>, %698, %cst_199 [1] : vector<8x256xf32> to vector<8xf32>
    %700 = vector.shape_cast %699 : vector<8xf32> to vector<8x1xf32>
    %701 = vector.broadcast %700 : vector<8x1xf32> to vector<8x256xf32>
    %702 = arith.subf %698, %701 : vector<8x256xf32>
    %703 = math.exp %702 : vector<8x256xf32>
    %cst_200 = arith.constant dense<0.000000e+00> : vector<8xf32>
    %704 = vector.multi_reduction <add>, %703, %cst_200 [1] : vector<8x256xf32> to vector<8xf32>
    %705 = vector.shape_cast %704 : vector<8xf32> to vector<8x1xf32>
    %706 = math.log %705 : vector<8x1xf32>
    %707 = arith.addf %700, %706 : vector<8x1xf32>
    %708 = vector.broadcast %707 : vector<8x1xf32> to vector<8x256xf32>
    %709 = arith.subf %698, %708 : vector<8x256xf32>
    %710 = arith.index_cast %c6_i32 : i32 to index
    %c0_201 = arith.constant 0 : index
    %c0_202 = arith.constant 0 : index
    %711 = vector.load %arg34[%710, %c0_201, %c0_202] : memref<8x8x256xf32, #tpu.memory_space<vmem>>, vector<1x8x256xf32>
    %712 = vector.shape_cast %711 : vector<1x8x256xf32> to vector<8x256xf32>
    %713 = vector.shape_cast %709 : vector<8x256xf32> to vector<1x8x256xf32>
    tpu.vector_store %arg34[%710, %c0_201, %c0_202], %713 {strides = array<i32>} : memref<8x8x256xf32, #tpu.memory_space<vmem>>, vector<1x8x256xf32>,
    %c7_i32 = arith.constant 7 : i32
    %714 = arith.index_cast %c7_i32 : i32 to index
    %c0_203 = arith.constant 0 : index
    %c0_204 = arith.constant 0 : index
    %715 = vector.load %arg5[%714, %c0_203, %c0_204] : memref<8x8x32xf32, #tpu.memory_space<vmem>>, vector<1x8x32xf32>
    %716 = vector.shape_cast %715 : vector<1x8x32xf32> to vector<8x32xf32>
    %cst_205 = arith.constant dense<0.000000e+00> : vector<8x384xf32>
    %717 = tpu.matmul %716, %37, %cst_205 {dimension_numbers = #tpu.dot_dimension_numbers<[1], [0], [0], [1], [0, 0, 1, 1], [], []>} : vector<8x32xf32>, vector<32x384xf32>, vector<8x384xf32> -> vector<8x384xf32>
    %cst_206 = arith.constant dense<0.000000e+00> : vector<8x768xf32>
    %718 = tpu.matmul %696, %38, %cst_206 {dimension_numbers = #tpu.dot_dimension_numbers<[1], [0], [0], [1], [0, 0, 1, 1], [], []>} : vector<8x128xf32>, vector<128x768xf32>, vector<8x768xf32> -> vector<8x768xf32>
    %719 = vector.extract_strided_slice %717 {offsets = [0, 0], sizes = [8, 256], strides = [1, 1]} : vector<8x384xf32> to vector<8x256xf32>
    %720 = vector.extract_strided_slice %718 {offsets = [0, 0], sizes = [8, 256], strides = [1, 1]} : vector<8x768xf32> to vector<8x256xf32>
    %721 = arith.addf %719, %720 : vector<8x256xf32>
    %722 = arith.addf %721, %44 : vector<8x256xf32>
    %723 = arith.negf %722 : vector<8x256xf32>
    %724 = math.exp %723 : vector<8x256xf32>
    %cst_207 = arith.constant 1.000000e+00 : f32
    %725 = vector.broadcast %cst_207 : f32 to vector<8x256xf32>
    %726 = arith.addf %725, %724 : vector<8x256xf32>
    %727 = arith.divf %725, %726 : vector<8x256xf32>
    %728 = vector.extract_strided_slice %727 {offsets = [0, 0], sizes = [8, 128], strides = [1, 1]} : vector<8x256xf32> to vector<8x128xf32>
    %729 = vector.extract_strided_slice %727 {offsets = [0, 128], sizes = [8, 128], strides = [1, 1]} : vector<8x256xf32> to vector<8x128xf32>
    %730 = vector.extract_strided_slice %717 {offsets = [0, 256], sizes = [8, 128], strides = [1, 1]} : vector<8x384xf32> to vector<8x128xf32>
    %731 = arith.addf %730, %47 : vector<8x128xf32>
    %732 = vector.extract_strided_slice %718 {offsets = [0, 256], sizes = [8, 128], strides = [1, 1]} : vector<8x768xf32> to vector<8x128xf32>
    %733 = arith.addf %732, %50 : vector<8x128xf32>
    %734 = arith.mulf %728, %733 : vector<8x128xf32>
    %735 = arith.addf %731, %734 : vector<8x128xf32>
    %736 = math.tanh %735 : vector<8x128xf32>
    %cst_208 = arith.constant 1.000000e+00 : f32
    %737 = vector.broadcast %cst_208 : f32 to vector<8x128xf32>
    %738 = arith.subf %737, %729 : vector<8x128xf32>
    %739 = arith.mulf %738, %736 : vector<8x128xf32>
    %740 = arith.mulf %729, %696 : vector<8x128xf32>
    %741 = arith.addf %739, %740 : vector<8x128xf32>
    %742 = vector.extract_strided_slice %718 {offsets = [0, 384], sizes = [8, 256], strides = [1, 1]} : vector<8x768xf32> to vector<8x256xf32>
    %743 = arith.addf %78, %742 : vector<8x256xf32>
    %744 = arith.negf %743 : vector<8x256xf32>
    %745 = math.exp %744 : vector<8x256xf32>
    %cst_209 = arith.constant 1.000000e+00 : f32
    %746 = vector.broadcast %cst_209 : f32 to vector<8x256xf32>
    %747 = arith.addf %746, %745 : vector<8x256xf32>
    %748 = arith.divf %746, %747 : vector<8x256xf32>
    %749 = vector.extract_strided_slice %748 {offsets = [0, 0], sizes = [8, 128], strides = [1, 1]} : vector<8x256xf32> to vector<8x128xf32>
    %750 = vector.extract_strided_slice %748 {offsets = [0, 128], sizes = [8, 128], strides = [1, 1]} : vector<8x256xf32> to vector<8x128xf32>
    %751 = vector.extract_strided_slice %718 {offsets = [0, 640], sizes = [8, 128], strides = [1, 1]} : vector<8x768xf32> to vector<8x128xf32>
    %752 = arith.addf %751, %53 : vector<8x128xf32>
    %753 = arith.mulf %749, %752 : vector<8x128xf32>
    %754 = arith.addf %83, %753 : vector<8x128xf32>
    %755 = math.tanh %754 : vector<8x128xf32>
    %cst_210 = arith.constant 1.000000e+00 : f32
    %756 = vector.broadcast %cst_210 : f32 to vector<8x128xf32>
    %757 = arith.subf %756, %750 : vector<8x128xf32>
    %758 = arith.mulf %757, %755 : vector<8x128xf32>
    %759 = arith.mulf %750, %696 : vector<8x128xf32>
    %760 = arith.addf %758, %759 : vector<8x128xf32>
    %cst_211 = arith.constant dense<0.000000e+00> : vector<8x128xf32>
    %761 = tpu.matmul %741, %40, %cst_211 {dimension_numbers = #tpu.dot_dimension_numbers<[1], [0], [0], [1], [0, 0, 1, 1], [], []>} : vector<8x128xf32>, vector<128x128xf32>, vector<8x128xf32> -> vector<8x128xf32>
    %762 = arith.addf %761, %56 : vector<8x128xf32>
    %763 = math.tanh %762 : vector<8x128xf32>
    %cst_212 = arith.constant dense<0.000000e+00> : vector<8x128xf32>
    %764 = tpu.matmul %760, %41, %cst_212 {dimension_numbers = #tpu.dot_dimension_numbers<[1], [0], [0], [1], [0, 0, 1, 1], [], []>} : vector<8x128xf32>, vector<128x128xf32>, vector<8x128xf32> -> vector<8x128xf32>
    %765 = arith.addf %764, %59 : vector<8x128xf32>
    %766 = math.tanh %765 : vector<8x128xf32>
    %767 = arith.mulf %763, %62 : vector<8x128xf32>
    %cst_213 = arith.constant dense<0.000000e+00> : vector<8xf32>
    %768 = vector.multi_reduction <add>, %767, %cst_213 [1] : vector<8x128xf32> to vector<8xf32>
    %769 = vector.shape_cast %768 : vector<8xf32> to vector<8x1xf32>
    %770 = arith.mulf %766, %65 : vector<8x128xf32>
    %cst_214 = arith.constant dense<0.000000e+00> : vector<8xf32>
    %771 = vector.multi_reduction <add>, %770, %cst_214 [1] : vector<8x128xf32> to vector<8xf32>
    %772 = vector.shape_cast %771 : vector<8xf32> to vector<8x1xf32>
    %773 = arith.addf %769, %772 : vector<8x1xf32>
    %774 = arith.addf %773, %68 : vector<8x1xf32>
    %775 = arith.negf %774 : vector<8x1xf32>
    %776 = math.exp %775 : vector<8x1xf32>
    %cst_215 = arith.constant 1.000000e+00 : f32
    %777 = vector.broadcast %cst_215 : f32 to vector<8x1xf32>
    %778 = arith.addf %777, %776 : vector<8x1xf32>
    %779 = arith.divf %777, %778 : vector<8x1xf32>
    %cst_216 = arith.constant 1.000000e+00 : f32
    %780 = vector.broadcast %cst_216 : f32 to vector<8x1xf32>
    %781 = arith.subf %780, %779 : vector<8x1xf32>
    %782 = vector.broadcast %781 : vector<8x1xf32> to vector<8x128xf32>
    %783 = arith.mulf %782, %741 : vector<8x128xf32>
    %784 = vector.broadcast %779 : vector<8x1xf32> to vector<8x128xf32>
    %785 = arith.mulf %784, %760 : vector<8x128xf32>
    %786 = arith.addf %783, %785 : vector<8x128xf32>
    %cst_217 = arith.constant dense<0.000000e+00> : vector<8x256xf32>
    %787 = tpu.matmul %786, %39, %cst_217 {dimension_numbers = #tpu.dot_dimension_numbers<[1], [0], [0], [1], [0, 0, 1, 1], [], []>} : vector<8x128xf32>, vector<128x256xf32>, vector<8x256xf32> -> vector<8x256xf32>
    %788 = arith.addf %787, %71 : vector<8x256xf32>
    %cst_218 = arith.constant dense<0xFF800000> : vector<8xf32>
    %789 = vector.multi_reduction <maximumf>, %788, %cst_218 [1] : vector<8x256xf32> to vector<8xf32>
    %790 = vector.shape_cast %789 : vector<8xf32> to vector<8x1xf32>
    %791 = vector.broadcast %790 : vector<8x1xf32> to vector<8x256xf32>
    %792 = arith.subf %788, %791 : vector<8x256xf32>
    %793 = math.exp %792 : vector<8x256xf32>
    %cst_219 = arith.constant dense<0.000000e+00> : vector<8xf32>
    %794 = vector.multi_reduction <add>, %793, %cst_219 [1] : vector<8x256xf32> to vector<8xf32>
    %795 = vector.shape_cast %794 : vector<8xf32> to vector<8x1xf32>
    %796 = math.log %795 : vector<8x1xf32>
    %797 = arith.addf %790, %796 : vector<8x1xf32>
    %798 = vector.broadcast %797 : vector<8x1xf32> to vector<8x256xf32>
    %799 = arith.subf %788, %798 : vector<8x256xf32>
    %800 = arith.index_cast %c7_i32 : i32 to index
    %c0_220 = arith.constant 0 : index
    %c0_221 = arith.constant 0 : index
    %801 = vector.load %arg34[%800, %c0_220, %c0_221] : memref<8x8x256xf32, #tpu.memory_space<vmem>>, vector<1x8x256xf32>
    %802 = vector.shape_cast %801 : vector<1x8x256xf32> to vector<8x256xf32>
    %803 = vector.shape_cast %799 : vector<8x256xf32> to vector<1x8x256xf32>
    tpu.vector_store %arg34[%800, %c0_220, %c0_221], %803 {strides = array<i32>} : memref<8x8x256xf32, #tpu.memory_space<vmem>>, vector<1x8x256xf32>,
    %c8_i32 = arith.constant 8 : i32
    return
  }
  func.func @transform_0(%arg0: i32) -> (i32, i32) {
    %c0_i32 = arith.constant 0 : i32
    %c0_i32_0 = arith.constant 0 : i32
    %c0_i32_1 = arith.constant 0 : i32
    return %c0_i32, %c0_i32_0 : i32, i32
  }
  func.func @transform_1(%arg0: i32) -> (i32, i32) {
    %c0_i32 = arith.constant 0 : i32
    %c0_i32_0 = arith.constant 0 : i32
    %c0_i32_1 = arith.constant 0 : i32
    return %c0_i32, %c0_i32_0 : i32, i32
  }
  func.func @transform_2(%arg0: i32) -> (i32, i32) {
    %c0_i32 = arith.constant 0 : i32
    %c0_i32_0 = arith.constant 0 : i32
    %c0_i32_1 = arith.constant 0 : i32
    return %c0_i32, %c0_i32_0 : i32, i32
  }
  func.func @transform_3(%arg0: i32) -> (i32, i32) {
    %c0_i32 = arith.constant 0 : i32
    %c0_i32_0 = arith.constant 0 : i32
    %c0_i32_1 = arith.constant 0 : i32
    return %c0_i32, %c0_i32_0 : i32, i32
  }
  func.func @transform_4(%arg0: i32) -> (i32, i32, i32) {
    %c0_i32 = arith.constant 0 : i32
    %c0_i32_0 = arith.constant 0 : i32
    %c0_i32_1 = arith.constant 0 : i32
    %c0_i32_2 = arith.constant 0 : i32
    return %c0_i32, %c0_i32_0, %c0_i32_1 : i32, i32, i32
  }
  func.func @transform_5(%arg0: i32) -> (i32, i32) {
    %c0_i32 = arith.constant 0 : i32
    %c0_i32_0 = arith.constant 0 : i32
    %c0_i32_1 = arith.constant 0 : i32
    return %c0_i32, %c0_i32_0 : i32, i32
  }
  func.func @transform_6(%arg0: i32) -> (i32, i32) {
    %c0_i32 = arith.constant 0 : i32
    %c0_i32_0 = arith.constant 0 : i32
    %c0_i32_1 = arith.constant 0 : i32
    return %c0_i32, %c0_i32_0 : i32, i32
  }
  func.func @transform_7(%arg0: i32) -> (i32, i32) {
    %c0_i32 = arith.constant 0 : i32
    %c0_i32_0 = arith.constant 0 : i32
    %c0_i32_1 = arith.constant 0 : i32
    return %c0_i32, %c0_i32_0 : i32, i32
  }
  func.func @transform_8(%arg0: i32) -> (i32, i32) {
    %c0_i32 = arith.constant 0 : i32
    %c0_i32_0 = arith.constant 0 : i32
    %c0_i32_1 = arith.constant 0 : i32
    return %c0_i32, %c0_i32_0 : i32, i32
  }
  func.func @transform_9(%arg0: i32) -> (i32, i32) {
    %c0_i32 = arith.constant 0 : i32
    %c0_i32_0 = arith.constant 0 : i32
    %c0_i32_1 = arith.constant 0 : i32
    return %c0_i32, %c0_i32_0 : i32, i32
  }
  func.func @transform_10(%arg0: i32) -> (i32, i32) {
    %c0_i32 = arith.constant 0 : i32
    %c0_i32_0 = arith.constant 0 : i32
    %c0_i32_1 = arith.constant 0 : i32
    return %c0_i32, %c0_i32_0 : i32, i32
  }
  func.func @transform_11(%arg0: i32) -> (i32, i32) {
    %c0_i32 = arith.constant 0 : i32
    %c0_i32_0 = arith.constant 0 : i32
    %c0_i32_1 = arith.constant 0 : i32
    return %c0_i32, %c0_i32_0 : i32, i32
  }
  func.func @transform_12(%arg0: i32) -> (i32, i32) {
    %c0_i32 = arith.constant 0 : i32
    %c0_i32_0 = arith.constant 0 : i32
    %c0_i32_1 = arith.constant 0 : i32
    return %c0_i32, %c0_i32_0 : i32, i32
  }
  func.func @transform_13(%arg0: i32) -> (i32, i32) {
    %c0_i32 = arith.constant 0 : i32
    %c0_i32_0 = arith.constant 0 : i32
    %c0_i32_1 = arith.constant 0 : i32
    return %c0_i32, %c0_i32_0 : i32, i32
  }
  func.func @transform_14(%arg0: i32) -> (i32, i32) {
    %c0_i32 = arith.constant 0 : i32
    %c0_i32_0 = arith.constant 0 : i32
    %c0_i32_1 = arith.constant 0 : i32
    return %c0_i32, %c0_i32_0 : i32, i32
  }
  func.func @transform_15(%arg0: i32) -> (i32, i32) {
    %c0_i32 = arith.constant 0 : i32
    %c0_i32_0 = arith.constant 0 : i32
    %c0_i32_1 = arith.constant 0 : i32
    return %c0_i32, %c0_i32_0 : i32, i32
  }
  func.func @transform_16(%arg0: i32) -> (i32, i32) {
    %c0_i32 = arith.constant 0 : i32
    %c0_i32_0 = arith.constant 0 : i32
    %c0_i32_1 = arith.constant 0 : i32
    return %c0_i32, %c0_i32_0 : i32, i32
  }
  func.func @transform_17(%arg0: i32) -> (i32, i32) {
    %c0_i32 = arith.constant 0 : i32
    %c0_i32_0 = arith.constant 0 : i32
    %c0_i32_1 = arith.constant 0 : i32
    return %c0_i32, %c0_i32_0 : i32, i32
  }
  func.func @transform_18(%arg0: i32) -> (i32, i32) {
    %c0_i32 = arith.constant 0 : i32
    %c0_i32_0 = arith.constant 0 : i32
    %c0_i32_1 = arith.constant 0 : i32
    return %c0_i32, %c0_i32_0 : i32, i32
  }
  func.func @transform_19(%arg0: i32) -> (i32, i32) {
    %c0_i32 = arith.constant 0 : i32
    %c0_i32_0 = arith.constant 0 : i32
    %c0_i32_1 = arith.constant 0 : i32
    return %c0_i32, %c0_i32_0 : i32, i32
  }
  func.func @transform_20(%arg0: i32) -> (i32, i32) {
    %c0_i32 = arith.constant 0 : i32
    %c0_i32_0 = arith.constant 0 : i32
    %c0_i32_1 = arith.constant 0 : i32
    return %c0_i32, %c0_i32_0 : i32, i32
  }
  func.func @transform_21(%arg0: i32) -> (i32, i32) {
    %c0_i32 = arith.constant 0 : i32
    %c0_i32_0 = arith.constant 0 : i32
    %c0_i32_1 = arith.constant 0 : i32
    return %c0_i32, %c0_i32_0 : i32, i32
  }
  func.func @transform_22(%arg0: i32) -> (i32, i32) {
    %c0_i32 = arith.constant 0 : i32
    %c0_i32_0 = arith.constant 0 : i32
    %c0_i32_1 = arith.constant 0 : i32
    return %c0_i32, %c0_i32_0 : i32, i32
  }
  func.func @transform_23(%arg0: i32) -> (i32, i32) {
    %c0_i32 = arith.constant 0 : i32
    %c0_i32_0 = arith.constant 0 : i32
    %c0_i32_1 = arith.constant 0 : i32
    return %c0_i32, %c0_i32_0 : i32, i32
  }
  func.func @transform_24(%arg0: i32) -> (i32, i32) {
    %c0_i32 = arith.constant 0 : i32
    %c0_i32_0 = arith.constant 0 : i32
    %c0_i32_1 = arith.constant 0 : i32
    return %c0_i32, %c0_i32_0 : i32, i32
  }
  func.func @transform_25(%arg0: i32) -> (i32, i32) {
    %c0_i32 = arith.constant 0 : i32
    %c0_i32_0 = arith.constant 0 : i32
    %c0_i32_1 = arith.constant 0 : i32
    return %c0_i32, %c0_i32_0 : i32, i32
  }
  func.func @transform_26(%arg0: i32) -> (i32, i32) {
    %c0_i32 = arith.constant 0 : i32
    %c0_i32_0 = arith.constant 0 : i32
    %c0_i32_1 = arith.constant 0 : i32
    return %c0_i32, %c0_i32_0 : i32, i32
  }
  func.func @transform_27(%arg0: i32) -> (i32, i32) {
    %c0_i32 = arith.constant 0 : i32
    %c0_i32_0 = arith.constant 0 : i32
    %c0_i32_1 = arith.constant 0 : i32
    return %c0_i32, %c0_i32_0 : i32, i32
  }
  func.func @transform_28(%arg0: i32) -> (i32, i32) {
    %c0_i32 = arith.constant 0 : i32
    %c0_i32_0 = arith.constant 0 : i32
    %c0_i32_1 = arith.constant 0 : i32
    return %c0_i32, %c0_i32_0 : i32, i32
  }
  func.func @transform_29(%arg0: i32) -> (i32, i32) {
    %c0_i32 = arith.constant 0 : i32
    %c0_i32_0 = arith.constant 0 : i32
    %c0_i32_1 = arith.constant 0 : i32
    return %c0_i32, %c0_i32_0 : i32, i32
  }
  func.func @transform_30(%arg0: i32) -> (i32, i32) {
    %c0_i32 = arith.constant 0 : i32
    %c0_i32_0 = arith.constant 0 : i32
    %c0_i32_1 = arith.constant 0 : i32
    return %c0_i32, %c0_i32_0 : i32, i32
  }
  func.func @transform_31(%arg0: i32) -> (i32, i32) {
    %c0_i32 = arith.constant 0 : i32
    %c0_i32_0 = arith.constant 0 : i32
    %c0_i32_1 = arith.constant 0 : i32
    return %c0_i32, %c0_i32_0 : i32, i32
  }
  func.func @transform_32(%arg0: i32) -> (i32, i32) {
    %c0_i32 = arith.constant 0 : i32
    %c0_i32_0 = arith.constant 0 : i32
    %c0_i32_1 = arith.constant 0 : i32
    return %c0_i32, %c0_i32_0 : i32, i32
  }
  func.func @transform_33(%arg0: i32) -> (i32, i32, i32) {
    %c0_i32 = arith.constant 0 : i32
    %c0_i32_0 = arith.constant 0 : i32
    %c0_i32_1 = arith.constant 0 : i32
    %c0_i32_2 = arith.constant 0 : i32
    return %c0_i32, %c0_i32_0, %c0_i32_1 : i32, i32, i32
  }
}

</mosaic_0001>

<bundles_post_ra>
// kernel: nete_user_forward.1
= control target key start
LH: loop header
LB: loop body
LE: loop exit
PB: predicated region body
PF: predicated region fallthrough
CT: control target
= control target key end

     0   :  { %s9868_s6 = smov 1   ;;  %s9869_s10 = smov 2   ;;  %s11951_s0 = inlined_call_operand.smem [shape: u32[34], index: -1, kind: input, shape index: {}] }
   0x1   :  { %s9927_s5 = sld [smem:[%s11951_s0]]   ;;  %s9870_s14 = smov 3  }
   0x2   :  { %s9932_s9 = sld [smem:[%s11951_s0 + %s9868_s6]]   ;;  %s9871_s18 = smov 4  }
   0x3   :  { %s9937_s13 = sld [smem:[%s11951_s0 + %s9869_s10]]   ;;  %s9872_s22 = smov 5  }
   0x4   :  { %s9942_s17 = sld [smem:[%s11951_s0 + %s9870_s14]]   ;;  %s9873_s26 = smov 6  }
   0x5   :  { %s9947_s21 = sld [smem:[%s11951_s0 + %s9871_s18]]   ;;  %s9874_s30 = smov 7  }
   0x6   :  { %s9952_s25 = sld [smem:[%s11951_s0 + %s9872_s22]]   ;;  %s9875_s4 = smov 8  }
   0x7   :  { %s9957_s29 = sld [smem:[%s11951_s0 + %s9873_s26]]   ;;  %s9876_s10 = smov 9  }
   0x8   :  { %s9962_s3 = sld [smem:[%s11951_s0 + %s9874_s30]]   ;;  %s9877_s15 = smov 10  }
   0x9   :  { %s9967_s8 = sld [smem:[%s11951_s0 + %s9875_s4]]   ;;  %s9878_s20 = smov 11  }
   0xa   :  { %s9972_s14 = sld [smem:[%s11951_s0 + %s9876_s10]]   ;;  %s9879_s26 = smov 12  }
   0xb   :  { %12123 = sst [smem:[#allocation14_spill]] %s9947_s21  ;;  %s9880_s1 = smov 13  }
   0xc   :  { %s9977_s19 = sld [smem:[%s11951_s0 + %s9877_s15]]   ;;  %s9881_s7 = smov 14  }
   0xd   :  { %s9982_s24 = sld [smem:[%s11951_s0 + %s9878_s20]]   ;;  %s9882_s15 = smov 15  }
   0xe   :  { %s9987_s30 = sld [smem:[%s11951_s0 + %s9879_s26]]   ;;  %s9883_s22 = smov 16  }
   0xf   :  { %12124 = sst [smem:[#allocation15_spill]] %s9967_s8  ;;  %s9884_s28 = smov 17  }
  0x10   :  { %s9992_s6 = sld [smem:[%s11951_s0 + %s9880_s1]]   ;;  %s9898_s16 = smov 31  }
  0x11   :  { %s9997_s12 = sld [smem:[%s11951_s0 + %s9881_s7]]   ;;  %s9885_s7 = smov 18  }
  0x12   :  { %s10002_s20 = sld [smem:[%s11951_s0 + %s9882_s15]]   ;;  %s9886_s15 = smov 19  }
  0x13   :  { %s10007_s27 = sld [smem:[%s11951_s0 + %s9883_s22]]   ;;  %s9887_s22 = smov 20  }
  0x14   :  { %12125 = sst [smem:[#allocation16_spill]] %s9987_s30  ;;  %s9899_s23 = smov 32  }
  0x15   :  { %s10012_s4 = sld [smem:[%s11951_s0 + %s9884_s28]]   ;;  %s9888_s28 = smov 21  }
  0x16   :  { %s10022_s30 = sld [smem:[%s11951_s0 + %s9886_s15]]   ;;  %s9890_s15 = smov 23  }
  0x17   :  { %12126 = sst [smem:[#allocation17_spill]] %s9997_s12  ;;  %s9900_s1 = smov 33  }
  0x18   :  { %s10017_s12 = sld [smem:[%s11951_s0 + %s9885_s7]]   ;;  %s9889_s7 = smov 22  }
  0x19   :  { %s10027_s21 = sld [smem:[%s11951_s0 + %s9887_s22]]   ;;  %s9891_s22 = smov 24  }
  0x1a   :  { %s10032_s8 = sld [smem:[%s11951_s0 + %s9888_s28]]   ;;  %s9892_s28 = smov 25  }
  0x1c   :  { %12128 = sst [smem:[#allocation19_spill]] %s10022_s30 }
  0x1d   :  { %s10042_s30 = sld [smem:[%s11951_s0 + %s9890_s15]]   ;;  %s9894_s15 = smov 27  }
  0x1e   :  { %12127 = sst [smem:[#allocation18_spill]] %s10017_s12 }
  0x1f   :  { %12129 = sst [smem:[#allocation20_spill]] %s10027_s21 }
  0x20   :  { %12130 = sst [smem:[#allocation21_spill]] %s10032_s8 }
  0x21   :  { %s10037_s12 = sld [smem:[%s11951_s0 + %s9889_s7]]   ;;  %s9893_s7 = smov 26  }
  0x22   :  { %s10047_s21 = sld [smem:[%s11951_s0 + %s9891_s22]]   ;;  %s9895_s22 = smov 28  }
  0x23   :  { %12132 = sst [smem:[#allocation23_spill]] %s10042_s30 }
  0x24   :  { %s10052_s8 = sld [smem:[%s11951_s0 + %s9892_s28]]   ;;  %s9896_s28 = smov 29  }
  0x25   :  { %s10062_s30 = sld [smem:[%s11951_s0 + %s9894_s15]]  }
  0x27   :  { %12131 = sst [smem:[#allocation22_spill]] %s10037_s12 }
  0x28   :  { %12133 = sst [smem:[#allocation24_spill]] %s10047_s21 }
  0x29   :  { %s10057_s12 = sld [smem:[%s11951_s0 + %s9893_s7]]   ;;  %s9897_s7 = smov 30  }
  0x2a   :  { %12134 = sst [smem:[#allocation25_spill]] %s10052_s8 }
  0x2b   :  { %12136 = sst [smem:[#allocation27_spill]] %s10062_s30 }
  0x2c   :  { %s10067_s21 = sld [smem:[%s11951_s0 + %s9895_s22]]  }
  0x2d   :  { %s10072_s8 = sld [smem:[%s11951_s0 + %s9896_s28]]  }
  0x2e   :  { %s10080_s30 = sld [smem:[%s11951_s0 + %s9898_s16]]  }
  0x2f   :  { %12135 = sst [smem:[#allocation26_spill]] %s10057_s12 }
  0x30   :  { %s6503_s12 = sld [smem:[%s11951_s0 + %s9897_s7]]  }
  0x32   :  { %12137 = sst [smem:[#allocation28_spill]] %s10067_s21 }
  0x33   :  { %12138 = sst [smem:[#allocation29_spill]] %s10072_s8 }
  0x34   :  { %s10085_s21 = sld [smem:[%s11951_s0 + %s9899_s23]]  }
  0x35   :  { %s10090_s8 = sld [smem:[%s11951_s0 + %s9900_s1]]  }
  0x36   :  { %v72_v0 = vstv %s6503_s12 }
  0x37   :  { %73 = vst [vmem:[#allocation2] sm:$0x1] %v72_v0 }
  0x38   :  { %74 = vsyncpa [#allocation4], 0 }
  0x39   :  { %75 = vsyncpa [#allocation6], 0 }
  0x3a   :  { %76 = vsyncpa [#allocation9], 0  ;;  %s9901_s7 = smov [#allocation5]   ;;  %s9902_s11 = smov [#allocation8]  }
  0x3b   :  { %s110_s10 = sshll.u32 %s9901_s7, 4  ;;  %s142_s16 = sshll.u32 %s9902_s11, 4  ;;  %s111_s10 = int_to_ptr.vmem [resolvable:$true] %s110_s10  ;;  %s10092_s16 = int_to_ptr.vmem [resolvable:$true] %s142_s16 }
  0x3c   :  { %s9752_s15 = scalar_lea.hbm %s9972_s14, 1536 }
  0x3d   :  { %p9753_p0 = scmp.ne.s32.totalorder %s9972_s14, %s9752_s15  ;;  %p9756_p1 = scmp.lt.u32.totalorder %s9752_s15, %s9972_s14 }
  0x3f   :  { %p9758_p2 = pnand %p9756_p1, %p9753_p0 }
  0x41   :  { %9761 = shalt.err (!%p9758_p2)
}
  0x42   :  { %s9762_s0 = scalar_lea.vmem %s111_s10, 1536  ;;  %p9767_p4 = scmp.lt.s32.totalorder %s111_s10, %s111_s10 }
  0x43   :  { %p9763_p3 = scmp.ne.s32.totalorder %s111_s10, %s9762_s0  ;;  %p9768_p5 = scmp.lt.s32.totalorder %s9762_s0, %s9762_s0 }
  0x45   :  { %p9769_p6 = por %p9768_p5, %p9767_p4 }
  0x47   :  { %p9770_p7 = pnand %p9769_p6, %p9763_p3 }
  0x49   :  { %9773 = shalt.err (!%p9770_p7)
}
  0x4a   :  { %s9903_s12 = smov 128   ;;  %s9904_s18 = smov 8  }
  0x4b   :  { %116 = dma.hbm_to_vmem [thread:$0]  %s9972_s14, 1536, %s111_s10, [#allocation6], %s9903_s12, %s9903_s12, %s9904_s18  }
  0x4c   :  { %s9774_s23 = scalar_lea.hbm %s10002_s20, 1536 }
  0x4d   :  { %p9775_p8 = scmp.ne.s32.totalorder %s10002_s20, %s9774_s23  ;;  %p9778_p9 = scmp.lt.u32.totalorder %s9774_s23, %s10002_s20 }
  0x4f   :  { %p9780_p10 = pnand %p9778_p9, %p9775_p8 }
  0x51   :  { %9783 = shalt.err (!%p9780_p10)
}
  0x52   :  { %s9784_s22 = scalar_lea.vmem %s10092_s16, 1536  ;;  %p9789_p12 = scmp.lt.s32.totalorder %s10092_s16, %s10092_s16 }
  0x53   :  { %p9785_p11 = scmp.ne.s32.totalorder %s10092_s16, %s9784_s22  ;;  %p9790_p13 = scmp.lt.s32.totalorder %s9784_s22, %s9784_s22 }
  0x55   :  { %p9791_p0 = por %p9790_p13, %p9789_p12 }
  0x57   :  { %p9792_p1 = pnand %p9791_p0, %p9785_p11 }
  0x59   :  { %9795 = shalt.err (!%p9792_p1)
}
  0x5a   :  { %s9905_s26 = smov 384   ;;  %s9906_s14 = smov 24  }
  0x5b   :  { %148 = dma.hbm_to_vmem [thread:$0]  %s10002_s20, 1536, %s10092_s16, [#allocation9], %s9905_s26, %s9905_s26, %s9906_s14  }
  0x5c   :  { %s9907_s1 = smov [#allocation3]   ;;  %s9908_s2 = smov [#allocation7]  }
  0x5d   :  { %s96_s28 = sshll.u32 %s9907_s1, 4  ;;  %s124_s7 = sshll.u32 %s9908_s2, 4  ;;  %s97_s28 = int_to_ptr.vmem [resolvable:$true] %s96_s28  ;;  %s10110_s7 = int_to_ptr.vmem [resolvable:$true] %s124_s7 }
  0x5e   :  { %s9796_s10 = scalar_lea.hbm %s9962_s3, 2048 }
  0x5f   :  { %p9797_p2 = scmp.ne.s32.totalorder %s9962_s3, %s9796_s10  ;;  %p9800_p3 = scmp.lt.u32.totalorder %s9796_s10, %s9962_s3 }
  0x61   :  { %p9802_p4 = pnand %p9800_p3, %p9797_p2 }
  0x63   :  { %9805 = shalt.err (!%p9802_p4)
}
  0x64   :  { %s9806_s11 = scalar_lea.vmem %s97_s28, 2048  ;;  %p9811_p6 = scmp.lt.s32.totalorder %s97_s28, %s97_s28 }
  0x65   :  { %p9807_p5 = scmp.ne.s32.totalorder %s97_s28, %s9806_s11  ;;  %p9812_p7 = scmp.lt.s32.totalorder %s9806_s11, %s9806_s11 }
  0x67   :  { %p9813_p8 = por %p9812_p7, %p9811_p6 }
  0x69   :  { %p9814_p9 = pnand %p9813_p8, %p9807_p5 }
  0x6b   :  { %9817 = shalt.err (!%p9814_p9)
}
  0x6c   :  { %102 = dma.hbm_to_vmem [thread:$0]  %s9962_s3, 2048, %s97_s28, [#allocation4], %s9903_s12, %s9903_s12, %s9904_s18  }
  0x6d   :  { %s9818_s20 = scalar_lea.hbm %s9982_s24, 2048 }
  0x6e   :  { %p9819_p10 = scmp.ne.s32.totalorder %s9982_s24, %s9818_s20  ;;  %p9822_p11 = scmp.lt.u32.totalorder %s9818_s20, %s9982_s24 }
  0x70   :  { %p9824_p12 = pnand %p9822_p11, %p9819_p10 }
  0x72   :  { %9827 = shalt.err (!%p9824_p12)
}
  0x73   :  { %s9828_s16 = scalar_lea.vmem %s10110_s7, 2048  ;;  %p9833_p0 = scmp.lt.s32.totalorder %s10110_s7, %s10110_s7 }
  0x74   :  { %p9829_p13 = scmp.ne.s32.totalorder %s10110_s7, %s9828_s16  ;;  %p9834_p1 = scmp.lt.s32.totalorder %s9828_s16, %s9828_s16 }
  0x76   :  { %p9835_p2 = por %p9834_p1, %p9833_p0 }
  0x78   :  { %p9836_p3 = pnand %p9835_p2, %p9829_p13 }
  0x7a   :  { %9839 = shalt.err (!%p9836_p3)
}
  0x7b   :  { %130 = dma.hbm_to_vmem [thread:$0]  %s9982_s24, 2048, %s10110_s7, [#allocation6], %s9903_s12, %s9903_s12, %s9904_s18  }
  0x7c   :  { %s9909_s3 = smov [#allocation10]   ;;  %s9840_s0 = scalar_lea.hbm %s10012_s4, 12288 }
  0x7d   :  { %s156_s15 = sshll.u32 %s9909_s3, 4  ;;  %p9841_p4 = scmp.ne.s32.totalorder %s10012_s4, %s9840_s0  ;;  %s157_s15 = int_to_ptr.vmem [resolvable:$true] %s156_s15 }
  0x7e   :  { %p9844_p5 = scmp.lt.u32.totalorder %s9840_s0, %s10012_s4 }
  0x80   :  { %p9846_p6 = pnand %p9844_p5, %p9841_p4 }
  0x82   :  { %9849 = shalt.err (!%p9846_p6)
}
  0x83   :  { %s9850_s23 = scalar_lea.vmem %s157_s15, 12288  ;;  %p9855_p8 = scmp.lt.s32.totalorder %s157_s15, %s157_s15 }
  0x84   :  { %p9851_p7 = scmp.ne.s32.totalorder %s157_s15, %s9850_s23  ;;  %p9856_p9 = scmp.lt.s32.totalorder %s9850_s23, %s9850_s23 }
  0x86   :  { %p9857_p10 = por %p9856_p9, %p9855_p8 }
  0x88   :  { %p9858_p11 = pnand %p9857_p10, %p9851_p7 }
  0x8a   :  { %9861 = shalt.err (!%p9858_p11)
}
  0x8b   :  { %s9910_s22 = smov 768   ;;  %s9911_s26 = smov 48  }
  0x8c   :  { %162 = dma.hbm_to_vmem [thread:$0]  %s10012_s4, 12288, %s157_s15, [#allocation9], %s9910_s22, %s9910_s22, %s9911_s26  }
  0x8d   :  { %9862 = dma.done.wait [#allocation4], 2048  }
  0x8e   :  { %9863 = vsyncadd [#allocation4], 4294965248 }
  0x8f   :  { %9864 = dma.done.wait [#allocation6], 3584  }
  0x90   :  { %9865 = vsyncadd [#allocation6], 4294963712 }
  0x91   :  { %9866 = dma.done.wait [#allocation9], 13824  }
  0x92   :  { %9867 = vsyncadd [#allocation9], 4294953472  ;;  %v11964_v1 = vmov 0.0|0.0   ;;  %vm9913_vm0 = vmmov 0   ;;  %v11962_v2 = vmov 0.0   ;;  %v209_v3 = vld [vmem:[%s9932_s9] sm:$0xff] }
  0x93   :  { %7751 = vmatprep.subr.bf16.mxu0 %v11964_v1  ;;  %7763 = vmatprep.subr.bf16.mxu1 %v11964_v1  ;;  %v210_v4 = vld [vmem:[%s9937_s13] sm:$0xff]  ;;  %s9915_s24 = smov 32   ;;  %s9916_s4 = smov 64   ;;  %v219_v6 = vld [vmem:[%s9952_s25 + $0x8] sm:$0xff]  ;;  %v220_v9 = vld [vmem:[%s9952_s25 + $0x10] sm:$0xff]  ;;  %vm216_vm1 = vcmask 261120  }
  0x94   :  { %6992 = vmatprep.mubr.msk.f32.mxu0 %vm9913_vm0, %v11962_v2  ;;  %7027 = vmatprep.mubr.msk.f32.mxu1 %vm9913_vm0, %v11962_v2  ;;  %v218_v5 = vld [vmem:[%s9952_s25] sm:$0xff]  ;;  %v221_v10 = vld [vmem:[%s9952_s25 + $0x18] sm:$0xff]  ;;  %v223_v13 = vld [vmem:[%s9952_s25 + $0x28] sm:$0xff]  ;;  %vm233_vm2 = vcmask 523264   ;;  %vm425_vm3 = vcmask 785408   ;;  %s9917_s9 = smov 96  }
  0x95   :  { %213 = vrot.lane.b32.xlu0 %v209_v3, %s9915_s24  ;;  %594 = vrot.lane.b32.xlu1 %v210_v4, %s9916_s4  ;;  %v10146_v7 = vld [vmem:[%s9942_s17] sm:$0xff]  ;;  %v7752_v8 = vpack.c.bf16 %v219_v6, %v218_v5  ;;  %v7755_v11 = vpack.c.bf16 %v221_v10, %v220_v9  ;;  %v224_v15 = vld [vmem:[%s9952_s25 + $0x30] sm:$0xff]  ;;  %s12142_s13 = sld [smem:[#allocation14_spill]]  ;;  %s12149_s17 = sld [smem:[#allocation16_spill]] }
  0x96   :  { %v222_v12 = vld [vmem:[%s9952_s25 + $0x20] sm:$0xff]  ;;  %v225_v16 = vld [vmem:[%s9952_s25 + $0x38] sm:$0xff]  ;;  %v309_v19 = vld [vmem:[#allocation3 + $0x8] sm:$0xff]  ;;  %s12175_s25 = sld [smem:[#allocation17_spill]]  ;;  %s12220_s12 = sld [smem:[#allocation20_spill]] }
  0x97   :  { %7753 = vmatpush3.bf16.msra.mxu0 %v7752_v8  ;;  %v7758_v14 = vpack.c.bf16 %v223_v13, %v222_v12  ;;  %v7761_v17 = vpack.c.bf16 %v225_v16, %v224_v15  ;;  %v308_v18 = vld [vmem:[#allocation3] sm:$0xff]  ;;  %v310_v20 = vld [vmem:[#allocation3 + $0x10] sm:$0xff]  ;;  %v311_v22 = vld [vmem:[#allocation3 + $0x18] sm:$0xff]  ;;  %s12221_s18 = sld [smem:[#allocation19_spill]]  ;;  %s12222_s14 = sld [smem:[#allocation23_spill]] }
  0x98   :  { %7754 = vmatprep.subr.bf16.mxu0 %v11964_v1  ;;  %v7764_v21 = vpack.c.bf16 %v309_v19, %v308_v18  ;;  %v7767_v23 = vpack.c.bf16 %v311_v22, %v310_v20  ;;  %v312_v24 = vld [vmem:[#allocation3 + $0x20] sm:$0xff]  ;;  %v313_v25 = vld [vmem:[#allocation3 + $0x28] sm:$0xff]  ;;  %v314_v27 = vld [vmem:[#allocation3 + $0x30] sm:$0xff]  ;;  %s12224_s1 = sld [smem:[#allocation22_spill]]  ;;  %s12225_s28 = sld [smem:[#allocation25_spill]] }
  0x99   :  { %402 = vrot.lane.b32.xlu0 %v10146_v7, %s9916_s4  ;;  %v7770_v26 = vpack.c.bf16 %v313_v25, %v312_v24  ;;  %v315_v28 = vld [vmem:[#allocation3 + $0x38] sm:$0xff]  ;;  %v316_v30 = vld [vmem:[#allocation3 + $0x40] sm:$0xff]  ;;  %v317_v31 = vld [vmem:[#allocation3 + $0x48] sm:$0xff]  ;;  %s12226_s2 = sld [smem:[#allocation28_spill]]  ;;  %s12227_s7 = sld [smem:[#allocation27_spill]] }
  0x9a   :  { %7765 = vmatpush3.bf16.msra.mxu1 %v7764_v21  ;;  %v7773_v29 = vpack.c.bf16 %v315_v28, %v314_v27  ;;  %v7776_v32 = vpack.c.bf16 %v317_v31, %v316_v30  ;;  %v318_v33 = vld [vmem:[#allocation3 + $0x50] sm:$0xff]  ;;  %v319_v34 = vld [vmem:[#allocation3 + $0x58] sm:$0xff]  ;;  %v320_v36 = vld [vmem:[#allocation3 + $0x60] sm:$0xff]  ;;  %s12228_s10 = sld [smem:[#allocation29_spill]] }
  0x9b   :  { %7756 = vmatpush3.bf16.msra.mxu0 %v7755_v11  ;;  %7766 = vmatprep.subr.bf16.mxu1 %v11964_v1  ;;  %v7779_v35 = vpack.c.bf16 %v319_v34, %v318_v33  ;;  %v321_v37 = vld [vmem:[#allocation3 + $0x68] sm:$0xff]  ;;  %v406_v39 = vld [vmem:[#allocation5] sm:$0xff]  ;;  %v408_v45 = vld [vmem:[#allocation5 + $0x10] sm:$0xff] }
  0x9c   :  { %7757 = vmatprep.subr.bf16.mxu0 %v11964_v1  ;;  %v7782_v38 = vpack.c.bf16 %v321_v37, %v320_v36  ;;  %v407_v40 = vld [vmem:[#allocation5 + $0x8] sm:$0xff]  ;;  %v208_v41 = vld [vmem:[%s9927_s5] sm:$0xff]  ;;  %v412_v53 = vld [vmem:[#allocation5 + $0x30] sm:$0xff]  ;;  %s12139_s5 = sld [smem:[#allocation15_spill]] }
  0x9d   :  { %v7788_v42 = vpack.c.bf16 %v407_v40, %v406_v39  ;;  %v409_v46 = vld [vmem:[#allocation5 + $0x18] sm:$0xff]  ;;  %v410_v50 = vld [vmem:[#allocation5 + $0x20] sm:$0xff]  ;;  %v411_v51 = vld [vmem:[#allocation5 + $0x28] sm:$0xff] }
  0x9e   :  { %7768 = vmatpush3.bf16.msra.mxu1 %v7767_v23  ;;  %v7791_v49 = vpack.c.bf16 %v409_v46, %v408_v45  ;;  %v7794_v52 = vpack.c.bf16 %v411_v51, %v410_v50  ;;  %v413_v54 = vld [vmem:[#allocation5 + $0x38] sm:$0xff]  ;;  %v414_v56 = vld [vmem:[#allocation5 + $0x40] sm:$0xff]  ;;  %v415_v57 = vld [vmem:[#allocation5 + $0x48] sm:$0xff] }
  0x9f   :  { %7759 = vmatpush3.bf16.msra.mxu0 %v7758_v14  ;;  %7769 = vmatprep.subr.bf16.mxu1 %v11964_v1  ;;  %v7797_v55 = vpack.c.bf16 %v413_v54, %v412_v53  ;;  %v7800_v58 = vpack.c.bf16 %v415_v57, %v414_v56  ;;  %v416_v59 = vld [vmem:[#allocation5 + $0x50] sm:$0xff]  ;;  %v417_v60 = vld [vmem:[#allocation5 + $0x58] sm:$0xff]  ;;  %v500_v6 = vld [vmem:[#allocation7] sm:$0xff] }
  0xa0   :  { %7760 = vmatprep.subr.bf16.mxu0 %v11964_v1  ;;  %v7803_v61 = vpack.c.bf16 %v417_v60, %v416_v59  ;;  %v322_v0 = vld [vmem:[#allocation3 + $0x70] sm:$0xff]  ;;  %v323_v3 = vld [vmem:[#allocation3 + $0x78] sm:$0xff]  ;;  %v501_v8 = vld [vmem:[#allocation7 + $0x8] sm:$0xff] }
  0xa1   :  { %v7785_v4 = vpack.c.bf16 %v323_v3, %v322_v0  ;;  %v6507_v5 = vld [vmem:[%s9957_s29] ss:$0 sm:$0xff]  ;;  %v7806_v12 = vpack.c.bf16 %v501_v8, %v500_v6  ;;  %v502_v14 = vld [vmem:[#allocation7 + $0x10] sm:$0xff]  ;;  %v505_v18 = vld [vmem:[#allocation7 + $0x28] sm:$0xff]  ;;  %s12190_s29 = sld [smem:[#allocation24_spill]] }
  0xa2   :  { %7771 = vmatpush3.bf16.msra.mxu1 %v7770_v26  ;;  %v503_v15 = vld [vmem:[#allocation7 + $0x18] sm:$0xff]  ;;  %v506_v20 = vld [vmem:[#allocation7 + $0x30] sm:$0xff]  ;;  %v508_v23 = vld [vmem:[#allocation7 + $0x40] sm:$0xff] }
  0xa3   :  { %7762 = vmatpush3.bf16.msra.mxu0 %v7761_v17  ;;  %7772 = vmatprep.subr.bf16.mxu1 %v11964_v1  ;;  %v7809_v16 = vpack.c.bf16 %v503_v15, %v502_v14  ;;  %v504_v17 = vld [vmem:[#allocation7 + $0x20] sm:$0xff]  ;;  %v507_v21 = vld [vmem:[#allocation7 + $0x38] sm:$0xff]  ;;  %v509_v24 = vld [vmem:[#allocation7 + $0x48] sm:$0xff] }
  0xa4   :  { %7787 = vmatprep.subr.bf16.mxu0 %v11964_v1  ;;  %v7812_v19 = vpack.c.bf16 %v505_v18, %v504_v17  ;;  %v7815_v22 = vpack.c.bf16 %v507_v21, %v506_v20  ;;  %v7818_v25 = vpack.c.bf16 %v509_v24, %v508_v23  ;;  %v510_v26 = vld [vmem:[#allocation7 + $0x50] sm:$0xff]  ;;  %v511_v27 = vld [vmem:[#allocation7 + $0x58] sm:$0xff]  ;;  %v513_v30 = vld [vmem:[#allocation7 + $0x68] sm:$0xff] }
  0xa5   :  { %v7821_v28 = vpack.c.bf16 %v511_v27, %v510_v26  ;;  %v514_v34 = vld [vmem:[#allocation7 + $0x70] sm:$0xff]  ;;  %v6510_v36 = vld [vmem:[%s9977_s19] ss:$0 sm:$0xff]  ;;  %v612_v54 = vld [vmem:[%s9992_s6 + $0x48] sm:$0xff]  ;;  %s12198_s19 = sld [smem:[#allocation26_spill]] }
  0xa6   :  { %7774 = vmatpush3.bf16.msra.mxu1 %v7773_v29  ;;  %v512_v29 = vld [vmem:[#allocation7 + $0x60] sm:$0xff]  ;;  %v609_v50 = vld [vmem:[%s9992_s6 + $0x30] sm:$0xff]  ;;  %v610_v51 = vld [vmem:[%s9992_s6 + $0x38] sm:$0xff] }
  0xa7   :  { %7775 = vmatprep.subr.bf16.mxu1 %v11964_v1  ;;  %v7824_v33 = vpack.c.bf16 %v513_v30, %v512_v29  ;;  %v603_v40 = vld [vmem:[%s9992_s6] sm:$0xff]  ;;  %v613_v56 = vld [vmem:[%s9992_s6 + $0x50] sm:$0xff]  ;;  %v614_v57 = vld [vmem:[%s9992_s6 + $0x58] sm:$0xff] }
  0xa8   :  { %v607_v46 = vld [vmem:[%s9992_s6 + $0x20] sm:$0xff]  ;;  %v616_v60 = vld [vmem:[%s9992_s6 + $0x68] sm:$0xff]  ;;  %v621_v6 = vld [vmem:[%s9992_s6 + $0x90] sm:$0xff] }
  0xa9   :  { %v611_v53 = vld [vmem:[%s9992_s6 + $0x40] sm:$0xff]  ;;  %v622_v8 = vld [vmem:[%s9992_s6 + $0x98] sm:$0xff]  ;;  %v965_v20 = vld [vmem:[%s10007_s27 + $0x48] sm:$0xff] }
  0xaa   :  { %7777 = vmatpush3.bf16.msra.mxu1 %v7776_v32  ;;  %v615_v59 = vld [vmem:[%s9992_s6 + $0x60] sm:$0xff]  ;;  %v959_v14 = vld [vmem:[%s10007_s27 + $0x18] sm:$0xff]  ;;  %v958_v24 = vld [vmem:[%s10007_s27 + $0x10] sm:$0xff] }
  0xab   :  { %7778 = vmatprep.subr.bf16.mxu1 %v11964_v1  ;;  %v619_v3 = vld [vmem:[%s9992_s6 + $0x80] sm:$0xff]  ;;  %v963_v15 = vld [vmem:[%s10007_s27 + $0x38] sm:$0xff] }
  0xac   :  { %v708_v23 = vld [vmem:[#allocation8 + $0x20] sm:$0xff]  ;;  %v6509_v27 = vld [vmem:[%s12139_s5] ss:$0 sm:$0xff] }
  0xad   :  { %v964_v30 = vld [vmem:[%s10007_s27 + $0x40] sm:$0xff] }
  0xae   :  { %7780 = vmatpush3.bf16.msra.mxu1 %v7779_v35  ;;  %v515_v35 = vld [vmem:[#allocation7 + $0x78] sm:$0xff] }
  0xaf   :  { %7781 = vmatprep.subr.bf16.mxu1 %v11964_v1  ;;  %v7827_v37 = vpack.c.bf16 %v515_v35, %v514_v34  ;;  %v706_v35 = vld [vmem:[#allocation8 + $0x10] sm:$0xff] }
  0xb2   :  { %7783 = vmatpush3.bf16.msra.mxu1 %v7782_v38 }
  0xb3   :  { %7784 = vmatprep.subr.bf16.mxu1 %v11964_v1 }
  0xb6   :  { %7786 = vmatpush3.bf16.msra.mxu1 %v7785_v4  ;;  %v620_v4 = vld [vmem:[%s9992_s6 + $0x88] sm:$0xff] }
  0xb7   :  { %7805 = vmatprep.subr.bf16.mxu1 %v11964_v1 }
 0x107   :  { %v214_v43 = vpop.permute.xlu0 %213  ;;  %v595_v44 = vpop.permute.xlu1 %594 }
 0x108   :  { %v217_v47 = vsel %vm216_vm1, %v208_v41, %v214_v43  ;;  %v604_v41 = vld [vmem:[%s9992_s6 + $0x8] sm:$0xff] }
 0x109   :  { %v10169_v48 = vsel %vm233_vm2, %v217_v47, %v595_v44  ;;  %6993 = vmatmul.mubr.msk.f32.vlgmr.msra.gmra.mrb[0].mxu0 %vm233_vm2, %v217_v47  ;;  %v7830_v43 = vpack.c.bf16 %v604_v41, %v603_v40  ;;  %v606_v44 = vld [vmem:[%s9992_s6 + $0x18] sm:$0xff]  ;;  %v725_v41 = vld [vmem:[#allocation10 + $0x48] sm:$0xff] }
 0x10a   :  { %7789 = vmatpush3.bf16.msra.mxu0 %v7788_v42  ;;  %7054 = vmatprep.mubr.msk.f32.mxu0 %vm9913_vm0, %v11962_v2  ;;  %v605_v42 = vld [vmem:[%s9992_s6 + $0x10] sm:$0xff]  ;;  %v719_v40 = vld [vmem:[#allocation10 + $0x18] sm:$0xff] }
 0x10b   :  { %7790 = vmatprep.subr.bf16.mxu0 %v11964_v1  ;;  %v403_v62 = vpop.permute.xlu0 %402  ;;  %v7833_v45 = vpack.c.bf16 %v606_v44, %v605_v42  ;;  %v718_v44 = vld [vmem:[#allocation10 + $0x10] sm:$0xff] }
 0x10c   :  { %v405_v63 = vsel %vm233_vm2, %v217_v47, %v403_v62  ;;  %v608_v47 = vld [vmem:[%s9992_s6 + $0x28] sm:$0xff]  ;;  %v617_v62 = vld [vmem:[%s9992_s6 + $0x70] sm:$0xff] }
 0x10e   :  { %7792 = vmatpush3.bf16.msra.mxu0 %v7791_v49  ;;  %v7836_v49 = vpack.c.bf16 %v608_v47, %v607_v46  ;;  %v731_v46 = vld [vmem:[#allocation10 + $0x78] sm:$0xff]  ;;  %v737_v47 = vld [vmem:[#allocation10 + $0xa8] sm:$0xff] }
 0x10f   :  { %7793 = vmatprep.subr.bf16.mxu0 %v11964_v1 }
 0x112   :  { %7795 = vmatpush3.bf16.msra.mxu0 %v7794_v52  ;;  %v7839_v52 = vpack.c.bf16 %v610_v51, %v609_v50  ;;  %v10266_v50 = vpack.c.bf16 %v737_v47, %v731_v46  ;;  %v730_v51 = vld [vmem:[#allocation10 + $0x70] sm:$0xff]  ;;  %v753_v46 = vld [vmem:[#allocation10 + $0x128] sm:$0xff]  ;;  %v759_v47 = vld [vmem:[#allocation10 + $0x158] sm:$0xff] }
 0x113   :  { %7796 = vmatprep.subr.bf16.mxu0 %v11964_v1 }
 0x114   :  { %12146 = vst [vmem:[#allocation35_spill] sm:$0xff] %v10266_v50 }
 0x116   :  { %7798 = vmatpush3.bf16.msra.mxu0 %v7797_v55  ;;  %v7842_v55 = vpack.c.bf16 %v612_v54, %v611_v53  ;;  %v743_v53 = vld [vmem:[#allocation10 + $0xd8] sm:$0xff]  ;;  %v749_v54 = vld [vmem:[#allocation10 + $0x108] sm:$0xff] }
 0x117   :  { %7799 = vmatprep.subr.bf16.mxu0 %v11964_v1 }
 0x11a   :  { %7801 = vmatpush3.bf16.msra.mxu0 %v7800_v58  ;;  %v7845_v58 = vpack.c.bf16 %v614_v57, %v613_v56  ;;  %v10275_v56 = vpack.c.bf16 %v749_v54, %v743_v53  ;;  %v742_v57 = vld [vmem:[#allocation10 + $0xd0] sm:$0xff]  ;;  %v765_v54 = vld [vmem:[#allocation10 + $0x188] sm:$0xff] }
 0x11b   :  { %7802 = vmatprep.subr.bf16.mxu0 %v11964_v1  ;;  %v758_v53 = vld [vmem:[#allocation10 + $0x150] sm:$0xff] }
 0x11c   :  { %12148 = vst [vmem:[#allocation37_spill] sm:$0xff] %v10275_v56 }
 0x11e   :  { %7804 = vmatpush3.bf16.msra.mxu0 %v7803_v61  ;;  %v7848_v61 = vpack.c.bf16 %v616_v60, %v615_v59  ;;  %v755_v59 = vld [vmem:[#allocation10 + $0x138] sm:$0xff]  ;;  %v761_v60 = vld [vmem:[#allocation10 + $0x168] sm:$0xff] }
 0x11f   :  { %7829 = vmatprep.subr.bf16.mxu0 %v11964_v1 }
 0x121   :  { %7055 = vmatmul.mubr.msk.f32.vlgmr.msra.gmra.mrb[2].mxu0 %vm425_vm3, %v405_v63  ;;  %v618_v63 = vld [vmem:[%s9992_s6 + $0x78] sm:$0xff]  ;;  %s12211_s6 = sld [smem:[#allocation21_spill]] }
 0x122   :  { %7831 = vmatpush1.bf16.msra.mxu0 %v7830_v43  ;;  %v7851_v0 = vpack.c.bf16 %v618_v63, %v617_v62  ;;  %v10257_v43 = vpack.c.bf16 %v725_v41, %v719_v40  ;;  %v10281_v62 = vpack.c.bf16 %v761_v60, %v755_v59  ;;  %v754_v63 = vld [vmem:[#allocation10 + $0x130] sm:$0xff]  ;;  %v764_v60 = vld [vmem:[#allocation10 + $0x180] sm:$0xff] }
 0x123   :  { %7832 = vmatprep.subr.bf16.mxu0 %v11964_v1 }
 0x124   :  { %12144 = vst [vmem:[#allocation33_spill] sm:$0xff] %v10257_v43  ;;  %12151 = vst [vmem:[#allocation39_spill] sm:$0xff] %v10281_v62 }
 0x126   :  { %7834 = vmatpush1.bf16.msra.mxu0 %v7833_v45  ;;  %v724_v45 = vld [vmem:[#allocation10 + $0x40] sm:$0xff] }
 0x127   :  { %7835 = vmatprep.subr.bf16.mxu0 %v11964_v1 }
 0x12a   :  { %7837 = vmatpush1.bf16.msra.mxu0 %v7836_v49  ;;  %v10261_v49 = vld [vmem:[%s12142_s13] sm:$0xff] }
 0x12b   :  { %7838 = vmatprep.subr.bf16.mxu0 %v11964_v1 }
 0x12e   :  { %7840 = vmatpush1.bf16.msra.mxu0 %v7839_v52  ;;  %v736_v52 = vld [vmem:[#allocation10 + $0xa0] sm:$0xff] }
 0x12f   :  { %7841 = vmatprep.subr.bf16.mxu0 %v11964_v1 }
 0x132   :  { %7843 = vmatpush1.bf16.msra.mxu0 %v7842_v55  ;;  %v10271_v55 = vpack.c.bf16 %v736_v52, %v730_v51  ;;  %v752_v52 = vld [vmem:[#allocation10 + $0x120] sm:$0xff] }
 0x133   :  { %7844 = vmatprep.subr.bf16.mxu0 %v11964_v1 }
 0x134   :  { %12147 = vst [vmem:[#allocation36_spill] sm:$0xff] %v10271_v55 }
 0x136   :  { %7846 = vmatpush1.bf16.msra.mxu0 %v7845_v58  ;;  %v748_v58 = vld [vmem:[#allocation10 + $0x100] sm:$0xff] }
 0x137   :  { %7847 = vmatprep.subr.bf16.mxu0 %v11964_v1 }
 0x13a   :  { %7849 = vmatpush1.bf16.msra.mxu0 %v7848_v61  ;;  %v10278_v61 = vpack.c.bf16 %v748_v58, %v742_v57  ;;  %v771_v57 = vld [vmem:[#allocation10 + $0x1b8] sm:$0xff]  ;;  %v10331_v58 = vpack.c.bf16 %v758_v53, %v752_v52  ;;  %v809_v53 = vld [vmem:[#allocation10 + $0x2e8] sm:$0xff] }
 0x13b   :  { %7850 = vmatprep.subr.bf16.mxu0 %v11964_v1  ;;  %v10334_v59 = vpack.c.bf16 %v771_v57, %v765_v54  ;;  %v803_v52 = vld [vmem:[#allocation10 + $0x2b8] sm:$0xff]  ;;  %v802_v54 = vld [vmem:[#allocation10 + $0x2b0] sm:$0xff] }
 0x13c   :  { %12150 = vst [vmem:[#allocation38_spill] sm:$0xff] %v10278_v61  ;;  %12161 = vst [vmem:[#allocation49_spill] sm:$0xff] %v10331_v58  ;;  %v10368_v57 = vpack.c.bf16 %v809_v53, %v803_v52  ;;  %v738_v52 = vld [vmem:[#allocation10 + $0xb0] sm:$0xff] }
 0x13d   :  { %12162 = vst [vmem:[#allocation50_spill] sm:$0xff] %v10334_v59 }
 0x13e   :  { %7852 = vmatpush1.bf16.msra.mxu0 %v7851_v0  ;;  %v760_v0 = vld [vmem:[#allocation10 + $0x160] sm:$0xff]  ;;  %12174 = vst [vmem:[#allocation62_spill] sm:$0xff] %v10368_v57 }
 0x13f   :  { %7853 = vmatprep.subr.bf16.mxu0 %v11964_v1 }
 0x1dc   :  { %v303_v9 = vpop.f32.mrb[0].mxu0 }
 0x1dd   :  { %v304_v10 = vadd.f32 %v6507_v5, %v303_v9  ;;  %v6994_v11 = vpop.f32.mrb[1].mxu0  ;;  %v7854_v5 = vpack.c.bf16 %v620_v4, %v619_v3  ;;  %v7857_v9 = vpack.c.bf16 %v622_v8, %v621_v6  ;;  %v767_v3 = vld [vmem:[#allocation10 + $0x198] sm:$0xff]  ;;  %v773_v4 = vld [vmem:[#allocation10 + $0x1c8] sm:$0xff]  ;;  %v766_v8 = vld [vmem:[#allocation10 + $0x190] sm:$0xff] }
 0x1de   :  { %v960_v11 = vld [vmem:[%s10007_s27 + $0x20] sm:$0xff]  ;;  %v10287_v6 = vpack.c.bf16 %v773_v4, %v767_v3  ;;  %v777_v3 = vld [vmem:[#allocation10 + $0x1e8] sm:$0xff] }
 0x1df   :  { %v307_v13 = vmax.f32 %v304_v10, 0.0  ;;  %7855 = vmatpush1.bf16.msra.mxu0 %v7854_v5  ;;  %v957_v10 = vld [vmem:[%s10007_s27 + $0x8] sm:$0xff]  ;;  %v10284_v5 = vpack.c.bf16 %v760_v0, %v754_v63  ;;  %v770_v63 = vld [vmem:[#allocation10 + $0x1b0] sm:$0xff]  ;;  %v783_v4 = vld [vmem:[#allocation10 + $0x218] sm:$0xff] }
 0x1e0   :  { %7856 = vmatprep.subr.bf16.mxu0 %v11964_v1  ;;  %12153 = vst [vmem:[#allocation41_spill] sm:$0xff] %v10287_v6  ;;  %v10337_v0 = vpack.c.bf16 %v770_v63, %v764_v60  ;;  %v808_v60 = vld [vmem:[#allocation10 + $0x2e0] sm:$0xff]  ;;  %v721_v63 = vld [vmem:[#allocation10 + $0x28] sm:$0xff] }
 0x1e1   :  { %7028 = vmatmul.mubr.f32.vlgmr.msra.gmra.mrb[0].mxu1 %v307_v13  ;;  %v7859_v13 = vpack.c.bf16 %v960_v11, %v957_v10  ;;  %12152 = vst [vmem:[#allocation40_spill] sm:$0xff] %v10284_v5  ;;  %v6512_v10 = vld [vmem:[%s12149_s17] ss:$0 sm:$0xff] }
 0x1e2   :  { %7807 = vmatpush3.bf16.msra.mxu1 %v7806_v12  ;;  %7089 = vmatprep.mubr.msk.f32.mxu1 %vm9913_vm0, %v11962_v2  ;;  %v956_v12 = vld [vmem:[%s10007_s27] sm:$0xff]  ;;  %12163 = vst [vmem:[#allocation51_spill] sm:$0xff] %v10337_v0 }
 0x1e3   :  { %7808 = vmatprep.subr.bf16.mxu1 %v11964_v1  ;;  %7858 = vmatpush1.bf16.msra.mxu0 %v7857_v9  ;;  %v7861_v17 = vpack.c.bf16 %v959_v14, %v956_v12  ;;  %v772_v9 = vld [vmem:[#allocation10 + $0x1c0] sm:$0xff] }
 0x1e4   :  { %v10291_v11 = vpack.c.bf16 %v772_v9, %v766_v8  ;;  %v10341_v8 = vpack.c.bf16 %v783_v4, %v777_v3  ;;  %v776_v9 = vld [vmem:[#allocation10 + $0x1e0] sm:$0xff]  ;;  %v727_v3 = vld [vmem:[#allocation10 + $0x58] sm:$0xff]  ;;  %v10372_v4 = vpack.c.bf16 %v808_v60, %v802_v54  ;;  %v745_v54 = vld [vmem:[#allocation10 + $0xe8] sm:$0xff] }
 0x1e5   :  { %v751_v60 = vld [vmem:[#allocation10 + $0x118] sm:$0xff] }
 0x1e6   :  { %7810 = vmatpush3.bf16.msra.mxu1 %v7809_v16  ;;  %v966_v16 = vld [vmem:[%s10007_s27 + $0x50] sm:$0xff]  ;;  %12154 = vst [vmem:[#allocation42_spill] sm:$0xff] %v10291_v11  ;;  %12164 = vst [vmem:[#allocation52_spill] sm:$0xff] %v10341_v8 }
 0x1e7   :  { %7811 = vmatprep.subr.bf16.mxu1 %v11964_v1  ;;  %v7863_v18 = vpack.c.bf16 %v966_v16, %v963_v15  ;;  %v704_v15 = vld [vmem:[#allocation8] sm:$0xff]  ;;  %v707_v16 = vld [vmem:[#allocation8 + $0x18] sm:$0xff]  ;;  %12176 = vst [vmem:[#allocation63_spill] sm:$0xff] %v10372_v4 }
 0x1ea   :  { %7813 = vmatpush3.bf16.msra.mxu1 %v7812_v19  ;;  %v962_v19 = vld [vmem:[%s10007_s27 + $0x30] sm:$0xff] }
 0x1eb   :  { %7814 = vmatprep.subr.bf16.mxu1 %v11964_v1  ;;  %v7865_v21 = vpack.c.bf16 %v965_v20, %v962_v19  ;;  %v10296_v19 = vpack.c.bf16 %v707_v16, %v704_v15  ;;  %v778_v15 = vld [vmem:[#allocation10 + $0x1f0] sm:$0xff]  ;;  %v784_v16 = vld [vmem:[#allocation10 + $0x220] sm:$0xff] }
 0x1ee   :  { %7816 = vmatpush3.bf16.msra.mxu1 %v7815_v22  ;;  %v705_v22 = vld [vmem:[#allocation8 + $0x8] sm:$0xff] }
 0x1ef   :  { %7817 = vmatprep.subr.bf16.mxu1 %v11964_v1  ;;  %v10234_v26 = vpack.c.bf16 %v708_v23, %v705_v22  ;;  %v710_v22 = vld [vmem:[#allocation8 + $0x30] sm:$0xff]  ;;  %v713_v23 = vld [vmem:[#allocation8 + $0x48] sm:$0xff] }
 0x1f1   :  { %12140 = vst [vmem:[#allocation30_spill] sm:$0xff] %v10234_v26  ;;  %7874 = vmatprep.subr.bf16.mxu0 %v10234_v26 }
 0x1f2   :  { %7819 = vmatpush3.bf16.msra.mxu1 %v7818_v25  ;;  %v961_v25 = vld [vmem:[%s10007_s27 + $0x28] sm:$0xff] }
 0x1f3   :  { %7820 = vmatprep.subr.bf16.mxu1 %v11964_v1 }
 0x1f4   :  { %v495_v31 = vpop.f32.mrb[2].mxu0 }
 0x1f5   :  { %v7056_v32 = vpop.f32.mrb[3].mxu0  ;;  %v496_v38 = vadd.f32 %v6510_v36, %v495_v31  ;;  %v967_v31 = vld [vmem:[%s10007_s27 + $0x58] sm:$0xff]  ;;  %v709_v36 = vld [vmem:[#allocation8 + $0x28] sm:$0xff]  ;;  %s12212_s27 = sld [smem:[#allocation18_spill]] }
 0x1f6   :  { %7822 = vmatpush3.bf16.msra.mxu1 %v7821_v28  ;;  %v7868_v28 = vpack.c.bf16 %v961_v25, %v958_v24  ;;  %v7871_v34 = vpack.c.bf16 %v967_v31, %v964_v30  ;;  %v717_v25 = vld [vmem:[#allocation10 + $0x8] sm:$0xff]  ;;  %v716_v30 = vld [vmem:[#allocation10] sm:$0xff]  ;;  %v722_v31 = vld [vmem:[#allocation10 + $0x30] sm:$0xff] }
 0x1f7   :  { %7823 = vmatprep.subr.bf16.mxu1 %v11964_v1  ;;  %v499_v39 = vmax.f32 %v496_v38, 0.0  ;;  %v712_v38 = vld [vmem:[#allocation8 + $0x40] sm:$0xff] }
 0x1fa   :  { %7825 = vmatpush3.bf16.msra.mxu1 %v7824_v33 }
 0x1fb   :  { %7826 = vmatprep.subr.bf16.mxu1 %v11964_v1 }
 0x1fe   :  { %7828 = vmatpush3.bf16.msra.mxu1 %v7827_v37  ;;  %v10246_v37 = vpack.c.bf16 %v709_v36, %v706_v35  ;;  %v728_v35 = vld [vmem:[#allocation10 + $0x60] sm:$0xff]  ;;  %v734_v36 = vld [vmem:[#allocation10 + $0x90] sm:$0xff] }
 0x1ff   :  { %7860 = vmatprep.subr.bf16.mxu1 %v7859_v13  ;;  %v10318_v40 = vpack.c.bf16 %v734_v36, %v728_v35  ;;  %v796_v35 = vld [vmem:[#allocation10 + $0x280] sm:$0xff]  ;;  %v801_v36 = vld [vmem:[#allocation10 + $0x2a8] sm:$0xff] }
 0x200   :  { %12141 = vst [vmem:[#allocation31_spill] sm:$0xff] %v10246_v37 }
 0x201   :  { %7090 = vmatmul.mubr.f32.vlgmr.msra.gmra.mrb[2].mxu1 %v499_v39  ;;  %v715_v39 = vld [vmem:[#allocation8 + $0x58] sm:$0xff]  ;;  %12157 = vst [vmem:[#allocation45_spill] sm:$0xff] %v10318_v40 }
 0x202   :  { %1034 = vmatprep.mubr.f32.mxu1 %v11962_v2  ;;  %7862 = vmatpush1.bf16.msra.mxu1 %v7861_v17  ;;  %v10252_v42 = vpack.c.bf16 %v715_v39, %v712_v38  ;;  %v711_v17 = vld [vmem:[#allocation8 + $0x38] sm:$0xff]  ;;  %v741_v38 = vld [vmem:[#allocation10 + $0xc8] sm:$0xff] }
 0x203   :  { %7864 = vmatprep.subr.bf16.mxu1 %v7863_v18  ;;  %v714_v18 = vld [vmem:[#allocation8 + $0x50] sm:$0xff]  ;;  %v747_v39 = vld [vmem:[#allocation10 + $0xf8] sm:$0xff] }
 0x204   :  { %12143 = vst [vmem:[#allocation32_spill] sm:$0xff] %v10252_v42  ;;  %v10322_v41 = vpack.c.bf16 %v747_v39, %v741_v38  ;;  %v807_v39 = vld [vmem:[#allocation10 + $0x2d8] sm:$0xff] }
 0x206   :  { %7866 = vmatpush1.bf16.msra.mxu1 %v7865_v21  ;;  %v10298_v21 = vpack.c.bf16 %v714_v18, %v711_v17  ;;  %12158 = vst [vmem:[#allocation46_spill] sm:$0xff] %v10322_v41  ;;  %v10348_v18 = vpack.c.bf16 %v784_v16, %v778_v15 }
 0x207   :  { %7867 = vmatprep.subr.bf16.mxu1 %v11964_v1 }
 0x208   :  { %12167 = vst [vmem:[#allocation55_spill] sm:$0xff] %v10348_v18 }
 0x209   :  { %6523 = vmatmul.mubr.msk.f32.vlgmr.msra.gmra.mrb[4].mxu1 %vm216_vm1, %v10146_v7 }
 0x20a   :  { %7869 = vmatpush3.bf16.msra.mxu1 %v7868_v28  ;;  %7100 = vmatprep.mubr.msk.f32.mxu1 %vm9913_vm0, %v11962_v2  ;;  %v10303_v28 = vpack.c.bf16 %v713_v23, %v710_v22  ;;  %v795_v22 = vld [vmem:[#allocation10 + $0x278] sm:$0xff]  ;;  %v788_v23 = vld [vmem:[#allocation10 + $0x240] sm:$0xff] }
 0x20b   :  { %7870 = vmatprep.subr.bf16.mxu1 %v11964_v1 }
 0x20e   :  { %7872 = vmatpush3.bf16.msra.mxu1 %v7871_v34 }
 0x20f   :  { %7881 = vmatprep.subr.bf16.mxu1 %v11964_v1 }
 0x211   :  { %7101 = vmatmul.mubr.msk.f32.vlgmr.msra.gmra.mrb[6].mxu1 %vm216_vm1, %v10146_v7  ;;  %v10263_v7 = vpack.c.bf16 %v724_v45, %v718_v44  ;;  %v740_v44 = vld [vmem:[#allocation10 + $0xc0] sm:$0xff]  ;;  %v746_v45 = vld [vmem:[#allocation10 + $0xf0] sm:$0xff] }
 0x212   :  { %7883 = vmatpush3.bf16.msra.mxu1 %v10246_v37  ;;  %7111 = vmatprep.mubr.msk.f32.mxu1 %vm9913_vm0, %v11962_v2  ;;  %v10325_v51 = vpack.c.bf16 %v746_v45, %v740_v44  ;;  %v800_v44 = vld [vmem:[#allocation10 + $0x2a0] sm:$0xff]  ;;  %v806_v45 = vld [vmem:[#allocation10 + $0x2d0] sm:$0xff] }
 0x213   :  { %7884 = vmatprep.subr.bf16.mxu1 %v11964_v1  ;;  %12145 = vst [vmem:[#allocation34_spill] sm:$0xff] %v10263_v7 }
 0x214   :  { %12159 = vst [vmem:[#allocation47_spill] sm:$0xff] %v10325_v51 }
 0x216   :  { %7886 = vmatpush3.bf16.msra.mxu1 %v10252_v42 }
 0x217   :  { %7920 = vmatprep.subr.bf16.mxu1 %v10257_v43 }
 0x219   :  { %7112 = vmatmul.mubr.msk.f32.vlgmr.msra.gmra.mrb[8].mxu1 %vm216_vm1, %v10261_v49 }
 0x21a   :  { %7922 = vmatpush1.bf16.msra.mxu1 %v10263_v7  ;;  %1413 = vmatprep.mubr.f32.mxu1 %v11962_v2 }
 0x21b   :  { %7924 = vmatprep.subr.bf16.mxu1 %v10266_v50 }
 0x21e   :  { %7926 = vmatpush1.bf16.msra.mxu1 %v10271_v55 }
 0x21f   :  { %7928 = vmatprep.subr.bf16.mxu1 %v10275_v56 }
 0x222   :  { %7930 = vmatpush1.bf16.msra.mxu1 %v10278_v61 }
 0x223   :  { %7932 = vmatprep.subr.bf16.mxu1 %v10281_v62 }
 0x226   :  { %7934 = vmatpush1.bf16.msra.mxu1 %v10284_v5  ;;  %v10561_v5 = vld [vmem:[%s12220_s12] ss:$0 sm:$0xff] }
 0x227   :  { %7936 = vmatprep.subr.bf16.mxu1 %v10287_v6  ;;  %12223 = vst [vmem:[#allocation101_spill] sm:$0xff] %v10561_v5 }
 0x22a   :  { %7938 = vmatpush1.bf16.msra.mxu1 %v10291_v11 }
 0x2b4   :  { %v397_v29 = vpop.f32.mrb[0].mxu1 }
 0x2b5   :  { %v398_v32 = vadd.f32 %v6509_v27, %v397_v29  ;;  %v7029_v33 = vpop.f32.mrb[1].mxu1  ;;  %v723_v27 = vld [vmem:[#allocation10 + $0x38] sm:$0xff] }
 0x2b6   :  { %v10307_v29 = vpack.c.bf16 %v723_v27, %v717_v25  ;;  %v735_v33 = vld [vmem:[#allocation10 + $0x98] sm:$0xff]  ;;  %v794_v25 = vld [vmem:[#allocation10 + $0x270] sm:$0xff] }
 0x2b7   :  { %598 = vrot.lane.b32.xlu1 %v398_v32, %s9917_s9  ;;  %v729_v32 = vld [vmem:[#allocation10 + $0x68] sm:$0xff]  ;;  %v791_v27 = vld [vmem:[#allocation10 + $0x258] sm:$0xff] }
 0x2b8   :  { %v10313_v34 = vpack.c.bf16 %v735_v33, %v729_v32  ;;  %v790_v33 = vld [vmem:[#allocation10 + $0x250] sm:$0xff] }
 0x2b9   :  { %v10360_v38 = vpack.c.bf16 %v796_v35, %v790_v33  ;;  %v726_v33 = vld [vmem:[#allocation10 + $0x50] sm:$0xff]  ;;  %v733_v35 = vld [vmem:[#allocation10 + $0x88] sm:$0xff] }
 0x2ba   :  { %12156 = vst [vmem:[#allocation44_spill] sm:$0xff] %v10313_v34 }
 0x2bb   :  { %12171 = vst [vmem:[#allocation59_spill] sm:$0xff] %v10360_v38 }
 0x2d4   :  { %v589_v12 = vpop.f32.mrb[2].mxu1 }
 0x2d5   :  { %v590_v13 = vadd.f32 %v6512_v10, %v589_v12  ;;  %v7091_v14 = vpop.f32.mrb[3].mxu1  ;;  %v782_v10 = vld [vmem:[#allocation10 + $0x210] sm:$0xff]  ;;  %v779_v12 = vld [vmem:[#allocation10 + $0x1f8] sm:$0xff] }
 0x2d6   :  { %v785_v14 = vld [vmem:[#allocation10 + $0x228] sm:$0xff] }
 0x2d7   :  { %6514 = vmatprep.mubr.msk.f32.mxu0 %vm216_vm1, %v590_v13  ;;  %v10343_v13 = vpack.c.bf16 %v782_v10, %v776_v9  ;;  %v10346_v17 = vpack.c.bf16 %v785_v14, %v779_v12  ;;  %v10374_v9 = vpack.c.bf16 %v727_v3, %v721_v63  ;;  %v10403_v3 = vpack.c.bf16 %v751_v60, %v745_v54  ;;  %v768_v54 = vld [vmem:[#allocation10 + $0x1a0] sm:$0xff]  ;;  %v774_v60 = vld [vmem:[#allocation10 + $0x1d0] sm:$0xff] }
 0x2d9   :  { %12165 = vst [vmem:[#allocation53_spill] sm:$0xff] %v10343_v13  ;;  %12166 = vst [vmem:[#allocation54_spill] sm:$0xff] %v10346_v17  ;;  %7940 = vmatprep.subr.bf16.mxu1 %v10346_v17 }
 0x2da   :  { %7942 = vmatpush1.bf16.msra.mxu1 %v10348_v18  ;;  %12177 = vst [vmem:[#allocation64_spill] sm:$0xff] %v10374_v9  ;;  %12181 = vst [vmem:[#allocation68_spill] sm:$0xff] %v10403_v3 }
 0x2dc   :  { %v10381_v10 = vpop.f32.mrb[4].mxu1 }
 0x2dd   :  { %v10383_v12 = vpop.f32.mrb[5].mxu1 }
 0x2e4   :  { %v10385_v14 = vpop.f32.mrb[6].mxu1 }
 0x2e5   :  { %v7102_v15 = vpop.f32.mrb[7].mxu1 }
 0x2e6   :  { %v744_v15 = vld [vmem:[#allocation10 + $0xe0] sm:$0xff] }
 0x2ec   :  { %v10387_v16 = vpop.f32.mrb[8].mxu1 }
 0x329   :  { %v599_v20 = vpop.permute.xlu1 %598 }
 0x32a   :  { %v602_v24 = vsel %vm425_vm3, %v10169_v48, %v599_v20  ;;  %v10310_v48 = vpack.c.bf16 %v722_v31, %v716_v30  ;;  %v789_v20 = vld [vmem:[#allocation10 + $0x248] sm:$0xff]  ;;  %v10355_v31 = vpack.c.bf16 %v794_v25, %v788_v23 }
 0x32b   :  { %698 = vmatmul.mubr.f32.vlgmr.msra.gmra.mrb[4].mxu0 %v602_v24  ;;  %v10352_v24 = vpack.c.bf16 %v795_v22, %v789_v20  ;;  %v797_v30 = vld [vmem:[#allocation10 + $0x288] sm:$0xff]  ;;  %v7113_v20 = vpop.f32.mrb[9].mxu1  ;;  %v6513_v22 = vld [vmem:[%s12175_s25] ss:$0 sm:$0xff] }
 0x32c   :  { %7876 = vmatpush1.bf16.msra.mxu0 %v10296_v19  ;;  %1201 = vmatprep.mubr.f32.mxu0 %v11962_v2  ;;  %12155 = vst [vmem:[#allocation43_spill] sm:$0xff] %v10310_v48  ;;  %12169 = vst [vmem:[#allocation57_spill] sm:$0xff] %v10355_v31  ;;  %v10357_v32 = vpack.c.bf16 %v797_v30, %v791_v27  ;;  %v720_v30 = vld [vmem:[#allocation10 + $0x20] sm:$0xff]  ;;  %v750_v20 = vld [vmem:[#allocation10 + $0x110] sm:$0xff] }
 0x32d   :  { %7878 = vmatprep.subr.bf16.mxu0 %v10298_v21  ;;  %12168 = vst [vmem:[#allocation56_spill] sm:$0xff] %v10352_v24 }
 0x32e   :  { %12170 = vst [vmem:[#allocation58_spill] sm:$0xff] %v10357_v32  ;;  %7944 = vmatprep.subr.bf16.mxu1 %v10357_v32  ;;  %v848_v32 = vld [vmem:[%s12190_s29 + $0x20] sm:$0xff] }
 0x32f   :  { %7946 = vmatpush1.bf16.msra.mxu1 %v10360_v38 }
 0x330   :  { %7880 = vmatpush1.bf16.msra.mxu0 %v10303_v28  ;;  %7948 = vmatprep.subr.bf16.mxu1 %v10368_v57  ;;  %v798_v57 = vld [vmem:[#allocation10 + $0x290] sm:$0xff] }
 0x331   :  { %7888 = vmatprep.subr.bf16.mxu0 %v10307_v29 }
 0x333   :  { %6526 = vmatmul.mubr.msk.f32.vlgmr.msra.gmra.mrb[6].mxu0 %vm216_vm1, %v10261_v49  ;;  %v10328_v49 = vpack.c.bf16 %v759_v47, %v753_v46  ;;  %v10364_v46 = vpack.c.bf16 %v807_v39, %v801_v36  ;;  %v10366_v47 = vpack.c.bf16 %v806_v45, %v800_v44  ;;  %7950 = vmatpush1.bf16.msra.mxu1 %v10372_v4  ;;  %v739_v36 = vld [vmem:[#allocation10 + $0xb8] sm:$0xff]  ;;  %v732_v45 = vld [vmem:[#allocation10 + $0x80] sm:$0xff] }
 0x334   :  { %7890 = vmatpush1.bf16.msra.mxu0 %v10310_v48  ;;  %1342 = vmatprep.mubr.f32.mxu0 %v11962_v2  ;;  %v10390_v39 = vpack.c.bf16 %v726_v33, %v720_v30  ;;  %v10392_v44 = vpack.c.bf16 %v739_v36, %v733_v35  ;;  %v10399_v63 = vpack.c.bf16 %v738_v52, %v732_v45  ;;  %v756_v30 = vld [vmem:[#allocation10 + $0x140] sm:$0xff]  ;;  %v762_v33 = vld [vmem:[#allocation10 + $0x170] sm:$0xff]  ;;  %v769_v35 = vld [vmem:[#allocation10 + $0x1a8] sm:$0xff] }
 0x335   :  { %7892 = vmatprep.subr.bf16.mxu0 %v10313_v34  ;;  %12160 = vst [vmem:[#allocation48_spill] sm:$0xff] %v10328_v49  ;;  %12172 = vst [vmem:[#allocation60_spill] sm:$0xff] %v10364_v46  ;;  %7983 = vmatprep.subr.bf16.mxu1 %v11964_v1  ;;  %v775_v36 = vld [vmem:[#allocation10 + $0x1d8] sm:$0xff]  ;;  %v10414_v45 = vpack.c.bf16 %v762_v33, %v756_v30  ;;  %v786_v1 = vld [vmem:[#allocation10 + $0x230] sm:$0xff] }
 0x336   :  { %12173 = vst [vmem:[#allocation61_spill] sm:$0xff] %v10366_v47  ;;  %12178 = vst [vmem:[#allocation65_spill] sm:$0xff] %v10390_v39  ;;  %v10417_v52 = vpack.c.bf16 %v775_v36, %v769_v35  ;;  %v793_v30 = vld [vmem:[#allocation10 + $0x268] sm:$0xff]  ;;  %v799_v33 = vld [vmem:[#allocation10 + $0x298] sm:$0xff] }
 0x337   :  { %12179 = vst [vmem:[#allocation66_spill] sm:$0xff] %v10392_v44  ;;  %12180 = vst [vmem:[#allocation67_spill] sm:$0xff] %v10399_v63  ;;  %v10429_v36 = vpack.c.bf16 %v799_v33, %v793_v30  ;;  %v792_v4 = vld [vmem:[#allocation10 + $0x260] sm:$0xff] }
 0x338   :  { %7894 = vmatpush1.bf16.msra.mxu0 %v10318_v40  ;;  %12184 = vst [vmem:[#allocation71_spill] sm:$0xff] %v10414_v45  ;;  %12185 = vst [vmem:[#allocation72_spill] sm:$0xff] %v10417_v52  ;;  %v844_v33 = vld [vmem:[%s12190_s29] sm:$0xff] }
 0x339   :  { %7896 = vmatprep.subr.bf16.mxu0 %v10322_v41  ;;  %12189 = vst [vmem:[#allocation76_spill] sm:$0xff] %v10429_v36 }
 0x33c   :  { %7898 = vmatpush1.bf16.msra.mxu0 %v10325_v51 }
 0x33d   :  { %7900 = vmatprep.subr.bf16.mxu0 %v10328_v49 }
 0x340   :  { %7902 = vmatpush1.bf16.msra.mxu0 %v10331_v58 }
 0x341   :  { %7904 = vmatprep.subr.bf16.mxu0 %v10334_v59 }
 0x344   :  { %7906 = vmatpush1.bf16.msra.mxu0 %v10337_v0 }
 0x345   :  { %7908 = vmatprep.subr.bf16.mxu0 %v10341_v8 }
 0x348   :  { %7910 = vmatpush1.bf16.msra.mxu0 %v10343_v13 }
 0x349   :  { %7912 = vmatprep.subr.bf16.mxu0 %v10352_v24 }
 0x34c   :  { %7914 = vmatpush1.bf16.msra.mxu0 %v10355_v31 }
 0x34d   :  { %7916 = vmatprep.subr.bf16.mxu0 %v10364_v46 }
 0x350   :  { %7918 = vmatpush1.bf16.msra.mxu0 %v10366_v47 }
 0x351   :  { %7952 = vmatprep.subr.bf16.mxu0 %v10374_v9 }
 0x3fe   :  { %v699_v23 = vpop.f32.mrb[4].mxu0 }
 0x3ff   :  { %v700_v25 = vadd.f32 %v6513_v22, %v699_v23  ;;  %v701_v27 = vpop.f32.mrb[5].mxu0  ;;  %v757_v22 = vld [vmem:[#allocation10 + $0x148] sm:$0xff]  ;;  %v763_v23 = vld [vmem:[#allocation10 + $0x178] sm:$0xff] }
 0x400   :  { %v10411_v27 = vpack.c.bf16 %v763_v23, %v757_v22  ;;  %v10420_v22 = vpack.c.bf16 %v774_v60, %v768_v54  ;;  %v805_v54 = vld [vmem:[#allocation10 + $0x2c8] sm:$0xff]  ;;  %v811_v60 = vld [vmem:[#allocation10 + $0x2f8] sm:$0xff] }
 0x401   :  { %9462 = vtanh.f32 %v700_v25  ;;  %v10408_v25 = vpack.c.bf16 %v750_v20, %v744_v15  ;;  %v781_v15 = vld [vmem:[#allocation10 + $0x208] sm:$0xff]  ;;  %v787_v20 = vld [vmem:[#allocation10 + $0x238] sm:$0xff] }
 0x402   :  { %12183 = vst [vmem:[#allocation70_spill] sm:$0xff] %v10411_v27  ;;  %12186 = vst [vmem:[#allocation73_spill] sm:$0xff] %v10420_v22  ;;  %v10423_v23 = vpack.c.bf16 %v787_v20, %v781_v15  ;;  %v10432_v15 = vpack.c.bf16 %v798_v57, %v792_v4  ;;  %v10435_v20 = vpack.c.bf16 %v811_v60, %v805_v54  ;;  %v12194_v57 = vmov 0.0|0.0   ;;  %v845_v54 = vld [vmem:[%s12190_s29 + $0x8] sm:$0xff] }
 0x403   :  { %12182 = vst [vmem:[#allocation69_spill] sm:$0xff] %v10408_v25  ;;  %v12195_v4 = vmov 0.0   ;;  %v10448_v60 = vpack.c.bf16 %v845_v54, %v844_v33  ;;  %v850_v54 = vld [vmem:[%s12190_s29 + $0x30] sm:$0xff] }
 0x404   :  { %12187 = vst [vmem:[#allocation74_spill] sm:$0xff] %v10423_v23  ;;  %12191 = vst [vmem:[#allocation77_spill] sm:$0xff] %v10432_v15 }
 0x405   :  { %12192 = vst [vmem:[#allocation78_spill] sm:$0xff] %v10435_v20  ;;  %12196 = vst [vmem:[#allocation80_spill] sm:$0xff] %v10448_v60 }
 0x40b   :  { %v10394_v53 = vpop.eup %9462 }
 0x40c   :  { %1343 = vmatmul.mubr.f32.vlgmr.msra.gmra.mrb[6].mxu0 %v10394_v53  ;;  %1414 = vmatmul.mubr.f32.vlgmr.msra.gmra.mrb[10].mxu1 %v10394_v53 }
 0x40d   :  { %7954 = vmatpush1.bf16.msra.mxu0 %v10390_v39  ;;  %1484 = vmatprep.mubr.f32.mxu0 %v11962_v2 }
 0x40e   :  { %7956 = vmatprep.subr.bf16.mxu0 %v10392_v44  ;;  %7146 = vmatprep.mubr.msk.f32.mxu1 %vm9913_vm0, %v11962_v2  ;;  %v780_v2 = vld [vmem:[#allocation10 + $0x200] sm:$0xff] }
 0x40f   :  { %v10426_v35 = vpack.c.bf16 %v786_v1, %v780_v2  ;;  %v804_v1 = vld [vmem:[#allocation10 + $0x2c0] sm:$0xff]  ;;  %v810_v2 = vld [vmem:[#allocation10 + $0x2f0] sm:$0xff]  ;;  %7985 = vmatpush3.bf16.msra.mxu1 %v10448_v60 }
 0x410   :  { %v10438_v30 = vpack.c.bf16 %v810_v2, %v804_v1  ;;  %7986 = vmatprep.subr.bf16.mxu1 %v12194_v57  ;;  %v846_v1 = vld [vmem:[%s12190_s29 + $0x10] sm:$0xff]  ;;  %v847_v2 = vld [vmem:[%s12190_s29 + $0x18] sm:$0xff] }
 0x411   :  { %7958 = vmatpush1.bf16.msra.mxu0 %v10399_v63  ;;  %12188 = vst [vmem:[#allocation75_spill] sm:$0xff] %v10426_v35  ;;  %v10454_v38 = vpack.c.bf16 %v847_v2, %v846_v1  ;;  %v851_v60 = vld [vmem:[%s12190_s29 + $0x38] sm:$0xff]  ;;  %v852_v2 = vld [vmem:[%s12190_s29 + $0x40] sm:$0xff] }
 0x412   :  { %7960 = vmatprep.subr.bf16.mxu0 %v10403_v3  ;;  %12193 = vst [vmem:[#allocation79_spill] sm:$0xff] %v10438_v30  ;;  %v10466_v1 = vpack.c.bf16 %v851_v60, %v850_v54  ;;  %v854_v60 = vld [vmem:[%s12190_s29 + $0x50] sm:$0xff]  ;;  %v855_v54 = vld [vmem:[%s12190_s29 + $0x58] sm:$0xff] }
 0x413   :  { %12197 = vst [vmem:[#allocation81_spill] sm:$0xff] %v10454_v38  ;;  %7988 = vmatpush3.bf16.msra.mxu1 %v10454_v38  ;;  %v853_v38 = vld [vmem:[%s12190_s29 + $0x48] sm:$0xff] }
 0x414   :  { %7989 = vmatprep.subr.bf16.mxu1 %v12194_v57  ;;  %12200 = vst [vmem:[#allocation83_spill] sm:$0xff] %v10466_v1 }
 0x415   :  { %7962 = vmatpush1.bf16.msra.mxu0 %v10408_v25 }
 0x416   :  { %7964 = vmatprep.subr.bf16.mxu0 %v10411_v27 }
 0x419   :  { %7966 = vmatpush1.bf16.msra.mxu0 %v10414_v45 }
 0x41a   :  { %7968 = vmatprep.subr.bf16.mxu0 %v10417_v52 }
 0x41d   :  { %7970 = vmatpush1.bf16.msra.mxu0 %v10420_v22 }
 0x41e   :  { %7972 = vmatprep.subr.bf16.mxu0 %v10423_v23 }
 0x421   :  { %7974 = vmatpush1.bf16.msra.mxu0 %v10426_v35 }
 0x422   :  { %7976 = vmatprep.subr.bf16.mxu0 %v10429_v36 }
 0x425   :  { %7978 = vmatpush1.bf16.msra.mxu0 %v10432_v15 }
 0x426   :  { %7980 = vmatprep.subr.bf16.mxu0 %v10435_v20 }
 0x429   :  { %7982 = vmatpush1.bf16.msra.mxu0 %v10438_v30  ;;  %v849_v30 = vld [vmem:[%s12190_s29 + $0x28] sm:$0xff] }
 0x42a   :  { %8007 = vmatprep.subr.bf16.mxu0 %v12194_v57  ;;  %v10460_v33 = vpack.c.bf16 %v849_v30, %v848_v32  ;;  %v10472_v32 = vpack.c.bf16 %v853_v38, %v852_v2  ;;  %v860_v30 = vld [vmem:[%s12198_s19] sm:$0xff]  ;;  %v862_v38 = vld [vmem:[%s12198_s19 + $0x10] sm:$0xff]  ;;  %v863_v2 = vld [vmem:[%s12198_s19 + $0x18] sm:$0xff] }
 0x42c   :  { %1485 = vmatmul.mubr.f32.vlgmr.msra.gmra.mrb[8].mxu0 %v10394_v53  ;;  %12199 = vst [vmem:[#allocation82_spill] sm:$0xff] %v10460_v33  ;;  %7991 = vmatpush3.bf16.msra.mxu1 %v10460_v33  ;;  %12201 = vst [vmem:[#allocation84_spill] sm:$0xff] %v10472_v32  ;;  %v861_v33 = vld [vmem:[%s12198_s19 + $0x8] sm:$0xff] }
 0x42d   :  { %7181 = vmatprep.mubr.msk.f32.mxu0 %vm9913_vm0, %v12195_v4  ;;  %7992 = vmatprep.subr.bf16.mxu1 %v12194_v57  ;;  %v10477_v18 = vpack.c.bf16 %v861_v33, %v860_v30  ;;  %v10489_v33 = vpack.c.bf16 %v863_v2, %v862_v38  ;;  %v856_v30 = vld [vmem:[%s12190_s29 + $0x60] sm:$0xff]  ;;  %v858_v2 = vld [vmem:[%s12190_s29 + $0x70] sm:$0xff] }
 0x42f   :  { %12202 = vst [vmem:[#allocation85_spill] sm:$0xff] %v10477_v18  ;;  %8009 = vmatpush3.bf16.msra.mxu0 %v10477_v18  ;;  %12204 = vst [vmem:[#allocation87_spill] sm:$0xff] %v10489_v33  ;;  %v865_v18 = vld [vmem:[%s12198_s19 + $0x28] sm:$0xff] }
 0x430   :  { %7994 = vmatpush3.bf16.msra.mxu1 %v10466_v1  ;;  %v10483_v1 = vpack.c.bf16 %v855_v54, %v854_v60  ;;  %8010 = vmatprep.subr.bf16.mxu0 %v12194_v57  ;;  %v864_v54 = vld [vmem:[%s12198_s19 + $0x20] sm:$0xff] }
 0x431   :  { %7995 = vmatprep.subr.bf16.mxu1 %v12194_v57  ;;  %v10501_v38 = vpack.c.bf16 %v865_v18, %v864_v54  ;;  %v868_v54 = vld [vmem:[%s12198_s19 + $0x40] sm:$0xff] }
 0x432   :  { %12203 = vst [vmem:[#allocation86_spill] sm:$0xff] %v10483_v1 }
 0x433   :  { %8012 = vmatpush3.bf16.msra.mxu0 %v10489_v33  ;;  %12206 = vst [vmem:[#allocation89_spill] sm:$0xff] %v10501_v38  ;;  %v867_v33 = vld [vmem:[%s12198_s19 + $0x38] sm:$0xff] }
 0x434   :  { %7997 = vmatpush3.bf16.msra.mxu1 %v10472_v32  ;;  %v857_v32 = vld [vmem:[%s12190_s29 + $0x68] sm:$0xff]  ;;  %8013 = vmatprep.subr.bf16.mxu0 %v12194_v57 }
 0x435   :  { %7998 = vmatprep.subr.bf16.mxu1 %v12194_v57  ;;  %v10495_v60 = vpack.c.bf16 %v857_v32, %v856_v30  ;;  %v866_v30 = vld [vmem:[%s12198_s19 + $0x30] sm:$0xff] }
 0x436   :  { %v10513_v18 = vpack.c.bf16 %v867_v33, %v866_v30  ;;  %v872_v33 = vld [vmem:[%s12198_s19 + $0x60] sm:$0xff]  ;;  %v873_v30 = vld [vmem:[%s12198_s19 + $0x68] sm:$0xff] }
 0x437   :  { %12205 = vst [vmem:[#allocation88_spill] sm:$0xff] %v10495_v60  ;;  %8015 = vmatpush3.bf16.msra.mxu0 %v10501_v38  ;;  %v871_v38 = vld [vmem:[%s12198_s19 + $0x58] sm:$0xff] }
 0x438   :  { %8000 = vmatpush3.bf16.msra.mxu1 %v10483_v1  ;;  %v859_v1 = vld [vmem:[%s12190_s29 + $0x78] sm:$0xff]  ;;  %8016 = vmatprep.subr.bf16.mxu0 %v12194_v57  ;;  %12208 = vst [vmem:[#allocation91_spill] sm:$0xff] %v10513_v18 }
 0x439   :  { %8001 = vmatprep.subr.bf16.mxu1 %v12194_v57  ;;  %v10507_v32 = vpack.c.bf16 %v859_v1, %v858_v2  ;;  %v870_v2 = vld [vmem:[%s12198_s19 + $0x50] sm:$0xff] }
 0x43a   :  { %v10524_v20 = vpack.c.bf16 %v871_v38, %v870_v2  ;;  %v878_v38 = vlaneseq }
 0x43b   :  { %12207 = vst [vmem:[#allocation90_spill] sm:$0xff] %v10507_v32  ;;  %8018 = vmatpush3.bf16.msra.mxu0 %v10513_v18 }
 0x43c   :  { %8003 = vmatpush3.bf16.msra.mxu1 %v10495_v60  ;;  %8019 = vmatprep.subr.bf16.mxu0 %v12194_v57  ;;  %v869_v60 = vld [vmem:[%s12198_s19 + $0x48] sm:$0xff]  ;;  %12210 = vst [vmem:[#allocation93_spill] sm:$0xff] %v10524_v20  ;;  %v879_v2 = vshrl.u32 %v878_v38, 7 }
 0x43d   :  { %8004 = vmatprep.subr.bf16.mxu1 %v12194_v57  ;;  %v10519_v1 = vpack.c.bf16 %v869_v60, %v868_v54  ;;  %v874_v60 = vld [vmem:[%s12198_s19 + $0x70] sm:$0xff]  ;;  %v875_v54 = vld [vmem:[%s12198_s19 + $0x78] sm:$0xff] }
 0x43e   :  { %v10536_v18 = vpack.c.bf16 %v875_v54, %v874_v60 }
 0x43f   :  { %12209 = vst [vmem:[#allocation92_spill] sm:$0xff] %v10519_v1  ;;  %8021 = vmatpush3.bf16.msra.mxu0 %v10519_v1  ;;  %v10541_v1 = vsub.s32 0, %v879_v2 }
 0x440   :  { %8006 = vmatpush3.bf16.msra.mxu1 %v10507_v32  ;;  %8022 = vmatprep.subr.bf16.mxu0 %v12194_v57  ;;  %v10530_v32 = vpack.c.bf16 %v873_v30, %v872_v33  ;;  %12214 = vst [vmem:[#allocation95_spill] sm:$0xff] %v10536_v18  ;;  %v1111_v33 = vld [vmem:[%s12211_s6] sm:$0x3] }
 0x441   :  { %12215 = vst [vmem:[#allocation96_spill] sm:$0xff] %v10541_v1  ;;  %v876_v30 = vld [vmem:[%s12212_s27] sm:$0x3] }
 0x442   :  { %12213 = vst [vmem:[#allocation94_spill] sm:$0xff] %v10530_v32  ;;  %v10547_v17 = vrot.slane %v876_v30, %v10541_v1 }
 0x443   :  { %8024 = vmatpush3.bf16.msra.mxu0 %v10524_v20  ;;  %v1116_v20 = vrot.slane %v1111_v33, %v10541_v1 }
 0x444   :  { %8025 = vmatprep.subr.bf16.mxu0 %v12194_v57  ;;  %12216 = vst [vmem:[#allocation97_spill] sm:$0xff] %v10547_v17 }
 0x445   :  { %v10552_v60 = vadd.f32 %v1116_v20, %v10381_v10 }
 0x447   :  { %8027 = vmatpush3.bf16.msra.mxu0 %v10530_v32  ;;  %v10549_v32 = vsub.s32 1, %v879_v2  ;;  %12218 = vst [vmem:[#allocation99_spill] sm:$0xff] %v10552_v60 }
 0x448   :  { %8028 = vmatprep.subr.bf16.mxu0 %v12194_v57 }
 0x449   :  { %12217 = vst [vmem:[#allocation98_spill] sm:$0xff] %v10549_v32  ;;  %v10555_v54 = vrot.slane %v876_v30, %v10549_v32 }
 0x44b   :  { %8030 = vmatpush3.bf16.msra.mxu0 %v10536_v18  ;;  %12219 = vst [vmem:[#allocation100_spill] sm:$0xff] %v10555_v54 }
 0x44c   :  { %8064 = vmatprep.subr.bf16.mxu0 %v10234_v26 }
 0x4df   :  { %v1344_v26 = vpop.f32.mrb[6].mxu0  ;;  %v1415_v18 = vpop.f32.mrb[10].mxu1 }
 0x4e0   :  { %v1493_v38 = vadd.f32 %v1344_v26, %v10547_v17  ;;  %v1346_v15 = vpop.f32.mrb[7].mxu0  ;;  %v1417_v11 = vpop.f32.mrb[11].mxu1 }
 0x4e1   :  { %v1516_v36 = vadd.f32 %v1417_v11, %v10552_v60  ;;  %v1494_v2 = vadd.f32 %v1346_v15, %v10555_v54  ;;  %v10564_v11 = vld [vmem:[%s12221_s18] ss:$0 sm:$0xff]  ;;  %v1120_v15 = vrot.slane %v1111_v33, %v10549_v32 }
 0x4e2   :  { %v6528_v6 = vmul.f32 -1.442695, %v1493_v38 }
 0x4e3   :  { %v6530_v1 = vmul.f32 -1.442695, %v1516_v36  ;;  %v6529_v10 = vmul.f32 -1.442695, %v1494_v2 }
 0x4e4   :  { %9464 = vpow2.f32 %v6528_v6  ;;  %v1508_v6 = vadd.f32 %v10561_v5, %v1415_v18 }
 0x4e5   :  { %9466 = vpow2.f32 %v6530_v1  ;;  %v1507_v1 = vadd.f32 %v10564_v11, %v10387_v16 }
 0x4e6   :  { %9468 = vpow2.f32 %v6529_v10  ;;  %v10574_v10 = vld [vmem:[%s12222_s14] ss:$0 sm:$0xff] }
 0x4ee   :  { %v9465_v20 = vpop.eup %9464 }
 0x4ef   :  { %v1501_v30 = vadd.f32 1.0, %v9465_v20  ;;  %v9467_v35 = vpop.eup %9466 }
 0x4f0   :  { %v1524_v26 = vadd.f32 1.0, %v9467_v35  ;;  %v9469_v17 = vpop.eup %9468  ;;  %v10571_v35 = vadd.f32 %v1120_v15, %v10383_v12 }
 0x4f1   :  { %9470 = vrcp.f32 %v1501_v30  ;;  %v1502_v23 = vadd.f32 1.0, %v9469_v17 }
 0x4f2   :  { %9472 = vrcp.f32 %v1524_v26 }
 0x4f3   :  { %9474 = vrcp.f32 %v1502_v23 }
 0x4fb   :  { %v9471_v36 = vpop.eup %9470 }
 0x4fc   :  { %v1509_v38 = vmul.f32 %v9471_v36, %v1508_v6  ;;  %v9473_v30 = vpop.eup %9472  ;;  %v6525_v36 = vld [vmem:[%s12224_s1] ss:$0 sm:$0xff] }
 0x4fd   :  { %v9475_v16 = vpop.eup %9474 }
 0x4fe   :  { %v1510_v2 = vadd.f32 %v1509_v38, %v1507_v1  ;;  %v1512_v23 = vsub.f32 1.0, %v9475_v16  ;;  %v1514_v15 = vmul.f32 %v9475_v16, %v10394_v53  ;;  %v10581_v1 = vadd.f32 %v6525_v36, %v10385_v14  ;;  %v10602_v36 = vld [vmem:[%s12226_s2] ss:$0 sm:$0xff] }
 0x4ff   :  { %v1486_v17 = vpop.f32.mrb[8].mxu0  ;;  %12230 = vst [vmem:[#allocation103_spill] sm:$0xff] %v10602_v36 }
 0x500   :  { %9476 = vtanh.f32 %v1510_v2  ;;  %v1517_v20 = vadd.f32 %v1486_v17, %v10571_v35  ;;  %v1488_v33 = vpop.f32.mrb[9].mxu0 }
 0x501   :  { %v1530_v18 = vadd.f32 %v10574_v10, %v1488_v33 }
 0x502   :  { %v6531_v26 = vmul.f32 -1.442695, %v1517_v20 }
 0x503   :  { %v1531_v32 = vmul.f32 %v9473_v30, %v1530_v18 }
 0x504   :  { %9478 = vpow2.f32 %v6531_v26 }
 0x505   :  { %v1532_v33 = vadd.f32 %v1531_v32, %v10581_v1  ;;  %v10598_v32 = vld [vmem:[%s12225_s28] ss:$0 sm:$0xff] }
 0x506   :  { %12229 = vst [vmem:[#allocation102_spill] sm:$0xff] %v10598_v32 }
 0x50a   :  { %v9477_v6 = vpop.eup %9476 }
 0x50b   :  { %v1513_v12 = vmul.f32 %v9477_v6, %v1512_v23 }
 0x50d   :  { %v10583_v38 = vadd.f32 %v1514_v15, %v1513_v12 }
 0x50e   :  { %v9479_v2 = vpop.eup %9478 }
 0x50f   :  { %v1525_v17 = vadd.f32 1.0, %v9479_v2  ;;  %7147 = vmatmul.mubr.f32.vlgmr.msra.gmra.mrb[12].mxu1 %v10583_v38  ;;  %v10606_v2 = vld [vmem:[%s12227_s7] ss:$0 sm:$0xff] }
 0x510   :  { %1772 = vmatprep.mubr.f32.mxu1 %v12195_v4  ;;  %12231 = vst [vmem:[#allocation104_spill] sm:$0xff] %v10606_v2 }
 0x511   :  { %9480 = vrcp.f32 %v1525_v17 }
 0x512   :  { %9482 = vtanh.f32 %v1532_v33 }
 0x51b   :  { %v9481_v20 = vpop.eup %9480 }
 0x51c   :  { %v1534_v18 = vsub.f32 1.0, %v9481_v20  ;;  %v9483_v30 = vpop.eup %9482  ;;  %v1536_v14 = vmul.f32 %v9481_v20, %v10394_v53 }
 0x51e   :  { %v1535_v26 = vmul.f32 %v9483_v30, %v1534_v18  ;;  %v10610_v18 = vld [vmem:[%s12228_s10] ss:$0 sm:$0xff] }
 0x51f   :  { %12232 = vst [vmem:[#allocation105_spill] sm:$0xff] %v10610_v18 }
 0x520   :  { %v10589_v16 = vadd.f32 %v1536_v14, %v1535_v26  ;;  %v9918_v14 = vmov 0  }
 0x521   :  { %9461 = vset.pattern.permute.xlu1 %v9918_v14  ;;  %9460 = vset.pattern.permute.xlu0 %v9918_v14  ;;  %v818_v14 = vld [vmem:[%s10080_s30 + $0x30] sm:$0xff] }
 0x522   :  { %7182 = vmatmul.mubr.f32.vlgmr.msra.gmra.mrb[10].mxu0 %v10589_v16 }
 0x523   :  { %8066 = vmatpush1.bf16.msra.mxu0 %v10296_v19  ;;  %1867 = vmatprep.mubr.f32.mxu0 %v12195_v4 }
 0x524   :  { %8068 = vmatprep.subr.bf16.mxu0 %v10298_v21 }
 0x527   :  { %8070 = vmatpush1.bf16.msra.mxu0 %v10303_v28 }
 0x528   :  { %8078 = vmatprep.subr.bf16.mxu0 %v10307_v29 }
 0x5e2   :  { %v1604_v23 = vpop.f32.mrb[12].mxu1 }
 0x5e3   :  { %v1605_v53 = vadd.f32 %v10598_v32, %v1604_v23  ;;  %v7148_v6 = vpop.f32.mrb[13].mxu1  ;;  %v813_v23 = vld [vmem:[%s10080_s30 + $0x8] sm:$0xff] }
 0x5e4   :  { %v812_v6 = vld [vmem:[%s10080_s30] sm:$0xff] }
 0x5e5   :  { %9484 = vtanh.f32 %v1605_v53  ;;  %v815_v53 = vld [vmem:[%s10080_s30 + $0x18] sm:$0xff] }
 0x5ef   :  { %v9485_v12 = vpop.eup %9484 }
 0x5f0   :  { %v1680_v15 = vmul.f32 %v9485_v12, %v10602_v36  ;;  %v10616_v12 = vpack.c.bf16 %v815_v53, %v813_v23  ;;  %v821_v53 = vld [vmem:[%s10080_s30 + $0x48] sm:$0xff]  ;;  %v831_v36 = vld [vmem:[%s10080_s30 + $0x98] sm:$0xff] }
 0x5f2   :  { %1681 = vadd.xlane.f32.xlu0 %v1680_v15  ;;  %12233 = vst [vmem:[#allocation106_spill] sm:$0xff] %v10616_v12  ;;  %v814_v15 = vld [vmem:[%s10080_s30 + $0x10] sm:$0xff]  ;;  %8032 = vmatprep.subr.bf16.mxu1 %v10616_v12 }
 0x5f5   :  { %v1675_v17 = vpop.f32.mrb[10].mxu0 }
 0x5f6   :  { %v1676_v33 = vadd.f32 %v10606_v2, %v1675_v17  ;;  %v7183_v20 = vpop.f32.mrb[11].mxu0  ;;  %v10620_v17 = vld [vmem:[%s12142_s13 + $0x8] sm:$0xff]  ;;  %v820_v2 = vld [vmem:[%s10080_s30 + $0x40] sm:$0xff] }
 0x5f7   :  { %v10623_v20 = vpack.c.bf16 %v814_v15, %v812_v6  ;;  %6534 = vmatmul.mubr.msk.f32.vlgmr.msra.gmra.mrb[12].mxu0 %vm216_vm1, %v10620_v17 }
 0x5f8   :  { %9486 = vtanh.f32 %v1676_v33  ;;  %v817_v33 = vld [vmem:[%s10080_s30 + $0x28] sm:$0xff]  ;;  %8080 = vmatpush1.bf16.msra.mxu0 %v10310_v48  ;;  %v822_v48 = vld [vmem:[%s10080_s30 + $0x50] sm:$0xff]  ;;  %2008 = vmatprep.mubr.f32.mxu0 %v12195_v4 }
 0x5f9   :  { %8034 = vmatpush1.bf16.msra.mxu1 %v10623_v20  ;;  %8082 = vmatprep.subr.bf16.mxu0 %v10313_v34  ;;  %v829_v34 = vld [vmem:[%s10080_s30 + $0x88] sm:$0xff] }
 0x5fc   :  { %8084 = vmatpush1.bf16.msra.mxu0 %v10318_v40  ;;  %v835_v40 = vld [vmem:[%s10080_s30 + $0xb8] sm:$0xff] }
 0x5fd   :  { %8086 = vmatprep.subr.bf16.mxu0 %v10322_v41  ;;  %v833_v41 = vld [vmem:[%s10080_s30 + $0xa8] sm:$0xff] }
 0x600   :  { %8088 = vmatpush1.bf16.msra.mxu0 %v10325_v51  ;;  %v839_v51 = vld [vmem:[%s10080_s30 + $0xd8] sm:$0xff] }
 0x601   :  { %8090 = vmatprep.subr.bf16.mxu0 %v10328_v49 }
 0x602   :  { %v9487_v30 = vpop.eup %9486 }
 0x603   :  { %v1683_v26 = vmul.f32 %v9487_v30, %v10610_v18  ;;  %v819_v30 = vld [vmem:[%s10080_s30 + $0x38] sm:$0xff] }
 0x604   :  { %v10632_v23 = vpack.c.bf16 %v819_v30, %v817_v33  ;;  %v823_v18 = vld [vmem:[%s10080_s30 + $0x58] sm:$0xff]  ;;  %v825_v33 = vld [vmem:[%s10080_s30 + $0x68] sm:$0xff]  ;;  %8092 = vmatpush1.bf16.msra.mxu0 %v10331_v58 }
 0x605   :  { %1684 = vadd.xlane.f32.xlu1 %v1683_v26  ;;  %v816_v26 = vld [vmem:[%s10080_s30 + $0x20] sm:$0xff]  ;;  %v10641_v15 = vpack.c.bf16 %v823_v18, %v821_v53  ;;  %v827_v30 = vld [vmem:[%s10080_s30 + $0x78] sm:$0xff]  ;;  %v826_v53 = vld [vmem:[%s10080_s30 + $0x70] sm:$0xff]  ;;  %8094 = vmatprep.subr.bf16.mxu0 %v10334_v59 }
 0x606   :  { %v10638_v6 = vpack.c.bf16 %v818_v14, %v816_v26  ;;  %8036 = vmatprep.subr.bf16.mxu1 %v10632_v23  ;;  %v10651_v26 = vpack.c.bf16 %v822_v48, %v820_v2  ;;  %v10654_v18 = vpack.c.bf16 %v827_v30, %v825_v33  ;;  %v824_v14 = vld [vmem:[%s10080_s30 + $0x60] sm:$0xff]  ;;  %v10666_v2 = vpack.c.bf16 %v831_v36, %v829_v34  ;;  %v830_v30 = vld [vmem:[%s10080_s30 + $0x90] sm:$0xff] }
 0x607   :  { %v10663_v48 = vpack.c.bf16 %v826_v53, %v824_v14  ;;  %v828_v33 = vld [vmem:[%s10080_s30 + $0x80] sm:$0xff]  ;;  %v10678_v14 = vpack.c.bf16 %v835_v40, %v833_v41  ;;  %v834_v36 = vld [vmem:[%s10080_s30 + $0xb0] sm:$0xff]  ;;  %v837_v53 = vld [vmem:[%s10080_s30 + $0xc8] sm:$0xff] }
 0x608   :  { %8038 = vmatpush1.bf16.msra.mxu1 %v10638_v6  ;;  %v10675_v49 = vpack.c.bf16 %v830_v30, %v828_v33  ;;  %v832_v34 = vld [vmem:[%s10080_s30 + $0xa0] sm:$0xff]  ;;  %8096 = vmatpush1.bf16.msra.mxu0 %v10337_v0  ;;  %v10690_v33 = vpack.c.bf16 %v839_v51, %v837_v53  ;;  %v838_v59 = vld [vmem:[%s10080_s30 + $0xd0] sm:$0xff] }
 0x609   :  { %8040 = vmatprep.subr.bf16.mxu1 %v10641_v15  ;;  %8098 = vmatprep.subr.bf16.mxu0 %v10341_v8  ;;  %v10687_v58 = vpack.c.bf16 %v834_v36, %v832_v34  ;;  %v836_v30 = vld [vmem:[%s10080_s30 + $0xc0] sm:$0xff] }
 0x60a   :  { %v10697_v40 = vpack.c.bf16 %v838_v59, %v836_v30  ;;  %v10705_v51 = vld [vmem:[#allocation2] ss:$0 sm:$0xff] }
 0x60b   :  { %v840_v8 = vld [vmem:[%s10080_s30 + $0xe0] sm:$0xff] }
 0x60c   :  { %8042 = vmatpush1.bf16.msra.mxu1 %v10651_v26  ;;  %8100 = vmatpush1.bf16.msra.mxu0 %v10343_v13 }
 0x60d   :  { %8044 = vmatprep.subr.bf16.mxu1 %v10654_v18  ;;  %8102 = vmatprep.subr.bf16.mxu0 %v10352_v24  ;;  %v841_v24 = vld [vmem:[%s10080_s30 + $0xe8] sm:$0xff] }
 0x610   :  { %8046 = vmatpush1.bf16.msra.mxu1 %v10663_v48  ;;  %8104 = vmatpush1.bf16.msra.mxu0 %v10355_v31 }
 0x611   :  { %8048 = vmatprep.subr.bf16.mxu1 %v10666_v2  ;;  %8106 = vmatprep.subr.bf16.mxu0 %v10364_v46  ;;  %v843_v46 = vld [vmem:[%s10080_s30 + $0xf8] sm:$0xff] }
 0x614   :  { %8050 = vmatpush1.bf16.msra.mxu1 %v10675_v49  ;;  %8108 = vmatpush1.bf16.msra.mxu0 %v10366_v47  ;;  %v10710_v47 = vpack.c.bf16 %v843_v46, %v841_v24 }
 0x615   :  { %8052 = vmatprep.subr.bf16.mxu1 %v10678_v14  ;;  %8142 = vmatprep.subr.bf16.mxu0 %v10374_v9  ;;  %v842_v9 = vld [vmem:[%s10080_s30 + $0xf0] sm:$0xff] }
 0x616   :  { %v10714_v32 = vpack.c.bf16 %v842_v9, %v840_v8  ;;  %v12235_v8 = vld [vmem:[#allocation40_spill] sm:$0xff]  ;;  %v12237_v9 = vld [vmem:[#allocation41_spill] sm:$0xff] }
 0x618   :  { %8054 = vmatpush1.bf16.msra.mxu1 %v10687_v58 }
 0x619   :  { %8056 = vmatprep.subr.bf16.mxu1 %v10690_v33 }
 0x61c   :  { %8058 = vmatpush1.bf16.msra.mxu1 %v10697_v40 }
 0x61d   :  { %8060 = vmatprep.subr.bf16.mxu1 %v10710_v47 }
 0x620   :  { %8062 = vmatpush1.bf16.msra.mxu1 %v10714_v32 }
 0x621   :  { %8071 = vmatprep.subr.bf16.mxu1 %v12194_v57 }
 0x67f   :  { %v1682_v41 = vpop.xlane.xlu0 %1681 }
 0x692   :  { %v1685_v59 = vpop.xlane.xlu1 %1684 }
 0x693   :  { %v1686_v34 = vadd.f32 %v1685_v59, %v1682_v41 }
 0x695   :  { %v1687_v36 = vadd.f32 %v10705_v51, %v1686_v34  ;;  %v12241_v34 = vld [vmem:[#allocation54_spill] sm:$0xff] }
 0x697   :  { %v6532_v53 = vmul.f32 -1.442695, %v1687_v36  ;;  %v12242_v36 = vld [vmem:[#allocation78_spill] sm:$0xff] }
 0x699   :  { %9488 = vpow2.f32 %v6532_v53  ;;  %v12243_v53 = vld [vmem:[#allocation55_spill] sm:$0xff] }
 0x6a3   :  { %v9489_v30 = vpop.eup %9488 }
 0x6a4   :  { %v1691_v31 = vadd.f32 1.0, %v9489_v30  ;;  %v12244_v30 = vld [vmem:[#allocation79_spill] sm:$0xff] }
 0x6a6   :  { %9490 = vrcp.f32 %v1691_v31 }
 0x6b0   :  { %v9491_v13 = vpop.eup %9490 }
 0x6b1   :  { %1703 = vperm.xlu1 %9461, %v9491_v13   ;;  %v1694_v0 = vsub.f32 1.0, %v9491_v13  ;;  %v12236_v13 = vld [vmem:[#allocation75_spill] sm:$0xff] }
 0x6b3   :  { %1697 = vperm.xlu0 %9460, %v1694_v0   ;;  %v12234_v0 = vld [vmem:[#allocation74_spill] sm:$0xff] }
 0x730   :  { %v1704_v41 = vpop.permute.xlu1 %1703 }
 0x731   :  { %v1706_v59 = vmul.f32 %v1704_v41, %v10589_v16  ;;  %v12239_v16 = vld [vmem:[#allocation42_spill] sm:$0xff] }
 0x732   :  { %v1698_v31 = vpop.permute.xlu0 %1697  ;;  %v12245_v41 = vld [vmem:[#allocation58_spill] sm:$0xff] }
 0x733   :  { %v1700_v24 = vmul.f32 %v1698_v31, %v10583_v38  ;;  %v12238_v38 = vld [vmem:[#allocation76_spill] sm:$0xff]  ;;  %v12246_v31 = vld [vmem:[#allocation59_spill] sm:$0xff] }
 0x735   :  { %v10721_v46 = vadd.f32 %v1706_v59, %v1700_v24  ;;  %v12247_v59 = vld [vmem:[#allocation85_spill] sm:$0xff]  ;;  %v12248_v24 = vld [vmem:[#allocation62_spill] sm:$0xff] }
 0x737   :  { %1773 = vmatmul.mubr.f32.vlgmr.msra.gmra.mrb[14].mxu1 %v10721_v46  ;;  %2009 = vmatmul.mubr.f32.vlgmr.msra.gmra.mrb[12].mxu0 %v10721_v46 }
 0x738   :  { %8073 = vmatpush3.bf16.msra.mxu1 %v10246_v37  ;;  %8144 = vmatpush1.bf16.msra.mxu0 %v10390_v39 }
 0x739   :  { %8074 = vmatprep.subr.bf16.mxu1 %v12194_v57  ;;  %8146 = vmatprep.subr.bf16.mxu0 %v10392_v44 }
 0x73a   :  { %7192 = vmatprep.mubr.msk.f32.mxu1 %vm9913_vm0, %v12195_v4  ;;  %2150 = vmatprep.mubr.f32.mxu0 %v12195_v4 }
 0x73c   :  { %8076 = vmatpush3.bf16.msra.mxu1 %v10252_v42  ;;  %8148 = vmatpush1.bf16.msra.mxu0 %v10399_v63 }
 0x73d   :  { %8110 = vmatprep.subr.bf16.mxu1 %v10257_v43  ;;  %8150 = vmatprep.subr.bf16.mxu0 %v10403_v3 }
 0x73f   :  { %7193 = vmatmul.mubr.msk.f32.vlgmr.msra.gmra.mrb[16].mxu1 %vm216_vm1, %v10620_v17  ;;  %v12240_v17 = vld [vmem:[#allocation77_spill] sm:$0xff] }
 0x740   :  { %8112 = vmatpush1.bf16.msra.mxu1 %v10263_v7  ;;  %8152 = vmatpush1.bf16.msra.mxu0 %v10408_v25 }
 0x741   :  { %8114 = vmatprep.subr.bf16.mxu1 %v10266_v50  ;;  %8154 = vmatprep.subr.bf16.mxu0 %v10411_v27 }
 0x742   :  { %2079 = vmatprep.mubr.f32.mxu1 %v12195_v4 }
 0x744   :  { %8116 = vmatpush1.bf16.msra.mxu1 %v10271_v55  ;;  %8156 = vmatpush1.bf16.msra.mxu0 %v10414_v45 }
 0x745   :  { %8118 = vmatprep.subr.bf16.mxu1 %v10275_v56  ;;  %8158 = vmatprep.subr.bf16.mxu0 %v10417_v52 }
 0x748   :  { %8120 = vmatpush1.bf16.msra.mxu1 %v10278_v61  ;;  %8160 = vmatpush1.bf16.msra.mxu0 %v10420_v22 }
 0x749   :  { %8122 = vmatprep.subr.bf16.mxu1 %v10281_v62  ;;  %8162 = vmatprep.subr.bf16.mxu0 %v12234_v0 }
 0x74c   :  { %8124 = vmatpush1.bf16.msra.mxu1 %v12235_v8  ;;  %8164 = vmatpush1.bf16.msra.mxu0 %v12236_v13 }
 0x74d   :  { %8126 = vmatprep.subr.bf16.mxu1 %v12237_v9  ;;  %8166 = vmatprep.subr.bf16.mxu0 %v12238_v38 }
 0x750   :  { %8128 = vmatpush1.bf16.msra.mxu1 %v12239_v16  ;;  %8168 = vmatpush1.bf16.msra.mxu0 %v12240_v17  ;;  %v12268_v17 = vld [vmem:[#allocation97_spill] sm:$0xff] }
 0x751   :  { %8130 = vmatprep.subr.bf16.mxu1 %v12241_v34  ;;  %8170 = vmatprep.subr.bf16.mxu0 %v12242_v36  ;;  %v12264_v36 = vld [vmem:[#allocation88_spill] sm:$0xff] }
 0x754   :  { %8132 = vmatpush1.bf16.msra.mxu1 %v12243_v53  ;;  %8172 = vmatpush1.bf16.msra.mxu0 %v12244_v30  ;;  %v12249_v53 = vld [vmem:[#allocation63_spill] sm:$0xff] }
 0x755   :  { %8134 = vmatprep.subr.bf16.mxu1 %v12245_v41  ;;  %8197 = vmatprep.subr.bf16.mxu0 %v12194_v57  ;;  %v12250_v30 = vld [vmem:[#allocation87_spill] sm:$0xff] }
 0x756   :  { %v12257_v41 = vld [vmem:[#allocation83_spill] sm:$0xff] }
 0x757   :  { %2151 = vmatmul.mubr.f32.vlgmr.msra.gmra.mrb[14].mxu0 %v10721_v46 }
 0x758   :  { %8136 = vmatpush1.bf16.msra.mxu1 %v12246_v31  ;;  %8199 = vmatpush3.bf16.msra.mxu0 %v12247_v59  ;;  %v12251_v31 = vld [vmem:[#allocation80_spill] sm:$0xff]  ;;  %v12255_v59 = vld [vmem:[#allocation82_spill] sm:$0xff] }
 0x759   :  { %8138 = vmatprep.subr.bf16.mxu1 %v12248_v24  ;;  %8200 = vmatprep.subr.bf16.mxu0 %v12194_v57  ;;  %v12252_v24 = vld [vmem:[#allocation89_spill] sm:$0xff] }
 0x75a   :  { %7262 = vmatprep.mubr.msk.f32.mxu0 %vm9913_vm0, %v12195_v4 }
 0x75c   :  { %8140 = vmatpush1.bf16.msra.mxu1 %v12249_v53  ;;  %8202 = vmatpush3.bf16.msra.mxu0 %v12250_v30  ;;  %v12253_v53 = vld [vmem:[#allocation81_spill] sm:$0xff]  ;;  %v12254_v30 = vld [vmem:[#allocation91_spill] sm:$0xff] }
 0x75d   :  { %8173 = vmatprep.subr.bf16.mxu1 %v12194_v57  ;;  %8203 = vmatprep.subr.bf16.mxu0 %v12194_v57 }
 0x75f   :  { %2080 = vmatmul.mubr.f32.vlgmr.msra.gmra.mrb[18].mxu1 %v10721_v46 }
 0x760   :  { %8175 = vmatpush3.bf16.msra.mxu1 %v12251_v31  ;;  %7227 = vmatprep.mubr.msk.f32.mxu1 %vm9913_vm0, %v12195_v4  ;;  %v12256_v31 = vld [vmem:[#allocation92_spill] sm:$0xff] }
 0x761   :  { %8176 = vmatprep.subr.bf16.mxu1 %v12194_v57  ;;  %8205 = vmatpush3.bf16.msra.mxu0 %v12252_v24  ;;  %v12258_v24 = vld [vmem:[#allocation93_spill] sm:$0xff] }
 0x762   :  { %8206 = vmatprep.subr.bf16.mxu0 %v12194_v57 }
 0x764   :  { %8178 = vmatpush3.bf16.msra.mxu1 %v12253_v53  ;;  %v12259_v53 = vld [vmem:[#allocation84_spill] sm:$0xff] }
 0x765   :  { %8179 = vmatprep.subr.bf16.mxu1 %v12194_v57  ;;  %8208 = vmatpush3.bf16.msra.mxu0 %v12254_v30  ;;  %v12260_v30 = vld [vmem:[#allocation94_spill] sm:$0xff] }
 0x766   :  { %8209 = vmatprep.subr.bf16.mxu0 %v12194_v57 }
 0x768   :  { %8181 = vmatpush3.bf16.msra.mxu1 %v12255_v59  ;;  %v12261_v59 = vld [vmem:[#allocation86_spill] sm:$0xff] }
 0x769   :  { %8182 = vmatprep.subr.bf16.mxu1 %v12194_v57  ;;  %8211 = vmatpush3.bf16.msra.mxu0 %v12256_v31  ;;  %v12262_v31 = vld [vmem:[#allocation95_spill] sm:$0xff] }
 0x76a   :  { %8212 = vmatprep.subr.bf16.mxu0 %v12194_v57 }
 0x76c   :  { %8184 = vmatpush3.bf16.msra.mxu1 %v12257_v41  ;;  %v12263_v41 = vld [vmem:[#allocation30_spill] sm:$0xff] }
 0x76d   :  { %8185 = vmatprep.subr.bf16.mxu1 %v12194_v57  ;;  %8214 = vmatpush3.bf16.msra.mxu0 %v12258_v24  ;;  %v12265_v24 = vld [vmem:[#allocation90_spill] sm:$0xff] }
 0x76e   :  { %8215 = vmatprep.subr.bf16.mxu0 %v12194_v57 }
 0x770   :  { %8187 = vmatpush3.bf16.msra.mxu1 %v12259_v53 }
 0x771   :  { %8188 = vmatprep.subr.bf16.mxu1 %v12194_v57  ;;  %8217 = vmatpush3.bf16.msra.mxu0 %v12260_v30 }
 0x772   :  { %8218 = vmatprep.subr.bf16.mxu0 %v12194_v57 }
 0x774   :  { %8190 = vmatpush3.bf16.msra.mxu1 %v12261_v59 }
 0x775   :  { %8191 = vmatprep.subr.bf16.mxu1 %v12194_v57  ;;  %8220 = vmatpush3.bf16.msra.mxu0 %v12262_v31 }
 0x776   :  { %8254 = vmatprep.subr.bf16.mxu0 %v12263_v41 }
 0x778   :  { %8193 = vmatpush3.bf16.msra.mxu1 %v12264_v36 }
 0x779   :  { %8194 = vmatprep.subr.bf16.mxu1 %v12194_v57 }
 0x77c   :  { %8196 = vmatpush3.bf16.msra.mxu1 %v12265_v24 }
 0x77d   :  { %8222 = vmatprep.subr.bf16.mxu1 %v10616_v12 }
 0x80a   :  { %v10805_v53 = vpop.f32.mrb[14].mxu1  ;;  %v2010_v30 = vpop.f32.mrb[12].mxu0 }
 0x80b   :  { %12266 = vst [vmem:[#allocation107_spill] sm:$0xff] %v10805_v53  ;;  %v10807_v34 = vpop.f32.mrb[15].mxu1  ;;  %v2012_v59 = vpop.f32.mrb[13].mxu0  ;;  %v2159_v16 = vadd.f32 %v2010_v30, %v12268_v17 }
 0x80c   :  { %12267 = vst [vmem:[#allocation108_spill] sm:$0xff] %v10807_v34  ;;  %v2160_v36 = vadd.f32 %v2012_v59, %v10555_v54 }
 0x80d   :  { %v6536_v9 = vmul.f32 -1.442695, %v2159_v16 }
 0x80e   :  { %v6537_v41 = vmul.f32 -1.442695, %v2160_v36 }
 0x80f   :  { %9492 = vpow2.f32 %v6536_v9 }
 0x810   :  { %9494 = vpow2.f32 %v6537_v41 }
 0x812   :  { %v1940_v38 = vpop.f32.mrb[16].mxu1 }
 0x813   :  { %v7194_v31 = vpop.f32.mrb[17].mxu1  ;;  %v2173_v9 = vadd.f32 %v10564_v11, %v1940_v38 }
 0x819   :  { %v9493_v13 = vpop.eup %9492 }
 0x81a   :  { %v2167_v24 = vadd.f32 1.0, %v9493_v13  ;;  %v9495_v53 = vpop.eup %9494 }
 0x81b   :  { %v2168_v0 = vadd.f32 1.0, %v9495_v53 }
 0x81c   :  { %9496 = vrcp.f32 %v2167_v24 }
 0x81d   :  { %9498 = vrcp.f32 %v2168_v0 }
 0x826   :  { %v9497_v30 = vpop.eup %9496 }
 0x827   :  { %v9499_v24 = vpop.eup %9498 }
 0x828   :  { %v2178_v54 = vsub.f32 1.0, %v9499_v24 }
 0x82a   :  { %v2152_v12 = vpop.f32.mrb[14].mxu0 }
 0x82b   :  { %v2154_v8 = vpop.f32.mrb[15].mxu0  ;;  %v2183_v41 = vadd.f32 %v2152_v12, %v10571_v35 }
 0x82d   :  { %v6539_v59 = vmul.f32 -1.442695, %v2183_v41  ;;  %v12269_v41 = vld [vmem:[#allocation102_spill] sm:$0xff] }
 0x832   :  { %v2081_v62 = vpop.f32.mrb[18].mxu1 }
 0x833   :  { %v2174_v34 = vadd.f32 %v10561_v5, %v2081_v62  ;;  %v2083_v22 = vpop.f32.mrb[19].mxu1 }
 0x834   :  { %v2182_v31 = vadd.f32 %v2083_v22, %v10552_v60  ;;  %v2180_v22 = vmul.f32 %v9499_v24, %v10721_v46 }
 0x835   :  { %v2175_v16 = vmul.f32 %v9497_v30, %v2174_v34  ;;  %v2196_v34 = vadd.f32 %v10574_v10, %v2154_v8 }
 0x836   :  { %v6538_v36 = vmul.f32 -1.442695, %v2182_v31 }
 0x837   :  { %v2176_v13 = vadd.f32 %v2175_v16, %v2173_v9 }
 0x838   :  { %9500 = vpow2.f32 %v6538_v36 }
 0x839   :  { %9502 = vtanh.f32 %v2176_v13 }
 0x83a   :  { %9504 = vpow2.f32 %v6539_v59 }
 0x842   :  { %v9501_v53 = vpop.eup %9500 }
 0x843   :  { %v9503_v62 = vpop.eup %9502  ;;  %v2190_v5 = vadd.f32 1.0, %v9501_v53  ;;  %v12270_v53 = vld [vmem:[#allocation103_spill] sm:$0xff] }
 0x844   :  { %v2179_v17 = vmul.f32 %v9503_v62, %v2178_v54  ;;  %v9505_v38 = vpop.eup %9504 }
 0x845   :  { %9506 = vrcp.f32 %v2190_v5  ;;  %v2191_v12 = vadd.f32 1.0, %v9505_v38  ;;  %v12271_v38 = vld [vmem:[#allocation104_spill] sm:$0xff] }
 0x846   :  { %v10816_v0 = vadd.f32 %v2180_v22, %v2179_v17 }
 0x847   :  { %9508 = vrcp.f32 %v2191_v12 }
 0x848   :  { %7228 = vmatmul.mubr.f32.vlgmr.msra.gmra.mrb[20].mxu1 %v10816_v0 }
 0x849   :  { %8224 = vmatpush1.bf16.msra.mxu1 %v10623_v20  ;;  %2438 = vmatprep.mubr.f32.mxu1 %v12195_v4 }
 0x84a   :  { %8226 = vmatprep.subr.bf16.mxu1 %v10632_v23 }
 0x84d   :  { %8228 = vmatpush1.bf16.msra.mxu1 %v10638_v6 }
 0x84e   :  { %8230 = vmatprep.subr.bf16.mxu1 %v10641_v15 }
 0x84f   :  { %v9507_v54 = vpop.eup %9506 }
 0x850   :  { %v2197_v5 = vmul.f32 %v9507_v54, %v2196_v34 }
 0x851   :  { %8232 = vmatpush1.bf16.msra.mxu1 %v10651_v26  ;;  %v9509_v30 = vpop.eup %9508 }
 0x852   :  { %v2198_v17 = vadd.f32 %v2197_v5, %v10581_v1  ;;  %8234 = vmatprep.subr.bf16.mxu1 %v10654_v18  ;;  %v2200_v8 = vsub.f32 1.0, %v9509_v30  ;;  %v2202_v16 = vmul.f32 %v9509_v30, %v10721_v46  ;;  %v12272_v5 = vld [vmem:[#allocation105_spill] sm:$0xff]  ;;  %v6543_v30 = vld [vmem:[%s12142_s13 + $0x10] sm:$0xff] }
 0x854   :  { %9510 = vtanh.f32 %v2198_v17 }
 0x855   :  { %8236 = vmatpush1.bf16.msra.mxu1 %v10663_v48 }
 0x856   :  { %8238 = vmatprep.subr.bf16.mxu1 %v10666_v2 }
 0x859   :  { %8240 = vmatpush1.bf16.msra.mxu1 %v10675_v49 }
 0x85a   :  { %8242 = vmatprep.subr.bf16.mxu1 %v10678_v14 }
 0x85d   :  { %8244 = vmatpush1.bf16.msra.mxu1 %v10687_v58 }
 0x85e   :  { %v9511_v31 = vpop.eup %9510  ;;  %8246 = vmatprep.subr.bf16.mxu1 %v10690_v33 }
 0x85f   :  { %v2201_v9 = vmul.f32 %v9511_v31, %v2200_v8  ;;  %v12273_v8 = vld [vmem:[#allocation43_spill] sm:$0xff]  ;;  %v12274_v31 = vld [vmem:[#allocation44_spill] sm:$0xff] }
 0x861   :  { %v2203_v36 = vadd.f32 %v2202_v16, %v2201_v9  ;;  %8248 = vmatpush1.bf16.msra.mxu1 %v10697_v40  ;;  %v12275_v9 = vld [vmem:[#allocation45_spill] sm:$0xff]  ;;  %v12276_v16 = vld [vmem:[#allocation46_spill] sm:$0xff] }
 0x862   :  { %8250 = vmatprep.subr.bf16.mxu1 %v10710_v47 }
 0x863   :  { %7263 = vmatmul.mubr.f32.vlgmr.msra.gmra.mrb[16].mxu0 %v2203_v36 }
 0x864   :  { %8256 = vmatpush1.bf16.msra.mxu0 %v10296_v19  ;;  %2534 = vmatprep.mubr.f32.mxu0 %v12195_v4 }
 0x865   :  { %8258 = vmatprep.subr.bf16.mxu0 %v10298_v21  ;;  %8252 = vmatpush1.bf16.msra.mxu1 %v10714_v32 }
 0x866   :  { %8261 = vmatprep.subr.bf16.mxu1 %v12194_v57 }
 0x868   :  { %8260 = vmatpush1.bf16.msra.mxu0 %v10303_v28 }
 0x869   :  { %8268 = vmatprep.subr.bf16.mxu0 %v10307_v29 }
 0x86b   :  { %6544 = vmatmul.mubr.msk.f32.vlgmr.msra.gmra.mrb[18].mxu0 %vm216_vm1, %v6543_v30 }
 0x86c   :  { %8270 = vmatpush1.bf16.msra.mxu0 %v12273_v8  ;;  %2675 = vmatprep.mubr.f32.mxu0 %v12195_v4 }
 0x86d   :  { %8272 = vmatprep.subr.bf16.mxu0 %v12274_v31 }
 0x870   :  { %8274 = vmatpush1.bf16.msra.mxu0 %v12275_v9 }
 0x871   :  { %8276 = vmatprep.subr.bf16.mxu0 %v12276_v16  ;;  %v12287_v16 = vld [vmem:[#allocation61_spill] sm:$0xff] }
 0x91b   :  { %v2270_v46 = vpop.f32.mrb[20].mxu1 }
 0x91c   :  { %v2271_v13 = vadd.f32 %v12269_v41, %v2270_v46  ;;  %v7229_v59 = vpop.f32.mrb[21].mxu1  ;;  %v12277_v46 = vld [vmem:[#allocation47_spill] sm:$0xff] }
 0x91d   :  { %8278 = vmatpush1.bf16.msra.mxu0 %v12277_v46  ;;  %v12279_v59 = vld [vmem:[#allocation49_spill] sm:$0xff]  ;;  %v12288_v46 = vld [vmem:[#allocation64_spill] sm:$0xff] }
 0x91e   :  { %9512 = vtanh.f32 %v2271_v13  ;;  %v12278_v13 = vld [vmem:[#allocation48_spill] sm:$0xff] }
 0x91f   :  { %8280 = vmatprep.subr.bf16.mxu0 %v12278_v13 }
 0x921   :  { %8282 = vmatpush1.bf16.msra.mxu0 %v12279_v59 }
 0x928   :  { %v9513_v24 = vpop.eup %9512 }
 0x929   :  { %v2346_v62 = vmul.f32 %v9513_v24, %v12270_v53  ;;  %v12280_v24 = vld [vmem:[#allocation50_spill] sm:$0xff] }
 0x92a   :  { %8284 = vmatprep.subr.bf16.mxu0 %v12280_v24 }
 0x92b   :  { %2347 = vadd.xlane.f32.xlu1 %v2346_v62  ;;  %v12281_v62 = vld [vmem:[#allocation51_spill] sm:$0xff] }
 0x92c   :  { %8286 = vmatpush1.bf16.msra.mxu0 %v12281_v62 }
 0x936   :  { %v2341_v22 = vpop.f32.mrb[16].mxu0 }
 0x937   :  { %v2342_v12 = vadd.f32 %v12271_v38, %v2341_v22  ;;  %v7264_v34 = vpop.f32.mrb[17].mxu0  ;;  %v12282_v22 = vld [vmem:[#allocation52_spill] sm:$0xff] }
 0x938   :  { %8288 = vmatprep.subr.bf16.mxu0 %v12282_v22  ;;  %v12284_v34 = vld [vmem:[#allocation56_spill] sm:$0xff] }
 0x939   :  { %9514 = vtanh.f32 %v2342_v12  ;;  %v12283_v12 = vld [vmem:[#allocation53_spill] sm:$0xff] }
 0x93a   :  { %8290 = vmatpush1.bf16.msra.mxu0 %v12283_v12 }
 0x93b   :  { %8292 = vmatprep.subr.bf16.mxu0 %v12284_v34 }
 0x943   :  { %v9515_v54 = vpop.eup %9514 }
 0x944   :  { %v2349_v17 = vmul.f32 %v9515_v54, %v12272_v5  ;;  %v12285_v54 = vld [vmem:[#allocation57_spill] sm:$0xff] }
 0x945   :  { %8294 = vmatpush1.bf16.msra.mxu0 %v12285_v54 }
 0x946   :  { %2350 = vadd.xlane.f32.xlu0 %v2349_v17  ;;  %v12286_v17 = vld [vmem:[#allocation60_spill] sm:$0xff] }
 0x947   :  { %8296 = vmatprep.subr.bf16.mxu0 %v12286_v17 }
 0x949   :  { %8298 = vmatpush1.bf16.msra.mxu0 %v12287_v16 }
 0x94a   :  { %8332 = vmatprep.subr.bf16.mxu0 %v12288_v46 }
 0x9b8   :  { %v2348_v13 = vpop.xlane.xlu1 %2347 }
 0x9d3   :  { %v2351_v59 = vpop.xlane.xlu0 %2350 }
 0x9d4   :  { %v2352_v9 = vadd.f32 %v2351_v59, %v2348_v13  ;;  %v12296_v13 = vld [vmem:[#allocation42_spill] sm:$0xff]  ;;  %v12297_v59 = vld [vmem:[#allocation77_spill] sm:$0xff] }
 0x9d6   :  { %v2353_v24 = vadd.f32 %v10705_v51, %v2352_v9  ;;  %v12294_v9 = vld [vmem:[#allocation41_spill] sm:$0xff] }
 0x9d8   :  { %v6540_v62 = vmul.f32 -1.442695, %v2353_v24  ;;  %v12298_v24 = vld [vmem:[#allocation54_spill] sm:$0xff] }
 0x9da   :  { %9516 = vpow2.f32 %v6540_v62  ;;  %v12299_v62 = vld [vmem:[#allocation78_spill] sm:$0xff] }
 0x9e4   :  { %v9517_v22 = vpop.eup %9516 }
 0x9e5   :  { %v2357_v31 = vadd.f32 1.0, %v9517_v22  ;;  %v12300_v22 = vld [vmem:[#allocation55_spill] sm:$0xff] }
 0x9e7   :  { %9518 = vrcp.f32 %v2357_v31  ;;  %v12293_v31 = vld [vmem:[#allocation75_spill] sm:$0xff] }
 0x9f1   :  { %v9519_v12 = vpop.eup %9518 }
 0x9f2   :  { %2369 = vperm.xlu0 %9460, %v9519_v12   ;;  %v2360_v34 = vsub.f32 1.0, %v9519_v12  ;;  %v12301_v12 = vld [vmem:[#allocation79_spill] sm:$0xff] }
 0x9f4   :  { %2363 = vperm.xlu1 %9461, %v2360_v34   ;;  %v12302_v34 = vld [vmem:[#allocation58_spill] sm:$0xff] }
 0xa71   :  { %v2370_v54 = vpop.permute.xlu0 %2369 }
 0xa72   :  { %v2372_v8 = vmul.f32 %v2370_v54, %v2203_v36  ;;  %v12290_v36 = vld [vmem:[#allocation39_spill] sm:$0xff] }
 0xa73   :  { %v2364_v17 = vpop.permute.xlu1 %2363  ;;  %v12303_v54 = vld [vmem:[#allocation59_spill] sm:$0xff] }
 0xa74   :  { %v2366_v16 = vmul.f32 %v2364_v17, %v10816_v0  ;;  %v12289_v0 = vld [vmem:[#allocation73_spill] sm:$0xff] }
 0xa75   :  { %v12304_v17 = vld [vmem:[#allocation85_spill] sm:$0xff] }
 0xa76   :  { %v10869_v46 = vadd.f32 %v2372_v8, %v2366_v16  ;;  %v12292_v8 = vld [vmem:[#allocation40_spill] sm:$0xff] }
 0xa77   :  { %v12295_v16 = vld [vmem:[#allocation76_spill] sm:$0xff] }
 0xa78   :  { %2439 = vmatmul.mubr.f32.vlgmr.msra.gmra.mrb[22].mxu1 %v10869_v46  ;;  %2676 = vmatmul.mubr.f32.vlgmr.msra.gmra.mrb[18].mxu0 %v10869_v46 }
 0xa79   :  { %8263 = vmatpush3.bf16.msra.mxu1 %v10246_v37  ;;  %8334 = vmatpush1.bf16.msra.mxu0 %v10390_v39 }
 0xa7a   :  { %8264 = vmatprep.subr.bf16.mxu1 %v12194_v57  ;;  %8336 = vmatprep.subr.bf16.mxu0 %v10392_v44 }
 0xa7b   :  { %7273 = vmatprep.mubr.msk.f32.mxu1 %vm9913_vm0, %v12195_v4  ;;  %2817 = vmatprep.mubr.f32.mxu0 %v12195_v4 }
 0xa7d   :  { %8266 = vmatpush3.bf16.msra.mxu1 %v10252_v42  ;;  %8338 = vmatpush1.bf16.msra.mxu0 %v10399_v63 }
 0xa7e   :  { %8300 = vmatprep.subr.bf16.mxu1 %v10257_v43  ;;  %8340 = vmatprep.subr.bf16.mxu0 %v10403_v3 }
 0xa80   :  { %7274 = vmatmul.mubr.msk.f32.vlgmr.msra.gmra.mrb[24].mxu1 %vm216_vm1, %v6543_v30  ;;  %v12291_v30 = vld [vmem:[#allocation74_spill] sm:$0xff] }
 0xa81   :  { %8302 = vmatpush1.bf16.msra.mxu1 %v10263_v7  ;;  %8342 = vmatpush1.bf16.msra.mxu0 %v10408_v25 }
 0xa82   :  { %8304 = vmatprep.subr.bf16.mxu1 %v10266_v50  ;;  %8344 = vmatprep.subr.bf16.mxu0 %v10411_v27 }
 0xa83   :  { %2746 = vmatprep.mubr.f32.mxu1 %v12195_v4 }
 0xa85   :  { %8306 = vmatpush1.bf16.msra.mxu1 %v10271_v55  ;;  %8346 = vmatpush1.bf16.msra.mxu0 %v10414_v45 }
 0xa86   :  { %8308 = vmatprep.subr.bf16.mxu1 %v10275_v56  ;;  %8348 = vmatprep.subr.bf16.mxu0 %v10417_v52 }
 0xa89   :  { %8310 = vmatpush1.bf16.msra.mxu1 %v10278_v61  ;;  %8350 = vmatpush1.bf16.msra.mxu0 %v12289_v0 }
 0xa8a   :  { %8312 = vmatprep.subr.bf16.mxu1 %v12290_v36  ;;  %8352 = vmatprep.subr.bf16.mxu0 %v12291_v30 }
 0xa8d   :  { %8314 = vmatpush1.bf16.msra.mxu1 %v12292_v8  ;;  %8354 = vmatpush1.bf16.msra.mxu0 %v12293_v31 }
 0xa8e   :  { %8316 = vmatprep.subr.bf16.mxu1 %v12294_v9  ;;  %8356 = vmatprep.subr.bf16.mxu0 %v12295_v16  ;;  %v12326_v16 = vld [vmem:[#allocation97_spill] sm:$0xff] }
 0xa91   :  { %8318 = vmatpush1.bf16.msra.mxu1 %v12296_v13  ;;  %8358 = vmatpush1.bf16.msra.mxu0 %v12297_v59  ;;  %v12305_v13 = vld [vmem:[#allocation62_spill] sm:$0xff] }
 0xa92   :  { %8320 = vmatprep.subr.bf16.mxu1 %v12298_v24  ;;  %8360 = vmatprep.subr.bf16.mxu0 %v12299_v62  ;;  %v12321_v62 = vld [vmem:[#allocation88_spill] sm:$0xff] }
 0xa95   :  { %8322 = vmatpush1.bf16.msra.mxu1 %v12300_v22  ;;  %8362 = vmatpush1.bf16.msra.mxu0 %v12301_v12  ;;  %v12306_v22 = vld [vmem:[#allocation63_spill] sm:$0xff] }
 0xa96   :  { %8324 = vmatprep.subr.bf16.mxu1 %v12302_v34  ;;  %8387 = vmatprep.subr.bf16.mxu0 %v12194_v57  ;;  %v12307_v12 = vld [vmem:[#allocation87_spill] sm:$0xff] }
 0xa97   :  { %v12314_v34 = vld [vmem:[#allocation83_spill] sm:$0xff] }
 0xa98   :  { %2818 = vmatmul.mubr.f32.vlgmr.msra.gmra.mrb[20].mxu0 %v10869_v46 }
 0xa99   :  { %8326 = vmatpush1.bf16.msra.mxu1 %v12303_v54  ;;  %8389 = vmatpush3.bf16.msra.mxu0 %v12304_v17  ;;  %v12308_v54 = vld [vmem:[#allocation80_spill] sm:$0xff]  ;;  %v12312_v17 = vld [vmem:[#allocation82_spill] sm:$0xff] }
 0xa9a   :  { %8328 = vmatprep.subr.bf16.mxu1 %v12305_v13  ;;  %8390 = vmatprep.subr.bf16.mxu0 %v12194_v57  ;;  %v12309_v13 = vld [vmem:[#allocation89_spill] sm:$0xff] }
 0xa9b   :  { %7343 = vmatprep.mubr.msk.f32.mxu0 %vm9913_vm0, %v12195_v4 }
 0xa9d   :  { %8330 = vmatpush1.bf16.msra.mxu1 %v12306_v22  ;;  %8392 = vmatpush3.bf16.msra.mxu0 %v12307_v12  ;;  %v12310_v22 = vld [vmem:[#allocation81_spill] sm:$0xff]  ;;  %v12311_v12 = vld [vmem:[#allocation91_spill] sm:$0xff] }
 0xa9e   :  { %8363 = vmatprep.subr.bf16.mxu1 %v12194_v57  ;;  %8393 = vmatprep.subr.bf16.mxu0 %v12194_v57 }
 0xaa0   :  { %2747 = vmatmul.mubr.f32.vlgmr.msra.gmra.mrb[26].mxu1 %v10869_v46 }
 0xaa1   :  { %8365 = vmatpush3.bf16.msra.mxu1 %v12308_v54  ;;  %7308 = vmatprep.mubr.msk.f32.mxu1 %vm9913_vm0, %v12195_v4  ;;  %v12313_v54 = vld [vmem:[#allocation92_spill] sm:$0xff] }
 0xaa2   :  { %8366 = vmatprep.subr.bf16.mxu1 %v12194_v57  ;;  %8395 = vmatpush3.bf16.msra.mxu0 %v12309_v13  ;;  %v12315_v13 = vld [vmem:[#allocation93_spill] sm:$0xff] }
 0xaa3   :  { %8396 = vmatprep.subr.bf16.mxu0 %v12194_v57 }
 0xaa5   :  { %8368 = vmatpush3.bf16.msra.mxu1 %v12310_v22  ;;  %v12316_v22 = vld [vmem:[#allocation84_spill] sm:$0xff] }
 0xaa6   :  { %8369 = vmatprep.subr.bf16.mxu1 %v12194_v57  ;;  %8398 = vmatpush3.bf16.msra.mxu0 %v12311_v12  ;;  %v12317_v12 = vld [vmem:[#allocation94_spill] sm:$0xff] }
 0xaa7   :  { %8399 = vmatprep.subr.bf16.mxu0 %v12194_v57 }
 0xaa9   :  { %8371 = vmatpush3.bf16.msra.mxu1 %v12312_v17  ;;  %v12318_v17 = vld [vmem:[#allocation86_spill] sm:$0xff] }
 0xaaa   :  { %8372 = vmatprep.subr.bf16.mxu1 %v12194_v57  ;;  %8401 = vmatpush3.bf16.msra.mxu0 %v12313_v54  ;;  %v12319_v54 = vld [vmem:[#allocation95_spill] sm:$0xff] }
 0xaab   :  { %8402 = vmatprep.subr.bf16.mxu0 %v12194_v57 }
 0xaad   :  { %8374 = vmatpush3.bf16.msra.mxu1 %v12314_v34  ;;  %v12320_v34 = vld [vmem:[#allocation30_spill] sm:$0xff] }
 0xaae   :  { %8375 = vmatprep.subr.bf16.mxu1 %v12194_v57  ;;  %8404 = vmatpush3.bf16.msra.mxu0 %v12315_v13  ;;  %v12322_v13 = vld [vmem:[#allocation90_spill] sm:$0xff] }
 0xaaf   :  { %8405 = vmatprep.subr.bf16.mxu0 %v12194_v57 }
 0xab1   :  { %8377 = vmatpush3.bf16.msra.mxu1 %v12316_v22  ;;  %v12323_v22 = vld [vmem:[#allocation106_spill] sm:$0xff] }
 0xab2   :  { %8378 = vmatprep.subr.bf16.mxu1 %v12194_v57  ;;  %8407 = vmatpush3.bf16.msra.mxu0 %v12317_v12 }
 0xab3   :  { %8408 = vmatprep.subr.bf16.mxu0 %v12194_v57 }
 0xab5   :  { %8380 = vmatpush3.bf16.msra.mxu1 %v12318_v17 }
 0xab6   :  { %8381 = vmatprep.subr.bf16.mxu1 %v12194_v57  ;;  %8410 = vmatpush3.bf16.msra.mxu0 %v12319_v54 }
 0xab7   :  { %8444 = vmatprep.subr.bf16.mxu0 %v12320_v34  ;;  %v12327_v34 = vld [vmem:[#allocation100_spill] sm:$0xff] }
 0xab9   :  { %8383 = vmatpush3.bf16.msra.mxu1 %v12321_v62 }
 0xaba   :  { %8384 = vmatprep.subr.bf16.mxu1 %v12194_v57 }
 0xabd   :  { %8386 = vmatpush3.bf16.msra.mxu1 %v12322_v13 }
 0xabe   :  { %8412 = vmatprep.subr.bf16.mxu1 %v12323_v22 }
 0xb4b   :  { %v10952_v24 = vpop.f32.mrb[22].mxu1  ;;  %v2677_v12 = vpop.f32.mrb[18].mxu0 }
 0xb4c   :  { %12324 = vst [vmem:[#allocation102_spill] sm:$0xff] %v10952_v24  ;;  %v10954_v59 = vpop.f32.mrb[23].mxu1  ;;  %v2679_v17 = vpop.f32.mrb[19].mxu0  ;;  %v2826_v9 = vadd.f32 %v2677_v12, %v12326_v16 }
 0xb4d   :  { %12325 = vst [vmem:[#allocation103_spill] sm:$0xff] %v10954_v59  ;;  %v2827_v62 = vadd.f32 %v2679_v17, %v12327_v34  ;;  %v12328_v59 = vld [vmem:[#allocation101_spill] sm:$0xff] }
 0xb4e   :  { %v6546_v8 = vmul.f32 -1.442695, %v2826_v9 }
 0xb4f   :  { %v6547_v30 = vmul.f32 -1.442695, %v2827_v62 }
 0xb50   :  { %9520 = vpow2.f32 %v6546_v8 }
 0xb51   :  { %9522 = vpow2.f32 %v6547_v30 }
 0xb53   :  { %v2607_v31 = vpop.f32.mrb[24].mxu1 }
 0xb54   :  { %v7275_v54 = vpop.f32.mrb[25].mxu1  ;;  %v2840_v8 = vadd.f32 %v10564_v11, %v2607_v31 }
 0xb5a   :  { %v9521_v36 = vpop.eup %9520 }
 0xb5b   :  { %v2834_v13 = vadd.f32 1.0, %v9521_v36  ;;  %v9523_v24 = vpop.eup %9522 }
 0xb5c   :  { %v2835_v61 = vadd.f32 1.0, %v9523_v24 }
 0xb5d   :  { %9524 = vrcp.f32 %v2834_v13 }
 0xb5e   :  { %9526 = vrcp.f32 %v2835_v61 }
 0xb67   :  { %v9525_v12 = vpop.eup %9524 }
 0xb68   :  { %v9527_v17 = vpop.eup %9526 }
 0xb69   :  { %v2845_v34 = vsub.f32 1.0, %v9527_v17 }
 0xb6b   :  { %v2819_v22 = vpop.f32.mrb[20].mxu0 }
 0xb6c   :  { %v2821_v0 = vpop.f32.mrb[21].mxu0  ;;  %v2850_v30 = vadd.f32 %v2819_v22, %v10571_v35 }
 0xb6d   :  { %v2863_v31 = vadd.f32 %v10574_v10, %v2821_v0 }
 0xb6e   :  { %v6549_v13 = vmul.f32 -1.442695, %v2850_v30 }
 0xb73   :  { %v2748_v52 = vpop.f32.mrb[26].mxu1 }
 0xb74   :  { %v2841_v56 = vadd.f32 %v12328_v59, %v2748_v52  ;;  %v2750_v45 = vpop.f32.mrb[27].mxu1 }
 0xb75   :  { %v2849_v54 = vadd.f32 %v2750_v45, %v10552_v60  ;;  %v2847_v45 = vmul.f32 %v9527_v17, %v10869_v46 }
 0xb76   :  { %v2842_v9 = vmul.f32 %v9525_v12, %v2841_v56 }
 0xb77   :  { %v6548_v62 = vmul.f32 -1.442695, %v2849_v54 }
 0xb78   :  { %v2843_v36 = vadd.f32 %v2842_v9, %v2840_v8 }
 0xb79   :  { %9528 = vpow2.f32 %v6548_v62 }
 0xb7a   :  { %9530 = vtanh.f32 %v2843_v36 }
 0xb7b   :  { %9532 = vpow2.f32 %v6549_v13 }
 0xb83   :  { %v9529_v24 = vpop.eup %9528 }
 0xb84   :  { %v9531_v52 = vpop.eup %9530  ;;  %v2857_v59 = vadd.f32 1.0, %v9529_v24 }
 0xb85   :  { %v2846_v16 = vmul.f32 %v9531_v52, %v2845_v34  ;;  %v9533_v56 = vpop.eup %9532 }
 0xb86   :  { %9534 = vrcp.f32 %v2857_v59  ;;  %v2858_v11 = vadd.f32 1.0, %v9533_v56  ;;  %v6553_v56 = vld [vmem:[%s12142_s13 + $0x18] sm:$0xff] }
 0xb87   :  { %v10963_v61 = vadd.f32 %v2847_v45, %v2846_v16 }
 0xb88   :  { %9536 = vrcp.f32 %v2858_v11  ;;  %v12329_v11 = vld [vmem:[#allocation43_spill] sm:$0xff] }
 0xb89   :  { %7309 = vmatmul.mubr.f32.vlgmr.msra.gmra.mrb[28].mxu1 %v10963_v61 }
 0xb8a   :  { %8414 = vmatpush1.bf16.msra.mxu1 %v10623_v20  ;;  %3105 = vmatprep.mubr.f32.mxu1 %v12195_v4 }
 0xb8b   :  { %8416 = vmatprep.subr.bf16.mxu1 %v10632_v23 }
 0xb8e   :  { %8418 = vmatpush1.bf16.msra.mxu1 %v10638_v6 }
 0xb8f   :  { %8420 = vmatprep.subr.bf16.mxu1 %v10641_v15 }
 0xb90   :  { %v9535_v22 = vpop.eup %9534 }
 0xb91   :  { %v2864_v16 = vmul.f32 %v9535_v22, %v2863_v31  ;;  %v12332_v31 = vld [vmem:[#allocation46_spill] sm:$0xff]  ;;  %v12334_v22 = vld [vmem:[#allocation48_spill] sm:$0xff] }
 0xb92   :  { %8422 = vmatpush1.bf16.msra.mxu1 %v10651_v26  ;;  %v9537_v12 = vpop.eup %9536 }
 0xb93   :  { %v2865_v34 = vadd.f32 %v2864_v16, %v10581_v1  ;;  %8424 = vmatprep.subr.bf16.mxu1 %v10654_v18  ;;  %v2867_v10 = vsub.f32 1.0, %v9537_v12  ;;  %v2869_v8 = vmul.f32 %v9537_v12, %v10869_v46  ;;  %v12335_v16 = vld [vmem:[#allocation49_spill] sm:$0xff]  ;;  %v12338_v12 = vld [vmem:[#allocation52_spill] sm:$0xff] }
 0xb95   :  { %9538 = vtanh.f32 %v2865_v34  ;;  %v12337_v34 = vld [vmem:[#allocation51_spill] sm:$0xff] }
 0xb96   :  { %8426 = vmatpush1.bf16.msra.mxu1 %v10663_v48 }
 0xb97   :  { %8428 = vmatprep.subr.bf16.mxu1 %v10666_v2 }
 0xb9a   :  { %8430 = vmatpush1.bf16.msra.mxu1 %v10675_v49 }
 0xb9b   :  { %8432 = vmatprep.subr.bf16.mxu1 %v10678_v14 }
 0xb9e   :  { %8434 = vmatpush1.bf16.msra.mxu1 %v10687_v58 }
 0xb9f   :  { %v9539_v0 = vpop.eup %9538  ;;  %8436 = vmatprep.subr.bf16.mxu1 %v10690_v33 }
 0xba0   :  { %v2868_v54 = vmul.f32 %v9539_v0, %v2867_v10  ;;  %v12339_v10 = vld [vmem:[#allocation53_spill] sm:$0xff]  ;;  %v12340_v0 = vld [vmem:[#allocation56_spill] sm:$0xff] }
 0xba2   :  { %v2870_v9 = vadd.f32 %v2869_v8, %v2868_v54  ;;  %8438 = vmatpush1.bf16.msra.mxu1 %v10697_v40  ;;  %v12341_v54 = vld [vmem:[#allocation57_spill] sm:$0xff]  ;;  %v12342_v8 = vld [vmem:[#allocation60_spill] sm:$0xff] }
 0xba3   :  { %8440 = vmatprep.subr.bf16.mxu1 %v10710_v47 }
 0xba4   :  { %7344 = vmatmul.mubr.f32.vlgmr.msra.gmra.mrb[22].mxu0 %v2870_v9 }
 0xba5   :  { %8446 = vmatpush1.bf16.msra.mxu0 %v10296_v19  ;;  %3201 = vmatprep.mubr.f32.mxu0 %v12195_v4 }
 0xba6   :  { %8448 = vmatprep.subr.bf16.mxu0 %v10298_v21  ;;  %8442 = vmatpush1.bf16.msra.mxu1 %v10714_v32 }
 0xba7   :  { %8451 = vmatprep.subr.bf16.mxu1 %v12194_v57 }
 0xba9   :  { %8450 = vmatpush1.bf16.msra.mxu0 %v10303_v28 }
 0xbaa   :  { %8458 = vmatprep.subr.bf16.mxu0 %v10307_v29 }
 0xbac   :  { %6554 = vmatmul.mubr.msk.f32.vlgmr.msra.gmra.mrb[24].mxu0 %vm216_vm1, %v6553_v56 }
 0xbad   :  { %8460 = vmatpush1.bf16.msra.mxu0 %v12329_v11  ;;  %3342 = vmatprep.mubr.f32.mxu0 %v12195_v4 }
 0xc5c   :  { %v2937_v46 = vpop.f32.mrb[28].mxu1 }
 0xc5d   :  { %v2938_v62 = vadd.f32 %v12269_v41, %v2937_v46  ;;  %v7310_v30 = vpop.f32.mrb[29].mxu1  ;;  %v12330_v41 = vld [vmem:[#allocation44_spill] sm:$0xff]  ;;  %v12343_v46 = vld [vmem:[#allocation61_spill] sm:$0xff] }
 0xc5e   :  { %8462 = vmatprep.subr.bf16.mxu0 %v12330_v41 }
 0xc5f   :  { %9540 = vtanh.f32 %v2938_v62  ;;  %v12344_v62 = vld [vmem:[#allocation64_spill] sm:$0xff] }
 0xc69   :  { %v9541_v36 = vpop.eup %9540 }
 0xc6a   :  { %v3013_v13 = vmul.f32 %v9541_v36, %v12270_v53  ;;  %v12331_v53 = vld [vmem:[#allocation45_spill] sm:$0xff] }
 0xc6b   :  { %8464 = vmatpush1.bf16.msra.mxu0 %v12331_v53 }
 0xc6c   :  { %3014 = vadd.xlane.f32.xlu1 %v3013_v13  ;;  %8466 = vmatprep.subr.bf16.mxu0 %v12332_v31 }
 0xc77   :  { %v3008_v17 = vpop.f32.mrb[22].mxu0 }
 0xc78   :  { %v3009_v24 = vadd.f32 %v12271_v38, %v3008_v17  ;;  %v7345_v52 = vpop.f32.mrb[23].mxu0  ;;  %v12333_v38 = vld [vmem:[#allocation47_spill] sm:$0xff] }
 0xc79   :  { %8468 = vmatpush1.bf16.msra.mxu0 %v12333_v38 }
 0xc7a   :  { %9542 = vtanh.f32 %v3009_v24  ;;  %8470 = vmatprep.subr.bf16.mxu0 %v12334_v22 }
 0xc7d   :  { %8472 = vmatpush1.bf16.msra.mxu0 %v12335_v16 }
 0xc84   :  { %v9543_v59 = vpop.eup %9542 }
 0xc85   :  { %v3016_v45 = vmul.f32 %v9543_v59, %v12272_v5  ;;  %v12336_v5 = vld [vmem:[#allocation50_spill] sm:$0xff] }
 0xc86   :  { %8474 = vmatprep.subr.bf16.mxu0 %v12336_v5 }
 0xc87   :  { %3017 = vadd.xlane.f32.xlu0 %v3016_v45  ;;  %8476 = vmatpush1.bf16.msra.mxu0 %v12337_v34 }
 0xc88   :  { %8478 = vmatprep.subr.bf16.mxu0 %v12338_v12 }
 0xc8b   :  { %8480 = vmatpush1.bf16.msra.mxu0 %v12339_v10 }
 0xc8c   :  { %8482 = vmatprep.subr.bf16.mxu0 %v12340_v0 }
 0xc8f   :  { %8484 = vmatpush1.bf16.msra.mxu0 %v12341_v54 }
 0xc90   :  { %8486 = vmatprep.subr.bf16.mxu0 %v12342_v8 }
 0xc93   :  { %8488 = vmatpush1.bf16.msra.mxu0 %v12343_v46 }
 0xc94   :  { %8522 = vmatprep.subr.bf16.mxu0 %v12344_v62 }
 0xcf9   :  { %v3015_v30 = vpop.xlane.xlu1 %3014 }
 0xd14   :  { %v3018_v36 = vpop.xlane.xlu0 %3017 }
 0xd15   :  { %v3019_v13 = vadd.f32 %v3018_v36, %v3015_v30  ;;  %v12354_v30 = vld [vmem:[#allocation41_spill] sm:$0xff]  ;;  %v12355_v36 = vld [vmem:[#allocation76_spill] sm:$0xff] }
 0xd17   :  { %v3020_v17 = vadd.f32 %v10705_v51, %v3019_v13  ;;  %v12345_v51 = vld [vmem:[#allocation71_spill] sm:$0xff]  ;;  %v12356_v13 = vld [vmem:[#allocation42_spill] sm:$0xff] }
 0xd19   :  { %v6550_v24 = vmul.f32 -1.442695, %v3020_v17  ;;  %v12357_v17 = vld [vmem:[#allocation77_spill] sm:$0xff] }
 0xd1b   :  { %9544 = vpow2.f32 %v6550_v24  ;;  %v12358_v24 = vld [vmem:[#allocation54_spill] sm:$0xff] }
 0xd25   :  { %v9545_v52 = vpop.eup %9544 }
 0xd26   :  { %v3024_v59 = vadd.f32 1.0, %v9545_v52  ;;  %v12359_v52 = vld [vmem:[#allocation78_spill] sm:$0xff] }
 0xd28   :  { %9546 = vrcp.f32 %v3024_v59  ;;  %v12360_v59 = vld [vmem:[#allocation55_spill] sm:$0xff] }
 0xd32   :  { %v9547_v45 = vpop.eup %9546 }
 0xd33   :  { %3036 = vperm.xlu0 %9460, %v9547_v45   ;;  %v3027_v0 = vsub.f32 1.0, %v9547_v45  ;;  %v12361_v45 = vld [vmem:[#allocation79_spill] sm:$0xff] }
 0xd35   :  { %3030 = vperm.xlu1 %9461, %v3027_v0   ;;  %v12350_v0 = vld [vmem:[#allocation39_spill] sm:$0xff] }
 0xdb2   :  { %v3037_v54 = vpop.permute.xlu0 %3036 }
 0xdb3   :  { %v3039_v10 = vmul.f32 %v3037_v54, %v2870_v9  ;;  %v12347_v9 = vld [vmem:[#allocation72_spill] sm:$0xff]  ;;  %v12351_v54 = vld [vmem:[#allocation74_spill] sm:$0xff] }
 0xdb4   :  { %v3031_v8 = vpop.permute.xlu1 %3030 }
 0xdb5   :  { %v3033_v46 = vmul.f32 %v3031_v8, %v10963_v61  ;;  %v12346_v61 = vld [vmem:[#allocation37_spill] sm:$0xff]  ;;  %v12352_v8 = vld [vmem:[#allocation40_spill] sm:$0xff] }
 0xdb7   :  { %v11016_v62 = vadd.f32 %v3039_v10, %v3033_v46  ;;  %v12348_v10 = vld [vmem:[#allocation38_spill] sm:$0xff]  ;;  %v12353_v46 = vld [vmem:[#allocation75_spill] sm:$0xff] }
 0xdb9   :  { %3106 = vmatmul.mubr.f32.vlgmr.msra.gmra.mrb[30].mxu1 %v11016_v62  ;;  %3343 = vmatmul.mubr.f32.vlgmr.msra.gmra.mrb[24].mxu0 %v11016_v62 }
 0xdba   :  { %8453 = vmatpush3.bf16.msra.mxu1 %v10246_v37  ;;  %8524 = vmatpush1.bf16.msra.mxu0 %v10390_v39 }
 0xdbb   :  { %8454 = vmatprep.subr.bf16.mxu1 %v12194_v57  ;;  %8526 = vmatprep.subr.bf16.mxu0 %v10392_v44 }
 0xdbc   :  { %7354 = vmatprep.mubr.msk.f32.mxu1 %vm9913_vm0, %v12195_v4  ;;  %3484 = vmatprep.mubr.f32.mxu0 %v12195_v4 }
 0xdbe   :  { %8456 = vmatpush3.bf16.msra.mxu1 %v10252_v42  ;;  %8528 = vmatpush1.bf16.msra.mxu0 %v10399_v63 }
 0xdbf   :  { %8490 = vmatprep.subr.bf16.mxu1 %v10257_v43  ;;  %8530 = vmatprep.subr.bf16.mxu0 %v10403_v3 }
 0xdc1   :  { %7355 = vmatmul.mubr.msk.f32.vlgmr.msra.gmra.mrb[32].mxu1 %vm216_vm1, %v6553_v56  ;;  %v12349_v56 = vld [vmem:[#allocation73_spill] sm:$0xff] }
 0xdc2   :  { %8492 = vmatpush1.bf16.msra.mxu1 %v10263_v7  ;;  %8532 = vmatpush1.bf16.msra.mxu0 %v10408_v25 }
 0xdc3   :  { %8494 = vmatprep.subr.bf16.mxu1 %v10266_v50  ;;  %8534 = vmatprep.subr.bf16.mxu0 %v10411_v27 }
 0xdc4   :  { %3413 = vmatprep.mubr.f32.mxu1 %v12195_v4 }
 0xdc6   :  { %8496 = vmatpush1.bf16.msra.mxu1 %v10271_v55  ;;  %8536 = vmatpush1.bf16.msra.mxu0 %v12345_v51  ;;  %v11106_v55 = vld [vmem:[%s12220_s12] ss:$0 sm:$0xff] }
 0xdc7   :  { %8498 = vmatprep.subr.bf16.mxu1 %v12346_v61  ;;  %8538 = vmatprep.subr.bf16.mxu0 %v12347_v9  ;;  %12388 = vst [vmem:[#allocation101_spill] sm:$0xff] %v11106_v55 }
 0xdca   :  { %8500 = vmatpush1.bf16.msra.mxu1 %v12348_v10  ;;  %8540 = vmatpush1.bf16.msra.mxu0 %v12349_v56 }
 0xdcb   :  { %8502 = vmatprep.subr.bf16.mxu1 %v12350_v0  ;;  %8542 = vmatprep.subr.bf16.mxu0 %v12351_v54  ;;  %v12362_v54 = vld [vmem:[#allocation58_spill] sm:$0xff] }
 0xdce   :  { %8504 = vmatpush1.bf16.msra.mxu1 %v12352_v8  ;;  %8544 = vmatpush1.bf16.msra.mxu0 %v12353_v46  ;;  %v12386_v46 = vld [vmem:[#allocation97_spill] sm:$0xff] }
 0xdcf   :  { %8506 = vmatprep.subr.bf16.mxu1 %v12354_v30  ;;  %8546 = vmatprep.subr.bf16.mxu0 %v12355_v36  ;;  %v12363_v30 = vld [vmem:[#allocation59_spill] sm:$0xff]  ;;  %v12364_v36 = vld [vmem:[#allocation85_spill] sm:$0xff] }
 0xdd2   :  { %8508 = vmatpush1.bf16.msra.mxu1 %v12356_v13  ;;  %8548 = vmatpush1.bf16.msra.mxu0 %v12357_v17  ;;  %v12365_v13 = vld [vmem:[#allocation62_spill] sm:$0xff] }
 0xdd3   :  { %8510 = vmatprep.subr.bf16.mxu1 %v12358_v24  ;;  %8550 = vmatprep.subr.bf16.mxu0 %v12359_v52  ;;  %v12381_v52 = vld [vmem:[#allocation88_spill] sm:$0xff] }
 0xdd6   :  { %8512 = vmatpush1.bf16.msra.mxu1 %v12360_v59  ;;  %8552 = vmatpush1.bf16.msra.mxu0 %v12361_v45  ;;  %v12366_v59 = vld [vmem:[#allocation63_spill] sm:$0xff] }
 0xdd7   :  { %8514 = vmatprep.subr.bf16.mxu1 %v12362_v54  ;;  %8577 = vmatprep.subr.bf16.mxu0 %v12194_v57  ;;  %v12367_v45 = vld [vmem:[#allocation87_spill] sm:$0xff] }
 0xdd8   :  { %v12374_v54 = vld [vmem:[#allocation83_spill] sm:$0xff] }
 0xdd9   :  { %3485 = vmatmul.mubr.f32.vlgmr.msra.gmra.mrb[26].mxu0 %v11016_v62 }
 0xdda   :  { %8516 = vmatpush1.bf16.msra.mxu1 %v12363_v30  ;;  %8579 = vmatpush3.bf16.msra.mxu0 %v12364_v36  ;;  %v12368_v30 = vld [vmem:[#allocation80_spill] sm:$0xff]  ;;  %v12372_v36 = vld [vmem:[#allocation82_spill] sm:$0xff] }
 0xddb   :  { %8518 = vmatprep.subr.bf16.mxu1 %v12365_v13  ;;  %8580 = vmatprep.subr.bf16.mxu0 %v12194_v57  ;;  %v12369_v13 = vld [vmem:[#allocation89_spill] sm:$0xff] }
 0xddc   :  { %7424 = vmatprep.mubr.msk.f32.mxu0 %vm9913_vm0, %v12195_v4 }
 0xdde   :  { %8520 = vmatpush1.bf16.msra.mxu1 %v12366_v59  ;;  %8582 = vmatpush3.bf16.msra.mxu0 %v12367_v45  ;;  %v12370_v59 = vld [vmem:[#allocation81_spill] sm:$0xff]  ;;  %v12371_v45 = vld [vmem:[#allocation91_spill] sm:$0xff] }
 0xddf   :  { %8553 = vmatprep.subr.bf16.mxu1 %v12194_v57  ;;  %8583 = vmatprep.subr.bf16.mxu0 %v12194_v57 }
 0xde1   :  { %3414 = vmatmul.mubr.f32.vlgmr.msra.gmra.mrb[34].mxu1 %v11016_v62 }
 0xde2   :  { %8555 = vmatpush3.bf16.msra.mxu1 %v12368_v30  ;;  %7389 = vmatprep.mubr.msk.f32.mxu1 %vm9913_vm0, %v12195_v4  ;;  %v12373_v30 = vld [vmem:[#allocation92_spill] sm:$0xff] }
 0xde3   :  { %8556 = vmatprep.subr.bf16.mxu1 %v12194_v57  ;;  %8585 = vmatpush3.bf16.msra.mxu0 %v12369_v13  ;;  %v12375_v13 = vld [vmem:[#allocation93_spill] sm:$0xff] }
 0xde4   :  { %8586 = vmatprep.subr.bf16.mxu0 %v12194_v57 }
 0xde6   :  { %8558 = vmatpush3.bf16.msra.mxu1 %v12370_v59  ;;  %v12376_v59 = vld [vmem:[#allocation84_spill] sm:$0xff] }
 0xde7   :  { %8559 = vmatprep.subr.bf16.mxu1 %v12194_v57  ;;  %8588 = vmatpush3.bf16.msra.mxu0 %v12371_v45  ;;  %v12377_v45 = vld [vmem:[#allocation94_spill] sm:$0xff] }
 0xde8   :  { %8589 = vmatprep.subr.bf16.mxu0 %v12194_v57 }
 0xdea   :  { %8561 = vmatpush3.bf16.msra.mxu1 %v12372_v36  ;;  %v12378_v36 = vld [vmem:[#allocation86_spill] sm:$0xff] }
 0xdeb   :  { %8562 = vmatprep.subr.bf16.mxu1 %v12194_v57  ;;  %8591 = vmatpush3.bf16.msra.mxu0 %v12373_v30  ;;  %v12379_v30 = vld [vmem:[#allocation95_spill] sm:$0xff] }
 0xdec   :  { %8592 = vmatprep.subr.bf16.mxu0 %v12194_v57 }
 0xdee   :  { %8564 = vmatpush3.bf16.msra.mxu1 %v12374_v54  ;;  %v12380_v54 = vld [vmem:[#allocation30_spill] sm:$0xff] }
 0xdef   :  { %8565 = vmatprep.subr.bf16.mxu1 %v12194_v57  ;;  %8594 = vmatpush3.bf16.msra.mxu0 %v12375_v13  ;;  %v12382_v13 = vld [vmem:[#allocation90_spill] sm:$0xff] }
 0xdf0   :  { %8595 = vmatprep.subr.bf16.mxu0 %v12194_v57 }
 0xdf2   :  { %8567 = vmatpush3.bf16.msra.mxu1 %v12376_v59  ;;  %v12383_v59 = vld [vmem:[#allocation106_spill] sm:$0xff] }
 0xdf3   :  { %8568 = vmatprep.subr.bf16.mxu1 %v12194_v57  ;;  %8597 = vmatpush3.bf16.msra.mxu0 %v12377_v45 }
 0xdf4   :  { %8598 = vmatprep.subr.bf16.mxu0 %v12194_v57 }
 0xdf6   :  { %8570 = vmatpush3.bf16.msra.mxu1 %v12378_v36 }
 0xdf7   :  { %8571 = vmatprep.subr.bf16.mxu1 %v12194_v57  ;;  %8600 = vmatpush3.bf16.msra.mxu0 %v12379_v30 }
 0xdf8   :  { %8634 = vmatprep.subr.bf16.mxu0 %v12380_v54 }
 0xdfa   :  { %8573 = vmatpush3.bf16.msra.mxu1 %v12381_v52  ;;  %v12387_v52 = vld [vmem:[#allocation100_spill] sm:$0xff] }
 0xdfb   :  { %8574 = vmatprep.subr.bf16.mxu1 %v12194_v57 }
 0xdfe   :  { %8576 = vmatpush3.bf16.msra.mxu1 %v12382_v13 }
 0xdff   :  { %8602 = vmatprep.subr.bf16.mxu1 %v12383_v59 }
 0xe8c   :  { %v11099_v24 = vpop.f32.mrb[30].mxu1  ;;  %v3344_v45 = vpop.f32.mrb[24].mxu0 }
 0xe8d   :  { %12384 = vst [vmem:[#allocation104_spill] sm:$0xff] %v11099_v24  ;;  %v11101_v17 = vpop.f32.mrb[31].mxu1  ;;  %v3346_v36 = vpop.f32.mrb[25].mxu0  ;;  %v3493_v8 = vadd.f32 %v3344_v45, %v12386_v46 }
 0xe8e   :  { %12385 = vst [vmem:[#allocation105_spill] sm:$0xff] %v11101_v17  ;;  %v3494_v56 = vadd.f32 %v3346_v36, %v12387_v52 }
 0xe8f   :  { %v6556_v54 = vmul.f32 -1.442695, %v3493_v8 }
 0xe90   :  { %v6557_v10 = vmul.f32 -1.442695, %v3494_v56  ;;  %v11111_v56 = vld [vmem:[%s12221_s18] ss:$0 sm:$0xff] }
 0xe91   :  { %9548 = vpow2.f32 %v6556_v54 }
 0xe92   :  { %9550 = vpow2.f32 %v6557_v10 }
 0xe94   :  { %v3274_v30 = vpop.f32.mrb[32].mxu1 }
 0xe95   :  { %v7356_v0 = vpop.f32.mrb[33].mxu1  ;;  %v3507_v10 = vadd.f32 %v11111_v56, %v3274_v30 }
 0xe9b   :  { %v9549_v13 = vpop.eup %9548 }
 0xe9c   :  { %v3501_v59 = vadd.f32 1.0, %v9549_v13  ;;  %v9551_v61 = vpop.eup %9550 }
 0xe9d   :  { %v3502_v17 = vadd.f32 1.0, %v9551_v61 }
 0xe9e   :  { %9552 = vrcp.f32 %v3501_v59 }
 0xe9f   :  { %9554 = vrcp.f32 %v3502_v17 }
 0xea8   :  { %v9553_v8 = vpop.eup %9552 }
 0xea9   :  { %v9555_v46 = vpop.eup %9554 }
 0xeac   :  { %v3486_v24 = vpop.f32.mrb[26].mxu0 }
 0xead   :  { %v3488_v9 = vpop.f32.mrb[27].mxu0  ;;  %v3517_v59 = vadd.f32 %v3486_v24, %v10571_v35 }
 0xeaf   :  { %v6559_v61 = vmul.f32 -1.442695, %v3517_v59  ;;  %v11151_v59 = vld [vmem:[%s12225_s28] ss:$0 sm:$0xff] }
 0xeb4   :  { %v3415_v51 = vpop.f32.mrb[34].mxu1 }
 0xeb5   :  { %v3508_v45 = vadd.f32 %v11106_v55, %v3415_v51  ;;  %v3417_v0 = vpop.f32.mrb[35].mxu1  ;;  %v3512_v55 = vsub.f32 1.0, %v9555_v46 }
 0xeb6   :  { %v3516_v54 = vadd.f32 %v3417_v0, %v10552_v60  ;;  %v3514_v60 = vmul.f32 %v9555_v46, %v11016_v62 }
 0xeb7   :  { %v3509_v36 = vmul.f32 %v9553_v8, %v3508_v45  ;;  %v11124_v45 = vld [vmem:[%s12222_s14] ss:$0 sm:$0xff] }
 0xeb8   :  { %v6558_v13 = vmul.f32 -1.442695, %v3516_v54 }
 0xeb9   :  { %v3510_v52 = vadd.f32 %v3509_v36, %v3507_v10 }
 0xeba   :  { %9556 = vpow2.f32 %v6558_v13 }
 0xebb   :  { %9558 = vtanh.f32 %v3510_v52 }
 0xebc   :  { %9560 = vpow2.f32 %v6559_v61 }
 0xec4   :  { %v9557_v51 = vpop.eup %9556 }
 0xec5   :  { %v9559_v27 = vpop.eup %9558  ;;  %v3524_v0 = vadd.f32 1.0, %v9557_v51 }
 0xec6   :  { %v3513_v17 = vmul.f32 %v9559_v27, %v3512_v55  ;;  %v9561_v24 = vpop.eup %9560  ;;  %v3530_v55 = vadd.f32 %v11124_v45, %v3488_v9 }
 0xec7   :  { %9562 = vrcp.f32 %v3524_v0  ;;  %v3525_v52 = vadd.f32 1.0, %v9561_v24 }
 0xec8   :  { %v11116_v30 = vadd.f32 %v3514_v60, %v3513_v17  ;;  %v11155_v17 = vld [vmem:[%s12226_s2] ss:$0 sm:$0xff] }
 0xec9   :  { %9564 = vrcp.f32 %v3525_v52 }
 0xeca   :  { %7390 = vmatmul.mubr.f32.vlgmr.msra.gmra.mrb[36].mxu1 %v11116_v30 }
 0xecb   :  { %8604 = vmatpush1.bf16.msra.mxu1 %v10623_v20  ;;  %3772 = vmatprep.mubr.f32.mxu1 %v12195_v4 }
 0xecc   :  { %8606 = vmatprep.subr.bf16.mxu1 %v10632_v23 }
 0xecf   :  { %8608 = vmatpush1.bf16.msra.mxu1 %v10638_v6 }
 0xed0   :  { %8610 = vmatprep.subr.bf16.mxu1 %v10641_v15 }
 0xed1   :  { %v9563_v27 = vpop.eup %9562 }
 0xed2   :  { %v3531_v60 = vmul.f32 %v9563_v27, %v3530_v55  ;;  %v11159_v55 = vld [vmem:[%s12227_s7] ss:$0 sm:$0xff] }
 0xed3   :  { %8612 = vmatpush1.bf16.msra.mxu1 %v10651_v26  ;;  %v9565_v8 = vpop.eup %9564 }
 0xed4   :  { %v3532_v46 = vadd.f32 %v3531_v60, %v10581_v1  ;;  %8614 = vmatprep.subr.bf16.mxu1 %v10654_v18  ;;  %v3534_v9 = vsub.f32 1.0, %v9565_v8  ;;  %v3536_v36 = vmul.f32 %v9565_v8, %v11016_v62  ;;  %v11163_v8 = vld [vmem:[%s12228_s10] ss:$0 sm:$0xff] }
 0xed6   :  { %9566 = vtanh.f32 %v3532_v46 }
 0xed7   :  { %8616 = vmatpush1.bf16.msra.mxu1 %v10663_v48 }
 0xed8   :  { %8618 = vmatprep.subr.bf16.mxu1 %v10666_v2 }
 0xedb   :  { %8620 = vmatpush1.bf16.msra.mxu1 %v10675_v49 }
 0xedc   :  { %8622 = vmatprep.subr.bf16.mxu1 %v10678_v14 }
 0xedf   :  { %8624 = vmatpush1.bf16.msra.mxu1 %v10687_v58 }
 0xee0   :  { %v9567_v54 = vpop.eup %9566  ;;  %8626 = vmatprep.subr.bf16.mxu1 %v10690_v33 }
 0xee1   :  { %v3535_v10 = vmul.f32 %v9567_v54, %v3534_v9  ;;  %v6563_v54 = vld [vmem:[%s12142_s13 + $0x20] sm:$0xff] }
 0xee3   :  { %v11138_v13 = vadd.f32 %v3536_v36, %v3535_v10  ;;  %8628 = vmatpush1.bf16.msra.mxu1 %v10697_v40  ;;  %v12389_v10 = vld [vmem:[#allocation53_spill] sm:$0xff]  ;;  %v12390_v36 = vld [vmem:[#allocation56_spill] sm:$0xff] }
 0xee4   :  { %8630 = vmatprep.subr.bf16.mxu1 %v10710_v47 }
 0xee5   :  { %7425 = vmatmul.mubr.f32.vlgmr.msra.gmra.mrb[28].mxu0 %v11138_v13 }
 0xee6   :  { %8636 = vmatpush1.bf16.msra.mxu0 %v10296_v19  ;;  %3868 = vmatprep.mubr.f32.mxu0 %v12195_v4 }
 0xee7   :  { %8638 = vmatprep.subr.bf16.mxu0 %v10298_v21  ;;  %8632 = vmatpush1.bf16.msra.mxu1 %v10714_v32 }
 0xee8   :  { %8641 = vmatprep.subr.bf16.mxu1 %v12194_v57 }
 0xeea   :  { %8640 = vmatpush1.bf16.msra.mxu0 %v10303_v28 }
 0xeeb   :  { %8648 = vmatprep.subr.bf16.mxu0 %v10307_v29 }
 0xeed   :  { %6564 = vmatmul.mubr.msk.f32.vlgmr.msra.gmra.mrb[30].mxu0 %vm216_vm1, %v6563_v54 }
 0xeee   :  { %8650 = vmatpush1.bf16.msra.mxu0 %v12329_v11  ;;  %4009 = vmatprep.mubr.f32.mxu0 %v12195_v4 }
 0xeef   :  { %8652 = vmatprep.subr.bf16.mxu0 %v12330_v41 }
 0xef2   :  { %8654 = vmatpush1.bf16.msra.mxu0 %v12331_v53 }
 0xef3   :  { %8656 = vmatprep.subr.bf16.mxu0 %v12332_v31 }
 0xef6   :  { %8658 = vmatpush1.bf16.msra.mxu0 %v12333_v38 }
 0xef7   :  { %8660 = vmatprep.subr.bf16.mxu0 %v12334_v22 }
 0xefa   :  { %8662 = vmatpush1.bf16.msra.mxu0 %v12335_v16 }
 0xefb   :  { %8664 = vmatprep.subr.bf16.mxu0 %v12336_v5 }
 0xefe   :  { %8666 = vmatpush1.bf16.msra.mxu0 %v12337_v34 }
 0xeff   :  { %8668 = vmatprep.subr.bf16.mxu0 %v12338_v12 }
 0xf02   :  { %8670 = vmatpush1.bf16.msra.mxu0 %v12389_v10 }
 0xf03   :  { %8672 = vmatprep.subr.bf16.mxu0 %v12390_v36 }
 0xf9d   :  { %v3604_v62 = vpop.f32.mrb[36].mxu1 }
 0xf9e   :  { %v3605_v61 = vadd.f32 %v11151_v59, %v3604_v62  ;;  %v7391_v51 = vpop.f32.mrb[37].mxu1  ;;  %v12391_v62 = vld [vmem:[#allocation57_spill] sm:$0xff] }
 0xf9f   :  { %8674 = vmatpush1.bf16.msra.mxu0 %v12391_v62  ;;  %v12393_v51 = vld [vmem:[#allocation61_spill] sm:$0xff] }
 0xfa0   :  { %9568 = vtanh.f32 %v3605_v61  ;;  %v12392_v61 = vld [vmem:[#allocation60_spill] sm:$0xff] }
 0xfa1   :  { %8676 = vmatprep.subr.bf16.mxu0 %v12392_v61 }
 0xfa3   :  { %8678 = vmatpush1.bf16.msra.mxu0 %v12393_v51 }
 0xfaa   :  { %v9569_v0 = vpop.eup %9568 }
 0xfab   :  { %v3680_v24 = vmul.f32 %v11155_v17, %v9569_v0  ;;  %v12394_v0 = vld [vmem:[#allocation64_spill] sm:$0xff] }
 0xfac   :  { %8712 = vmatprep.subr.bf16.mxu0 %v12394_v0 }
 0xfad   :  { %3681 = vadd.xlane.f32.xlu1 %v3680_v24 }
 0xfb8   :  { %v3675_v52 = vpop.f32.mrb[28].mxu0 }
 0xfb9   :  { %v3676_v27 = vadd.f32 %v11159_v55, %v3675_v52  ;;  %v7426_v60 = vpop.f32.mrb[29].mxu0 }
 0xfba   :  { %v11185_v60 = vld [vmem:[#allocation2] ss:$0 sm:$0xff] }
 0xfbb   :  { %9570 = vtanh.f32 %v3676_v27 }
 0xfc5   :  { %v9571_v46 = vpop.eup %9570 }
 0xfc6   :  { %v3683_v9 = vmul.f32 %v11163_v8, %v9571_v46 }
 0xfc8   :  { %3684 = vadd.xlane.f32.xlu0 %v3683_v9 }
0x103a   :  { %v3682_v24 = vpop.xlane.xlu1 %3681 }
0x1055   :  { %v3685_v52 = vpop.xlane.xlu0 %3684 }
0x1056   :  { %v3686_v27 = vadd.f32 %v3685_v52, %v3682_v24  ;;  %v12406_v52 = vld [vmem:[#allocation41_spill] sm:$0xff] }
0x1058   :  { %v3687_v46 = vadd.f32 %v11185_v60, %v3686_v27  ;;  %v12407_v27 = vld [vmem:[#allocation76_spill] sm:$0xff] }
0x105a   :  { %v6560_v9 = vmul.f32 -1.442695, %v3687_v46  ;;  %v12408_v46 = vld [vmem:[#allocation42_spill] sm:$0xff] }
0x105c   :  { %9572 = vpow2.f32 %v6560_v9  ;;  %v12409_v9 = vld [vmem:[#allocation77_spill] sm:$0xff] }
0x1066   :  { %v9573_v10 = vpop.eup %9572 }
0x1067   :  { %v3691_v12 = vadd.f32 1.0, %v9573_v10  ;;  %v12399_v10 = vld [vmem:[#allocation72_spill] sm:$0xff] }
0x1069   :  { %9574 = vrcp.f32 %v3691_v12  ;;  %v12396_v12 = vld [vmem:[#allocation36_spill] sm:$0xff] }
0x1073   :  { %v9575_v36 = vpop.eup %9574 }
0x1074   :  { %3703 = vperm.xlu0 %9460, %v9575_v36   ;;  %v3694_v62 = vsub.f32 1.0, %v9575_v36  ;;  %v12400_v36 = vld [vmem:[#allocation38_spill] sm:$0xff] }
0x1076   :  { %3697 = vperm.xlu1 %9461, %v3694_v62   ;;  %v12402_v62 = vld [vmem:[#allocation39_spill] sm:$0xff] }
0x10f3   :  { %v3704_v61 = vpop.permute.xlu0 %3703 }
0x10f4   :  { %v3706_v0 = vmul.f32 %v3704_v61, %v11138_v13  ;;  %v12398_v13 = vld [vmem:[#allocation37_spill] sm:$0xff]  ;;  %v12403_v61 = vld [vmem:[#allocation74_spill] sm:$0xff] }
0x10f5   :  { %v3698_v51 = vpop.permute.xlu1 %3697 }
0x10f6   :  { %v3700_v34 = vmul.f32 %v3698_v51, %v11116_v30  ;;  %v12397_v30 = vld [vmem:[#allocation71_spill] sm:$0xff]  ;;  %v12404_v51 = vld [vmem:[#allocation40_spill] sm:$0xff] }
0x10f8   :  { %v11190_v24 = vadd.f32 %v3706_v0, %v3700_v34  ;;  %v12395_v34 = vld [vmem:[#allocation70_spill] sm:$0xff]  ;;  %v12405_v0 = vld [vmem:[#allocation75_spill] sm:$0xff] }
0x10fa   :  { %3773 = vmatmul.mubr.f32.vlgmr.msra.gmra.mrb[38].mxu1 %v11190_v24  ;;  %4010 = vmatmul.mubr.f32.vlgmr.msra.gmra.mrb[30].mxu0 %v11190_v24 }
0x10fb   :  { %8643 = vmatpush3.bf16.msra.mxu1 %v10246_v37  ;;  %8714 = vmatpush1.bf16.msra.mxu0 %v10390_v39 }
0x10fc   :  { %8644 = vmatprep.subr.bf16.mxu1 %v12194_v57  ;;  %8716 = vmatprep.subr.bf16.mxu0 %v10392_v44 }
0x10fd   :  { %7435 = vmatprep.mubr.msk.f32.mxu1 %vm9913_vm0, %v12195_v4  ;;  %4151 = vmatprep.mubr.f32.mxu0 %v12195_v4 }
0x10ff   :  { %8646 = vmatpush3.bf16.msra.mxu1 %v10252_v42  ;;  %8718 = vmatpush1.bf16.msra.mxu0 %v10399_v63 }
0x1100   :  { %8680 = vmatprep.subr.bf16.mxu1 %v10257_v43  ;;  %8720 = vmatprep.subr.bf16.mxu0 %v10403_v3 }
0x1102   :  { %7436 = vmatmul.mubr.msk.f32.vlgmr.msra.gmra.mrb[40].mxu1 %vm216_vm1, %v6563_v54  ;;  %v12401_v54 = vld [vmem:[#allocation73_spill] sm:$0xff] }
0x1103   :  { %8682 = vmatpush1.bf16.msra.mxu1 %v10263_v7  ;;  %8722 = vmatpush1.bf16.msra.mxu0 %v10408_v25 }
0x1104   :  { %8684 = vmatprep.subr.bf16.mxu1 %v10266_v50  ;;  %8724 = vmatprep.subr.bf16.mxu0 %v12395_v34 }
0x1105   :  { %4080 = vmatprep.mubr.f32.mxu1 %v12195_v4 }
0x1107   :  { %8686 = vmatpush1.bf16.msra.mxu1 %v12396_v12  ;;  %8726 = vmatpush1.bf16.msra.mxu0 %v12397_v30 }
0x1108   :  { %8688 = vmatprep.subr.bf16.mxu1 %v12398_v13  ;;  %8728 = vmatprep.subr.bf16.mxu0 %v12399_v10  ;;  %v12410_v10 = vld [vmem:[#allocation54_spill] sm:$0xff] }
0x110b   :  { %8690 = vmatpush1.bf16.msra.mxu1 %v12400_v36  ;;  %8730 = vmatpush1.bf16.msra.mxu0 %v12401_v54  ;;  %v12411_v36 = vld [vmem:[#allocation78_spill] sm:$0xff]  ;;  %v12412_v54 = vld [vmem:[#allocation55_spill] sm:$0xff] }
0x110c   :  { %8692 = vmatprep.subr.bf16.mxu1 %v12402_v62  ;;  %8732 = vmatprep.subr.bf16.mxu0 %v12403_v61  ;;  %v12413_v62 = vld [vmem:[#allocation79_spill] sm:$0xff]  ;;  %v12414_v61 = vld [vmem:[#allocation58_spill] sm:$0xff] }
0x110f   :  { %8694 = vmatpush1.bf16.msra.mxu1 %v12404_v51  ;;  %8734 = vmatpush1.bf16.msra.mxu0 %v12405_v0  ;;  %v12438_v0 = vld [vmem:[#allocation97_spill] sm:$0xff] }
0x1110   :  { %8696 = vmatprep.subr.bf16.mxu1 %v12406_v52  ;;  %8736 = vmatprep.subr.bf16.mxu0 %v12407_v27  ;;  %v12415_v52 = vld [vmem:[#allocation59_spill] sm:$0xff]  ;;  %v12416_v27 = vld [vmem:[#allocation85_spill] sm:$0xff] }
0x1113   :  { %8698 = vmatpush1.bf16.msra.mxu1 %v12408_v46  ;;  %8738 = vmatpush1.bf16.msra.mxu0 %v12409_v9  ;;  %v12417_v46 = vld [vmem:[#allocation62_spill] sm:$0xff] }
0x1114   :  { %8700 = vmatprep.subr.bf16.mxu1 %v12410_v10  ;;  %8740 = vmatprep.subr.bf16.mxu0 %v12411_v36  ;;  %v12433_v36 = vld [vmem:[#allocation88_spill] sm:$0xff] }
0x1117   :  { %8702 = vmatpush1.bf16.msra.mxu1 %v12412_v54  ;;  %8742 = vmatpush1.bf16.msra.mxu0 %v12413_v62  ;;  %v12418_v54 = vld [vmem:[#allocation63_spill] sm:$0xff] }
0x1118   :  { %8704 = vmatprep.subr.bf16.mxu1 %v12414_v61  ;;  %8767 = vmatprep.subr.bf16.mxu0 %v12194_v57  ;;  %v12419_v62 = vld [vmem:[#allocation87_spill] sm:$0xff] }
0x1119   :  { %v12426_v61 = vld [vmem:[#allocation83_spill] sm:$0xff] }
0x111a   :  { %4152 = vmatmul.mubr.f32.vlgmr.msra.gmra.mrb[32].mxu0 %v11190_v24 }
0x111b   :  { %8706 = vmatpush1.bf16.msra.mxu1 %v12415_v52  ;;  %8769 = vmatpush3.bf16.msra.mxu0 %v12416_v27  ;;  %v12420_v52 = vld [vmem:[#allocation80_spill] sm:$0xff]  ;;  %v12424_v27 = vld [vmem:[#allocation82_spill] sm:$0xff] }
0x111c   :  { %8708 = vmatprep.subr.bf16.mxu1 %v12417_v46  ;;  %8770 = vmatprep.subr.bf16.mxu0 %v12194_v57  ;;  %v12421_v46 = vld [vmem:[#allocation89_spill] sm:$0xff] }
0x111d   :  { %7505 = vmatprep.mubr.msk.f32.mxu0 %vm9913_vm0, %v12195_v4 }
0x111f   :  { %8710 = vmatpush1.bf16.msra.mxu1 %v12418_v54  ;;  %8772 = vmatpush3.bf16.msra.mxu0 %v12419_v62  ;;  %v12422_v54 = vld [vmem:[#allocation81_spill] sm:$0xff]  ;;  %v12423_v62 = vld [vmem:[#allocation91_spill] sm:$0xff] }
0x1120   :  { %8743 = vmatprep.subr.bf16.mxu1 %v12194_v57  ;;  %8773 = vmatprep.subr.bf16.mxu0 %v12194_v57 }
0x1122   :  { %4081 = vmatmul.mubr.f32.vlgmr.msra.gmra.mrb[42].mxu1 %v11190_v24 }
0x1123   :  { %8745 = vmatpush3.bf16.msra.mxu1 %v12420_v52  ;;  %7470 = vmatprep.mubr.msk.f32.mxu1 %vm9913_vm0, %v12195_v4  ;;  %v12425_v52 = vld [vmem:[#allocation92_spill] sm:$0xff] }
0x1124   :  { %8746 = vmatprep.subr.bf16.mxu1 %v12194_v57  ;;  %8775 = vmatpush3.bf16.msra.mxu0 %v12421_v46  ;;  %v12427_v46 = vld [vmem:[#allocation93_spill] sm:$0xff] }
0x1125   :  { %8776 = vmatprep.subr.bf16.mxu0 %v12194_v57 }
0x1127   :  { %8748 = vmatpush3.bf16.msra.mxu1 %v12422_v54  ;;  %v12428_v54 = vld [vmem:[#allocation84_spill] sm:$0xff] }
0x1128   :  { %8749 = vmatprep.subr.bf16.mxu1 %v12194_v57  ;;  %8778 = vmatpush3.bf16.msra.mxu0 %v12423_v62  ;;  %v12429_v62 = vld [vmem:[#allocation94_spill] sm:$0xff] }
0x1129   :  { %8779 = vmatprep.subr.bf16.mxu0 %v12194_v57 }
0x112b   :  { %8751 = vmatpush3.bf16.msra.mxu1 %v12424_v27  ;;  %v12430_v27 = vld [vmem:[#allocation86_spill] sm:$0xff] }
0x112c   :  { %8752 = vmatprep.subr.bf16.mxu1 %v12194_v57  ;;  %8781 = vmatpush3.bf16.msra.mxu0 %v12425_v52  ;;  %v12431_v52 = vld [vmem:[#allocation95_spill] sm:$0xff] }
0x112d   :  { %8782 = vmatprep.subr.bf16.mxu0 %v12194_v57 }
0x112f   :  { %8754 = vmatpush3.bf16.msra.mxu1 %v12426_v61  ;;  %v12432_v61 = vld [vmem:[#allocation30_spill] sm:$0xff] }
0x1130   :  { %8755 = vmatprep.subr.bf16.mxu1 %v12194_v57  ;;  %8784 = vmatpush3.bf16.msra.mxu0 %v12427_v46  ;;  %v12434_v46 = vld [vmem:[#allocation90_spill] sm:$0xff] }
0x1131   :  { %8785 = vmatprep.subr.bf16.mxu0 %v12194_v57 }
0x1133   :  { %8757 = vmatpush3.bf16.msra.mxu1 %v12428_v54  ;;  %v12435_v54 = vld [vmem:[#allocation106_spill] sm:$0xff] }
0x1134   :  { %8758 = vmatprep.subr.bf16.mxu1 %v12194_v57  ;;  %8787 = vmatpush3.bf16.msra.mxu0 %v12429_v62 }
0x1135   :  { %8788 = vmatprep.subr.bf16.mxu0 %v12194_v57 }
0x1137   :  { %8760 = vmatpush3.bf16.msra.mxu1 %v12430_v27 }
0x1138   :  { %8761 = vmatprep.subr.bf16.mxu1 %v12194_v57  ;;  %8790 = vmatpush3.bf16.msra.mxu0 %v12431_v52 }
0x1139   :  { %8824 = vmatprep.subr.bf16.mxu0 %v12432_v61  ;;  %v12439_v61 = vld [vmem:[#allocation100_spill] sm:$0xff] }
0x113b   :  { %8763 = vmatpush3.bf16.msra.mxu1 %v12433_v36 }
0x113c   :  { %8764 = vmatprep.subr.bf16.mxu1 %v12194_v57 }
0x113f   :  { %8766 = vmatpush3.bf16.msra.mxu1 %v12434_v46 }
0x1140   :  { %8792 = vmatprep.subr.bf16.mxu1 %v12435_v54 }
0x11cd   :  { %v11273_v10 = vpop.f32.mrb[38].mxu1  ;;  %v4011_v62 = vpop.f32.mrb[30].mxu0 }
0x11ce   :  { %12436 = vst [vmem:[#allocation43_spill] sm:$0xff] %v11273_v10  ;;  %v11275_v9 = vpop.f32.mrb[39].mxu1  ;;  %v4013_v27 = vpop.f32.mrb[31].mxu0  ;;  %v4160_v51 = vadd.f32 %v4011_v62, %v12438_v0  ;;  %v12441_v0 = vld [vmem:[#allocation99_spill] sm:$0xff] }
0x11cf   :  { %12437 = vst [vmem:[#allocation44_spill] sm:$0xff] %v11275_v9  ;;  %v4161_v36 = vadd.f32 %v4013_v27, %v12439_v61  ;;  %v12440_v9 = vld [vmem:[#allocation101_spill] sm:$0xff] }
0x11d0   :  { %v6566_v30 = vmul.f32 -1.442695, %v4160_v51 }
0x11d1   :  { %v6567_v12 = vmul.f32 -1.442695, %v4161_v36 }
0x11d2   :  { %9576 = vpow2.f32 %v6566_v30 }
0x11d3   :  { %9578 = vpow2.f32 %v6567_v12 }
0x11d5   :  { %v3941_v13 = vpop.f32.mrb[40].mxu1 }
0x11d6   :  { %v7437_v52 = vpop.f32.mrb[41].mxu1  ;;  %v4174_v30 = vadd.f32 %v11111_v56, %v3941_v13 }
0x11dc   :  { %v9577_v34 = vpop.eup %9576 }
0x11dd   :  { %v4168_v46 = vadd.f32 1.0, %v9577_v34  ;;  %v9579_v10 = vpop.eup %9578 }
0x11de   :  { %v4169_v25 = vadd.f32 1.0, %v9579_v10 }
0x11df   :  { %9580 = vrcp.f32 %v4168_v46 }
0x11e0   :  { %9582 = vrcp.f32 %v4169_v25 }
0x11e9   :  { %v9581_v62 = vpop.eup %9580 }
0x11ea   :  { %v9583_v46 = vpop.eup %9582 }
0x11eb   :  { %v4179_v61 = vsub.f32 1.0, %v9583_v46 }
0x11ed   :  { %v4153_v54 = vpop.f32.mrb[32].mxu0 }
0x11ee   :  { %v4155_v50 = vpop.f32.mrb[33].mxu0  ;;  %v4184_v12 = vadd.f32 %v4153_v54, %v10571_v35 }
0x11ef   :  { %v4197_v54 = vadd.f32 %v11124_v45, %v4155_v50 }
0x11f0   :  { %v6569_v27 = vmul.f32 -1.442695, %v4184_v12 }
0x11f5   :  { %v4082_v7 = vpop.f32.mrb[42].mxu1 }
0x11f6   :  { %v4175_v3 = vadd.f32 %v12440_v9, %v4082_v7  ;;  %v4084_v43 = vpop.f32.mrb[43].mxu1 }
0x11f7   :  { %v4183_v52 = vadd.f32 %v4084_v43, %v12441_v0  ;;  %v4181_v43 = vmul.f32 %v9583_v46, %v11190_v24 }
0x11f8   :  { %v4176_v51 = vmul.f32 %v9581_v62, %v4175_v3 }
0x11f9   :  { %v6568_v36 = vmul.f32 -1.442695, %v4183_v52 }
0x11fa   :  { %v4177_v34 = vadd.f32 %v4176_v51, %v4174_v30 }
0x11fb   :  { %9584 = vpow2.f32 %v6568_v36 }
0x11fc   :  { %9586 = vtanh.f32 %v4177_v34 }
0x11fd   :  { %9588 = vpow2.f32 %v6569_v27 }
0x1205   :  { %v9585_v10 = vpop.eup %9584 }
0x1206   :  { %v9587_v7 = vpop.eup %9586  ;;  %v4191_v9 = vadd.f32 1.0, %v9585_v10 }
0x1207   :  { %v4180_v63 = vmul.f32 %v9587_v7, %v4179_v61  ;;  %v9589_v3 = vpop.eup %9588 }
0x1208   :  { %9590 = vrcp.f32 %v4191_v9  ;;  %v4192_v13 = vadd.f32 1.0, %v9589_v3 }
0x1209   :  { %v11284_v25 = vadd.f32 %v4181_v43, %v4180_v63 }
0x120a   :  { %9592 = vrcp.f32 %v4192_v13 }
0x120b   :  { %7471 = vmatmul.mubr.f32.vlgmr.msra.gmra.mrb[44].mxu1 %v11284_v25 }
0x120c   :  { %8794 = vmatpush1.bf16.msra.mxu1 %v10623_v20  ;;  %4439 = vmatprep.mubr.f32.mxu1 %v12195_v4 }
0x120d   :  { %8796 = vmatprep.subr.bf16.mxu1 %v10632_v23 }
0x1210   :  { %8798 = vmatpush1.bf16.msra.mxu1 %v10638_v6 }
0x1211   :  { %8800 = vmatprep.subr.bf16.mxu1 %v10641_v15 }
0x1212   :  { %v9591_v61 = vpop.eup %9590 }
0x1213   :  { %v4198_v63 = vmul.f32 %v9591_v61, %v4197_v54  ;;  %v6573_v54 = vld [vmem:[%s12142_s13 + $0x28] sm:$0xff] }
0x1214   :  { %8802 = vmatpush1.bf16.msra.mxu1 %v10651_v26  ;;  %v9593_v62 = vpop.eup %9592  ;;  %v12442_v61 = vld [vmem:[#allocation51_spill] sm:$0xff] }
0x1215   :  { %v4199_v9 = vadd.f32 %v4198_v63, %v10581_v1  ;;  %8804 = vmatprep.subr.bf16.mxu1 %v10654_v18  ;;  %v4201_v50 = vsub.f32 1.0, %v9593_v62  ;;  %v4203_v51 = vmul.f32 %v9593_v62, %v11190_v24  ;;  %v12443_v63 = vld [vmem:[#allocation52_spill] sm:$0xff] }
0x1216   :  { %v12445_v62 = vld [vmem:[#allocation56_spill] sm:$0xff] }
0x1217   :  { %9594 = vtanh.f32 %v4199_v9  ;;  %v12444_v9 = vld [vmem:[#allocation53_spill] sm:$0xff] }
0x1218   :  { %8806 = vmatpush1.bf16.msra.mxu1 %v10663_v48 }
0x1219   :  { %8808 = vmatprep.subr.bf16.mxu1 %v10666_v2 }
0x121c   :  { %8810 = vmatpush1.bf16.msra.mxu1 %v10675_v49 }
0x121d   :  { %8812 = vmatprep.subr.bf16.mxu1 %v10678_v14 }
0x1220   :  { %8814 = vmatpush1.bf16.msra.mxu1 %v10687_v58 }
0x1221   :  { %v9595_v52 = vpop.eup %9594  ;;  %8816 = vmatprep.subr.bf16.mxu1 %v10690_v33 }
0x1222   :  { %v4202_v30 = vmul.f32 %v9595_v52, %v4201_v50  ;;  %v12446_v50 = vld [vmem:[#allocation57_spill] sm:$0xff]  ;;  %v12447_v52 = vld [vmem:[#allocation60_spill] sm:$0xff] }
0x1224   :  { %v4204_v36 = vadd.f32 %v4203_v51, %v4202_v30  ;;  %8818 = vmatpush1.bf16.msra.mxu1 %v10697_v40  ;;  %v12448_v30 = vld [vmem:[#allocation61_spill] sm:$0xff]  ;;  %v12449_v51 = vld [vmem:[#allocation64_spill] sm:$0xff] }
0x1225   :  { %8820 = vmatprep.subr.bf16.mxu1 %v10710_v47 }
0x1226   :  { %7506 = vmatmul.mubr.f32.vlgmr.msra.gmra.mrb[34].mxu0 %v4204_v36 }
0x1227   :  { %8826 = vmatpush1.bf16.msra.mxu0 %v10296_v19  ;;  %4535 = vmatprep.mubr.f32.mxu0 %v12195_v4 }
0x1228   :  { %8828 = vmatprep.subr.bf16.mxu0 %v10298_v21  ;;  %8822 = vmatpush1.bf16.msra.mxu1 %v10714_v32 }
0x1229   :  { %8831 = vmatprep.subr.bf16.mxu1 %v12194_v57 }
0x122b   :  { %8830 = vmatpush1.bf16.msra.mxu0 %v10303_v28 }
0x122c   :  { %8838 = vmatprep.subr.bf16.mxu0 %v10307_v29 }
0x122e   :  { %6574 = vmatmul.mubr.msk.f32.vlgmr.msra.gmra.mrb[36].mxu0 %vm216_vm1, %v6573_v54 }
0x122f   :  { %8840 = vmatpush1.bf16.msra.mxu0 %v12329_v11  ;;  %4676 = vmatprep.mubr.f32.mxu0 %v12195_v4 }
0x1230   :  { %8842 = vmatprep.subr.bf16.mxu0 %v12330_v41 }
0x1233   :  { %8844 = vmatpush1.bf16.msra.mxu0 %v12331_v53 }
0x1234   :  { %8846 = vmatprep.subr.bf16.mxu0 %v12332_v31 }
0x1237   :  { %8848 = vmatpush1.bf16.msra.mxu0 %v12333_v38 }
0x1238   :  { %8850 = vmatprep.subr.bf16.mxu0 %v12334_v22 }
0x123b   :  { %8852 = vmatpush1.bf16.msra.mxu0 %v12335_v16 }
0x123c   :  { %8854 = vmatprep.subr.bf16.mxu0 %v12336_v5 }
0x123f   :  { %8856 = vmatpush1.bf16.msra.mxu0 %v12442_v61 }
0x1240   :  { %8858 = vmatprep.subr.bf16.mxu0 %v12443_v63 }
0x1243   :  { %8860 = vmatpush1.bf16.msra.mxu0 %v12444_v9 }
0x1244   :  { %8862 = vmatprep.subr.bf16.mxu0 %v12445_v62 }
0x1247   :  { %8864 = vmatpush1.bf16.msra.mxu0 %v12446_v50 }
0x1248   :  { %8866 = vmatprep.subr.bf16.mxu0 %v12447_v52 }
0x124b   :  { %8868 = vmatpush1.bf16.msra.mxu0 %v12448_v30 }
0x124c   :  { %8902 = vmatprep.subr.bf16.mxu0 %v12449_v51 }
0x12de   :  { %v4271_v24 = vpop.f32.mrb[44].mxu1 }
0x12df   :  { %v4272_v12 = vadd.f32 %v11151_v59, %v4271_v24  ;;  %v7472_v34 = vpop.f32.mrb[45].mxu1 }
0x12e1   :  { %9596 = vtanh.f32 %v4272_v12 }
0x12eb   :  { %v9597_v27 = vpop.eup %9596 }
0x12ec   :  { %v4347_v46 = vmul.f32 %v11155_v17, %v9597_v27 }
0x12ee   :  { %4348 = vadd.xlane.f32.xlu1 %v4347_v46 }
0x12f9   :  { %v4342_v10 = vpop.f32.mrb[34].mxu0 }
0x12fa   :  { %v4343_v7 = vadd.f32 %v11159_v55, %v4342_v10  ;;  %v7507_v43 = vpop.f32.mrb[35].mxu0 }
0x12fc   :  { %9598 = vtanh.f32 %v4343_v7 }
0x1306   :  { %v9599_v3 = vpop.eup %9598 }
0x1307   :  { %v4350_v13 = vmul.f32 %v11163_v8, %v9599_v3 }
0x1309   :  { %4351 = vadd.xlane.f32.xlu0 %v4350_v13 }
0x137b   :  { %v4349_v24 = vpop.xlane.xlu1 %4348 }
0x1396   :  { %v4352_v12 = vpop.xlane.xlu0 %4351 }
0x1397   :  { %v4353_v34 = vadd.f32 %v4352_v12, %v4349_v24  ;;  %v12455_v24 = vld [vmem:[#allocation35_spill] sm:$0xff]  ;;  %v12456_v12 = vld [vmem:[#allocation70_spill] sm:$0xff] }
0x1399   :  { %v4354_v27 = vadd.f32 %v11185_v60, %v4353_v34  ;;  %v12457_v34 = vld [vmem:[#allocation36_spill] sm:$0xff] }
0x139b   :  { %v6570_v46 = vmul.f32 -1.442695, %v4354_v27  ;;  %v12458_v27 = vld [vmem:[#allocation71_spill] sm:$0xff] }
0x139d   :  { %9600 = vpow2.f32 %v6570_v46  ;;  %v12459_v46 = vld [vmem:[#allocation37_spill] sm:$0xff] }
0x13a7   :  { %v9601_v10 = vpop.eup %9600 }
0x13a8   :  { %v4358_v7 = vadd.f32 1.0, %v9601_v10  ;;  %v12460_v10 = vld [vmem:[#allocation72_spill] sm:$0xff] }
0x13aa   :  { %9602 = vrcp.f32 %v4358_v7  ;;  %v12461_v7 = vld [vmem:[#allocation38_spill] sm:$0xff] }
0x13b4   :  { %v9603_v43 = vpop.eup %9602 }
0x13b5   :  { %4370 = vperm.xlu0 %9460, %v9603_v43   ;;  %v4361_v3 = vsub.f32 1.0, %v9603_v43  ;;  %v12463_v43 = vld [vmem:[#allocation39_spill] sm:$0xff] }
0x13b7   :  { %4364 = vperm.xlu1 %9461, %v4361_v3   ;;  %v12464_v3 = vld [vmem:[#allocation74_spill] sm:$0xff] }
0x1434   :  { %v4371_v13 = vpop.permute.xlu0 %4370 }
0x1435   :  { %v4373_v50 = vmul.f32 %v4371_v13, %v4204_v36  ;;  %v12451_v36 = vld [vmem:[#allocation33_spill] sm:$0xff]  ;;  %v12465_v13 = vld [vmem:[#allocation40_spill] sm:$0xff] }
0x1436   :  { %v4365_v52 = vpop.permute.xlu1 %4364 }
0x1437   :  { %v4367_v30 = vmul.f32 %v4365_v52, %v11284_v25  ;;  %v12450_v25 = vld [vmem:[#allocation67_spill] sm:$0xff]  ;;  %v12453_v52 = vld [vmem:[#allocation34_spill] sm:$0xff] }
0x1439   :  { %v11337_v51 = vadd.f32 %v4373_v50, %v4367_v30  ;;  %v12452_v50 = vld [vmem:[#allocation68_spill] sm:$0xff]  ;;  %v12454_v30 = vld [vmem:[#allocation69_spill] sm:$0xff] }
0x143b   :  { %4440 = vmatmul.mubr.f32.vlgmr.msra.gmra.mrb[46].mxu1 %v11337_v51  ;;  %4677 = vmatmul.mubr.f32.vlgmr.msra.gmra.mrb[36].mxu0 %v11337_v51 }
0x143c   :  { %8833 = vmatpush3.bf16.msra.mxu1 %v10246_v37  ;;  %8904 = vmatpush1.bf16.msra.mxu0 %v10390_v39 }
0x143d   :  { %8834 = vmatprep.subr.bf16.mxu1 %v12194_v57  ;;  %8906 = vmatprep.subr.bf16.mxu0 %v10392_v44 }
0x143e   :  { %7516 = vmatprep.mubr.msk.f32.mxu1 %vm9913_vm0, %v12195_v4  ;;  %4818 = vmatprep.mubr.f32.mxu0 %v12195_v4 }
0x1440   :  { %8836 = vmatpush3.bf16.msra.mxu1 %v10252_v42  ;;  %8908 = vmatpush1.bf16.msra.mxu0 %v12450_v25 }
0x1441   :  { %8870 = vmatprep.subr.bf16.mxu1 %v12451_v36  ;;  %8910 = vmatprep.subr.bf16.mxu0 %v12452_v50 }
0x1443   :  { %7517 = vmatmul.mubr.msk.f32.vlgmr.msra.gmra.mrb[48].mxu1 %vm216_vm1, %v6573_v54  ;;  %v12462_v54 = vld [vmem:[#allocation73_spill] sm:$0xff] }
0x1444   :  { %8872 = vmatpush1.bf16.msra.mxu1 %v12453_v52  ;;  %8912 = vmatpush1.bf16.msra.mxu0 %v12454_v30 }
0x1445   :  { %8874 = vmatprep.subr.bf16.mxu1 %v12455_v24  ;;  %8914 = vmatprep.subr.bf16.mxu0 %v12456_v12  ;;  %v12466_v12 = vld [vmem:[#allocation75_spill] sm:$0xff]  ;;  %v12467_v24 = vld [vmem:[#allocation41_spill] sm:$0xff] }
0x1446   :  { %4747 = vmatprep.mubr.f32.mxu1 %v12195_v4 }
0x1448   :  { %8876 = vmatpush1.bf16.msra.mxu1 %v12457_v34  ;;  %8916 = vmatpush1.bf16.msra.mxu0 %v12458_v27  ;;  %v12468_v34 = vld [vmem:[#allocation76_spill] sm:$0xff]  ;;  %v12469_v27 = vld [vmem:[#allocation42_spill] sm:$0xff] }
0x1449   :  { %8878 = vmatprep.subr.bf16.mxu1 %v12459_v46  ;;  %8918 = vmatprep.subr.bf16.mxu0 %v12460_v10  ;;  %v12470_v46 = vld [vmem:[#allocation77_spill] sm:$0xff]  ;;  %v12471_v10 = vld [vmem:[#allocation54_spill] sm:$0xff] }
0x144c   :  { %8880 = vmatpush1.bf16.msra.mxu1 %v12461_v7  ;;  %8920 = vmatpush1.bf16.msra.mxu0 %v12462_v54  ;;  %v12472_v7 = vld [vmem:[#allocation78_spill] sm:$0xff]  ;;  %v12473_v54 = vld [vmem:[#allocation55_spill] sm:$0xff] }
0x144d   :  { %8882 = vmatprep.subr.bf16.mxu1 %v12463_v43  ;;  %8922 = vmatprep.subr.bf16.mxu0 %v12464_v3  ;;  %v12474_v43 = vld [vmem:[#allocation79_spill] sm:$0xff]  ;;  %v12475_v3 = vld [vmem:[#allocation58_spill] sm:$0xff] }
0x1450   :  { %8884 = vmatpush1.bf16.msra.mxu1 %v12465_v13  ;;  %8924 = vmatpush1.bf16.msra.mxu0 %v12466_v12  ;;  %v12499_v12 = vld [vmem:[#allocation97_spill] sm:$0xff] }
0x1451   :  { %8886 = vmatprep.subr.bf16.mxu1 %v12467_v24  ;;  %8926 = vmatprep.subr.bf16.mxu0 %v12468_v34  ;;  %v12476_v24 = vld [vmem:[#allocation59_spill] sm:$0xff]  ;;  %v12477_v34 = vld [vmem:[#allocation85_spill] sm:$0xff] }
0x1454   :  { %8888 = vmatpush1.bf16.msra.mxu1 %v12469_v27  ;;  %8928 = vmatpush1.bf16.msra.mxu0 %v12470_v46  ;;  %v12478_v27 = vld [vmem:[#allocation62_spill] sm:$0xff] }
0x1455   :  { %8890 = vmatprep.subr.bf16.mxu1 %v12471_v10  ;;  %8930 = vmatprep.subr.bf16.mxu0 %v12472_v7  ;;  %v12494_v7 = vld [vmem:[#allocation88_spill] sm:$0xff] }
0x1458   :  { %8892 = vmatpush1.bf16.msra.mxu1 %v12473_v54  ;;  %8932 = vmatpush1.bf16.msra.mxu0 %v12474_v43  ;;  %v12479_v54 = vld [vmem:[#allocation63_spill] sm:$0xff] }
0x1459   :  { %8894 = vmatprep.subr.bf16.mxu1 %v12475_v3  ;;  %8957 = vmatprep.subr.bf16.mxu0 %v12194_v57  ;;  %v12480_v43 = vld [vmem:[#allocation87_spill] sm:$0xff] }
0x145a   :  { %v12487_v3 = vld [vmem:[#allocation83_spill] sm:$0xff] }
0x145b   :  { %4819 = vmatmul.mubr.f32.vlgmr.msra.gmra.mrb[38].mxu0 %v11337_v51 }
0x145c   :  { %8896 = vmatpush1.bf16.msra.mxu1 %v12476_v24  ;;  %8959 = vmatpush3.bf16.msra.mxu0 %v12477_v34  ;;  %v12481_v24 = vld [vmem:[#allocation80_spill] sm:$0xff]  ;;  %v12485_v34 = vld [vmem:[#allocation82_spill] sm:$0xff] }
0x145d   :  { %8898 = vmatprep.subr.bf16.mxu1 %v12478_v27  ;;  %8960 = vmatprep.subr.bf16.mxu0 %v12194_v57  ;;  %v12482_v27 = vld [vmem:[#allocation89_spill] sm:$0xff] }
0x145e   :  { %7586 = vmatprep.mubr.msk.f32.mxu0 %vm9913_vm0, %v12195_v4 }
0x1460   :  { %8900 = vmatpush1.bf16.msra.mxu1 %v12479_v54  ;;  %8962 = vmatpush3.bf16.msra.mxu0 %v12480_v43  ;;  %v12483_v54 = vld [vmem:[#allocation81_spill] sm:$0xff]  ;;  %v12484_v43 = vld [vmem:[#allocation91_spill] sm:$0xff] }
0x1461   :  { %8933 = vmatprep.subr.bf16.mxu1 %v12194_v57  ;;  %8963 = vmatprep.subr.bf16.mxu0 %v12194_v57 }
0x1463   :  { %4748 = vmatmul.mubr.f32.vlgmr.msra.gmra.mrb[50].mxu1 %v11337_v51 }
0x1464   :  { %8935 = vmatpush3.bf16.msra.mxu1 %v12481_v24  ;;  %7551 = vmatprep.mubr.msk.f32.mxu1 %vm9913_vm0, %v12195_v4  ;;  %v12486_v24 = vld [vmem:[#allocation92_spill] sm:$0xff] }
0x1465   :  { %8936 = vmatprep.subr.bf16.mxu1 %v12194_v57  ;;  %8965 = vmatpush3.bf16.msra.mxu0 %v12482_v27  ;;  %v12488_v27 = vld [vmem:[#allocation93_spill] sm:$0xff] }
0x1466   :  { %8966 = vmatprep.subr.bf16.mxu0 %v12194_v57 }
0x1468   :  { %8938 = vmatpush3.bf16.msra.mxu1 %v12483_v54  ;;  %v12489_v54 = vld [vmem:[#allocation84_spill] sm:$0xff] }
0x1469   :  { %8939 = vmatprep.subr.bf16.mxu1 %v12194_v57  ;;  %8968 = vmatpush3.bf16.msra.mxu0 %v12484_v43  ;;  %v12490_v43 = vld [vmem:[#allocation94_spill] sm:$0xff] }
0x146a   :  { %8969 = vmatprep.subr.bf16.mxu0 %v12194_v57 }
0x146c   :  { %8941 = vmatpush3.bf16.msra.mxu1 %v12485_v34  ;;  %v12491_v34 = vld [vmem:[#allocation86_spill] sm:$0xff] }
0x146d   :  { %8942 = vmatprep.subr.bf16.mxu1 %v12194_v57  ;;  %8971 = vmatpush3.bf16.msra.mxu0 %v12486_v24  ;;  %v12492_v24 = vld [vmem:[#allocation95_spill] sm:$0xff] }
0x146e   :  { %8972 = vmatprep.subr.bf16.mxu0 %v12194_v57 }
0x1470   :  { %8944 = vmatpush3.bf16.msra.mxu1 %v12487_v3  ;;  %v12493_v3 = vld [vmem:[#allocation30_spill] sm:$0xff] }
0x1471   :  { %8945 = vmatprep.subr.bf16.mxu1 %v12194_v57  ;;  %8974 = vmatpush3.bf16.msra.mxu0 %v12488_v27  ;;  %v12495_v27 = vld [vmem:[#allocation90_spill] sm:$0xff] }
0x1472   :  { %8975 = vmatprep.subr.bf16.mxu0 %v12194_v57 }
0x1474   :  { %8947 = vmatpush3.bf16.msra.mxu1 %v12489_v54  ;;  %v12496_v54 = vld [vmem:[#allocation106_spill] sm:$0xff] }
0x1475   :  { %8948 = vmatprep.subr.bf16.mxu1 %v12194_v57  ;;  %8977 = vmatpush3.bf16.msra.mxu0 %v12490_v43 }
0x1476   :  { %8978 = vmatprep.subr.bf16.mxu0 %v12194_v57 }
0x1478   :  { %8950 = vmatpush3.bf16.msra.mxu1 %v12491_v34 }
0x1479   :  { %8951 = vmatprep.subr.bf16.mxu1 %v12194_v57  ;;  %8980 = vmatpush3.bf16.msra.mxu0 %v12492_v24 }
0x147a   :  { %9014 = vmatprep.subr.bf16.mxu0 %v12493_v3  ;;  %v12500_v3 = vld [vmem:[#allocation100_spill] sm:$0xff] }
0x147c   :  { %8953 = vmatpush3.bf16.msra.mxu1 %v12494_v7 }
0x147d   :  { %8954 = vmatprep.subr.bf16.mxu1 %v12194_v57 }
0x1480   :  { %8956 = vmatpush3.bf16.msra.mxu1 %v12495_v27 }
0x1481   :  { %8982 = vmatprep.subr.bf16.mxu1 %v12496_v54 }
0x150e   :  { %v11420_v10 = vpop.f32.mrb[46].mxu1  ;;  %v4678_v43 = vpop.f32.mrb[36].mxu0 }
0x150f   :  { %12497 = vst [vmem:[#allocation45_spill] sm:$0xff] %v11420_v10  ;;  %v11422_v46 = vpop.f32.mrb[47].mxu1  ;;  %v4680_v34 = vpop.f32.mrb[37].mxu0  ;;  %v4827_v13 = vadd.f32 %v4678_v43, %v12499_v12 }
0x1510   :  { %12498 = vst [vmem:[#allocation46_spill] sm:$0xff] %v11422_v46  ;;  %v4828_v7 = vadd.f32 %v4680_v34, %v12500_v3  ;;  %v12501_v46 = vld [vmem:[#allocation101_spill] sm:$0xff] }
0x1511   :  { %v6576_v52 = vmul.f32 -1.442695, %v4827_v13 }
0x1512   :  { %v6577_v50 = vmul.f32 -1.442695, %v4828_v7 }
0x1513   :  { %9604 = vpow2.f32 %v6576_v52 }
0x1514   :  { %9606 = vpow2.f32 %v6577_v50 }
0x1516   :  { %v4608_v30 = vpop.f32.mrb[48].mxu1 }
0x1517   :  { %v7518_v24 = vpop.f32.mrb[49].mxu1  ;;  %v4841_v52 = vadd.f32 %v11111_v56, %v4608_v30 }
0x151d   :  { %v9605_v36 = vpop.eup %9604 }
0x151e   :  { %v4835_v27 = vadd.f32 1.0, %v9605_v36  ;;  %v9607_v10 = vpop.eup %9606 }
0x151f   :  { %v4836_v42 = vadd.f32 1.0, %v9607_v10 }
0x1520   :  { %9608 = vrcp.f32 %v4835_v27 }
0x1521   :  { %9610 = vrcp.f32 %v4836_v42 }
0x152a   :  { %v9609_v43 = vpop.eup %9608 }
0x152b   :  { %v9611_v13 = vpop.eup %9610 }
0x152c   :  { %v4846_v3 = vsub.f32 1.0, %v9611_v13 }
0x152e   :  { %v4820_v54 = vpop.f32.mrb[38].mxu0 }
0x152f   :  { %v4822_v25 = vpop.f32.mrb[39].mxu0  ;;  %v4851_v50 = vadd.f32 %v4820_v54, %v10571_v35 }
0x1530   :  { %v4864_v30 = vadd.f32 %v11124_v45, %v4822_v25 }
0x1531   :  { %v6579_v27 = vmul.f32 -1.442695, %v4851_v50 }
0x1536   :  { %v4749_v44 = vpop.f32.mrb[50].mxu1 }
0x1537   :  { %v4842_v39 = vadd.f32 %v12501_v46, %v4749_v44  ;;  %v4751_v37 = vpop.f32.mrb[51].mxu1 }
0x1538   :  { %v4850_v24 = vadd.f32 %v4751_v37, %v12441_v0  ;;  %v4848_v37 = vmul.f32 %v9611_v13, %v11337_v51 }
0x1539   :  { %v4843_v34 = vmul.f32 %v9609_v43, %v4842_v39 }
0x153a   :  { %v6578_v7 = vmul.f32 -1.442695, %v4850_v24 }
0x153b   :  { %v4844_v36 = vadd.f32 %v4843_v34, %v4841_v52 }
0x153c   :  { %9612 = vpow2.f32 %v6578_v7 }
0x153d   :  { %9614 = vtanh.f32 %v4844_v36 }
0x153e   :  { %9616 = vpow2.f32 %v6579_v27 }
0x1546   :  { %v9613_v10 = vpop.eup %9612 }
0x1547   :  { %v9615_v44 = vpop.eup %9614  ;;  %v4858_v46 = vadd.f32 1.0, %v9613_v10 }
0x1548   :  { %v4847_v12 = vmul.f32 %v9615_v44, %v4846_v3  ;;  %v9617_v39 = vpop.eup %9616 }
0x1549   :  { %9618 = vrcp.f32 %v4858_v46  ;;  %v4859_v56 = vadd.f32 1.0, %v9617_v39  ;;  %v6583_v39 = vld [vmem:[%s12142_s13 + $0x30] sm:$0xff] }
0x154a   :  { %v11431_v42 = vadd.f32 %v4848_v37, %v4847_v12 }
0x154b   :  { %9620 = vrcp.f32 %v4859_v56 }
0x154c   :  { %7552 = vmatmul.mubr.f32.vlgmr.msra.gmra.mrb[52].mxu1 %v11431_v42 }
0x154d   :  { %8984 = vmatpush1.bf16.msra.mxu1 %v10623_v20  ;;  %5106 = vmatprep.mubr.f32.mxu1 %v12195_v4 }
0x154e   :  { %8986 = vmatprep.subr.bf16.mxu1 %v10632_v23 }
0x1551   :  { %8988 = vmatpush1.bf16.msra.mxu1 %v10638_v6 }
0x1552   :  { %8990 = vmatprep.subr.bf16.mxu1 %v10641_v15 }
0x1553   :  { %v9619_v54 = vpop.eup %9618 }
0x1554   :  { %v4865_v12 = vmul.f32 %v9619_v54, %v4864_v30 }
0x1555   :  { %8992 = vmatpush1.bf16.msra.mxu1 %v10651_v26  ;;  %v9621_v43 = vpop.eup %9620 }
0x1556   :  { %v4866_v3 = vadd.f32 %v4865_v12, %v10581_v1  ;;  %8994 = vmatprep.subr.bf16.mxu1 %v10654_v18  ;;  %v4868_v45 = vsub.f32 1.0, %v9621_v43  ;;  %v4870_v52 = vmul.f32 %v9621_v43, %v11337_v51 }
0x1558   :  { %9622 = vtanh.f32 %v4866_v3 }
0x1559   :  { %8996 = vmatpush1.bf16.msra.mxu1 %v10663_v48 }
0x155a   :  { %8998 = vmatprep.subr.bf16.mxu1 %v10666_v2 }
0x155d   :  { %9000 = vmatpush1.bf16.msra.mxu1 %v10675_v49 }
0x155e   :  { %9002 = vmatprep.subr.bf16.mxu1 %v10678_v14 }
0x1561   :  { %9004 = vmatpush1.bf16.msra.mxu1 %v10687_v58 }
0x1562   :  { %v9623_v25 = vpop.eup %9622  ;;  %9006 = vmatprep.subr.bf16.mxu1 %v10690_v33 }
0x1563   :  { %v4869_v24 = vmul.f32 %v9623_v25, %v4868_v45 }
0x1565   :  { %v4871_v34 = vadd.f32 %v4870_v52, %v4869_v24  ;;  %9008 = vmatpush1.bf16.msra.mxu1 %v10697_v40 }
0x1566   :  { %9010 = vmatprep.subr.bf16.mxu1 %v10710_v47 }
0x1567   :  { %7587 = vmatmul.mubr.f32.vlgmr.msra.gmra.mrb[40].mxu0 %v4871_v34 }
0x1568   :  { %9016 = vmatpush1.bf16.msra.mxu0 %v10296_v19  ;;  %5202 = vmatprep.mubr.f32.mxu0 %v12195_v4 }
0x1569   :  { %9018 = vmatprep.subr.bf16.mxu0 %v10298_v21  ;;  %9012 = vmatpush1.bf16.msra.mxu1 %v10714_v32 }
0x156a   :  { %9021 = vmatprep.subr.bf16.mxu1 %v12194_v57 }
0x156c   :  { %9020 = vmatpush1.bf16.msra.mxu0 %v10303_v28 }
0x156d   :  { %9028 = vmatprep.subr.bf16.mxu0 %v10307_v29 }
0x156f   :  { %6584 = vmatmul.mubr.msk.f32.vlgmr.msra.gmra.mrb[42].mxu0 %vm216_vm1, %v6583_v39 }
0x1570   :  { %9030 = vmatpush1.bf16.msra.mxu0 %v12329_v11  ;;  %5343 = vmatprep.mubr.f32.mxu0 %v12195_v4 }
0x1571   :  { %9032 = vmatprep.subr.bf16.mxu0 %v12330_v41 }
0x1574   :  { %9034 = vmatpush1.bf16.msra.mxu0 %v12331_v53 }
0x1575   :  { %9036 = vmatprep.subr.bf16.mxu0 %v12332_v31 }
0x1578   :  { %9038 = vmatpush1.bf16.msra.mxu0 %v12333_v38 }
0x1579   :  { %9040 = vmatprep.subr.bf16.mxu0 %v12334_v22 }
0x157c   :  { %9042 = vmatpush1.bf16.msra.mxu0 %v12335_v16 }
0x157d   :  { %9044 = vmatprep.subr.bf16.mxu0 %v12336_v5 }
0x1580   :  { %9046 = vmatpush1.bf16.msra.mxu0 %v12442_v61 }
0x1581   :  { %9048 = vmatprep.subr.bf16.mxu0 %v12443_v63 }
0x1584   :  { %9050 = vmatpush1.bf16.msra.mxu0 %v12444_v9 }
0x1585   :  { %9052 = vmatprep.subr.bf16.mxu0 %v12445_v62 }
0x161f   :  { %v4938_v51 = vpop.f32.mrb[52].mxu1 }
0x1620   :  { %v4939_v7 = vadd.f32 %v11151_v59, %v4938_v51  ;;  %v7553_v50 = vpop.f32.mrb[53].mxu1  ;;  %v12502_v59 = vld [vmem:[#allocation57_spill] sm:$0xff] }
0x1621   :  { %9054 = vmatpush1.bf16.msra.mxu0 %v12502_v59 }
0x1622   :  { %9624 = vtanh.f32 %v4939_v7 }
0x162c   :  { %v9625_v36 = vpop.eup %9624 }
0x162d   :  { %v5014_v27 = vmul.f32 %v11155_v17, %v9625_v36  ;;  %v12503_v17 = vld [vmem:[#allocation60_spill] sm:$0xff] }
0x162e   :  { %9056 = vmatprep.subr.bf16.mxu0 %v12503_v17 }
0x162f   :  { %5015 = vadd.xlane.f32.xlu1 %v5014_v27  ;;  %v12507_v27 = vld [vmem:[#allocation65_spill] sm:$0xff] }
0x163a   :  { %v5009_v13 = vpop.f32.mrb[40].mxu0 }
0x163b   :  { %v5010_v10 = vadd.f32 %v11159_v55, %v5009_v13  ;;  %v7588_v44 = vpop.f32.mrb[41].mxu0  ;;  %v12504_v55 = vld [vmem:[#allocation61_spill] sm:$0xff]  ;;  %v12508_v13 = vld [vmem:[#allocation66_spill] sm:$0xff] }
0x163c   :  { %9058 = vmatpush1.bf16.msra.mxu0 %v12504_v55  ;;  %v12512_v44 = vld [vmem:[#allocation68_spill] sm:$0xff] }
0x163d   :  { %9626 = vtanh.f32 %v5010_v10  ;;  %v12511_v10 = vld [vmem:[#allocation33_spill] sm:$0xff] }
0x1647   :  { %v9627_v46 = vpop.eup %9626 }
0x1648   :  { %v5017_v37 = vmul.f32 %v11163_v8, %v9627_v46  ;;  %v12505_v8 = vld [vmem:[#allocation64_spill] sm:$0xff]  ;;  %v12513_v46 = vld [vmem:[#allocation34_spill] sm:$0xff] }
0x1649   :  { %9092 = vmatprep.subr.bf16.mxu0 %v12505_v8 }
0x164a   :  { %5018 = vadd.xlane.f32.xlu0 %v5017_v37  ;;  %v12514_v37 = vld [vmem:[#allocation69_spill] sm:$0xff] }
0x16bc   :  { %v5016_v56 = vpop.xlane.xlu1 %5015 }
0x16d7   :  { %v5019_v30 = vpop.xlane.xlu0 %5018 }
0x16d8   :  { %v5020_v54 = vadd.f32 %v5019_v30, %v5016_v56  ;;  %v12515_v56 = vld [vmem:[#allocation35_spill] sm:$0xff]  ;;  %v12516_v30 = vld [vmem:[#allocation70_spill] sm:$0xff] }
0x16da   :  { %v5021_v12 = vadd.f32 %v11185_v60, %v5020_v54  ;;  %v12506_v60 = vld [vmem:[#allocation31_spill] sm:$0xff]  ;;  %v12517_v54 = vld [vmem:[#allocation36_spill] sm:$0xff] }
0x16dc   :  { %v6580_v3 = vmul.f32 -1.442695, %v5021_v12  ;;  %v12518_v12 = vld [vmem:[#allocation71_spill] sm:$0xff] }
0x16de   :  { %9628 = vpow2.f32 %v6580_v3  ;;  %v12519_v3 = vld [vmem:[#allocation37_spill] sm:$0xff] }
0x16e8   :  { %v9629_v43 = vpop.eup %9628 }
0x16e9   :  { %v5025_v45 = vadd.f32 1.0, %v9629_v43  ;;  %v12520_v43 = vld [vmem:[#allocation72_spill] sm:$0xff] }
0x16eb   :  { %9630 = vrcp.f32 %v5025_v45  ;;  %v12521_v45 = vld [vmem:[#allocation38_spill] sm:$0xff] }
0x16f5   :  { %v9631_v25 = vpop.eup %9630 }
0x16f6   :  { %5037 = vperm.xlu0 %9460, %v9631_v25   ;;  %v5028_v24 = vsub.f32 1.0, %v9631_v25  ;;  %v12523_v25 = vld [vmem:[#allocation39_spill] sm:$0xff] }
0x16f8   :  { %5031 = vperm.xlu1 %9461, %v5028_v24   ;;  %v12524_v24 = vld [vmem:[#allocation74_spill] sm:$0xff] }
0x1775   :  { %v5038_v52 = vpop.permute.xlu0 %5037 }
0x1776   :  { %v5040_v7 = vmul.f32 %v5038_v52, %v4871_v34  ;;  %v12510_v34 = vld [vmem:[#allocation67_spill] sm:$0xff]  ;;  %v12525_v52 = vld [vmem:[#allocation40_spill] sm:$0xff] }
0x1777   :  { %v5032_v51 = vpop.permute.xlu1 %5031 }
0x1778   :  { %v5034_v50 = vmul.f32 %v5032_v51, %v11431_v42  ;;  %v12509_v42 = vld [vmem:[#allocation32_spill] sm:$0xff]  ;;  %v12526_v51 = vld [vmem:[#allocation75_spill] sm:$0xff] }
0x177a   :  { %v11484_v36 = vadd.f32 %v5040_v7, %v5034_v50  ;;  %v12527_v7 = vld [vmem:[#allocation41_spill] sm:$0xff]  ;;  %v12528_v50 = vld [vmem:[#allocation76_spill] sm:$0xff] }
0x177c   :  { %5107 = vmatmul.mubr.f32.vlgmr.msra.gmra.mrb[54].mxu1 %v11484_v36  ;;  %5344 = vmatmul.mubr.f32.vlgmr.msra.gmra.mrb[42].mxu0 %v11484_v36 }
0x177d   :  { %9023 = vmatpush3.bf16.msra.mxu1 %v12506_v60  ;;  %9094 = vmatpush1.bf16.msra.mxu0 %v12507_v27 }
0x177e   :  { %9024 = vmatprep.subr.bf16.mxu1 %v12194_v57  ;;  %9096 = vmatprep.subr.bf16.mxu0 %v12508_v13 }
0x177f   :  { %7597 = vmatprep.mubr.msk.f32.mxu1 %vm9913_vm0, %v12195_v4  ;;  %5485 = vmatprep.mubr.f32.mxu0 %v12195_v4 }
0x1781   :  { %9026 = vmatpush3.bf16.msra.mxu1 %v12509_v42  ;;  %9098 = vmatpush1.bf16.msra.mxu0 %v12510_v34 }
0x1782   :  { %9060 = vmatprep.subr.bf16.mxu1 %v12511_v10  ;;  %9100 = vmatprep.subr.bf16.mxu0 %v12512_v44  ;;  %v11574_v10 = vld [vmem:[%s12220_s12] ss:$0 sm:$0xff] }
0x1783   :  { %12561 = vst [vmem:[#allocation49_spill] sm:$0xff] %v11574_v10 }
0x1784   :  { %7598 = vmatmul.mubr.msk.f32.vlgmr.msra.gmra.mrb[56].mxu1 %vm216_vm1, %v6583_v39  ;;  %v12522_v39 = vld [vmem:[#allocation73_spill] sm:$0xff] }
0x1785   :  { %9062 = vmatpush1.bf16.msra.mxu1 %v12513_v46  ;;  %9102 = vmatpush1.bf16.msra.mxu0 %v12514_v37 }
0x1786   :  { %9064 = vmatprep.subr.bf16.mxu1 %v12515_v56  ;;  %9104 = vmatprep.subr.bf16.mxu0 %v12516_v30 }
0x1787   :  { %5414 = vmatprep.mubr.f32.mxu1 %v12195_v4 }
0x1789   :  { %9066 = vmatpush1.bf16.msra.mxu1 %v12517_v54  ;;  %9106 = vmatpush1.bf16.msra.mxu0 %v12518_v12  ;;  %v12529_v12 = vld [vmem:[#allocation42_spill] sm:$0xff] }
0x178a   :  { %9068 = vmatprep.subr.bf16.mxu1 %v12519_v3  ;;  %9108 = vmatprep.subr.bf16.mxu0 %v12520_v43  ;;  %v12530_v3 = vld [vmem:[#allocation77_spill] sm:$0xff]  ;;  %v12531_v43 = vld [vmem:[#allocation54_spill] sm:$0xff] }
0x178d   :  { %9070 = vmatpush1.bf16.msra.mxu1 %v12521_v45  ;;  %9110 = vmatpush1.bf16.msra.mxu0 %v12522_v39  ;;  %v12532_v45 = vld [vmem:[#allocation78_spill] sm:$0xff]  ;;  %v12533_v39 = vld [vmem:[#allocation55_spill] sm:$0xff] }
0x178e   :  { %9072 = vmatprep.subr.bf16.mxu1 %v12523_v25  ;;  %9112 = vmatprep.subr.bf16.mxu0 %v12524_v24  ;;  %v12534_v25 = vld [vmem:[#allocation79_spill] sm:$0xff]  ;;  %v12535_v24 = vld [vmem:[#allocation58_spill] sm:$0xff] }
0x1791   :  { %9074 = vmatpush1.bf16.msra.mxu1 %v12525_v52  ;;  %9114 = vmatpush1.bf16.msra.mxu0 %v12526_v51  ;;  %v12559_v51 = vld [vmem:[#allocation97_spill] sm:$0xff] }
0x1792   :  { %9076 = vmatprep.subr.bf16.mxu1 %v12527_v7  ;;  %9116 = vmatprep.subr.bf16.mxu0 %v12528_v50  ;;  %v12536_v7 = vld [vmem:[#allocation59_spill] sm:$0xff]  ;;  %v12537_v50 = vld [vmem:[#allocation85_spill] sm:$0xff] }
0x1795   :  { %9078 = vmatpush1.bf16.msra.mxu1 %v12529_v12  ;;  %9118 = vmatpush1.bf16.msra.mxu0 %v12530_v3  ;;  %v12538_v12 = vld [vmem:[#allocation62_spill] sm:$0xff] }
0x1796   :  { %9080 = vmatprep.subr.bf16.mxu1 %v12531_v43  ;;  %9120 = vmatprep.subr.bf16.mxu0 %v12532_v45  ;;  %v12554_v45 = vld [vmem:[#allocation88_spill] sm:$0xff] }
0x1799   :  { %9082 = vmatpush1.bf16.msra.mxu1 %v12533_v39  ;;  %9122 = vmatpush1.bf16.msra.mxu0 %v12534_v25  ;;  %v12539_v39 = vld [vmem:[#allocation63_spill] sm:$0xff] }
0x179a   :  { %9084 = vmatprep.subr.bf16.mxu1 %v12535_v24  ;;  %9147 = vmatprep.subr.bf16.mxu0 %v12194_v57  ;;  %v12540_v25 = vld [vmem:[#allocation87_spill] sm:$0xff] }
0x179b   :  { %v12547_v24 = vld [vmem:[#allocation83_spill] sm:$0xff] }
0x179c   :  { %5486 = vmatmul.mubr.f32.vlgmr.msra.gmra.mrb[44].mxu0 %v11484_v36 }
0x179d   :  { %9086 = vmatpush1.bf16.msra.mxu1 %v12536_v7  ;;  %9149 = vmatpush3.bf16.msra.mxu0 %v12537_v50  ;;  %v12541_v7 = vld [vmem:[#allocation80_spill] sm:$0xff]  ;;  %v12545_v50 = vld [vmem:[#allocation82_spill] sm:$0xff] }
0x179e   :  { %9088 = vmatprep.subr.bf16.mxu1 %v12538_v12  ;;  %9150 = vmatprep.subr.bf16.mxu0 %v12194_v57  ;;  %v12542_v12 = vld [vmem:[#allocation89_spill] sm:$0xff] }
0x179f   :  { %7667 = vmatprep.mubr.msk.f32.mxu0 %vm9913_vm0, %v12195_v4 }
0x17a1   :  { %9090 = vmatpush1.bf16.msra.mxu1 %v12539_v39  ;;  %9152 = vmatpush3.bf16.msra.mxu0 %v12540_v25  ;;  %v12543_v39 = vld [vmem:[#allocation81_spill] sm:$0xff]  ;;  %v12544_v25 = vld [vmem:[#allocation91_spill] sm:$0xff] }
0x17a2   :  { %9123 = vmatprep.subr.bf16.mxu1 %v12194_v57  ;;  %9153 = vmatprep.subr.bf16.mxu0 %v12194_v57 }
0x17a4   :  { %5415 = vmatmul.mubr.f32.vlgmr.msra.gmra.mrb[58].mxu1 %v11484_v36 }
0x17a5   :  { %9125 = vmatpush3.bf16.msra.mxu1 %v12541_v7  ;;  %7632 = vmatprep.mubr.msk.f32.mxu1 %vm9913_vm0, %v12195_v4  ;;  %v12546_v7 = vld [vmem:[#allocation92_spill] sm:$0xff] }
0x17a6   :  { %9126 = vmatprep.subr.bf16.mxu1 %v12194_v57  ;;  %9155 = vmatpush3.bf16.msra.mxu0 %v12542_v12  ;;  %v12548_v12 = vld [vmem:[#allocation93_spill] sm:$0xff] }
0x17a7   :  { %9156 = vmatprep.subr.bf16.mxu0 %v12194_v57 }
0x17a9   :  { %9128 = vmatpush3.bf16.msra.mxu1 %v12543_v39  ;;  %v12549_v39 = vld [vmem:[#allocation84_spill] sm:$0xff] }
0x17aa   :  { %9129 = vmatprep.subr.bf16.mxu1 %v12194_v57  ;;  %9158 = vmatpush3.bf16.msra.mxu0 %v12544_v25  ;;  %v12550_v25 = vld [vmem:[#allocation94_spill] sm:$0xff] }
0x17ab   :  { %9159 = vmatprep.subr.bf16.mxu0 %v12194_v57 }
0x17ad   :  { %9131 = vmatpush3.bf16.msra.mxu1 %v12545_v50  ;;  %v12551_v50 = vld [vmem:[#allocation86_spill] sm:$0xff] }
0x17ae   :  { %9132 = vmatprep.subr.bf16.mxu1 %v12194_v57  ;;  %9161 = vmatpush3.bf16.msra.mxu0 %v12546_v7  ;;  %v12552_v7 = vld [vmem:[#allocation95_spill] sm:$0xff] }
0x17af   :  { %9162 = vmatprep.subr.bf16.mxu0 %v12194_v57 }
0x17b1   :  { %9134 = vmatpush3.bf16.msra.mxu1 %v12547_v24  ;;  %v12553_v24 = vld [vmem:[#allocation30_spill] sm:$0xff] }
0x17b2   :  { %9135 = vmatprep.subr.bf16.mxu1 %v12194_v57  ;;  %9164 = vmatpush3.bf16.msra.mxu0 %v12548_v12  ;;  %v12555_v12 = vld [vmem:[#allocation90_spill] sm:$0xff] }
0x17b3   :  { %9165 = vmatprep.subr.bf16.mxu0 %v12194_v57 }
0x17b5   :  { %9137 = vmatpush3.bf16.msra.mxu1 %v12549_v39  ;;  %v12556_v39 = vld [vmem:[#allocation106_spill] sm:$0xff] }
0x17b6   :  { %9138 = vmatprep.subr.bf16.mxu1 %v12194_v57  ;;  %9167 = vmatpush3.bf16.msra.mxu0 %v12550_v25 }
0x17b7   :  { %9168 = vmatprep.subr.bf16.mxu0 %v12194_v57 }
0x17b9   :  { %9140 = vmatpush3.bf16.msra.mxu1 %v12551_v50 }
0x17ba   :  { %9141 = vmatprep.subr.bf16.mxu1 %v12194_v57  ;;  %9170 = vmatpush3.bf16.msra.mxu0 %v12552_v7 }
0x17bb   :  { %9204 = vmatprep.subr.bf16.mxu0 %v12553_v24 }
0x17bd   :  { %9143 = vmatpush3.bf16.msra.mxu1 %v12554_v45  ;;  %v12560_v45 = vld [vmem:[#allocation100_spill] sm:$0xff] }
0x17be   :  { %9144 = vmatprep.subr.bf16.mxu1 %v12194_v57 }
0x17c1   :  { %9146 = vmatpush3.bf16.msra.mxu1 %v12555_v12 }
0x17c2   :  { %9172 = vmatprep.subr.bf16.mxu1 %v12556_v39 }
0x184f   :  { %v11567_v43 = vpop.f32.mrb[54].mxu1  ;;  %v5345_v25 = vpop.f32.mrb[42].mxu0 }
0x1850   :  { %12557 = vst [vmem:[#allocation47_spill] sm:$0xff] %v11567_v43  ;;  %v11569_v3 = vpop.f32.mrb[55].mxu1  ;;  %v5347_v50 = vpop.f32.mrb[43].mxu0  ;;  %v5494_v52 = vadd.f32 %v5345_v25, %v12559_v51 }
0x1851   :  { %12558 = vst [vmem:[#allocation48_spill] sm:$0xff] %v11569_v3  ;;  %v5495_v30 = vadd.f32 %v5347_v50, %v12560_v45 }
0x1852   :  { %v6586_v24 = vmul.f32 -1.442695, %v5494_v52 }
0x1853   :  { %v6587_v56 = vmul.f32 -1.442695, %v5495_v30  ;;  %v11579_v30 = vld [vmem:[%s12221_s18] ss:$0 sm:$0xff] }
0x1854   :  { %9632 = vpow2.f32 %v6586_v24 }
0x1855   :  { %9634 = vpow2.f32 %v6587_v56 }
0x1857   :  { %v5275_v7 = vpop.f32.mrb[56].mxu1 }
0x1858   :  { %v7599_v54 = vpop.f32.mrb[57].mxu1  ;;  %v5508_v56 = vadd.f32 %v11579_v30, %v5275_v7 }
0x185e   :  { %v9633_v12 = vpop.eup %9632 }
0x185f   :  { %v5502_v39 = vadd.f32 1.0, %v9633_v12  ;;  %v9635_v46 = vpop.eup %9634 }
0x1860   :  { %v5503_v3 = vadd.f32 1.0, %v9635_v46 }
0x1861   :  { %9636 = vrcp.f32 %v5502_v39 }
0x1862   :  { %9638 = vrcp.f32 %v5503_v3 }
0x186b   :  { %v9637_v52 = vpop.eup %9636 }
0x186c   :  { %v9639_v51 = vpop.eup %9638 }
0x186f   :  { %v5487_v43 = vpop.f32.mrb[44].mxu0 }
0x1870   :  { %v5489_v37 = vpop.f32.mrb[45].mxu0  ;;  %v5518_v50 = vadd.f32 %v5487_v43, %v10571_v35 }
0x1872   :  { %v6589_v46 = vmul.f32 -1.442695, %v5518_v50  ;;  %v11619_v50 = vld [vmem:[%s12225_s28] ss:$0 sm:$0xff] }
0x1877   :  { %v5416_v44 = vpop.f32.mrb[58].mxu1 }
0x1878   :  { %v5509_v25 = vadd.f32 %v11574_v10, %v5416_v44  ;;  %v5418_v54 = vpop.f32.mrb[59].mxu1  ;;  %v5513_v10 = vsub.f32 1.0, %v9639_v51 }
0x1879   :  { %v5517_v24 = vadd.f32 %v5418_v54, %v12441_v0  ;;  %v5515_v0 = vmul.f32 %v9639_v51, %v11484_v36 }
0x187a   :  { %v5510_v12 = vmul.f32 %v9637_v52, %v5509_v25  ;;  %v11592_v25 = vld [vmem:[%s12222_s14] ss:$0 sm:$0xff] }
0x187b   :  { %v6588_v39 = vmul.f32 -1.442695, %v5517_v24 }
0x187c   :  { %v5511_v45 = vadd.f32 %v5510_v12, %v5508_v56 }
0x187d   :  { %9640 = vpow2.f32 %v6588_v39 }
0x187e   :  { %9642 = vtanh.f32 %v5511_v45 }
0x187f   :  { %9644 = vpow2.f32 %v6589_v46 }
0x1887   :  { %v9641_v44 = vpop.eup %9640 }
0x1888   :  { %v9643_v34 = vpop.eup %9642  ;;  %v5525_v54 = vadd.f32 1.0, %v9641_v44 }
0x1889   :  { %v5514_v3 = vmul.f32 %v9643_v34, %v5513_v10  ;;  %v9645_v43 = vpop.eup %9644  ;;  %v5531_v34 = vadd.f32 %v11592_v25, %v5489_v37 }
0x188a   :  { %9646 = vrcp.f32 %v5525_v54  ;;  %v5526_v45 = vadd.f32 1.0, %v9645_v43  ;;  %v11623_v54 = vld [vmem:[%s12226_s2] ss:$0 sm:$0xff] }
0x188b   :  { %v11584_v7 = vadd.f32 %v5515_v0, %v5514_v3  ;;  %v11627_v43 = vld [vmem:[%s12227_s7] ss:$0 sm:$0xff] }
0x188c   :  { %9648 = vrcp.f32 %v5526_v45 }
0x188d   :  { %7633 = vmatmul.mubr.f32.vlgmr.msra.gmra.mrb[60].mxu1 %v11584_v7 }
0x188e   :  { %9174 = vmatpush1.bf16.msra.mxu1 %v10623_v20  ;;  %5773 = vmatprep.mubr.f32.mxu1 %v12195_v4 }
0x188f   :  { %9176 = vmatprep.subr.bf16.mxu1 %v10632_v23 }
0x1892   :  { %9178 = vmatpush1.bf16.msra.mxu1 %v10638_v6 }
0x1893   :  { %9180 = vmatprep.subr.bf16.mxu1 %v10641_v15 }
0x1894   :  { %v9647_v0 = vpop.eup %9646 }
0x1895   :  { %v5532_v10 = vmul.f32 %v9647_v0, %v5531_v34  ;;  %v11631_v34 = vld [vmem:[%s12228_s10] ss:$0 sm:$0xff] }
0x1896   :  { %9182 = vmatpush1.bf16.msra.mxu1 %v10651_v26  ;;  %v9649_v52 = vpop.eup %9648 }
0x1897   :  { %v5533_v51 = vadd.f32 %v5532_v10, %v10581_v1  ;;  %9184 = vmatprep.subr.bf16.mxu1 %v10654_v18  ;;  %v5535_v37 = vsub.f32 1.0, %v9649_v52  ;;  %v5537_v12 = vmul.f32 %v9649_v52, %v11484_v36  ;;  %v6593_v10 = vld [vmem:[%s12142_s13 + $0x38] sm:$0xff]  ;;  %v12568_v52 = vld [vmem:[#allocation70_spill] sm:$0xff] }
0x1899   :  { %9650 = vtanh.f32 %v5533_v51  ;;  %v12564_v51 = vld [vmem:[#allocation68_spill] sm:$0xff] }
0x189a   :  { %9186 = vmatpush1.bf16.msra.mxu1 %v10663_v48 }
0x189b   :  { %9188 = vmatprep.subr.bf16.mxu1 %v10666_v2 }
0x189e   :  { %9190 = vmatpush1.bf16.msra.mxu1 %v10675_v49 }
0x189f   :  { %9192 = vmatprep.subr.bf16.mxu1 %v10678_v14 }
0x18a2   :  { %9194 = vmatpush1.bf16.msra.mxu1 %v10687_v58 }
0x18a3   :  { %v9651_v24 = vpop.eup %9650  ;;  %9196 = vmatprep.subr.bf16.mxu1 %v10690_v33 }
0x18a4   :  { %v5536_v56 = vmul.f32 %v9651_v24, %v5535_v37  ;;  %v12569_v37 = vld [vmem:[#allocation36_spill] sm:$0xff]  ;;  %v12571_v24 = vld [vmem:[#allocation37_spill] sm:$0xff] }
0x18a6   :  { %v11606_v39 = vadd.f32 %v5537_v12, %v5536_v56  ;;  %9198 = vmatpush1.bf16.msra.mxu1 %v10697_v40  ;;  %v12572_v56 = vld [vmem:[#allocation72_spill] sm:$0xff]  ;;  %v12573_v12 = vld [vmem:[#allocation38_spill] sm:$0xff] }
0x18a7   :  { %9200 = vmatprep.subr.bf16.mxu1 %v10710_v47 }
0x18a8   :  { %7668 = vmatmul.mubr.f32.vlgmr.msra.gmra.mrb[46].mxu0 %v11606_v39 }
0x18a9   :  { %9206 = vmatpush1.bf16.msra.mxu0 %v10296_v19  ;;  %5869 = vmatprep.mubr.f32.mxu0 %v12195_v4 }
0x18aa   :  { %9208 = vmatprep.subr.bf16.mxu0 %v10298_v21  ;;  %9202 = vmatpush1.bf16.msra.mxu1 %v10714_v32 }
0x18ab   :  { %9211 = vmatprep.subr.bf16.mxu1 %v12194_v57 }
0x18ad   :  { %9210 = vmatpush1.bf16.msra.mxu0 %v10303_v28 }
0x18ae   :  { %9218 = vmatprep.subr.bf16.mxu0 %v10307_v29 }
0x18b0   :  { %6594 = vmatmul.mubr.msk.f32.vlgmr.msra.gmra.mrb[48].mxu0 %vm216_vm1, %v6593_v10 }
0x18b1   :  { %9220 = vmatpush1.bf16.msra.mxu0 %v12329_v11  ;;  %6010 = vmatprep.mubr.f32.mxu0 %v12195_v4 }
0x18b2   :  { %9222 = vmatprep.subr.bf16.mxu0 %v12330_v41 }
0x18b5   :  { %9224 = vmatpush1.bf16.msra.mxu0 %v12331_v53 }
0x18b6   :  { %9226 = vmatprep.subr.bf16.mxu0 %v12332_v31  ;;  %v11653_v31 = vld [vmem:[#allocation2] ss:$0 sm:$0xff] }
0x18b9   :  { %9228 = vmatpush1.bf16.msra.mxu0 %v12333_v38 }
0x18ba   :  { %9230 = vmatprep.subr.bf16.mxu0 %v12334_v22 }
0x18bd   :  { %9232 = vmatpush1.bf16.msra.mxu0 %v12335_v16 }
0x18be   :  { %9234 = vmatprep.subr.bf16.mxu0 %v12336_v5 }
0x18c1   :  { %9236 = vmatpush1.bf16.msra.mxu0 %v12442_v61 }
0x18c2   :  { %9238 = vmatprep.subr.bf16.mxu0 %v12443_v63 }
0x18c5   :  { %9240 = vmatpush1.bf16.msra.mxu0 %v12444_v9 }
0x18c6   :  { %9242 = vmatprep.subr.bf16.mxu0 %v12445_v62 }
0x18c9   :  { %9244 = vmatpush1.bf16.msra.mxu0 %v12502_v59 }
0x18ca   :  { %9246 = vmatprep.subr.bf16.mxu0 %v12503_v17 }
0x18cd   :  { %9248 = vmatpush1.bf16.msra.mxu0 %v12504_v55 }
0x18ce   :  { %9282 = vmatprep.subr.bf16.mxu0 %v12505_v8  ;;  %v12562_v8 = vld [vmem:[#allocation67_spill] sm:$0xff] }
0x1960   :  { %v5605_v36 = vpop.f32.mrb[60].mxu1 }
0x1961   :  { %v5606_v46 = vadd.f32 %v11619_v50, %v5605_v36  ;;  %v7634_v19 = vpop.f32.mrb[61].mxu1  ;;  %v12575_v36 = vld [vmem:[#allocation39_spill] sm:$0xff] }
0x1962   :  { %v12577_v19 = vld [vmem:[#allocation40_spill] sm:$0xff] }
0x1963   :  { %9652 = vtanh.f32 %v5606_v46  ;;  %v12576_v46 = vld [vmem:[#allocation74_spill] sm:$0xff] }
0x196d   :  { %v9653_v44 = vpop.eup %9652 }
0x196e   :  { %v5681_v21 = vmul.f32 %v11623_v54, %v9653_v44  ;;  %v12578_v44 = vld [vmem:[#allocation75_spill] sm:$0xff] }
0x1970   :  { %5682 = vadd.xlane.f32.xlu1 %v5681_v21  ;;  %v12579_v21 = vld [vmem:[#allocation41_spill] sm:$0xff] }
0x197b   :  { %v5676_v3 = vpop.f32.mrb[46].mxu0 }
0x197c   :  { %v5677_v28 = vadd.f32 %v11627_v43, %v5676_v3  ;;  %v7669_v29 = vpop.f32.mrb[47].mxu0  ;;  %v12580_v3 = vld [vmem:[#allocation76_spill] sm:$0xff] }
0x197d   :  { %v12582_v29 = vld [vmem:[#allocation77_spill] sm:$0xff] }
0x197e   :  { %9654 = vtanh.f32 %v5677_v28  ;;  %v12581_v28 = vld [vmem:[#allocation42_spill] sm:$0xff] }
0x1988   :  { %v9655_v45 = vpop.eup %9654 }
0x1989   :  { %v5684_v0 = vmul.f32 %v11631_v34, %v9655_v45  ;;  %v12583_v45 = vld [vmem:[#allocation54_spill] sm:$0xff] }
0x198b   :  { %5685 = vadd.xlane.f32.xlu0 %v5684_v0  ;;  %v12584_v0 = vld [vmem:[#allocation78_spill] sm:$0xff] }
0x19fd   :  { %v5683_v11 = vpop.xlane.xlu1 %5682 }
0x1a18   :  { %v5686_v41 = vpop.xlane.xlu0 %5685 }
0x1a19   :  { %v5687_v53 = vadd.f32 %v5686_v41, %v5683_v11  ;;  %v12586_v11 = vld [vmem:[#allocation79_spill] sm:$0xff]  ;;  %v12587_v41 = vld [vmem:[#allocation58_spill] sm:$0xff] }
0x1a1b   :  { %v5688_v38 = vadd.f32 %v11653_v31, %v5687_v53  ;;  %v12588_v53 = vld [vmem:[#allocation59_spill] sm:$0xff] }
0x1a1d   :  { %v6590_v22 = vmul.f32 -1.442695, %v5688_v38  ;;  %v12589_v38 = vld [vmem:[#allocation85_spill] sm:$0xff] }
0x1a1f   :  { %9656 = vpow2.f32 %v6590_v22  ;;  %v12590_v22 = vld [vmem:[#allocation62_spill] sm:$0xff] }
0x1a29   :  { %v9657_v16 = vpop.eup %9656 }
0x1a2a   :  { %v5692_v5 = vadd.f32 1.0, %v9657_v16  ;;  %v12591_v16 = vld [vmem:[#allocation63_spill] sm:$0xff] }
0x1a2c   :  { %9658 = vrcp.f32 %v5692_v5  ;;  %v12592_v5 = vld [vmem:[#allocation87_spill] sm:$0xff] }
0x1a36   :  { %v9659_v61 = vpop.eup %9658 }
0x1a37   :  { %5704 = vperm.xlu0 %9460, %v9659_v61   ;;  %v5695_v63 = vsub.f32 1.0, %v9659_v61  ;;  %v12593_v61 = vld [vmem:[#allocation80_spill] sm:$0xff] }
0x1a39   :  { %5698 = vperm.xlu1 %9461, %v5695_v63   ;;  %v12594_v63 = vld [vmem:[#allocation89_spill] sm:$0xff] }
0x1ab6   :  { %v5705_v9 = vpop.permute.xlu0 %5704 }
0x1ab7   :  { %v5707_v59 = vmul.f32 %v5705_v9, %v11606_v39  ;;  %v12574_v39 = vld [vmem:[#allocation73_spill] sm:$0xff] }
0x1ab8   :  { %v5699_v62 = vpop.permute.xlu1 %5698  ;;  %v12595_v9 = vld [vmem:[#allocation81_spill] sm:$0xff] }
0x1ab9   :  { %v5701_v17 = vmul.f32 %v5699_v62, %v11584_v7  ;;  %v12563_v7 = vld [vmem:[#allocation33_spill] sm:$0xff]  ;;  %v12596_v62 = vld [vmem:[#allocation91_spill] sm:$0xff] }
0x1abb   :  { %v11658_v55 = vadd.f32 %v5707_v59, %v5701_v17  ;;  %v12597_v59 = vld [vmem:[#allocation82_spill] sm:$0xff]  ;;  %v12598_v17 = vld [vmem:[#allocation92_spill] sm:$0xff] }
0x1abd   :  { %5774 = vmatmul.mubr.f32.vlgmr.msra.gmra.mrb[62].mxu1 %v11658_v55  ;;  %6011 = vmatmul.mubr.f32.vlgmr.msra.gmra.mrb[48].mxu0 %v11658_v55 }
0x1abe   :  { %9213 = vmatpush3.bf16.msra.mxu1 %v12506_v60  ;;  %9284 = vmatpush1.bf16.msra.mxu0 %v12507_v27  ;;  %v12565_v60 = vld [vmem:[#allocation34_spill] sm:$0xff]  ;;  %v12566_v27 = vld [vmem:[#allocation69_spill] sm:$0xff] }
0x1abf   :  { %9214 = vmatprep.subr.bf16.mxu1 %v12194_v57  ;;  %9286 = vmatprep.subr.bf16.mxu0 %v12508_v13  ;;  %v12567_v13 = vld [vmem:[#allocation35_spill] sm:$0xff] }
0x1ac0   :  { %7678 = vmatprep.mubr.msk.f32.mxu1 %vm9913_vm0, %v12195_v4  ;;  %6152 = vmatprep.mubr.f32.mxu0 %v12195_v4 }
0x1ac2   :  { %9216 = vmatpush3.bf16.msra.mxu1 %v12509_v42  ;;  %9288 = vmatpush1.bf16.msra.mxu0 %v12562_v8  ;;  %v12570_v42 = vld [vmem:[#allocation71_spill] sm:$0xff] }
0x1ac3   :  { %9250 = vmatprep.subr.bf16.mxu1 %v12563_v7  ;;  %9290 = vmatprep.subr.bf16.mxu0 %v12564_v51  ;;  %v12599_v8 = vld [vmem:[#allocation83_spill] sm:$0xff]  ;;  %v12600_v7 = vld [vmem:[#allocation93_spill] sm:$0xff]  ;;  %v12601_v51 = vld [vmem:[#allocation84_spill] sm:$0xff] }
0x1ac5   :  { %7679 = vmatmul.mubr.msk.f32.vlgmr.msra.gmra.mrb[64].mxu1 %vm216_vm1, %v6593_v10  ;;  %v12585_v10 = vld [vmem:[#allocation55_spill] sm:$0xff] }
0x1ac6   :  { %9252 = vmatpush1.bf16.msra.mxu1 %v12565_v60  ;;  %9292 = vmatpush1.bf16.msra.mxu0 %v12566_v27  ;;  %v12602_v60 = vld [vmem:[#allocation94_spill] sm:$0xff] }
0x1ac7   :  { %9254 = vmatprep.subr.bf16.mxu1 %v12567_v13  ;;  %9294 = vmatprep.subr.bf16.mxu0 %v12568_v52  ;;  %v12603_v27 = vld [vmem:[#allocation86_spill] sm:$0xff]  ;;  %v12604_v13 = vld [vmem:[#allocation95_spill] sm:$0xff]  ;;  %v12605_v52 = vld [vmem:[#allocation88_spill] sm:$0xff] }
0x1ac8   :  { %6081 = vmatprep.mubr.f32.mxu1 %v12195_v4 }
0x1aca   :  { %9256 = vmatpush1.bf16.msra.mxu1 %v12569_v37  ;;  %9296 = vmatpush1.bf16.msra.mxu0 %v12570_v42  ;;  %v12606_v37 = vld [vmem:[#allocation90_spill] sm:$0xff] }
0x1acb   :  { %9258 = vmatprep.subr.bf16.mxu1 %v12571_v24  ;;  %9298 = vmatprep.subr.bf16.mxu0 %v12572_v56  ;;  %v12607_v42 = vld [vmem:[#allocation106_spill] sm:$0xff] }
0x1ace   :  { %9260 = vmatpush1.bf16.msra.mxu1 %v12573_v12  ;;  %9300 = vmatpush1.bf16.msra.mxu0 %v12574_v39 }
0x1acf   :  { %9262 = vmatprep.subr.bf16.mxu1 %v12575_v36  ;;  %9302 = vmatprep.subr.bf16.mxu0 %v12576_v46  ;;  %v12608_v36 = vld [vmem:[#allocation97_spill] sm:$0xff] }
0x1ad2   :  { %9264 = vmatpush1.bf16.msra.mxu1 %v12577_v19  ;;  %9304 = vmatpush1.bf16.msra.mxu0 %v12578_v44 }
0x1ad3   :  { %9266 = vmatprep.subr.bf16.mxu1 %v12579_v21  ;;  %9306 = vmatprep.subr.bf16.mxu0 %v12580_v3  ;;  %v12609_v3 = vld [vmem:[#allocation100_spill] sm:$0xff] }
0x1ad6   :  { %9268 = vmatpush1.bf16.msra.mxu1 %v12581_v28  ;;  %9308 = vmatpush1.bf16.msra.mxu0 %v12582_v29 }
0x1ad7   :  { %9270 = vmatprep.subr.bf16.mxu1 %v12583_v45  ;;  %9310 = vmatprep.subr.bf16.mxu0 %v12584_v0 }
0x1ada   :  { %9272 = vmatpush1.bf16.msra.mxu1 %v12585_v10  ;;  %9312 = vmatpush1.bf16.msra.mxu0 %v12586_v11 }
0x1adb   :  { %9274 = vmatprep.subr.bf16.mxu1 %v12587_v41  ;;  %9337 = vmatprep.subr.bf16.mxu0 %v12194_v57 }
0x1add   :  { %6153 = vmatmul.mubr.f32.vlgmr.msra.gmra.mrb[50].mxu0 %v11658_v55 }
0x1ade   :  { %9276 = vmatpush1.bf16.msra.mxu1 %v12588_v53  ;;  %9339 = vmatpush3.bf16.msra.mxu0 %v12589_v38  ;;  %v12610_v38 = vld [vmem:[#allocation49_spill] sm:$0xff] }
0x1adf   :  { %9278 = vmatprep.subr.bf16.mxu1 %v12590_v22  ;;  %9340 = vmatprep.subr.bf16.mxu0 %v12194_v57 }
0x1ae0   :  { %7748 = vmatprep.mubr.msk.f32.mxu0 %vm9913_vm0, %v12195_v4 }
0x1ae2   :  { %9280 = vmatpush1.bf16.msra.mxu1 %v12591_v16  ;;  %9342 = vmatpush3.bf16.msra.mxu0 %v12592_v5 }
0x1ae3   :  { %9313 = vmatprep.subr.bf16.mxu1 %v12194_v57  ;;  %9343 = vmatprep.subr.bf16.mxu0 %v12194_v57 }
0x1ae5   :  { %6082 = vmatmul.mubr.f32.vlgmr.msra.gmra.mrb[66].mxu1 %v11658_v55 }
0x1ae6   :  { %9315 = vmatpush3.bf16.msra.mxu1 %v12593_v61  ;;  %7713 = vmatprep.mubr.msk.f32.mxu1 %vm9913_vm0, %v12195_v4  ;;  %v12611_v61 = vld [vmem:[#allocation99_spill] sm:$0xff] }
0x1ae7   :  { %9316 = vmatprep.subr.bf16.mxu1 %v12194_v57  ;;  %9345 = vmatpush3.bf16.msra.mxu0 %v12594_v63 }
0x1ae8   :  { %9346 = vmatprep.subr.bf16.mxu0 %v12194_v57 }
0x1aea   :  { %9318 = vmatpush3.bf16.msra.mxu1 %v12595_v9 }
0x1aeb   :  { %9319 = vmatprep.subr.bf16.mxu1 %v12194_v57  ;;  %9348 = vmatpush3.bf16.msra.mxu0 %v12596_v62 }
0x1aec   :  { %9349 = vmatprep.subr.bf16.mxu0 %v12194_v57 }
0x1aee   :  { %9321 = vmatpush3.bf16.msra.mxu1 %v12597_v59 }
0x1aef   :  { %9322 = vmatprep.subr.bf16.mxu1 %v12194_v57  ;;  %9351 = vmatpush3.bf16.msra.mxu0 %v12598_v17 }
0x1af0   :  { %9352 = vmatprep.subr.bf16.mxu0 %v12194_v57 }
0x1af2   :  { %9324 = vmatpush3.bf16.msra.mxu1 %v12599_v8 }
0x1af3   :  { %9325 = vmatprep.subr.bf16.mxu1 %v12194_v57  ;;  %9354 = vmatpush3.bf16.msra.mxu0 %v12600_v7 }
0x1af4   :  { %9355 = vmatprep.subr.bf16.mxu0 %v12194_v57 }
0x1af6   :  { %9327 = vmatpush3.bf16.msra.mxu1 %v12601_v51 }
0x1af7   :  { %9328 = vmatprep.subr.bf16.mxu1 %v12194_v57  ;;  %9357 = vmatpush3.bf16.msra.mxu0 %v12602_v60 }
0x1af8   :  { %9358 = vmatprep.subr.bf16.mxu0 %v12194_v57 }
0x1afa   :  { %9330 = vmatpush3.bf16.msra.mxu1 %v12603_v27 }
0x1afb   :  { %9331 = vmatprep.subr.bf16.mxu1 %v12194_v57  ;;  %9360 = vmatpush3.bf16.msra.mxu0 %v12604_v13 }
0x1afe   :  { %9333 = vmatpush3.bf16.msra.mxu1 %v12605_v52 }
0x1aff   :  { %9334 = vmatprep.subr.bf16.mxu1 %v12194_v57 }
0x1b02   :  { %9336 = vmatpush3.bf16.msra.mxu1 %v12606_v37 }
0x1b03   :  { %9362 = vmatprep.subr.bf16.mxu1 %v12607_v42 }
0x1b90   :  { %v11740_v24 = vpop.f32.mrb[62].mxu1  ;;  %v6012_v56 = vpop.f32.mrb[48].mxu0 }
0x1b91   :  { %v11742_v12 = vpop.f32.mrb[63].mxu1  ;;  %v6014_v39 = vpop.f32.mrb[49].mxu0  ;;  %v6161_v46 = vadd.f32 %v6012_v56, %v12608_v36 }
0x1b92   :  { %v6162_v28 = vadd.f32 %v6014_v39, %v12609_v3 }
0x1b93   :  { %v6596_v21 = vmul.f32 -1.442695, %v6161_v46 }
0x1b94   :  { %v6597_v29 = vmul.f32 -1.442695, %v6162_v28  ;;  %v944_v28 = vld [vmem:[%s10085_s21] sm:$0x3] }
0x1b95   :  { %9660 = vpow2.f32 %v6596_v21 }
0x1b96   :  { %9662 = vpow2.f32 %v6597_v29  ;;  %v12612_v29 = vld [vmem:[#allocation96_spill] sm:$0xff] }
0x1b98   :  { %v5942_v19 = vpop.f32.mrb[64].mxu1 }
0x1b99   :  { %v7680_v44 = vpop.f32.mrb[65].mxu1  ;;  %v6175_v9 = vadd.f32 %v11579_v30, %v5942_v19 }
0x1b9f   :  { %v9661_v57 = vpop.eup %9660 }
0x1ba0   :  { %v6169_v45 = vadd.f32 1.0, %v9661_v57  ;;  %v9663_v11 = vpop.eup %9662  ;;  %v11783_v57 = vrot.slane %v944_v28, %v12612_v29 }
0x1ba1   :  { %v6170_v41 = vadd.f32 1.0, %v9663_v11 }
0x1ba2   :  { %9664 = vrcp.f32 %v6169_v45 }
0x1ba3   :  { %9666 = vrcp.f32 %v6170_v41 }
0x1bac   :  { %v9665_v5 = vpop.eup %9664 }
0x1bad   :  { %v9667_v51 = vpop.eup %9666 }
0x1bae   :  { %v6180_v27 = vsub.f32 1.0, %v9667_v51  ;;  %v6182_v42 = vmul.f32 %v9667_v51, %v11658_v55 }
0x1bb0   :  { %v6154_v0 = vpop.f32.mrb[50].mxu0 }
0x1bb1   :  { %v6156_v10 = vpop.f32.mrb[51].mxu0  ;;  %v6185_v17 = vadd.f32 %v6154_v0, %v10571_v35  ;;  %v12614_v0 = vld [vmem:[#allocation102_spill] sm:$0xff] }
0x1bb2   :  { %v6198_v39 = vadd.f32 %v11592_v25, %v6156_v10  ;;  %v11790_v10 = vadd.f32 %v12614_v0, %v11783_v57 }
0x1bb3   :  { %v6599_v7 = vmul.f32 -1.442695, %v6185_v17 }
0x1bb8   :  { %v6083_v53 = vpop.f32.mrb[66].mxu1 }
0x1bb9   :  { %v6176_v22 = vadd.f32 %v12610_v38, %v6083_v53  ;;  %v6085_v16 = vpop.f32.mrb[67].mxu1  ;;  %v12616_v53 = vld [vmem:[#allocation107_spill] sm:$0xff] }
0x1bba   :  { %v6184_v63 = vadd.f32 %v6085_v16, %v12611_v61  ;;  %v11800_v38 = vadd.f32 %v12616_v53, %v11783_v57 }
0x1bbb   :  { %v6177_v62 = vmul.f32 %v9665_v5, %v6176_v22  ;;  %v12617_v22 = vld [vmem:[#allocation108_spill] sm:$0xff] }
0x1bbc   :  { %v6598_v59 = vmul.f32 -1.442695, %v6184_v63  ;;  %v12618_v5 = vld [vmem:[#allocation104_spill] sm:$0xff]  ;;  %v12619_v63 = vld [vmem:[#allocation105_spill] sm:$0xff] }
0x1bbd   :  { %v6178_v8 = vadd.f32 %v6177_v62, %v6175_v9  ;;  %v11808_v61 = vadd.f32 %v12618_v5, %v11783_v57 }
0x1bbe   :  { %9668 = vpow2.f32 %v6598_v59  ;;  %v12620_v59 = vld [vmem:[#allocation43_spill] sm:$0xff] }
0x1bbf   :  { %9670 = vtanh.f32 %v6178_v8  ;;  %v11818_v17 = vadd.f32 %v12620_v59, %v11783_v57  ;;  %v12621_v8 = vld [vmem:[#allocation44_spill] sm:$0xff] }
0x1bc0   :  { %9672 = vpow2.f32 %v6599_v7 }
0x1bc8   :  { %v9669_v60 = vpop.eup %9668 }
0x1bc9   :  { %v9671_v13 = vpop.eup %9670  ;;  %v6192_v52 = vadd.f32 1.0, %v9669_v60  ;;  %v12622_v60 = vld [vmem:[#allocation45_spill] sm:$0xff] }
0x1bca   :  { %v6181_v37 = vmul.f32 %v9671_v13, %v6180_v27  ;;  %v9673_v30 = vpop.eup %9672  ;;  %v11828_v27 = vadd.f32 %v12622_v60, %v11783_v57  ;;  %v12623_v13 = vld [vmem:[#allocation46_spill] sm:$0xff] }
0x1bcb   :  { %9674 = vrcp.f32 %v6192_v52  ;;  %v6193_v35 = vadd.f32 1.0, %v9673_v30 }
0x1bcc   :  { %v11751_v56 = vadd.f32 %v6182_v42, %v6181_v37  ;;  %v12624_v42 = vld [vmem:[#allocation47_spill] sm:$0xff] }
0x1bcd   :  { %9676 = vrcp.f32 %v6193_v35  ;;  %v11838_v30 = vadd.f32 %v12624_v42, %v11783_v57  ;;  %v12625_v35 = vld [vmem:[#allocation48_spill] sm:$0xff] }
0x1bce   :  { %7714 = vmatmul.mubr.f32.vlgmr.msra.gmra.mrb[68].mxu1 %v11751_v56 }
0x1bcf   :  { %9364 = vmatpush1.bf16.msra.mxu1 %v10623_v20  ;;  %6440 = vmatprep.mubr.f32.mxu1 %v12195_v4 }
0x1bd0   :  { %9366 = vmatprep.subr.bf16.mxu1 %v10632_v23 }
0x1bd3   :  { %9368 = vmatpush1.bf16.msra.mxu1 %v10638_v6 }
0x1bd4   :  { %9370 = vmatprep.subr.bf16.mxu1 %v10641_v15 }
0x1bd5   :  { %v9675_v36 = vpop.eup %9674 }
0x1bd6   :  { %v6199_v46 = vmul.f32 %v9675_v36, %v6198_v39 }
0x1bd7   :  { %9372 = vmatpush1.bf16.msra.mxu1 %v10651_v26  ;;  %v9677_v4 = vpop.eup %9676 }
0x1bd8   :  { %v6200_v19 = vadd.f32 %v6199_v46, %v10581_v1  ;;  %9374 = vmatprep.subr.bf16.mxu1 %v10654_v18  ;;  %v6202_v20 = vsub.f32 1.0, %v9677_v4  ;;  %v6204_v1 = vmul.f32 %v9677_v4, %v11658_v55  ;;  %v11848_v46 = vadd.f32 %v11740_v24, %v11783_v57 }
0x1bda   :  { %9678 = vtanh.f32 %v6200_v19 }
0x1bdb   :  { %9376 = vmatpush1.bf16.msra.mxu1 %v10663_v48 }
0x1bdc   :  { %9378 = vmatprep.subr.bf16.mxu1 %v10666_v2 }
0x1bdf   :  { %9380 = vmatpush1.bf16.msra.mxu1 %v10675_v49 }
0x1be0   :  { %9382 = vmatprep.subr.bf16.mxu1 %v10678_v14 }
0x1be3   :  { %9384 = vmatpush1.bf16.msra.mxu1 %v10687_v58 }
0x1be4   :  { %v9679_v23 = vpop.eup %9678  ;;  %9386 = vmatprep.subr.bf16.mxu1 %v10690_v33 }
0x1be5   :  { %v6203_v6 = vmul.f32 %v9679_v23, %v6202_v20 }
0x1be7   :  { %v11770_v15 = vadd.f32 %v6204_v1, %v6203_v6  ;;  %9388 = vmatpush1.bf16.msra.mxu1 %v10697_v40 }
0x1be8   :  { %9390 = vmatprep.subr.bf16.mxu1 %v10710_v47 }
0x1be9   :  { %7749 = vmatmul.mubr.f32.vlgmr.msra.gmra.mrb[52].mxu0 %v11770_v15 }
0x1beb   :  { %9392 = vmatpush1.bf16.msra.mxu1 %v10714_v32 }
0x1ca1   :  { %v6272_v49 = vpop.f32.mrb[68].mxu1 }
0x1ca2   :  { %v6273_v26 = vadd.f32 %v11619_v50, %v6272_v49  ;;  %v7715_v58 = vpop.f32.mrb[69].mxu1 }
0x1ca4   :  { %9680 = vtanh.f32 %v6273_v26 }
0x1cae   :  { %v9681_v18 = vpop.eup %9680 }
0x1caf   :  { %v6348_v48 = vmul.f32 %v11623_v54, %v9681_v18 }
0x1cb1   :  { %6349 = vadd.xlane.f32.xlu1 %v6348_v48 }
0x1cbc   :  { %v6343_v2 = vpop.f32.mrb[52].mxu0 }
0x1cbd   :  { %v6344_v14 = vadd.f32 %v11627_v43, %v6343_v2  ;;  %v7750_v33 = vpop.f32.mrb[53].mxu0 }
0x1cbf   :  { %9682 = vtanh.f32 %v6344_v14 }
0x1cc9   :  { %v9683_v40 = vpop.eup %9682 }
0x1cca   :  { %v6351_v47 = vmul.f32 %v11631_v34, %v9683_v40  ;;  %v12613_v34 = vld [vmem:[#allocation98_spill] sm:$0xff] }
0x1ccb   :  { %v11786_v45 = vrot.slane %v944_v28, %v12613_v34 }
0x1ccc   :  { %6352 = vadd.xlane.f32.xlu0 %v6351_v47 }
0x1ccd   :  { %v11804_v16 = vadd.f32 %v12617_v22, %v11786_v45  ;;  %v11812_v9 = vadd.f32 %v12619_v63, %v11786_v45  ;;  %v11822_v7 = vadd.f32 %v12621_v8, %v11786_v45  ;;  %v11832_v52 = vadd.f32 %v12623_v13, %v11786_v45 }
0x1cce   :  { %v11842_v39 = vadd.f32 %v12625_v35, %v11786_v45  ;;  %v11852_v19 = vadd.f32 %v11742_v12, %v11786_v45 }
0x1ccf   :  { %v1779_v62 = vmax.f32 %v11800_v38, %v11804_v16  ;;  %v3112_v51 = vmax.f32 %v11808_v61, %v11812_v9  ;;  %v3779_v37 = vmax.f32 %v11818_v17, %v11822_v7  ;;  %v4446_v36 = vmax.f32 %v11828_v27, %v11832_v52 }
0x1cd0   :  { %v5113_v4 = vmax.f32 %v11838_v30, %v11842_v39  ;;  %v5780_v20 = vmax.f32 %v11848_v46, %v11852_v19 }
0x1d3e   :  { %v6350_v32 = vpop.xlane.xlu1 %6349 }
0x1d59   :  { %v6353_v25 = vpop.xlane.xlu0 %6352 }
0x1d5a   :  { %v6354_v55 = vadd.f32 %v6353_v25, %v6350_v32 }
0x1d5c   :  { %v6355_v50 = vadd.f32 %v11653_v31, %v6354_v55  ;;  %v12615_v31 = vld [vmem:[#allocation103_spill] sm:$0xff] }
0x1d5d   :  { %v11794_v11 = vadd.f32 %v12615_v31, %v11786_v45 }
0x1d5e   :  { %v6600_v44 = vmul.f32 -1.442695, %v6355_v50 }
0x1d5f   :  { %v2445_v41 = vmax.f32 %v11790_v10, %v11794_v11 }
0x1d60   :  { %9684 = vpow2.f32 %v6600_v44 }
0x1d6a   :  { %v9685_v21 = vpop.eup %9684 }
0x1d6b   :  { %v6359_v54 = vadd.f32 1.0, %v9685_v21 }
0x1d6d   :  { %9686 = vrcp.f32 %v6359_v54 }
0x1d77   :  { %v9687_v3 = vpop.eup %9686 }
0x1d78   :  { %6371 = vperm.xlu0 %9460, %v9687_v3   ;;  %v6362_v43 = vsub.f32 1.0, %v9687_v3 }
0x1d7a   :  { %6365 = vperm.xlu1 %9461, %v6362_v43  }
0x1d97   :  { %2446 = vmax.xlane.f32.xlu0 %v2445_v41 }
0x1d9e   :  { %1780 = vmax.xlane.f32.xlu1 %v1779_v62 }
0x1da2   :  { %3113 = vmax.xlane.f32.xlu1 %v3112_v51 }
0x1da6   :  { %3780 = vmax.xlane.f32.xlu1 %v3779_v37 }
0x1daa   :  { %4447 = vmax.xlane.f32.xlu1 %v4446_v36 }
0x1dae   :  { %5114 = vmax.xlane.f32.xlu1 %v5113_v4 }
0x1db2   :  { %5781 = vmax.xlane.f32.xlu1 %v5780_v20 }
0x1df7   :  { %v6372_v23 = vpop.permute.xlu0 %6371 }
0x1df8   :  { %v6374_v1 = vmul.f32 %v6372_v23, %v11770_v15 }
0x1df9   :  { %v6366_v6 = vpop.permute.xlu1 %6365 }
0x1dfa   :  { %v6368_v49 = vmul.f32 %v6366_v6, %v11751_v56 }
0x1dfc   :  { %v6375_v24 = vadd.f32 %v6374_v1, %v6368_v49 }
0x1dfe   :  { %6441 = vmatmul.mubr.f32.vlgmr.msra.gmra.mrb[70].mxu1 %v6375_v24 }
0x1e24   :  { %v11888_v51 = vpop.xlane.xlu0 %2446 }
0x1e25   :  { %v2448_v60 = vsub.f32 %v11790_v10, %v11888_v51  ;;  %v2449_v13 = vsub.f32 %v11794_v11, %v11888_v51 }
0x1e27   :  { %v2450_v37 = vmul.f32 1.442695, %v2448_v60  ;;  %v2452_v35 = vmul.f32 1.442695, %v2449_v13 }
0x1e2b   :  { %v11860_v26 = vpop.xlane.xlu1 %1780 }
0x1e2c   :  { %v1782_v12 = vsub.f32 %v11800_v38, %v11860_v26  ;;  %v1783_v58 = vsub.f32 %v11804_v16, %v11860_v26 }
0x1e2e   :  { %v1784_v18 = vmul.f32 1.442695, %v1782_v12  ;;  %v1786_v48 = vmul.f32 1.442695, %v1783_v58 }
0x1e2f   :  { %v11866_v2 = vpop.xlane.xlu1 %3113 }
0x1e30   :  { %9688 = vpow2.f32 %v1784_v18  ;;  %v3115_v15 = vsub.f32 %v11808_v61, %v11866_v2  ;;  %v3116_v56 = vsub.f32 %v11812_v9, %v11866_v2 }
0x1e31   :  { %9690 = vpow2.f32 %v1786_v48 }
0x1e32   :  { %v3117_v14 = vmul.f32 1.442695, %v3115_v15  ;;  %v3119_v33 = vmul.f32 1.442695, %v3116_v56 }
0x1e33   :  { %v11872_v40 = vpop.xlane.xlu1 %3780 }
0x1e34   :  { %9692 = vpow2.f32 %v3117_v14  ;;  %v3782_v42 = vsub.f32 %v11818_v17, %v11872_v40  ;;  %v3783_v36 = vsub.f32 %v11822_v7, %v11872_v40 }
0x1e35   :  { %9694 = vpow2.f32 %v3119_v33 }
0x1e36   :  { %v3784_v4 = vmul.f32 1.442695, %v3782_v42  ;;  %v3786_v20 = vmul.f32 1.442695, %v3783_v36 }
0x1e37   :  { %v11874_v47 = vpop.xlane.xlu1 %4447 }
0x1e38   :  { %v4449_v32 = vsub.f32 %v11828_v27, %v11874_v47  ;;  %v4450_v25 = vsub.f32 %v11832_v52, %v11874_v47 }
0x1e3a   :  { %v9689_v55 = vpop.eup %9688  ;;  %v4451_v50 = vmul.f32 1.442695, %v4449_v32  ;;  %v4453_v44 = vmul.f32 1.442695, %v4450_v25 }
0x1e3b   :  { %v9691_v21 = vpop.eup %9690  ;;  %v11880_v54 = vpop.xlane.xlu1 %5114 }
0x1e3c   :  { %9696 = vpow2.f32 %v4451_v50  ;;  %v1788_v3 = vadd.f32 %v9691_v21, %v9689_v55  ;;  %v5116_v23 = vsub.f32 %v11838_v30, %v11880_v54  ;;  %v5117_v1 = vsub.f32 %v11842_v39, %v11880_v54 }
0x1e3d   :  { %9698 = vpow2.f32 %v4453_v44 }
0x1e3e   :  { %v9693_v43 = vpop.eup %9692  ;;  %1789 = vadd.xlane.f32.xlu1 %v1788_v3  ;;  %v5118_v49 = vmul.f32 1.442695, %v5116_v23  ;;  %v5120_v12 = vmul.f32 1.442695, %v5117_v1 }
0x1e3f   :  { %v9695_v28 = vpop.eup %9694  ;;  %v11882_v29 = vpop.xlane.xlu1 %5781 }
0x1e40   :  { %v5783_v34 = vsub.f32 %v11848_v46, %v11882_v29  ;;  %v5784_v0 = vsub.f32 %v11852_v19, %v11882_v29  ;;  %v3121_v31 = vadd.f32 %v9695_v28, %v9693_v43 }
0x1e42   :  { %v5785_v41 = vmul.f32 1.442695, %v5783_v34  ;;  %v5787_v53 = vmul.f32 1.442695, %v5784_v0  ;;  %3122 = vadd.xlane.f32.xlu1 %v3121_v31 }
0x1e44   :  { %9700 = vpow2.f32 %v5785_v41 }
0x1e45   :  { %9702 = vpow2.f32 %v5787_v53 }
0x1e46   :  { %v9697_v22 = vpop.eup %9696  ;;  %9704 = vpow2.f32 %v2450_v37 }
0x1e47   :  { %v9699_v5 = vpop.eup %9698  ;;  %9706 = vpow2.f32 %v2452_v35 }
0x1e48   :  { %v4455_v63 = vadd.f32 %v9699_v5, %v9697_v22 }
0x1e4a   :  { %4456 = vadd.xlane.f32.xlu1 %v4455_v63 }
0x1e4e   :  { %v9701_v62 = vpop.eup %9700 }
0x1e4f   :  { %v9703_v59 = vpop.eup %9702 }
0x1e50   :  { %v5789_v8 = vadd.f32 %v9703_v59, %v9701_v62  ;;  %v9705_v56 = vpop.eup %9704 }
0x1e51   :  { %v9707_v14 = vpop.eup %9706 }
0x1e52   :  { %5790 = vadd.xlane.f32.xlu1 %v5789_v8  ;;  %v2454_v21 = vadd.f32 %v9707_v14, %v9705_v56 }
0x1ecb   :  { %v1790_v6 = vpop.xlane.xlu1 %1789 }
0x1ecc   :  { %9708 = vlog2.f32 %v1790_v6 }
0x1ecd   :  { %9710 = vpow2.f32 %v3784_v4 }
0x1ece   :  { %9712 = vpow2.f32 %v3786_v20 }
0x1ecf   :  { %v3123_v24 = vpop.xlane.xlu1 %3122 }
0x1ed0   :  { %9714 = vlog2.f32 %v3123_v24 }
0x1ed1   :  { %v6442_v58 = vpop.f32.mrb[70].mxu1  ;;  %9716 = vpow2.f32 %v5118_v49 }
0x1ed2   :  { %v11903_v18 = vadd.f32 %v6442_v58, %v11783_v57  ;;  %v6444_v48 = vpop.f32.mrb[71].mxu1  ;;  %9718 = vpow2.f32 %v5120_v12 }
0x1ed3   :  { %v11906_v15 = vadd.f32 %v6444_v48, %v11786_v45 }
0x1ed5   :  { %v6447_v33 = vmax.f32 %v11903_v18, %v11906_v15 }
0x1ed6   :  { %v9709_v32 = vpop.eup %9708 }
0x1ed7   :  { %v1792_v25 = vmul.f32 0.6931472, %v9709_v32  ;;  %v4457_v55 = vpop.xlane.xlu1 %4456  ;;  %6448 = vmax.xlane.f32.xlu0 %v6447_v33  ;;  %v9711_v50 = vpop.eup %9710 }
0x1ed8   :  { %9720 = vlog2.f32 %v4457_v55  ;;  %v9713_v57 = vpop.eup %9712 }
0x1ed9   :  { %v1793_v44 = vadd.f32 %v1792_v25, %v11860_v26  ;;  %v3788_v31 = vadd.f32 %v9713_v57, %v9711_v50 }
0x1eda   :  { %v9715_v45 = vpop.eup %9714 }
0x1edb   :  { %v1794_v3 = vsub.f32 %v11800_v38, %v1793_v44  ;;  %v1795_v43 = vsub.f32 %v11804_v16, %v1793_v44  ;;  %v3125_v28 = vmul.f32 0.6931472, %v9715_v45  ;;  %2455 = vadd.xlane.f32.xlu0 %v2454_v21  ;;  %v9717_v34 = vpop.eup %9716 }
0x1edc   :  { %v9719_v41 = vpop.eup %9718 }
0x1edd   :  { %1796 = vst [vmem:[%s10090_s8] sm:$0xff] %v1794_v3  ;;  %1797 = vst [vmem:[%s10090_s8 + $0x8] sm:$0xff] %v1795_v43  ;;  %v3126_v0 = vadd.f32 %v3125_v28, %v11866_v2  ;;  %v5122_v38 = vadd.f32 %v9719_v41, %v9717_v34 }
0x1edf   :  { %v3127_v26 = vsub.f32 %v11808_v61, %v3126_v0  ;;  %v3128_v53 = vsub.f32 %v11812_v9, %v3126_v0  ;;  %v5791_v22 = vpop.xlane.xlu1 %5790  ;;  %3789 = vadd.xlane.f32.xlu0 %v3788_v31 }
0x1ee0   :  { %9722 = vlog2.f32 %v5791_v22 }
0x1ee1   :  { %6551 = vst [vmem:[%s10090_s8 + $0x20] sm:$0xff] %v3127_v26  ;;  %6552 = vst [vmem:[%s10090_s8 + $0x28] sm:$0xff] %v3128_v53 }
0x1ee2   :  { %v9721_v16 = vpop.eup %9720 }
0x1ee3   :  { %v4459_v5 = vmul.f32 0.6931472, %v9721_v16  ;;  %5123 = vadd.xlane.f32.xlu0 %v5122_v38 }
0x1ee5   :  { %v4460_v2 = vadd.f32 %v4459_v5, %v11874_v47 }
0x1ee7   :  { %v4461_v63 = vsub.f32 %v11828_v27, %v4460_v2  ;;  %v4462_v62 = vsub.f32 %v11832_v52, %v4460_v2 }
0x1ee9   :  { %6571 = vst [vmem:[%s10090_s8 + $0x40] sm:$0xff] %v4461_v63  ;;  %6572 = vst [vmem:[%s10090_s8 + $0x48] sm:$0xff] %v4462_v62 }
0x1eea   :  { %v9723_v61 = vpop.eup %9722 }
0x1eeb   :  { %v5793_v9 = vmul.f32 0.6931472, %v9723_v61 }
0x1eed   :  { %v5794_v59 = vadd.f32 %v5793_v9, %v11882_v29 }
0x1eef   :  { %v5795_v8 = vsub.f32 %v11848_v46, %v5794_v59  ;;  %v5796_v60 = vsub.f32 %v11852_v19, %v5794_v59 }
0x1ef1   :  { %6591 = vst [vmem:[%s10090_s8 + $0x60] sm:$0xff] %v5795_v8  ;;  %6592 = vst [vmem:[%s10090_s8 + $0x68] sm:$0xff] %v5796_v60 }
0x1f64   :  { %v6449_v13 = vpop.xlane.xlu0 %6448 }
0x1f65   :  { %v6450_v37 = vsub.f32 %v11903_v18, %v6449_v13  ;;  %v6451_v47 = vsub.f32 %v11906_v15, %v6449_v13 }
0x1f67   :  { %v6452_v27 = vmul.f32 1.442695, %v6450_v37  ;;  %v6454_v42 = vmul.f32 1.442695, %v6451_v47 }
0x1f68   :  { %v2456_v52 = vpop.xlane.xlu0 %2455 }
0x1f69   :  { %9724 = vpow2.f32 %v6452_v27 }
0x1f6a   :  { %9726 = vpow2.f32 %v6454_v42 }
0x1f6b   :  { %9728 = vlog2.f32 %v2456_v52 }
0x1f6c   :  { %v3790_v35 = vpop.xlane.xlu0 %3789 }
0x1f6d   :  { %9730 = vlog2.f32 %v3790_v35 }
0x1f70   :  { %v5124_v29 = vpop.xlane.xlu0 %5123 }
0x1f71   :  { %9732 = vlog2.f32 %v5124_v29 }
0x1f73   :  { %v9725_v46 = vpop.eup %9724 }
0x1f74   :  { %v9727_v19 = vpop.eup %9726 }
0x1f75   :  { %v9729_v36 = vpop.eup %9728  ;;  %v6456_v4 = vadd.f32 %v9727_v19, %v9725_v46 }
0x1f76   :  { %v2458_v20 = vmul.f32 0.6931472, %v9729_v36 }
0x1f77   :  { %v9731_v23 = vpop.eup %9730  ;;  %6457 = vadd.xlane.f32.xlu0 %v6456_v4 }
0x1f78   :  { %v2459_v6 = vadd.f32 %v2458_v20, %v11888_v51  ;;  %v3792_v1 = vmul.f32 0.6931472, %v9731_v23 }
0x1f7a   :  { %v2460_v49 = vsub.f32 %v11790_v10, %v2459_v6  ;;  %v2461_v24 = vsub.f32 %v11794_v11, %v2459_v6  ;;  %v3793_v12 = vadd.f32 %v3792_v1, %v11872_v40 }
0x1f7b   :  { %v9733_v58 = vpop.eup %9732 }
0x1f7c   :  { %6541 = vst [vmem:[%s10090_s8 + $0x10] sm:$0xff] %v2460_v49  ;;  %6542 = vst [vmem:[%s10090_s8 + $0x18] sm:$0xff] %v2461_v24  ;;  %v3794_v48 = vsub.f32 %v11818_v17, %v3793_v12  ;;  %v3795_v56 = vsub.f32 %v11822_v7, %v3793_v12  ;;  %v5126_v14 = vmul.f32 0.6931472, %v9733_v58 }
0x1f7e   :  { %6561 = vst [vmem:[%s10090_s8 + $0x30] sm:$0xff] %v3794_v48  ;;  %6562 = vst [vmem:[%s10090_s8 + $0x38] sm:$0xff] %v3795_v56  ;;  %v5127_v51 = vadd.f32 %v5126_v14, %v11880_v54 }
0x1f80   :  { %v5128_v10 = vsub.f32 %v11838_v30, %v5127_v51  ;;  %v5129_v11 = vsub.f32 %v11842_v39, %v5127_v51 }
0x1f82   :  { %6581 = vst [vmem:[%s10090_s8 + $0x50] sm:$0xff] %v5128_v10  ;;  %6582 = vst [vmem:[%s10090_s8 + $0x58] sm:$0xff] %v5129_v11 }
0x2004   :  { %v6458_v40 = vpop.xlane.xlu0 %6457 }
0x2005   :  { %9734 = vlog2.f32 %v6458_v40 }
0x200f   :  { %v9735_v33 = vpop.eup %9734 }
0x2010   :  { %v6460_v32 = vmul.f32 0.6931472, %v9735_v33 }
0x2012   :  { %v6461_v17 = vadd.f32 %v6460_v32, %v6449_v13 }
0x2014   :  { %v6462_v7 = vsub.f32 %v11903_v18, %v6461_v17  ;;  %v6463_v25 = vsub.f32 %v11906_v15, %v6461_v17 }
0x2016   :  { %6601 = vst [vmem:[%s10090_s8 + $0x70] sm:$0xff] %v6462_v7  ;;  %6602 = vst [vmem:[%s10090_s8 + $0x78] sm:$0xff] %v6463_v25 }
0x2017   :  { %6471 = vsyncpa [#allocation4], 1 }
0x2018   :  { %6472 = vsyncpa [#allocation6], 1 }
0x2019   :  { %6473 = vsyncpa [#allocation9], 1 }

</bundles_post_ra>
